<compile_context>
chip_gen: v6e
topology: v6e:2x2x1
jax: 0.10.0
libtpu: 0.0.40
codegen_flags: <defaults>
</compile_context>

<pallas_src>
import jax
import jax.numpy as jnp
import numpy as np
from jax.experimental import pallas as pl
from jax.experimental.pallas import tpu as pltpu

MAX_DEG = 8  # MFConv degree buckets; node degree is clamped to MAX_DEG


def _forward_math(x, a_rel, a_all, inv_deg, deg_mask, pool,
                  w_emb, b_emb, w_rgcn_cat, b_rgcn,
                  mf_w1_cat, mf_w2_cat, mf_b_cat, sel,
                  w_h1, b_h1, w_h2, b_h2):
    """Shared forward math.

    Arguments may be Pallas VMEM Refs (inside the kernel) or plain jnp arrays
    (pure-JAX reference path); only read-indexing is used, which has identical
    syntax and semantics for both. This guarantees kernel == reference math.
    """
    f32, bf16 = jnp.float32, jnp.bfloat16
    H = w_emb.shape[1]
    num_blocks = w_rgcn_cat.shape[0]
    n_rel = a_rel.shape[0]

    # node embedding (Linear); bf16 operands, f32 accumulation
    h = jnp.dot(x[...].astype(bf16), w_emb[...],
                preferred_element_type=f32) + b_emb[...]

    for blk in range(num_blocks):                            # static unrolled conv blocks
        # ---- ReLU -> RGCNConv (root + per-relation mean aggregation) ----
        h = jnp.maximum(h, 0.0)
        # single lane-dense fused projection: [N, H] @ [H, (R+1)*H]
        hw = jnp.dot(h.astype(bf16), w_rgcn_cat[blk], preferred_element_type=f32)
        out = hw[:, :H] + b_rgcn[blk]                        # root transform + bias
        hw_rel = hw[:, H:].astype(bf16)                      # one [N, R*H] cast per block
        for r in range(n_rel):
            # binary adjacency aggregation, then exact f32 1/in-degree row scale
            agg_r = jnp.dot(a_rel[r], hw_rel[:, r * H:(r + 1) * H],
                            preferred_element_type=f32)
            out = out + inv_deg[r] * agg_r

        # ---- ReLU -> MFConv (degree-bucketed weights, sum aggregation) ----
        h = jnp.maximum(out, 0.0)
        hb = h.astype(bf16)
        agg = jnp.dot(a_all[...], hb, preferred_element_type=f32)       # [N, H] neighbor sum
        # two lane-dense matmuls covering all D degree buckets at once: [N, D*H]
        y = (jnp.dot(hb, mf_w1_cat[blk], preferred_element_type=f32)
             + jnp.dot(agg.astype(bf16), mf_w2_cat[blk], preferred_element_type=f32)
             + mf_b_cat[blk])
        # degree-bucket select on the MXU: mask (VPU) then 0/1 selector matmul [D*H, H]
        h = jnp.dot((y * deg_mask[...]).astype(bf16), sel[...],
                    preferred_element_type=f32)

    # ---- global add-pool -> Linear -> ReLU -> Linear ----
    g = jnp.dot(pool[...], h.astype(bf16), preferred_element_type=f32)  # [B, H]
    g = jnp.maximum(
        jnp.dot(g.astype(bf16), w_h1[...], preferred_element_type=f32) + b_h1[...], 0.0)
    return jnp.dot(g.astype(bf16), w_h2[...], preferred_element_type=f32) + b_h2[...]


def gnn_kernel(x_ref, a_rel_ref, a_all_ref, inv_deg_ref, deg_mask_ref, pool_ref,
               w_emb_ref, b_emb_ref, w_rgcn_ref, b_rgcn_ref,
               mf_w1_ref, mf_w2_ref, mf_b_ref, sel_ref,
               w_h1_ref, b_h1_ref, w_h2_ref, b_h2_ref,
               out_ref):
    out_ref[...] = _forward_math(
        x_ref, a_rel_ref, a_all_ref, inv_deg_ref, deg_mask_ref, pool_ref,
        w_emb_ref, b_emb_ref, w_rgcn_ref, b_rgcn_ref,
        mf_w1_ref, mf_w2_ref, mf_b_ref, sel_ref,
        w_h1_ref, b_h1_ref, w_h2_ref, b_h2_ref)


def init_params(key, n_node_features, n_edge_features, n_hidden, n_output, num_blocks):
    ks = jax.random.split(key, 10)
    D = MAX_DEG + 1

    def w(k, shape, fan_in):
        return (jax.random.normal(k, shape, jnp.float32) / np.sqrt(fan_in)).astype(jnp.float32)

    return dict(
        w_emb=w(ks[0], (n_node_features, n_hidden), n_node_features),
        b_emb=jnp.zeros((1, n_hidden), jnp.float32),
        w_root=w(ks[1], (num_blocks, n_hidden, n_hidden), n_hidden),
        b_rgcn=jnp.zeros((num_blocks, 1, n_hidden), jnp.float32),
        w_rel=w(ks[2], (num_blocks, n_edge_features, n_hidden, n_hidden), n_hidden),
        mf_w1=w(ks[3], (num_blocks, D, n_hidden, n_hidden), n_hidden),
        mf_w2=w(ks[4], (num_blocks, D, n_hidden, n_hidden), n_hidden),
        mf_b=jnp.zeros((num_blocks, D, 1, n_hidden), jnp.float32),
        w_h1=w(ks[5], (n_hidden, n_hidden), n_hidden),
        b_h1=jnp.zeros((1, n_hidden), jnp.float32),
        w_h2=w(ks[6], (n_hidden, n_output), n_hidden),
        b_h2=jnp.zeros((1, n_output), jnp.float32),
    )


def fuse_params(params):
    """Wrapper-side weight fusion: concatenate relation / degree-bucket weights so the
    kernel's matmul outputs are lane-dense; cast matmul weights to bf16, keep biases f32."""
    bf16 = jnp.bfloat16
    w_root, w_rel = params["w_root"], params["w_rel"]
    nb, H, _ = w_root.shape
    R = w_rel.shape[1]
    D = params["mf_w1"].shape[1]

    # [nb, H, (R+1)*H] : [W_root | W_rel_0 | ... | W_rel_{R-1}]
    w_rgcn_cat = jnp.concatenate([w_root] + [w_rel[:, r] for r in range(R)],
                                 axis=-1).astype(bf16)
    # [nb, H, D*H] : degree buckets concatenated along lanes
    mf_w1_cat = jnp.transpose(params["mf_w1"], (0, 2, 1, 3)).reshape(nb, H, D * H).astype(bf16)
    mf_w2_cat = jnp.transpose(params["mf_w2"], (0, 2, 1, 3)).reshape(nb, H, D * H).astype(bf16)
    mf_b_cat = params["mf_b"].reshape(nb, D * H)[:, None, :]            # [nb, 1, D*H] f32
    # [D*H, H] vstack of identities: exact 0/1 in bf16 -> degree-select via MXU
    sel = jnp.tile(jnp.eye(H, dtype=jnp.float32), (D, 1)).astype(bf16)

    return dict(
        w_emb=params["w_emb"].astype(bf16), b_emb=params["b_emb"],
        w_rgcn_cat=w_rgcn_cat, b_rgcn=params["b_rgcn"],
        mf_w1_cat=mf_w1_cat, mf_w2_cat=mf_w2_cat, mf_b_cat=mf_b_cat, sel=sel,
        w_h1=params["w_h1"].astype(bf16), b_h1=params["b_h1"],
        w_h2=params["w_h2"].astype(bf16), b_h2=params["b_h2"],
    )


def build_dense_graph(x, edge_index, edge_attr, batch_idx, num_graphs, n_hidden):
    """Glue: convert sparse PyG-style graph tensors to dense operators.
    Adjacency stays binary (exact in bf16); mean normalization is an f32 row scale."""
    N = x.shape[0]
    R = edge_attr.shape[1]
    D = MAX_DEG + 1
    edge_type = jnp.argmax(edge_attr, axis=-1)                        # relation id per edge
    src, dst = edge_index[0], edge_index[1]
    a_rel_f32 = jnp.zeros((R, N, N), jnp.float32).at[edge_type, dst, src].set(1.0)
    deg_rel = jnp.sum(a_rel_f32, axis=2, keepdims=True)               # [R, N, 1] in-degree
    inv_deg = 1.0 / jnp.maximum(deg_rel, 1.0)                         # f32 mean normalization
    a_all_f32 = jnp.clip(jnp.sum(a_rel_f32, axis=0), 0.0, 1.0)        # [N, N]
    deg = jnp.sum(a_all_f32, axis=1).astype(jnp.int32)
    deg_oh = jax.nn.one_hot(jnp.minimum(deg, MAX_DEG), D, dtype=jnp.float32)
    deg_mask = jnp.repeat(deg_oh, n_hidden, axis=1)                   # [N, D*H] 0/1 mask
    pool = jax.nn.one_hot(batch_idx, num_graphs, dtype=jnp.float32).T.astype(jnp.bfloat16)
    return (a_rel_f32.astype(jnp.bfloat16), a_all_f32.astype(jnp.bfloat16),
            inv_deg, deg_mask, pool)


def gnn_forward(x, edge_index, edge_attr, batch_idx, params, num_graphs,
                graphs_per_tile=None):
    n_hidden = params["w_emb"].shape[1]
    n_output = params["w_h2"].shape[1]
    nb = params["w_root"].shape[0]
    N, F = x.shape
    R = edge_attr.shape[1]
    D = MAX_DEG + 1
    DH = D * n_hidden

    a_rel, a_all, inv_deg, deg_mask, pool = build_dense_graph(
        x, edge_index, edge_attr, batch_idx, num_graphs, n_hidden)
    fp = fuse_params(params)

    # ---- graph-tile grid: adjacency is block-diagonal per graph, so each grid step works
    # on one diagonal block; tiles are independent -> "parallel" (2nd TC on v7x, pipelined
    # DMA/compute overlap everywhere).
    if graphs_per_tile is None:
        graphs_per_tile = num_graphs
    assert num_graphs % graphs_per_tile == 0
    num_tiles = num_graphs // graphs_per_tile
    assert N % num_tiles == 0
    Nt = N // num_tiles
    Bt = graphs_per_tile
    assert Nt % 8 == 0 and Bt % 8 == 0, "tile sizes must respect the (8,128) layout"

    # host-side structural checks (inputs are concrete in this script)
    bi = np.asarray(batch_idx)
    assert np.all((bi // Bt) == (np.arange(N) // Nt)), \
        "graphs must occupy contiguous equal-size node ranges for graph-tile blocking"
    si, di = np.asarray(edge_index[0]), np.asarray(edge_index[1])
    assert np.all((si // Nt) == (di // Nt)), "edges must not cross graph tiles"

    inputs = (x, a_rel, a_all, inv_deg, deg_mask, pool,
              fp["w_emb"], fp["b_emb"], fp["w_rgcn_cat"], fp["b_rgcn"],
              fp["mf_w1_cat"], fp["mf_w2_cat"], fp["mf_b_cat"], fp["sel"],
              fp["w_h1"], fp["b_h1"], fp["w_h2"], fp["b_h2"])

    def resident(a):
        # weights: full block, constant index -> stay VMEM-resident across grid steps
        return pl.BlockSpec(a.shape, lambda t, _nd=a.ndim: (0,) * _nd)

    in_specs = [
        pl.BlockSpec((Nt, F), lambda t: (t, 0)),             # x
        pl.BlockSpec((R, Nt, Nt), lambda t: (0, t, t)),      # a_rel  (diagonal block)
        pl.BlockSpec((Nt, Nt), lambda t: (t, t)),            # a_all  (diagonal block)
        pl.BlockSpec((R, Nt, 1), lambda t: (0, t, 0)),       # inv_deg (f32 row scale)
        pl.BlockSpec((Nt, DH), lambda t: (t, 0)),            # deg_mask
        pl.BlockSpec((Bt, Nt), lambda t: (t, t)),            # pool   (diagonal block)
    ] + [resident(a) for a in inputs[6:]]
    out_specs = pl.BlockSpec((Bt, n_output), lambda t: (t, 0))

    out_shape = jax.ShapeDtypeStruct((num_graphs, n_output), jnp.float32)

    # advisory cost estimate so XLA schedules the custom call against the dense-graph build
    flops = int(
        2 * nb * (N * n_hidden * (R + 1) * n_hidden          # fused RGCN projection
                  + R * N * Nt * n_hidden                    # per-relation aggregation
                  + N * Nt * n_hidden                        # neighbor-sum aggregation
                  + 2 * N * n_hidden * DH                    # MFConv bucket matmuls
                  + N * DH * n_hidden)                       # degree-select matmul
        + 2 * (N * F * n_hidden                              # embedding
               + num_graphs * Nt * n_hidden                  # add-pool
               + num_graphs * n_hidden * n_hidden            # head MLP
               + num_graphs * n_hidden * n_output))
    in_bytes = sum(int(a.size) * jnp.dtype(a.dtype).itemsize for a in inputs)
    cost = pl.CostEstimate(flops=flops, transcendentals=0,
                           bytes_accessed=in_bytes + num_graphs * n_output * 4)

    # per-tile VMEM footprint (x2 for double-buffering) + headroom; under v7x's 64 MiB
    def nbytes(shape, dtype):
        return int(np.prod(shape)) * jnp.dtype(dtype).itemsize
    tile_bytes = (nbytes((Nt, F), x.dtype)
                  + nbytes((R, Nt, Nt), jnp.bfloat16)
                  + nbytes((Nt, Nt), jnp.bfloat16)
                  + nbytes((R, Nt, 1), jnp.float32)
                  + nbytes((Nt, DH), jnp.float32)
                  + nbytes((Bt, Nt), jnp.bfloat16)
                  + sum(int(a.size) * jnp.dtype(a.dtype).itemsize for a in inputs[6:])
                  + nbytes((Bt, n_output), jnp.float32))
    vmem_limit = int(min(max(2 * tile_bytes + (8 << 20), 16 << 20), 40 << 20))

    return pl.pallas_call(
        gnn_kernel,
        out_shape=out_shape,
        grid=(num_tiles,),
        in_specs=in_specs,
        out_specs=out_specs,
        compiler_params=pltpu.CompilerParams(
            dimension_semantics=("parallel",),
            vmem_limit_bytes=vmem_limit),
        cost_estimate=cost,
    )(*inputs)


def gnn_reference(x, edge_index, edge_attr, batch_idx, params, num_graphs):
    """Pure-JAX reference with identical math (same fused weights, same bf16 casts,
    same masked-selector degree select)."""
    n_hidden = params["w_emb"].shape[1]
    a_rel, a_all, inv_deg, deg_mask, pool = build_dense_graph(
        x, edge_index, edge_attr, batch_idx, num_graphs, n_hidden)
    fp = fuse_params(params)
    return _forward_math(x, a_rel, a_all, inv_deg, deg_mask, pool,
                         fp["w_emb"], fp["b_emb"], fp["w_rgcn_cat"], fp["b_rgcn"],
                         fp["mf_w1_cat"], fp["mf_w2_cat"], fp["mf_b_cat"], fp["sel"],
                         fp["w_h1"], fp["b_h1"], fp["w_h2"], fp["b_h2"])


if __name__ == "__main__":
    n_node_features = 8
    n_edge_features = 4
    n_hidden = 32
    n_output = 4
    num_convolution_blocks = 2

    # batch many graphs into one call: 32 graphs x 16 nodes = 512 node rows,
    # tiled into 2 graph-groups of 256 rows each (parallel grid axis).
    num_graphs = 32
    nodes_per_graph = 16
    edges_per_graph = 32
    graphs_per_tile = 16
    N = num_graphs * nodes_per_graph
    E = num_graphs * edges_per_graph

    key = jax.random.PRNGKey(0)
    k_x, k_src, k_dst, k_rel, k_par = jax.random.split(key, 5)

    x = jax.random.normal(k_x, (N, n_node_features), jnp.float32)

    # edges kept inside their own graph (block-diagonal adjacency)
    src_list, dst_list = [], []
    for g in range(num_graphs):
        base = g * nodes_per_graph
        s = jax.random.randint(jax.random.fold_in(k_src, g),
                               (edges_per_graph,), 0, nodes_per_graph) + base
        d = jax.random.randint(jax.random.fold_in(k_dst, g),
                               (edges_per_graph,), 0, nodes_per_graph) + base
        src_list.append(s)
        dst_list.append(d)
    edge_index = jnp.stack([jnp.concatenate(src_list), jnp.concatenate(dst_list)], axis=0)
    edge_rel = jax.random.randint(k_rel, (E,), 0, n_edge_features)
    edge_attr = jax.nn.one_hot(edge_rel, n_edge_features, dtype=jnp.float32)     # [E, R]
    batch_idx = jnp.repeat(jnp.arange(num_graphs, dtype=jnp.int32), nodes_per_graph)

    params = init_params(k_par, n_node_features, n_edge_features, n_hidden, n_output,
                         num_convolution_blocks)

    out = gnn_forward(x, edge_index, edge_attr, batch_idx, params, num_graphs,
                      graphs_per_tile=graphs_per_tile)
    out = jax.block_until_ready(out)

    ref = gnn_reference(x, edge_index, edge_attr, batch_idx, params, num_graphs)
    ref = jax.block_until_ready(ref)

    np.testing.assert_allclose(np.asarray(out), np.asarray(ref), rtol=1e-3, atol=1e-3)
    assert out.shape == (num_graphs, n_output)
    print("KERNEL_OK")
</pallas_src>

<mosaic_0001>
module attributes {stable_mosaic.version = 11 : i64} {
  func.func @gnn_kernel(%arg0: i32, %arg1: memref<256x8xf32, #tpu.memory_space<vmem>>, %arg2: memref<4x256x256xbf16, #tpu.memory_space<vmem>>, %arg3: memref<256x256xbf16, #tpu.memory_space<vmem>>, %arg4: memref<4x256x1xf32, #tpu.memory_space<vmem>>, %arg5: memref<256x288xf32, #tpu.memory_space<vmem>>, %arg6: memref<16x256xbf16, #tpu.memory_space<vmem>>, %arg7: memref<8x32xbf16, #tpu.memory_space<vmem>>, %arg8: memref<1x32xf32, #tpu.memory_space<vmem>>, %arg9: memref<2x32x160xbf16, #tpu.memory_space<vmem>>, %arg10: memref<2x1x32xf32, #tpu.memory_space<vmem>>, %arg11: memref<2x32x288xbf16, #tpu.memory_space<vmem>>, %arg12: memref<2x32x288xbf16, #tpu.memory_space<vmem>>, %arg13: memref<2x1x288xf32, #tpu.memory_space<vmem>>, %arg14: memref<288x32xbf16, #tpu.memory_space<vmem>>, %arg15: memref<32x32xbf16, #tpu.memory_space<vmem>>, %arg16: memref<1x32xf32, #tpu.memory_space<vmem>>, %arg17: memref<32x4xbf16, #tpu.memory_space<vmem>>, %arg18: memref<1x4xf32, #tpu.memory_space<vmem>>, %arg19: memref<16x4xf32, #tpu.memory_space<vmem>>) attributes {dimension_semantics = [#tpu.dimension_semantics<parallel>], iteration_bounds = array<i64: 2>, scalar_prefetch = 0 : i64, scratch_operands = 0 : i64, tpu.core_type = #tpu.core_type<tc>, window_params = [{transform_indices = @transform_0, window_bounds = array<i64: 256, 8>}, {transform_indices = @transform_1, window_bounds = array<i64: 4, 256, 256>}, {transform_indices = @transform_2, window_bounds = array<i64: 256, 256>}, {transform_indices = @transform_3, window_bounds = array<i64: 4, 256, 1>}, {transform_indices = @transform_4, window_bounds = array<i64: 256, 288>}, {transform_indices = @transform_5, window_bounds = array<i64: 16, 256>}, {pipeline_mode = #tpu.pipeline_mode<synchronous>, transform_indices = @transform_6, window_bounds = array<i64: 8, 32>}, {pipeline_mode = #tpu.pipeline_mode<synchronous>, transform_indices = @transform_7, window_bounds = array<i64: 1, 32>}, {pipeline_mode = #tpu.pipeline_mode<synchronous>, transform_indices = @transform_8, window_bounds = array<i64: 2, 32, 160>}, {pipeline_mode = #tpu.pipeline_mode<synchronous>, transform_indices = @transform_9, window_bounds = array<i64: 2, 1, 32>}, {pipeline_mode = #tpu.pipeline_mode<synchronous>, transform_indices = @transform_10, window_bounds = array<i64: 2, 32, 288>}, {pipeline_mode = #tpu.pipeline_mode<synchronous>, transform_indices = @transform_11, window_bounds = array<i64: 2, 32, 288>}, {pipeline_mode = #tpu.pipeline_mode<synchronous>, transform_indices = @transform_12, window_bounds = array<i64: 2, 1, 288>}, {pipeline_mode = #tpu.pipeline_mode<synchronous>, transform_indices = @transform_13, window_bounds = array<i64: 288, 32>}, {pipeline_mode = #tpu.pipeline_mode<synchronous>, transform_indices = @transform_14, window_bounds = array<i64: 32, 32>}, {pipeline_mode = #tpu.pipeline_mode<synchronous>, transform_indices = @transform_15, window_bounds = array<i64: 1, 32>}, {pipeline_mode = #tpu.pipeline_mode<synchronous>, transform_indices = @transform_16, window_bounds = array<i64: 32, 4>}, {pipeline_mode = #tpu.pipeline_mode<synchronous>, transform_indices = @transform_17, window_bounds = array<i64: 1, 4>}, {transform_indices = @transform_18, window_bounds = array<i64: 16, 4>}]} {
    %c0 = arith.constant 0 : index
    %c0_0 = arith.constant 0 : index
    %0 = vector.load %arg1[%c0, %c0_0] : memref<256x8xf32, #tpu.memory_space<vmem>>, vector<256x8xf32>
    %1 = arith.truncf %0 : vector<256x8xf32> to vector<256x8xbf16>
    %c0_1 = arith.constant 0 : index
    %c0_2 = arith.constant 0 : index
    %2 = vector.load %arg7[%c0_1, %c0_2] : memref<8x32xbf16, #tpu.memory_space<vmem>>, vector<8x32xbf16>
    %cst = arith.constant dense<0.000000e+00> : vector<256x32xf32>
    %3 = tpu.matmul %1, %2, %cst {dimension_numbers = #tpu.dot_dimension_numbers<[1], [0], [0], [1], [0, 0, 1, 1], [], []>} : vector<256x8xbf16>, vector<8x32xbf16>, vector<256x32xf32> -> vector<256x32xf32>
    %c0_3 = arith.constant 0 : index
    %c0_4 = arith.constant 0 : index
    %4 = vector.load %arg8[%c0_3, %c0_4] : memref<1x32xf32, #tpu.memory_space<vmem>>, vector<1x32xf32>
    %5 = vector.broadcast %4 : vector<1x32xf32> to vector<256x32xf32>
    %6 = arith.addf %3, %5 : vector<256x32xf32>
    %cst_5 = arith.constant 0.000000e+00 : f32
    %7 = vector.broadcast %cst_5 : f32 to vector<256x32xf32>
    %8 = arith.maximumf %6, %7 : vector<256x32xf32>
    %9 = arith.truncf %8 : vector<256x32xf32> to vector<256x32xbf16>
    %c0_6 = arith.constant 0 : index
    %c0_7 = arith.constant 0 : index
    %c0_8 = arith.constant 0 : index
    %10 = vector.load %arg9[%c0_6, %c0_7, %c0_8] : memref<2x32x160xbf16, #tpu.memory_space<vmem>>, vector<1x32x160xbf16>
    %11 = vector.shape_cast %10 : vector<1x32x160xbf16> to vector<32x160xbf16>
    %cst_9 = arith.constant dense<0.000000e+00> : vector<256x160xf32>
    %12 = tpu.matmul %9, %11, %cst_9 {dimension_numbers = #tpu.dot_dimension_numbers<[1], [0], [0], [1], [0, 0, 1, 1], [], []>} : vector<256x32xbf16>, vector<32x160xbf16>, vector<256x160xf32> -> vector<256x160xf32>
    %13 = vector.extract_strided_slice %12 {offsets = [0, 0], sizes = [256, 32], strides = [1, 1]} : vector<256x160xf32> to vector<256x32xf32>
    %c0_10 = arith.constant 0 : index
    %c0_11 = arith.constant 0 : index
    %c0_12 = arith.constant 0 : index
    %14 = vector.load %arg10[%c0_10, %c0_11, %c0_12] : memref<2x1x32xf32, #tpu.memory_space<vmem>>, vector<1x1x32xf32>
    %15 = vector.shape_cast %14 : vector<1x1x32xf32> to vector<1x32xf32>
    %16 = vector.broadcast %15 : vector<1x32xf32> to vector<256x32xf32>
    %17 = arith.addf %13, %16 : vector<256x32xf32>
    %18 = vector.extract_strided_slice %12 {offsets = [0, 32], sizes = [256, 128], strides = [1, 1]} : vector<256x160xf32> to vector<256x128xf32>
    %19 = arith.truncf %18 : vector<256x128xf32> to vector<256x128xbf16>
    %c0_13 = arith.constant 0 : index
    %c0_14 = arith.constant 0 : index
    %c0_15 = arith.constant 0 : index
    %20 = vector.load %arg2[%c0_13, %c0_14, %c0_15] : memref<4x256x256xbf16, #tpu.memory_space<vmem>>, vector<1x256x256xbf16>
    %21 = vector.shape_cast %20 : vector<1x256x256xbf16> to vector<256x256xbf16>
    %22 = vector.extract_strided_slice %19 {offsets = [0, 0], sizes = [256, 32], strides = [1, 1]} : vector<256x128xbf16> to vector<256x32xbf16>
    %cst_16 = arith.constant dense<0.000000e+00> : vector<256x32xf32>
    %23 = tpu.matmul %21, %22, %cst_16 {dimension_numbers = #tpu.dot_dimension_numbers<[1], [0], [0], [1], [0, 0, 1, 1], [], []>} : vector<256x256xbf16>, vector<256x32xbf16>, vector<256x32xf32> -> vector<256x32xf32>
    %c0_17 = arith.constant 0 : index
    %c0_18 = arith.constant 0 : index
    %c0_19 = arith.constant 0 : index
    %24 = vector.load %arg4[%c0_17, %c0_18, %c0_19] : memref<4x256x1xf32, #tpu.memory_space<vmem>>, vector<1x256x1xf32>
    %25 = vector.shape_cast %24 : vector<1x256x1xf32> to vector<256x1xf32>
    %26 = vector.broadcast %25 : vector<256x1xf32> to vector<256x32xf32>
    %27 = arith.mulf %26, %23 : vector<256x32xf32>
    %28 = arith.addf %17, %27 : vector<256x32xf32>
    %c1 = arith.constant 1 : index
    %c0_20 = arith.constant 0 : index
    %c0_21 = arith.constant 0 : index
    %29 = vector.load %arg2[%c1, %c0_20, %c0_21] : memref<4x256x256xbf16, #tpu.memory_space<vmem>>, vector<1x256x256xbf16>
    %30 = vector.shape_cast %29 : vector<1x256x256xbf16> to vector<256x256xbf16>
    %31 = vector.extract_strided_slice %19 {offsets = [0, 32], sizes = [256, 32], strides = [1, 1]} : vector<256x128xbf16> to vector<256x32xbf16>
    %cst_22 = arith.constant dense<0.000000e+00> : vector<256x32xf32>
    %32 = tpu.matmul %30, %31, %cst_22 {dimension_numbers = #tpu.dot_dimension_numbers<[1], [0], [0], [1], [0, 0, 1, 1], [], []>} : vector<256x256xbf16>, vector<256x32xbf16>, vector<256x32xf32> -> vector<256x32xf32>
    %c1_23 = arith.constant 1 : index
    %c0_24 = arith.constant 0 : index
    %c0_25 = arith.constant 0 : index
    %33 = vector.load %arg4[%c1_23, %c0_24, %c0_25] : memref<4x256x1xf32, #tpu.memory_space<vmem>>, vector<1x256x1xf32>
    %34 = vector.shape_cast %33 : vector<1x256x1xf32> to vector<256x1xf32>
    %35 = vector.broadcast %34 : vector<256x1xf32> to vector<256x32xf32>
    %36 = arith.mulf %35, %32 : vector<256x32xf32>
    %37 = arith.addf %28, %36 : vector<256x32xf32>
    %c2 = arith.constant 2 : index
    %c0_26 = arith.constant 0 : index
    %c0_27 = arith.constant 0 : index
    %38 = vector.load %arg2[%c2, %c0_26, %c0_27] : memref<4x256x256xbf16, #tpu.memory_space<vmem>>, vector<1x256x256xbf16>
    %39 = vector.shape_cast %38 : vector<1x256x256xbf16> to vector<256x256xbf16>
    %40 = vector.extract_strided_slice %19 {offsets = [0, 64], sizes = [256, 32], strides = [1, 1]} : vector<256x128xbf16> to vector<256x32xbf16>
    %cst_28 = arith.constant dense<0.000000e+00> : vector<256x32xf32>
    %41 = tpu.matmul %39, %40, %cst_28 {dimension_numbers = #tpu.dot_dimension_numbers<[1], [0], [0], [1], [0, 0, 1, 1], [], []>} : vector<256x256xbf16>, vector<256x32xbf16>, vector<256x32xf32> -> vector<256x32xf32>
    %c2_29 = arith.constant 2 : index
    %c0_30 = arith.constant 0 : index
    %c0_31 = arith.constant 0 : index
    %42 = vector.load %arg4[%c2_29, %c0_30, %c0_31] : memref<4x256x1xf32, #tpu.memory_space<vmem>>, vector<1x256x1xf32>
    %43 = vector.shape_cast %42 : vector<1x256x1xf32> to vector<256x1xf32>
    %44 = vector.broadcast %43 : vector<256x1xf32> to vector<256x32xf32>
    %45 = arith.mulf %44, %41 : vector<256x32xf32>
    %46 = arith.addf %37, %45 : vector<256x32xf32>
    %c3 = arith.constant 3 : index
    %c0_32 = arith.constant 0 : index
    %c0_33 = arith.constant 0 : index
    %47 = vector.load %arg2[%c3, %c0_32, %c0_33] : memref<4x256x256xbf16, #tpu.memory_space<vmem>>, vector<1x256x256xbf16>
    %48 = vector.shape_cast %47 : vector<1x256x256xbf16> to vector<256x256xbf16>
    %49 = vector.extract_strided_slice %19 {offsets = [0, 96], sizes = [256, 32], strides = [1, 1]} : vector<256x128xbf16> to vector<256x32xbf16>
    %cst_34 = arith.constant dense<0.000000e+00> : vector<256x32xf32>
    %50 = tpu.matmul %48, %49, %cst_34 {dimension_numbers = #tpu.dot_dimension_numbers<[1], [0], [0], [1], [0, 0, 1, 1], [], []>} : vector<256x256xbf16>, vector<256x32xbf16>, vector<256x32xf32> -> vector<256x32xf32>
    %c3_35 = arith.constant 3 : index
    %c0_36 = arith.constant 0 : index
    %c0_37 = arith.constant 0 : index
    %51 = vector.load %arg4[%c3_35, %c0_36, %c0_37] : memref<4x256x1xf32, #tpu.memory_space<vmem>>, vector<1x256x1xf32>
    %52 = vector.shape_cast %51 : vector<1x256x1xf32> to vector<256x1xf32>
    %53 = vector.broadcast %52 : vector<256x1xf32> to vector<256x32xf32>
    %54 = arith.mulf %53, %50 : vector<256x32xf32>
    %55 = arith.addf %46, %54 : vector<256x32xf32>
    %cst_38 = arith.constant 0.000000e+00 : f32
    %56 = vector.broadcast %cst_38 : f32 to vector<256x32xf32>
    %57 = arith.maximumf %55, %56 : vector<256x32xf32>
    %58 = arith.truncf %57 : vector<256x32xf32> to vector<256x32xbf16>
    %c0_39 = arith.constant 0 : index
    %c0_40 = arith.constant 0 : index
    %59 = vector.load %arg3[%c0_39, %c0_40] : memref<256x256xbf16, #tpu.memory_space<vmem>>, vector<256x256xbf16>
    %cst_41 = arith.constant dense<0.000000e+00> : vector<256x32xf32>
    %60 = tpu.matmul %59, %58, %cst_41 {dimension_numbers = #tpu.dot_dimension_numbers<[1], [0], [0], [1], [0, 0, 1, 1], [], []>} : vector<256x256xbf16>, vector<256x32xbf16>, vector<256x32xf32> -> vector<256x32xf32>
    %c0_42 = arith.constant 0 : index
    %c0_43 = arith.constant 0 : index
    %c0_44 = arith.constant 0 : index
    %61 = vector.load %arg11[%c0_42, %c0_43, %c0_44] : memref<2x32x288xbf16, #tpu.memory_space<vmem>>, vector<1x32x288xbf16>
    %62 = vector.shape_cast %61 : vector<1x32x288xbf16> to vector<32x288xbf16>
    %cst_45 = arith.constant dense<0.000000e+00> : vector<256x288xf32>
    %63 = tpu.matmul %58, %62, %cst_45 {dimension_numbers = #tpu.dot_dimension_numbers<[1], [0], [0], [1], [0, 0, 1, 1], [], []>} : vector<256x32xbf16>, vector<32x288xbf16>, vector<256x288xf32> -> vector<256x288xf32>
    %64 = arith.truncf %60 : vector<256x32xf32> to vector<256x32xbf16>
    %c0_46 = arith.constant 0 : index
    %c0_47 = arith.constant 0 : index
    %c0_48 = arith.constant 0 : index
    %65 = vector.load %arg12[%c0_46, %c0_47, %c0_48] : memref<2x32x288xbf16, #tpu.memory_space<vmem>>, vector<1x32x288xbf16>
    %66 = vector.shape_cast %65 : vector<1x32x288xbf16> to vector<32x288xbf16>
    %cst_49 = arith.constant dense<0.000000e+00> : vector<256x288xf32>
    %67 = tpu.matmul %64, %66, %cst_49 {dimension_numbers = #tpu.dot_dimension_numbers<[1], [0], [0], [1], [0, 0, 1, 1], [], []>} : vector<256x32xbf16>, vector<32x288xbf16>, vector<256x288xf32> -> vector<256x288xf32>
    %68 = arith.addf %63, %67 : vector<256x288xf32>
    %c0_50 = arith.constant 0 : index
    %c0_51 = arith.constant 0 : index
    %c0_52 = arith.constant 0 : index
    %69 = vector.load %arg13[%c0_50, %c0_51, %c0_52] : memref<2x1x288xf32, #tpu.memory_space<vmem>>, vector<1x1x288xf32>
    %70 = vector.shape_cast %69 : vector<1x1x288xf32> to vector<1x288xf32>
    %71 = vector.broadcast %70 : vector<1x288xf32> to vector<256x288xf32>
    %72 = arith.addf %68, %71 : vector<256x288xf32>
    %c0_53 = arith.constant 0 : index
    %c0_54 = arith.constant 0 : index
    %73 = vector.load %arg5[%c0_53, %c0_54] : memref<256x288xf32, #tpu.memory_space<vmem>>, vector<256x288xf32>
    %74 = arith.mulf %72, %73 : vector<256x288xf32>
    %75 = arith.truncf %74 : vector<256x288xf32> to vector<256x288xbf16>
    %c0_55 = arith.constant 0 : index
    %c0_56 = arith.constant 0 : index
    %76 = vector.load %arg14[%c0_55, %c0_56] : memref<288x32xbf16, #tpu.memory_space<vmem>>, vector<288x32xbf16>
    %cst_57 = arith.constant dense<0.000000e+00> : vector<256x32xf32>
    %77 = tpu.matmul %75, %76, %cst_57 {dimension_numbers = #tpu.dot_dimension_numbers<[1], [0], [0], [1], [0, 0, 1, 1], [], []>} : vector<256x288xbf16>, vector<288x32xbf16>, vector<256x32xf32> -> vector<256x32xf32>
    %cst_58 = arith.constant 0.000000e+00 : f32
    %78 = vector.broadcast %cst_58 : f32 to vector<256x32xf32>
    %79 = arith.maximumf %77, %78 : vector<256x32xf32>
    %80 = arith.truncf %79 : vector<256x32xf32> to vector<256x32xbf16>
    %c1_59 = arith.constant 1 : index
    %c0_60 = arith.constant 0 : index
    %c0_61 = arith.constant 0 : index
    %81 = vector.load %arg9[%c1_59, %c0_60, %c0_61] : memref<2x32x160xbf16, #tpu.memory_space<vmem>>, vector<1x32x160xbf16>
    %82 = vector.shape_cast %81 : vector<1x32x160xbf16> to vector<32x160xbf16>
    %cst_62 = arith.constant dense<0.000000e+00> : vector<256x160xf32>
    %83 = tpu.matmul %80, %82, %cst_62 {dimension_numbers = #tpu.dot_dimension_numbers<[1], [0], [0], [1], [0, 0, 1, 1], [], []>} : vector<256x32xbf16>, vector<32x160xbf16>, vector<256x160xf32> -> vector<256x160xf32>
    %84 = vector.extract_strided_slice %83 {offsets = [0, 0], sizes = [256, 32], strides = [1, 1]} : vector<256x160xf32> to vector<256x32xf32>
    %c1_63 = arith.constant 1 : index
    %c0_64 = arith.constant 0 : index
    %c0_65 = arith.constant 0 : index
    %85 = vector.load %arg10[%c1_63, %c0_64, %c0_65] : memref<2x1x32xf32, #tpu.memory_space<vmem>>, vector<1x1x32xf32>
    %86 = vector.shape_cast %85 : vector<1x1x32xf32> to vector<1x32xf32>
    %87 = vector.broadcast %86 : vector<1x32xf32> to vector<256x32xf32>
    %88 = arith.addf %84, %87 : vector<256x32xf32>
    %89 = vector.extract_strided_slice %83 {offsets = [0, 32], sizes = [256, 128], strides = [1, 1]} : vector<256x160xf32> to vector<256x128xf32>
    %90 = arith.truncf %89 : vector<256x128xf32> to vector<256x128xbf16>
    %c0_66 = arith.constant 0 : index
    %c0_67 = arith.constant 0 : index
    %c0_68 = arith.constant 0 : index
    %91 = vector.load %arg2[%c0_66, %c0_67, %c0_68] : memref<4x256x256xbf16, #tpu.memory_space<vmem>>, vector<1x256x256xbf16>
    %92 = vector.shape_cast %91 : vector<1x256x256xbf16> to vector<256x256xbf16>
    %93 = vector.extract_strided_slice %90 {offsets = [0, 0], sizes = [256, 32], strides = [1, 1]} : vector<256x128xbf16> to vector<256x32xbf16>
    %cst_69 = arith.constant dense<0.000000e+00> : vector<256x32xf32>
    %94 = tpu.matmul %92, %93, %cst_69 {dimension_numbers = #tpu.dot_dimension_numbers<[1], [0], [0], [1], [0, 0, 1, 1], [], []>} : vector<256x256xbf16>, vector<256x32xbf16>, vector<256x32xf32> -> vector<256x32xf32>
    %c0_70 = arith.constant 0 : index
    %c0_71 = arith.constant 0 : index
    %c0_72 = arith.constant 0 : index
    %95 = vector.load %arg4[%c0_70, %c0_71, %c0_72] : memref<4x256x1xf32, #tpu.memory_space<vmem>>, vector<1x256x1xf32>
    %96 = vector.shape_cast %95 : vector<1x256x1xf32> to vector<256x1xf32>
    %97 = vector.broadcast %96 : vector<256x1xf32> to vector<256x32xf32>
    %98 = arith.mulf %97, %94 : vector<256x32xf32>
    %99 = arith.addf %88, %98 : vector<256x32xf32>
    %c1_73 = arith.constant 1 : index
    %c0_74 = arith.constant 0 : index
    %c0_75 = arith.constant 0 : index
    %100 = vector.load %arg2[%c1_73, %c0_74, %c0_75] : memref<4x256x256xbf16, #tpu.memory_space<vmem>>, vector<1x256x256xbf16>
    %101 = vector.shape_cast %100 : vector<1x256x256xbf16> to vector<256x256xbf16>
    %102 = vector.extract_strided_slice %90 {offsets = [0, 32], sizes = [256, 32], strides = [1, 1]} : vector<256x128xbf16> to vector<256x32xbf16>
    %cst_76 = arith.constant dense<0.000000e+00> : vector<256x32xf32>
    %103 = tpu.matmul %101, %102, %cst_76 {dimension_numbers = #tpu.dot_dimension_numbers<[1], [0], [0], [1], [0, 0, 1, 1], [], []>} : vector<256x256xbf16>, vector<256x32xbf16>, vector<256x32xf32> -> vector<256x32xf32>
    %c1_77 = arith.constant 1 : index
    %c0_78 = arith.constant 0 : index
    %c0_79 = arith.constant 0 : index
    %104 = vector.load %arg4[%c1_77, %c0_78, %c0_79] : memref<4x256x1xf32, #tpu.memory_space<vmem>>, vector<1x256x1xf32>
    %105 = vector.shape_cast %104 : vector<1x256x1xf32> to vector<256x1xf32>
    %106 = vector.broadcast %105 : vector<256x1xf32> to vector<256x32xf32>
    %107 = arith.mulf %106, %103 : vector<256x32xf32>
    %108 = arith.addf %99, %107 : vector<256x32xf32>
    %c2_80 = arith.constant 2 : index
    %c0_81 = arith.constant 0 : index
    %c0_82 = arith.constant 0 : index
    %109 = vector.load %arg2[%c2_80, %c0_81, %c0_82] : memref<4x256x256xbf16, #tpu.memory_space<vmem>>, vector<1x256x256xbf16>
    %110 = vector.shape_cast %109 : vector<1x256x256xbf16> to vector<256x256xbf16>
    %111 = vector.extract_strided_slice %90 {offsets = [0, 64], sizes = [256, 32], strides = [1, 1]} : vector<256x128xbf16> to vector<256x32xbf16>
    %cst_83 = arith.constant dense<0.000000e+00> : vector<256x32xf32>
    %112 = tpu.matmul %110, %111, %cst_83 {dimension_numbers = #tpu.dot_dimension_numbers<[1], [0], [0], [1], [0, 0, 1, 1], [], []>} : vector<256x256xbf16>, vector<256x32xbf16>, vector<256x32xf32> -> vector<256x32xf32>
    %c2_84 = arith.constant 2 : index
    %c0_85 = arith.constant 0 : index
    %c0_86 = arith.constant 0 : index
    %113 = vector.load %arg4[%c2_84, %c0_85, %c0_86] : memref<4x256x1xf32, #tpu.memory_space<vmem>>, vector<1x256x1xf32>
    %114 = vector.shape_cast %113 : vector<1x256x1xf32> to vector<256x1xf32>
    %115 = vector.broadcast %114 : vector<256x1xf32> to vector<256x32xf32>
    %116 = arith.mulf %115, %112 : vector<256x32xf32>
    %117 = arith.addf %108, %116 : vector<256x32xf32>
    %c3_87 = arith.constant 3 : index
    %c0_88 = arith.constant 0 : index
    %c0_89 = arith.constant 0 : index
    %118 = vector.load %arg2[%c3_87, %c0_88, %c0_89] : memref<4x256x256xbf16, #tpu.memory_space<vmem>>, vector<1x256x256xbf16>
    %119 = vector.shape_cast %118 : vector<1x256x256xbf16> to vector<256x256xbf16>
    %120 = vector.extract_strided_slice %90 {offsets = [0, 96], sizes = [256, 32], strides = [1, 1]} : vector<256x128xbf16> to vector<256x32xbf16>
    %cst_90 = arith.constant dense<0.000000e+00> : vector<256x32xf32>
    %121 = tpu.matmul %119, %120, %cst_90 {dimension_numbers = #tpu.dot_dimension_numbers<[1], [0], [0], [1], [0, 0, 1, 1], [], []>} : vector<256x256xbf16>, vector<256x32xbf16>, vector<256x32xf32> -> vector<256x32xf32>
    %c3_91 = arith.constant 3 : index
    %c0_92 = arith.constant 0 : index
    %c0_93 = arith.constant 0 : index
    %122 = vector.load %arg4[%c3_91, %c0_92, %c0_93] : memref<4x256x1xf32, #tpu.memory_space<vmem>>, vector<1x256x1xf32>
    %123 = vector.shape_cast %122 : vector<1x256x1xf32> to vector<256x1xf32>
    %124 = vector.broadcast %123 : vector<256x1xf32> to vector<256x32xf32>
    %125 = arith.mulf %124, %121 : vector<256x32xf32>
    %126 = arith.addf %117, %125 : vector<256x32xf32>
    %cst_94 = arith.constant 0.000000e+00 : f32
    %127 = vector.broadcast %cst_94 : f32 to vector<256x32xf32>
    %128 = arith.maximumf %126, %127 : vector<256x32xf32>
    %129 = arith.truncf %128 : vector<256x32xf32> to vector<256x32xbf16>
    %c0_95 = arith.constant 0 : index
    %c0_96 = arith.constant 0 : index
    %130 = vector.load %arg3[%c0_95, %c0_96] : memref<256x256xbf16, #tpu.memory_space<vmem>>, vector<256x256xbf16>
    %cst_97 = arith.constant dense<0.000000e+00> : vector<256x32xf32>
    %131 = tpu.matmul %130, %129, %cst_97 {dimension_numbers = #tpu.dot_dimension_numbers<[1], [0], [0], [1], [0, 0, 1, 1], [], []>} : vector<256x256xbf16>, vector<256x32xbf16>, vector<256x32xf32> -> vector<256x32xf32>
    %c1_98 = arith.constant 1 : index
    %c0_99 = arith.constant 0 : index
    %c0_100 = arith.constant 0 : index
    %132 = vector.load %arg11[%c1_98, %c0_99, %c0_100] : memref<2x32x288xbf16, #tpu.memory_space<vmem>>, vector<1x32x288xbf16>
    %133 = vector.shape_cast %132 : vector<1x32x288xbf16> to vector<32x288xbf16>
    %cst_101 = arith.constant dense<0.000000e+00> : vector<256x288xf32>
    %134 = tpu.matmul %129, %133, %cst_101 {dimension_numbers = #tpu.dot_dimension_numbers<[1], [0], [0], [1], [0, 0, 1, 1], [], []>} : vector<256x32xbf16>, vector<32x288xbf16>, vector<256x288xf32> -> vector<256x288xf32>
    %135 = arith.truncf %131 : vector<256x32xf32> to vector<256x32xbf16>
    %c1_102 = arith.constant 1 : index
    %c0_103 = arith.constant 0 : index
    %c0_104 = arith.constant 0 : index
    %136 = vector.load %arg12[%c1_102, %c0_103, %c0_104] : memref<2x32x288xbf16, #tpu.memory_space<vmem>>, vector<1x32x288xbf16>
    %137 = vector.shape_cast %136 : vector<1x32x288xbf16> to vector<32x288xbf16>
    %cst_105 = arith.constant dense<0.000000e+00> : vector<256x288xf32>
    %138 = tpu.matmul %135, %137, %cst_105 {dimension_numbers = #tpu.dot_dimension_numbers<[1], [0], [0], [1], [0, 0, 1, 1], [], []>} : vector<256x32xbf16>, vector<32x288xbf16>, vector<256x288xf32> -> vector<256x288xf32>
    %139 = arith.addf %134, %138 : vector<256x288xf32>
    %c1_106 = arith.constant 1 : index
    %c0_107 = arith.constant 0 : index
    %c0_108 = arith.constant 0 : index
    %140 = vector.load %arg13[%c1_106, %c0_107, %c0_108] : memref<2x1x288xf32, #tpu.memory_space<vmem>>, vector<1x1x288xf32>
    %141 = vector.shape_cast %140 : vector<1x1x288xf32> to vector<1x288xf32>
    %142 = vector.broadcast %141 : vector<1x288xf32> to vector<256x288xf32>
    %143 = arith.addf %139, %142 : vector<256x288xf32>
    %c0_109 = arith.constant 0 : index
    %c0_110 = arith.constant 0 : index
    %144 = vector.load %arg5[%c0_109, %c0_110] : memref<256x288xf32, #tpu.memory_space<vmem>>, vector<256x288xf32>
    %145 = arith.mulf %143, %144 : vector<256x288xf32>
    %146 = arith.truncf %145 : vector<256x288xf32> to vector<256x288xbf16>
    %c0_111 = arith.constant 0 : index
    %c0_112 = arith.constant 0 : index
    %147 = vector.load %arg14[%c0_111, %c0_112] : memref<288x32xbf16, #tpu.memory_space<vmem>>, vector<288x32xbf16>
    %cst_113 = arith.constant dense<0.000000e+00> : vector<256x32xf32>
    %148 = tpu.matmul %146, %147, %cst_113 {dimension_numbers = #tpu.dot_dimension_numbers<[1], [0], [0], [1], [0, 0, 1, 1], [], []>} : vector<256x288xbf16>, vector<288x32xbf16>, vector<256x32xf32> -> vector<256x32xf32>
    %c0_114 = arith.constant 0 : index
    %c0_115 = arith.constant 0 : index
    %149 = vector.load %arg6[%c0_114, %c0_115] : memref<16x256xbf16, #tpu.memory_space<vmem>>, vector<16x256xbf16>
    %150 = arith.truncf %148 : vector<256x32xf32> to vector<256x32xbf16>
    %cst_116 = arith.constant dense<0.000000e+00> : vector<16x32xf32>
    %151 = tpu.matmul %149, %150, %cst_116 {dimension_numbers = #tpu.dot_dimension_numbers<[1], [0], [0], [1], [0, 0, 1, 1], [], []>} : vector<16x256xbf16>, vector<256x32xbf16>, vector<16x32xf32> -> vector<16x32xf32>
    %152 = arith.truncf %151 : vector<16x32xf32> to vector<16x32xbf16>
    %c0_117 = arith.constant 0 : index
    %c0_118 = arith.constant 0 : index
    %153 = vector.load %arg15[%c0_117, %c0_118] : memref<32x32xbf16, #tpu.memory_space<vmem>>, vector<32x32xbf16>
    %cst_119 = arith.constant dense<0.000000e+00> : vector<16x32xf32>
    %154 = tpu.matmul %152, %153, %cst_119 {dimension_numbers = #tpu.dot_dimension_numbers<[1], [0], [0], [1], [0, 0, 1, 1], [], []>} : vector<16x32xbf16>, vector<32x32xbf16>, vector<16x32xf32> -> vector<16x32xf32>
    %c0_120 = arith.constant 0 : index
    %c0_121 = arith.constant 0 : index
    %155 = vector.load %arg16[%c0_120, %c0_121] : memref<1x32xf32, #tpu.memory_space<vmem>>, vector<1x32xf32>
    %156 = vector.broadcast %155 : vector<1x32xf32> to vector<16x32xf32>
    %157 = arith.addf %154, %156 : vector<16x32xf32>
    %cst_122 = arith.constant 0.000000e+00 : f32
    %158 = vector.broadcast %cst_122 : f32 to vector<16x32xf32>
    %159 = arith.maximumf %157, %158 : vector<16x32xf32>
    %160 = arith.truncf %159 : vector<16x32xf32> to vector<16x32xbf16>
    %c0_123 = arith.constant 0 : index
    %c0_124 = arith.constant 0 : index
    %161 = vector.load %arg17[%c0_123, %c0_124] : memref<32x4xbf16, #tpu.memory_space<vmem>>, vector<32x4xbf16>
    %cst_125 = arith.constant dense<0.000000e+00> : vector<16x4xf32>
    %162 = tpu.matmul %160, %161, %cst_125 {dimension_numbers = #tpu.dot_dimension_numbers<[1], [0], [0], [1], [0, 0, 1, 1], [], []>} : vector<16x32xbf16>, vector<32x4xbf16>, vector<16x4xf32> -> vector<16x4xf32>
    %c0_126 = arith.constant 0 : index
    %c0_127 = arith.constant 0 : index
    %163 = vector.load %arg18[%c0_126, %c0_127] : memref<1x4xf32, #tpu.memory_space<vmem>>, vector<1x4xf32>
    %164 = vector.broadcast %163 : vector<1x4xf32> to vector<16x4xf32>
    %165 = arith.addf %162, %164 : vector<16x4xf32>
    %c0_128 = arith.constant 0 : index
    %c0_129 = arith.constant 0 : index
    %166 = vector.load %arg19[%c0_128, %c0_129] : memref<16x4xf32, #tpu.memory_space<vmem>>, vector<16x4xf32>
    tpu.vector_store %arg19[%c0_128, %c0_129], %165 {strides = array<i32>} : memref<16x4xf32, #tpu.memory_space<vmem>>, vector<16x4xf32>,
    return
  }
  func.func @transform_0(%arg0: i32) -> (i32, i32) {
    %c0_i32 = arith.constant 0 : i32
    %c0_i32_0 = arith.constant 0 : i32
    return %arg0, %c0_i32 : i32, i32
  }
  func.func @transform_1(%arg0: i32) -> (i32, i32, i32) {
    %c0_i32 = arith.constant 0 : i32
    %c0_i32_0 = arith.constant 0 : i32
    return %c0_i32, %arg0, %arg0 : i32, i32, i32
  }
  func.func @transform_2(%arg0: i32) -> (i32, i32) {
    %c0_i32 = arith.constant 0 : i32
    return %arg0, %arg0 : i32, i32
  }
  func.func @transform_3(%arg0: i32) -> (i32, i32, i32) {
    %c0_i32 = arith.constant 0 : i32
    %c0_i32_0 = arith.constant 0 : i32
    %c0_i32_1 = arith.constant 0 : i32
    return %c0_i32, %arg0, %c0_i32_0 : i32, i32, i32
  }
  func.func @transform_4(%arg0: i32) -> (i32, i32) {
    %c0_i32 = arith.constant 0 : i32
    %c0_i32_0 = arith.constant 0 : i32
    return %arg0, %c0_i32 : i32, i32
  }
  func.func @transform_5(%arg0: i32) -> (i32, i32) {
    %c0_i32 = arith.constant 0 : i32
    return %arg0, %arg0 : i32, i32
  }
  func.func @transform_6(%arg0: i32) -> (i32, i32) {
    %c0_i32 = arith.constant 0 : i32
    %c0_i32_0 = arith.constant 0 : i32
    %c0_i32_1 = arith.constant 0 : i32
    return %c0_i32, %c0_i32_0 : i32, i32
  }
  func.func @transform_7(%arg0: i32) -> (i32, i32) {
    %c0_i32 = arith.constant 0 : i32
    %c0_i32_0 = arith.constant 0 : i32
    %c0_i32_1 = arith.constant 0 : i32
    return %c0_i32, %c0_i32_0 : i32, i32
  }
  func.func @transform_8(%arg0: i32) -> (i32, i32, i32) {
    %c0_i32 = arith.constant 0 : i32
    %c0_i32_0 = arith.constant 0 : i32
    %c0_i32_1 = arith.constant 0 : i32
    %c0_i32_2 = arith.constant 0 : i32
    return %c0_i32, %c0_i32_0, %c0_i32_1 : i32, i32, i32
  }
  func.func @transform_9(%arg0: i32) -> (i32, i32, i32) {
    %c0_i32 = arith.constant 0 : i32
    %c0_i32_0 = arith.constant 0 : i32
    %c0_i32_1 = arith.constant 0 : i32
    %c0_i32_2 = arith.constant 0 : i32
    return %c0_i32, %c0_i32_0, %c0_i32_1 : i32, i32, i32
  }
  func.func @transform_10(%arg0: i32) -> (i32, i32, i32) {
    %c0_i32 = arith.constant 0 : i32
    %c0_i32_0 = arith.constant 0 : i32
    %c0_i32_1 = arith.constant 0 : i32
    %c0_i32_2 = arith.constant 0 : i32
    return %c0_i32, %c0_i32_0, %c0_i32_1 : i32, i32, i32
  }
  func.func @transform_11(%arg0: i32) -> (i32, i32, i32) {
    %c0_i32 = arith.constant 0 : i32
    %c0_i32_0 = arith.constant 0 : i32
    %c0_i32_1 = arith.constant 0 : i32
    %c0_i32_2 = arith.constant 0 : i32
    return %c0_i32, %c0_i32_0, %c0_i32_1 : i32, i32, i32
  }
  func.func @transform_12(%arg0: i32) -> (i32, i32, i32) {
    %c0_i32 = arith.constant 0 : i32
    %c0_i32_0 = arith.constant 0 : i32
    %c0_i32_1 = arith.constant 0 : i32
    %c0_i32_2 = arith.constant 0 : i32
    return %c0_i32, %c0_i32_0, %c0_i32_1 : i32, i32, i32
  }
  func.func @transform_13(%arg0: i32) -> (i32, i32) {
    %c0_i32 = arith.constant 0 : i32
    %c0_i32_0 = arith.constant 0 : i32
    %c0_i32_1 = arith.constant 0 : i32
    return %c0_i32, %c0_i32_0 : i32, i32
  }
  func.func @transform_14(%arg0: i32) -> (i32, i32) {
    %c0_i32 = arith.constant 0 : i32
    %c0_i32_0 = arith.constant 0 : i32
    %c0_i32_1 = arith.constant 0 : i32
    return %c0_i32, %c0_i32_0 : i32, i32
  }
  func.func @transform_15(%arg0: i32) -> (i32, i32) {
    %c0_i32 = arith.constant 0 : i32
    %c0_i32_0 = arith.constant 0 : i32
    %c0_i32_1 = arith.constant 0 : i32
    return %c0_i32, %c0_i32_0 : i32, i32
  }
  func.func @transform_16(%arg0: i32) -> (i32, i32) {
    %c0_i32 = arith.constant 0 : i32
    %c0_i32_0 = arith.constant 0 : i32
    %c0_i32_1 = arith.constant 0 : i32
    return %c0_i32, %c0_i32_0 : i32, i32
  }
  func.func @transform_17(%arg0: i32) -> (i32, i32) {
    %c0_i32 = arith.constant 0 : i32
    %c0_i32_0 = arith.constant 0 : i32
    %c0_i32_1 = arith.constant 0 : i32
    return %c0_i32, %c0_i32_0 : i32, i32
  }
  func.func @transform_18(%arg0: i32) -> (i32, i32) {
    %c0_i32 = arith.constant 0 : i32
    %c0_i32_0 = arith.constant 0 : i32
    return %arg0, %c0_i32 : i32, i32
  }
}

</mosaic_0001>

<bundles_post_ra>
// kernel: tpu_custom_call.1
= control target key start
LH: loop header
LB: loop body
LE: loop exit
PB: predicated region body
PF: predicated region fallthrough
CT: control target
= control target key end

     0   :  { %s18662_s0 = inlined_call_operand.vmem [shape: f32[512,8], index: 0, kind: input, shape index: {}]   ;;  %s18663_s1 = inlined_call_operand.vmem [shape: bf16[4,512,512], index: 1, kind: input, shape index: {}]   ;;  %s18664_s2 = inlined_call_operand.vmem [shape: bf16[512,512], index: 2, kind: input, shape index: {}]   ;;  %s18665_s3 = inlined_call_operand.vmem [shape: f32[4,512,1], index: 3, kind: input, shape index: {}]   ;;  %s18666_s4 = inlined_call_operand.vmem [shape: f32[512,288], index: 4, kind: input, shape index: {}]   ;;  %s18667_s5 = inlined_call_operand.vmem [shape: bf16[32,512], index: 5, kind: input, shape index: {}]   ;;  %s18668_s6 = inlined_call_operand.vmem [shape: bf16[8,32], index: 6, kind: input, shape index: {}]   ;;  %s18669_s7 = inlined_call_operand.vmem [shape: f32[1,32], index: 7, kind: input, shape index: {}]   ;;  %s18670_s8 = inlined_call_operand.vmem [shape: bf16[2,32,160], index: 8, kind: input, shape index: {}]   ;;  %s18671_s9 = inlined_call_operand.vmem [shape: f32[2,1,32], index: 9, kind: input, shape index: {}]   ;;  %s18672_s10 = inlined_call_operand.vmem [shape: bf16[2,32,288], index: 10, kind: input, shape index: {}]   ;;  %s18673_s11 = inlined_call_operand.vmem [shape: bf16[2,32,288], index: 11, kind: input, shape index: {}]   ;;  %s18674_s12 = inlined_call_operand.vmem [shape: f32[2,1,288], index: 12, kind: input, shape index: {}]   ;;  %s18675_s13 = inlined_call_operand.vmem [shape: bf16[288,32], index: 13, kind: input, shape index: {}]   ;;  %s18676_s14 = inlined_call_operand.vmem [shape: bf16[32,32], index: 14, kind: input, shape index: {}]   ;;  %s18677_s15 = inlined_call_operand.vmem [shape: f32[1,32], index: 15, kind: input, shape index: {}]   ;;  %s18678_s16 = inlined_call_operand.vmem [shape: bf16[32,4], index: 16, kind: input, shape index: {}]   ;;  %s18679_s17 = inlined_call_operand.vmem [shape: f32[1,4], index: 17, kind: input, shape index: {}]   ;;  %s18680_s18 = inlined_call_operand.vmem [shape: f32[32,4], index: 18, kind: output, shape index: {}]  }
   0x1   :  { %18876 = sst [smem:[#allocation198_spill]] %s18662_s0 }
   0x2   :  { %18877 = sst [smem:[#allocation199_spill]] %s18663_s1 }
   0x3   :  { %18878 = sst [smem:[#allocation200_spill]] %s18664_s2 }
   0x4   :  { %18879 = sst [smem:[#allocation201_spill]] %s18677_s15 }
   0x5   :  { %18880 = sst [smem:[#allocation202_spill]] %s18678_s16 }
   0x6   :  { %18881 = sst [smem:[#allocation203_spill]] %s18679_s17 }
   0x7   :  { %18882 = sst [smem:[#allocation204_spill]] %s18680_s18 }
   0x8   :  { %s14188_s27 = smov 0   ;;  %s14190_s28 = smov 0  }
   0x9   :  { %s14192_s29 = smov 0   ;;  %s14194_s30 = smov 0  }
   0xa   :  { %s14196_s0 = smov 0  }
   0xb LB: > { %s14215_s1 = sadd.s32 1, %s14085_s0   ;;  %s63_s21 = sadd.s32 1, %s14081_s30  ;;  %s14085_s0 = sphi %s14196_s0, %s19594_s0   ;;  %s14081_s30 = sphi %s14194_s30, %s19600_s30   ;;  %s14077_s29 = sphi %s14192_s29, %s19599_s29   ;;  %s14073_s28 = sphi %s14190_s28, %s19598_s28   ;;  %s14069_s27 = sphi %s14188_s27, %s19597_s27  }
   0xc   : > { %18883 = sst [smem:[#allocation6_spill]] %s14215_s1  ;;  %s58_s20 = ssub.s32 %s14085_s0, %s14215_s1 }
   0xd   : > { %s60_s22 = sor.u32 %s58_s20, %s58_s20  ;;  %p70_p0 = scmp.ne.s32.totalorder %s14081_s30, %s14077_s29 }
   0xe   : > { %p61_p1 = scmp.eq.s32.totalorder %s60_s22, 0  ;;  %p71_p2 = scmp.eq.s32.totalorder %s14085_s0, 0 }
   0xf   : > { %p115_p3 = scmp.eq.s32.totalorder %s58_s20, 0  ;;  %s117_s2 = sadd.s32 1, %s14073_s28 }
  0x10   : > { %s14225_s23 = scalar_select %p61_p1, %s14081_s30, %s63_s21  }
  0x11   : > { %p14227_p4 = por %p71_p2, %p70_p0  ;;  %p124_p5 = scmp.ne.s32.totalorder %s14073_s28, %s14069_s27 }
  0x12   : > { %18884 = sst [smem:[#allocation7_spill]] %s14225_s23  ;;  %p10967_p7 = scmp.ge.s32.totalorder %s14085_s0, 2 }
  0x13   : > { %s14234_s25 = scalar_select %p115_p3, %s14073_s28, %s117_s2  }
  0x14   : > { %p14236_p6 = por %p124_p5, %p71_p2  ;;  %518 = sbr.rel (%p10967_p7) target bundleno = 201 (0xc9), region = 64 }
  0x15   : > { %18886 = sst [smem:[#allocation8_spill]] %s14234_s25 }
  0x19   : > { %530 = sbr.rel (!%p14227_p4) target bundleno = 99 (0x63), region = 72  ;;  %s532_s20 = sand.u32 (%p14227_p4), 1, %s14081_s30  }
  0x1a   : > { %s10970_s21 = sshll.u32 (%p14227_p4), %s14085_s0, 1  ;;  %s10968_s22 = sshll.u32 (%p14227_p4), %s532_s20, 10 }
  0x1b   : > { %s11644_s19 = sshll.u32 (%p14227_p4), %s14085_s0, 7  ;;  %s18888_s18 = sld [smem:[#allocation199_spill]] (%p14227_p4) }
  0x1c   : > { %s538_s23 = sadd.s32 (%p14227_p4), %s11644_s19, %s10970_s21  ;;  %s14254_s20 = scalar_lea.vmem (%p14227_p4), [#allocation2], %s10968_s22 }
  0x1d   : > { %s10972_s2 = sshll.u32 (%p14227_p4), %s538_s23, 2 }
  0x21   : > { %s14249_s17 = scalar_lea.vmem %s18888_s18, %s10972_s2 }
  0x22   : > { %v823_v0 = vld [vmem:[%s14249_s17] sm:$0xff]  ;;  %v825_v1 = vld [vmem:[%s14249_s17 + $0x10] sm:$0xff] }
  0x23   : > { %v827_v2 = vld [vmem:[%s14249_s17 + $0x20] sm:$0xff]  ;;  %824 = vst [vmem:[%s14254_s20] sm:$0xff] %v823_v0  ;;  %826 = vst [vmem:[%s14254_s20 + $0x8] sm:$0xff] %v825_v1  ;;  %v829_v3 = vld [vmem:[%s14249_s17 + $0x30] sm:$0xff] }
  0x24   : > { %828 = vst [vmem:[%s14254_s20 + $0x10] sm:$0xff] %v827_v2  ;;  %v831_v4 = vld [vmem:[%s14249_s17 + $0x40] sm:$0xff]  ;;  %v833_v5 = vld [vmem:[%s14249_s17 + $0x50] sm:$0xff]  ;;  %830 = vst [vmem:[%s14254_s20 + $0x18] sm:$0xff] %v829_v3 }
  0x25   : > { %832 = vst [vmem:[%s14254_s20 + $0x20] sm:$0xff] %v831_v4  ;;  %834 = vst [vmem:[%s14254_s20 + $0x28] sm:$0xff] %v833_v5  ;;  %v835_v6 = vld [vmem:[%s14249_s17 + $0x60] sm:$0xff]  ;;  %v837_v7 = vld [vmem:[%s14249_s17 + $0x70] sm:$0xff] }
  0x26   : > { %v839_v8 = vld [vmem:[%s14249_s17 + $0x80] sm:$0xff]  ;;  %836 = vst [vmem:[%s14254_s20 + $0x30] sm:$0xff] %v835_v6  ;;  %838 = vst [vmem:[%s14254_s20 + $0x38] sm:$0xff] %v837_v7  ;;  %v841_v9 = vld [vmem:[%s14249_s17 + $0x90] sm:$0xff] }
  0x27   : > { %840 = vst [vmem:[%s14254_s20 + $0x40] sm:$0xff] %v839_v8  ;;  %v843_v10 = vld [vmem:[%s14249_s17 + $0xa0] sm:$0xff]  ;;  %v845_v11 = vld [vmem:[%s14249_s17 + $0xb0] sm:$0xff]  ;;  %842 = vst [vmem:[%s14254_s20 + $0x48] sm:$0xff] %v841_v9 }
  0x28   : > { %844 = vst [vmem:[%s14254_s20 + $0x50] sm:$0xff] %v843_v10  ;;  %846 = vst [vmem:[%s14254_s20 + $0x58] sm:$0xff] %v845_v11  ;;  %v847_v12 = vld [vmem:[%s14249_s17 + $0xc0] sm:$0xff]  ;;  %v849_v13 = vld [vmem:[%s14249_s17 + $0xd0] sm:$0xff] }
  0x29   : > { %v851_v14 = vld [vmem:[%s14249_s17 + $0xe0] sm:$0xff]  ;;  %848 = vst [vmem:[%s14254_s20 + $0x60] sm:$0xff] %v847_v12  ;;  %850 = vst [vmem:[%s14254_s20 + $0x68] sm:$0xff] %v849_v13  ;;  %v853_v15 = vld [vmem:[%s14249_s17 + $0xf0] sm:$0xff] }
  0x2a   : > { %852 = vst [vmem:[%s14254_s20 + $0x70] sm:$0xff] %v851_v14  ;;  %v855_v16 = vld [vmem:[%s14249_s17 + $0x100] sm:$0xff]  ;;  %v857_v17 = vld [vmem:[%s14249_s17 + $0x110] sm:$0xff]  ;;  %854 = vst [vmem:[%s14254_s20 + $0x78] sm:$0xff] %v853_v15 }
  0x2b   : > { %856 = vst [vmem:[%s14254_s20 + $0x80] sm:$0xff] %v855_v16  ;;  %858 = vst [vmem:[%s14254_s20 + $0x88] sm:$0xff] %v857_v17  ;;  %v859_v18 = vld [vmem:[%s14249_s17 + $0x120] sm:$0xff]  ;;  %v861_v19 = vld [vmem:[%s14249_s17 + $0x130] sm:$0xff] }
  0x2c   : > { %v863_v20 = vld [vmem:[%s14249_s17 + $0x140] sm:$0xff]  ;;  %860 = vst [vmem:[%s14254_s20 + $0x90] sm:$0xff] %v859_v18  ;;  %862 = vst [vmem:[%s14254_s20 + $0x98] sm:$0xff] %v861_v19  ;;  %v865_v21 = vld [vmem:[%s14249_s17 + $0x150] sm:$0xff] }
  0x2d   : > { %864 = vst [vmem:[%s14254_s20 + $0xa0] sm:$0xff] %v863_v20  ;;  %v867_v22 = vld [vmem:[%s14249_s17 + $0x160] sm:$0xff]  ;;  %v869_v23 = vld [vmem:[%s14249_s17 + $0x170] sm:$0xff]  ;;  %866 = vst [vmem:[%s14254_s20 + $0xa8] sm:$0xff] %v865_v21 }
  0x2e   : > { %868 = vst [vmem:[%s14254_s20 + $0xb0] sm:$0xff] %v867_v22  ;;  %870 = vst [vmem:[%s14254_s20 + $0xb8] sm:$0xff] %v869_v23  ;;  %v871_v24 = vld [vmem:[%s14249_s17 + $0x180] sm:$0xff]  ;;  %v873_v25 = vld [vmem:[%s14249_s17 + $0x190] sm:$0xff] }
  0x2f   : > { %v875_v26 = vld [vmem:[%s14249_s17 + $0x1a0] sm:$0xff]  ;;  %872 = vst [vmem:[%s14254_s20 + $0xc0] sm:$0xff] %v871_v24  ;;  %874 = vst [vmem:[%s14254_s20 + $0xc8] sm:$0xff] %v873_v25  ;;  %v877_v27 = vld [vmem:[%s14249_s17 + $0x1b0] sm:$0xff] }
  0x30   : > { %876 = vst [vmem:[%s14254_s20 + $0xd0] sm:$0xff] %v875_v26  ;;  %v879_v28 = vld [vmem:[%s14249_s17 + $0x1c0] sm:$0xff]  ;;  %v881_v29 = vld [vmem:[%s14249_s17 + $0x1d0] sm:$0xff]  ;;  %878 = vst [vmem:[%s14254_s20 + $0xd8] sm:$0xff] %v877_v27 }
  0x31   : > { %880 = vst [vmem:[%s14254_s20 + $0xe0] sm:$0xff] %v879_v28  ;;  %882 = vst [vmem:[%s14254_s20 + $0xe8] sm:$0xff] %v881_v29  ;;  %v883_v30 = vld [vmem:[%s14249_s17 + $0x1e0] sm:$0xff]  ;;  %v885_v31 = vld [vmem:[%s14249_s17 + $0x1f0] sm:$0xff] }
  0x32   : > { %v887_v32 = vld [vmem:[%s14249_s17 + $0x400] sm:$0xff]  ;;  %884 = vst [vmem:[%s14254_s20 + $0xf0] sm:$0xff] %v883_v30  ;;  %886 = vst [vmem:[%s14254_s20 + $0xf8] sm:$0xff] %v885_v31  ;;  %v889_v33 = vld [vmem:[%s14249_s17 + $0x410] sm:$0xff] }
  0x33   : > { %888 = vst [vmem:[%s14254_s20 + $0x100] sm:$0xff] %v887_v32  ;;  %v891_v34 = vld [vmem:[%s14249_s17 + $0x420] sm:$0xff]  ;;  %v893_v35 = vld [vmem:[%s14249_s17 + $0x430] sm:$0xff]  ;;  %890 = vst [vmem:[%s14254_s20 + $0x108] sm:$0xff] %v889_v33 }
  0x34   : > { %892 = vst [vmem:[%s14254_s20 + $0x110] sm:$0xff] %v891_v34  ;;  %894 = vst [vmem:[%s14254_s20 + $0x118] sm:$0xff] %v893_v35  ;;  %v895_v36 = vld [vmem:[%s14249_s17 + $0x440] sm:$0xff]  ;;  %v897_v37 = vld [vmem:[%s14249_s17 + $0x450] sm:$0xff] }
  0x35   : > { %v899_v38 = vld [vmem:[%s14249_s17 + $0x460] sm:$0xff]  ;;  %896 = vst [vmem:[%s14254_s20 + $0x120] sm:$0xff] %v895_v36  ;;  %898 = vst [vmem:[%s14254_s20 + $0x128] sm:$0xff] %v897_v37  ;;  %v901_v39 = vld [vmem:[%s14249_s17 + $0x470] sm:$0xff] }
  0x36   : > { %900 = vst [vmem:[%s14254_s20 + $0x130] sm:$0xff] %v899_v38  ;;  %v903_v40 = vld [vmem:[%s14249_s17 + $0x480] sm:$0xff]  ;;  %v905_v41 = vld [vmem:[%s14249_s17 + $0x490] sm:$0xff]  ;;  %902 = vst [vmem:[%s14254_s20 + $0x138] sm:$0xff] %v901_v39 }
  0x37   : > { %904 = vst [vmem:[%s14254_s20 + $0x140] sm:$0xff] %v903_v40  ;;  %906 = vst [vmem:[%s14254_s20 + $0x148] sm:$0xff] %v905_v41  ;;  %v907_v42 = vld [vmem:[%s14249_s17 + $0x4a0] sm:$0xff]  ;;  %v909_v43 = vld [vmem:[%s14249_s17 + $0x4b0] sm:$0xff] }
  0x38   : > { %v911_v44 = vld [vmem:[%s14249_s17 + $0x4c0] sm:$0xff]  ;;  %908 = vst [vmem:[%s14254_s20 + $0x150] sm:$0xff] %v907_v42  ;;  %910 = vst [vmem:[%s14254_s20 + $0x158] sm:$0xff] %v909_v43  ;;  %v913_v45 = vld [vmem:[%s14249_s17 + $0x4d0] sm:$0xff] }
  0x39   : > { %912 = vst [vmem:[%s14254_s20 + $0x160] sm:$0xff] %v911_v44  ;;  %v915_v46 = vld [vmem:[%s14249_s17 + $0x4e0] sm:$0xff]  ;;  %v917_v47 = vld [vmem:[%s14249_s17 + $0x4f0] sm:$0xff]  ;;  %914 = vst [vmem:[%s14254_s20 + $0x168] sm:$0xff] %v913_v45 }
  0x3a   : > { %916 = vst [vmem:[%s14254_s20 + $0x170] sm:$0xff] %v915_v46  ;;  %918 = vst [vmem:[%s14254_s20 + $0x178] sm:$0xff] %v917_v47  ;;  %v919_v48 = vld [vmem:[%s14249_s17 + $0x500] sm:$0xff]  ;;  %v921_v49 = vld [vmem:[%s14249_s17 + $0x510] sm:$0xff] }
  0x3b   : > { %v923_v50 = vld [vmem:[%s14249_s17 + $0x520] sm:$0xff]  ;;  %920 = vst [vmem:[%s14254_s20 + $0x180] sm:$0xff] %v919_v48  ;;  %922 = vst [vmem:[%s14254_s20 + $0x188] sm:$0xff] %v921_v49  ;;  %v925_v51 = vld [vmem:[%s14249_s17 + $0x530] sm:$0xff] }
  0x3c   : > { %924 = vst [vmem:[%s14254_s20 + $0x190] sm:$0xff] %v923_v50  ;;  %v927_v52 = vld [vmem:[%s14249_s17 + $0x540] sm:$0xff]  ;;  %v929_v53 = vld [vmem:[%s14249_s17 + $0x550] sm:$0xff]  ;;  %926 = vst [vmem:[%s14254_s20 + $0x198] sm:$0xff] %v925_v51 }
  0x3d   : > { %928 = vst [vmem:[%s14254_s20 + $0x1a0] sm:$0xff] %v927_v52  ;;  %930 = vst [vmem:[%s14254_s20 + $0x1a8] sm:$0xff] %v929_v53  ;;  %v931_v54 = vld [vmem:[%s14249_s17 + $0x560] sm:$0xff]  ;;  %v933_v55 = vld [vmem:[%s14249_s17 + $0x570] sm:$0xff] }
  0x3e   : > { %v935_v56 = vld [vmem:[%s14249_s17 + $0x580] sm:$0xff]  ;;  %932 = vst [vmem:[%s14254_s20 + $0x1b0] sm:$0xff] %v931_v54  ;;  %934 = vst [vmem:[%s14254_s20 + $0x1b8] sm:$0xff] %v933_v55  ;;  %v937_v57 = vld [vmem:[%s14249_s17 + $0x590] sm:$0xff] }
  0x3f   : > { %936 = vst [vmem:[%s14254_s20 + $0x1c0] sm:$0xff] %v935_v56  ;;  %v939_v58 = vld [vmem:[%s14249_s17 + $0x5a0] sm:$0xff]  ;;  %v941_v59 = vld [vmem:[%s14249_s17 + $0x5b0] sm:$0xff]  ;;  %938 = vst [vmem:[%s14254_s20 + $0x1c8] sm:$0xff] %v937_v57 }
  0x40   : > { %940 = vst [vmem:[%s14254_s20 + $0x1d0] sm:$0xff] %v939_v58  ;;  %942 = vst [vmem:[%s14254_s20 + $0x1d8] sm:$0xff] %v941_v59  ;;  %v943_v60 = vld [vmem:[%s14249_s17 + $0x5c0] sm:$0xff]  ;;  %v945_v61 = vld [vmem:[%s14249_s17 + $0x5d0] sm:$0xff] }
  0x41   : > { %v947_v62 = vld [vmem:[%s14249_s17 + $0x5e0] sm:$0xff]  ;;  %944 = vst [vmem:[%s14254_s20 + $0x1e0] sm:$0xff] %v943_v60  ;;  %946 = vst [vmem:[%s14254_s20 + $0x1e8] sm:$0xff] %v945_v61  ;;  %v949_v63 = vld [vmem:[%s14249_s17 + $0x5f0] sm:$0xff] }
  0x42   : > { %948 = vst [vmem:[%s14254_s20 + $0x1f0] sm:$0xff] %v947_v62  ;;  %v951_v0 = vld [vmem:[%s14249_s17 + $0x800] sm:$0xff]  ;;  %v953_v1 = vld [vmem:[%s14249_s17 + $0x810] sm:$0xff]  ;;  %950 = vst [vmem:[%s14254_s20 + $0x1f8] sm:$0xff] %v949_v63 }
  0x43   : > { %952 = vst [vmem:[%s14254_s20 + $0x200] sm:$0xff] %v951_v0  ;;  %954 = vst [vmem:[%s14254_s20 + $0x208] sm:$0xff] %v953_v1  ;;  %v955_v2 = vld [vmem:[%s14249_s17 + $0x820] sm:$0xff]  ;;  %v957_v3 = vld [vmem:[%s14249_s17 + $0x830] sm:$0xff] }
  0x44   : > { %v959_v4 = vld [vmem:[%s14249_s17 + $0x840] sm:$0xff]  ;;  %956 = vst [vmem:[%s14254_s20 + $0x210] sm:$0xff] %v955_v2  ;;  %958 = vst [vmem:[%s14254_s20 + $0x218] sm:$0xff] %v957_v3  ;;  %v961_v5 = vld [vmem:[%s14249_s17 + $0x850] sm:$0xff] }
  0x45   : > { %960 = vst [vmem:[%s14254_s20 + $0x220] sm:$0xff] %v959_v4  ;;  %v963_v6 = vld [vmem:[%s14249_s17 + $0x860] sm:$0xff]  ;;  %v965_v7 = vld [vmem:[%s14249_s17 + $0x870] sm:$0xff]  ;;  %962 = vst [vmem:[%s14254_s20 + $0x228] sm:$0xff] %v961_v5 }
  0x46   : > { %964 = vst [vmem:[%s14254_s20 + $0x230] sm:$0xff] %v963_v6  ;;  %966 = vst [vmem:[%s14254_s20 + $0x238] sm:$0xff] %v965_v7  ;;  %v967_v8 = vld [vmem:[%s14249_s17 + $0x880] sm:$0xff]  ;;  %v969_v9 = vld [vmem:[%s14249_s17 + $0x890] sm:$0xff] }
  0x47   : > { %v971_v10 = vld [vmem:[%s14249_s17 + $0x8a0] sm:$0xff]  ;;  %968 = vst [vmem:[%s14254_s20 + $0x240] sm:$0xff] %v967_v8  ;;  %970 = vst [vmem:[%s14254_s20 + $0x248] sm:$0xff] %v969_v9  ;;  %v973_v11 = vld [vmem:[%s14249_s17 + $0x8b0] sm:$0xff] }
  0x48   : > { %972 = vst [vmem:[%s14254_s20 + $0x250] sm:$0xff] %v971_v10  ;;  %v975_v12 = vld [vmem:[%s14249_s17 + $0x8c0] sm:$0xff]  ;;  %v977_v13 = vld [vmem:[%s14249_s17 + $0x8d0] sm:$0xff]  ;;  %974 = vst [vmem:[%s14254_s20 + $0x258] sm:$0xff] %v973_v11 }
  0x49   : > { %976 = vst [vmem:[%s14254_s20 + $0x260] sm:$0xff] %v975_v12  ;;  %978 = vst [vmem:[%s14254_s20 + $0x268] sm:$0xff] %v977_v13  ;;  %v979_v14 = vld [vmem:[%s14249_s17 + $0x8e0] sm:$0xff]  ;;  %v981_v15 = vld [vmem:[%s14249_s17 + $0x8f0] sm:$0xff] }
  0x4a   : > { %v983_v16 = vld [vmem:[%s14249_s17 + $0x900] sm:$0xff]  ;;  %980 = vst [vmem:[%s14254_s20 + $0x270] sm:$0xff] %v979_v14  ;;  %982 = vst [vmem:[%s14254_s20 + $0x278] sm:$0xff] %v981_v15  ;;  %v985_v17 = vld [vmem:[%s14249_s17 + $0x910] sm:$0xff] }
  0x4b   : > { %984 = vst [vmem:[%s14254_s20 + $0x280] sm:$0xff] %v983_v16  ;;  %v987_v18 = vld [vmem:[%s14249_s17 + $0x920] sm:$0xff]  ;;  %v989_v19 = vld [vmem:[%s14249_s17 + $0x930] sm:$0xff]  ;;  %986 = vst [vmem:[%s14254_s20 + $0x288] sm:$0xff] %v985_v17 }
  0x4c   : > { %988 = vst [vmem:[%s14254_s20 + $0x290] sm:$0xff] %v987_v18  ;;  %990 = vst [vmem:[%s14254_s20 + $0x298] sm:$0xff] %v989_v19  ;;  %v991_v20 = vld [vmem:[%s14249_s17 + $0x940] sm:$0xff]  ;;  %v993_v21 = vld [vmem:[%s14249_s17 + $0x950] sm:$0xff] }
  0x4d   : > { %v995_v22 = vld [vmem:[%s14249_s17 + $0x960] sm:$0xff]  ;;  %992 = vst [vmem:[%s14254_s20 + $0x2a0] sm:$0xff] %v991_v20  ;;  %994 = vst [vmem:[%s14254_s20 + $0x2a8] sm:$0xff] %v993_v21  ;;  %v997_v23 = vld [vmem:[%s14249_s17 + $0x970] sm:$0xff] }
  0x4e   : > { %996 = vst [vmem:[%s14254_s20 + $0x2b0] sm:$0xff] %v995_v22  ;;  %v999_v24 = vld [vmem:[%s14249_s17 + $0x980] sm:$0xff]  ;;  %v1001_v25 = vld [vmem:[%s14249_s17 + $0x990] sm:$0xff]  ;;  %998 = vst [vmem:[%s14254_s20 + $0x2b8] sm:$0xff] %v997_v23 }
  0x4f   : > { %1000 = vst [vmem:[%s14254_s20 + $0x2c0] sm:$0xff] %v999_v24  ;;  %1002 = vst [vmem:[%s14254_s20 + $0x2c8] sm:$0xff] %v1001_v25  ;;  %v1003_v26 = vld [vmem:[%s14249_s17 + $0x9a0] sm:$0xff]  ;;  %v1005_v27 = vld [vmem:[%s14249_s17 + $0x9b0] sm:$0xff] }
  0x50   : > { %v1007_v28 = vld [vmem:[%s14249_s17 + $0x9c0] sm:$0xff]  ;;  %1004 = vst [vmem:[%s14254_s20 + $0x2d0] sm:$0xff] %v1003_v26  ;;  %1006 = vst [vmem:[%s14254_s20 + $0x2d8] sm:$0xff] %v1005_v27  ;;  %v1009_v29 = vld [vmem:[%s14249_s17 + $0x9d0] sm:$0xff] }
  0x51   : > { %1008 = vst [vmem:[%s14254_s20 + $0x2e0] sm:$0xff] %v1007_v28  ;;  %v1011_v30 = vld [vmem:[%s14249_s17 + $0x9e0] sm:$0xff]  ;;  %v1013_v31 = vld [vmem:[%s14249_s17 + $0x9f0] sm:$0xff]  ;;  %1010 = vst [vmem:[%s14254_s20 + $0x2e8] sm:$0xff] %v1009_v29 }
  0x52   : > { %1012 = vst [vmem:[%s14254_s20 + $0x2f0] sm:$0xff] %v1011_v30  ;;  %1014 = vst [vmem:[%s14254_s20 + $0x2f8] sm:$0xff] %v1013_v31  ;;  %v1015_v32 = vld [vmem:[%s14249_s17 + $0xc00] sm:$0xff]  ;;  %v1017_v33 = vld [vmem:[%s14249_s17 + $0xc10] sm:$0xff] }
  0x53   : > { %v1019_v34 = vld [vmem:[%s14249_s17 + $0xc20] sm:$0xff]  ;;  %1016 = vst [vmem:[%s14254_s20 + $0x300] sm:$0xff] %v1015_v32  ;;  %1018 = vst [vmem:[%s14254_s20 + $0x308] sm:$0xff] %v1017_v33  ;;  %v1021_v35 = vld [vmem:[%s14249_s17 + $0xc30] sm:$0xff] }
  0x54   : > { %1020 = vst [vmem:[%s14254_s20 + $0x310] sm:$0xff] %v1019_v34  ;;  %v1023_v36 = vld [vmem:[%s14249_s17 + $0xc40] sm:$0xff]  ;;  %v1025_v37 = vld [vmem:[%s14249_s17 + $0xc50] sm:$0xff]  ;;  %1022 = vst [vmem:[%s14254_s20 + $0x318] sm:$0xff] %v1021_v35 }
  0x55   : > { %1024 = vst [vmem:[%s14254_s20 + $0x320] sm:$0xff] %v1023_v36  ;;  %1026 = vst [vmem:[%s14254_s20 + $0x328] sm:$0xff] %v1025_v37  ;;  %v1027_v38 = vld [vmem:[%s14249_s17 + $0xc60] sm:$0xff]  ;;  %v1029_v39 = vld [vmem:[%s14249_s17 + $0xc70] sm:$0xff] }
  0x56   : > { %v1031_v40 = vld [vmem:[%s14249_s17 + $0xc80] sm:$0xff]  ;;  %1028 = vst [vmem:[%s14254_s20 + $0x330] sm:$0xff] %v1027_v38  ;;  %1030 = vst [vmem:[%s14254_s20 + $0x338] sm:$0xff] %v1029_v39  ;;  %v1033_v41 = vld [vmem:[%s14249_s17 + $0xc90] sm:$0xff] }
  0x57   : > { %1032 = vst [vmem:[%s14254_s20 + $0x340] sm:$0xff] %v1031_v40  ;;  %v1035_v42 = vld [vmem:[%s14249_s17 + $0xca0] sm:$0xff]  ;;  %v1037_v43 = vld [vmem:[%s14249_s17 + $0xcb0] sm:$0xff]  ;;  %1034 = vst [vmem:[%s14254_s20 + $0x348] sm:$0xff] %v1033_v41 }
  0x58   : > { %1036 = vst [vmem:[%s14254_s20 + $0x350] sm:$0xff] %v1035_v42  ;;  %1038 = vst [vmem:[%s14254_s20 + $0x358] sm:$0xff] %v1037_v43  ;;  %v1039_v44 = vld [vmem:[%s14249_s17 + $0xcc0] sm:$0xff]  ;;  %v1041_v45 = vld [vmem:[%s14249_s17 + $0xcd0] sm:$0xff] }
  0x59   : > { %v1043_v46 = vld [vmem:[%s14249_s17 + $0xce0] sm:$0xff]  ;;  %1040 = vst [vmem:[%s14254_s20 + $0x360] sm:$0xff] %v1039_v44  ;;  %1042 = vst [vmem:[%s14254_s20 + $0x368] sm:$0xff] %v1041_v45  ;;  %v1045_v47 = vld [vmem:[%s14249_s17 + $0xcf0] sm:$0xff] }
  0x5a   : > { %1044 = vst [vmem:[%s14254_s20 + $0x370] sm:$0xff] %v1043_v46  ;;  %v1047_v48 = vld [vmem:[%s14249_s17 + $0xd00] sm:$0xff]  ;;  %v1049_v49 = vld [vmem:[%s14249_s17 + $0xd10] sm:$0xff]  ;;  %1046 = vst [vmem:[%s14254_s20 + $0x378] sm:$0xff] %v1045_v47 }
  0x5b   : > { %1048 = vst [vmem:[%s14254_s20 + $0x380] sm:$0xff] %v1047_v48  ;;  %1050 = vst [vmem:[%s14254_s20 + $0x388] sm:$0xff] %v1049_v49  ;;  %v1051_v50 = vld [vmem:[%s14249_s17 + $0xd20] sm:$0xff]  ;;  %v1053_v51 = vld [vmem:[%s14249_s17 + $0xd30] sm:$0xff] }
  0x5c   : > { %v1055_v52 = vld [vmem:[%s14249_s17 + $0xd40] sm:$0xff]  ;;  %1052 = vst [vmem:[%s14254_s20 + $0x390] sm:$0xff] %v1051_v50  ;;  %1054 = vst [vmem:[%s14254_s20 + $0x398] sm:$0xff] %v1053_v51  ;;  %v1057_v53 = vld [vmem:[%s14249_s17 + $0xd50] sm:$0xff] }
  0x5d   : > { %1056 = vst [vmem:[%s14254_s20 + $0x3a0] sm:$0xff] %v1055_v52  ;;  %v1059_v54 = vld [vmem:[%s14249_s17 + $0xd60] sm:$0xff]  ;;  %v1061_v55 = vld [vmem:[%s14249_s17 + $0xd70] sm:$0xff]  ;;  %1058 = vst [vmem:[%s14254_s20 + $0x3a8] sm:$0xff] %v1057_v53 }
  0x5e   : > { %1060 = vst [vmem:[%s14254_s20 + $0x3b0] sm:$0xff] %v1059_v54  ;;  %1062 = vst [vmem:[%s14254_s20 + $0x3b8] sm:$0xff] %v1061_v55  ;;  %v1063_v56 = vld [vmem:[%s14249_s17 + $0xd80] sm:$0xff]  ;;  %v1065_v57 = vld [vmem:[%s14249_s17 + $0xd90] sm:$0xff] }
  0x5f   : > { %v1067_v58 = vld [vmem:[%s14249_s17 + $0xda0] sm:$0xff]  ;;  %1064 = vst [vmem:[%s14254_s20 + $0x3c0] sm:$0xff] %v1063_v56  ;;  %1066 = vst [vmem:[%s14254_s20 + $0x3c8] sm:$0xff] %v1065_v57  ;;  %v1069_v59 = vld [vmem:[%s14249_s17 + $0xdb0] sm:$0xff] }
  0x60   : > { %1068 = vst [vmem:[%s14254_s20 + $0x3d0] sm:$0xff] %v1067_v58  ;;  %v1071_v60 = vld [vmem:[%s14249_s17 + $0xdc0] sm:$0xff]  ;;  %v1073_v61 = vld [vmem:[%s14249_s17 + $0xdd0] sm:$0xff]  ;;  %1070 = vst [vmem:[%s14254_s20 + $0x3d8] sm:$0xff] %v1069_v59 }
  0x61   : > { %1072 = vst [vmem:[%s14254_s20 + $0x3e0] sm:$0xff] %v1071_v60  ;;  %1074 = vst [vmem:[%s14254_s20 + $0x3e8] sm:$0xff] %v1073_v61  ;;  %v1075_v62 = vld [vmem:[%s14249_s17 + $0xde0] sm:$0xff]  ;;  %v1077_v63 = vld [vmem:[%s14249_s17 + $0xdf0] sm:$0xff] }
  0x62   : > { %1076 = vst [vmem:[%s14254_s20 + $0x3f0] sm:$0xff] %v1075_v62  ;;  %1078 = vst [vmem:[%s14254_s20 + $0x3f8] sm:$0xff] %v1077_v63 }
  0x63 PF: > { %1084 = sbr.rel (!%p14227_p4) target bundleno = 125 (0x7d), region = 110  ;;  %s1086_s18 = sand.u32 (%p14227_p4), 1, %s14081_s30  }
  0x64   : > { %s10975_s19 = sshll.u32 (%p14227_p4), %s14085_s0, 1  ;;  %s10973_s1 = sshll.u32 (%p14227_p4), %s1086_s18, 8 }
  0x65   : > { %s11645_s23 = sshll.u32 (%p14227_p4), %s14085_s0, 7  ;;  %s18889_s15 = sld [smem:[#allocation200_spill]] (%p14227_p4) }
  0x66   : > { %s1092_s25 = sadd.s32 (%p14227_p4), %s11645_s23, %s10975_s19  ;;  %s14522_s17 = scalar_lea.vmem (%p14227_p4), [#allocation3], %s10973_s1 }
  0x67   : > { %s10977_s21 = sshll.u32 (%p14227_p4), %s1092_s25, 2 }
  0x6b   : > { %s14517_s16 = scalar_lea.vmem %s18889_s15, %s10977_s21 }
  0x6c   : > { %v1185_v0 = vld [vmem:[%s14517_s16] sm:$0xff]  ;;  %v1187_v1 = vld [vmem:[%s14517_s16 + $0x10] sm:$0xff] }
  0x6d   : > { %v1189_v2 = vld [vmem:[%s14517_s16 + $0x20] sm:$0xff]  ;;  %1186 = vst [vmem:[%s14522_s17] sm:$0xff] %v1185_v0  ;;  %1188 = vst [vmem:[%s14522_s17 + $0x8] sm:$0xff] %v1187_v1  ;;  %v1191_v3 = vld [vmem:[%s14517_s16 + $0x30] sm:$0xff] }
  0x6e   : > { %1190 = vst [vmem:[%s14522_s17 + $0x10] sm:$0xff] %v1189_v2  ;;  %v1193_v4 = vld [vmem:[%s14517_s16 + $0x40] sm:$0xff]  ;;  %v1195_v5 = vld [vmem:[%s14517_s16 + $0x50] sm:$0xff]  ;;  %1192 = vst [vmem:[%s14522_s17 + $0x18] sm:$0xff] %v1191_v3 }
  0x6f   : > { %1194 = vst [vmem:[%s14522_s17 + $0x20] sm:$0xff] %v1193_v4  ;;  %1196 = vst [vmem:[%s14522_s17 + $0x28] sm:$0xff] %v1195_v5  ;;  %v1197_v6 = vld [vmem:[%s14517_s16 + $0x60] sm:$0xff]  ;;  %v1199_v7 = vld [vmem:[%s14517_s16 + $0x70] sm:$0xff] }
  0x70   : > { %v1201_v8 = vld [vmem:[%s14517_s16 + $0x80] sm:$0xff]  ;;  %1198 = vst [vmem:[%s14522_s17 + $0x30] sm:$0xff] %v1197_v6  ;;  %1200 = vst [vmem:[%s14522_s17 + $0x38] sm:$0xff] %v1199_v7  ;;  %v1203_v9 = vld [vmem:[%s14517_s16 + $0x90] sm:$0xff] }
  0x71   : > { %1202 = vst [vmem:[%s14522_s17 + $0x40] sm:$0xff] %v1201_v8  ;;  %v1205_v10 = vld [vmem:[%s14517_s16 + $0xa0] sm:$0xff]  ;;  %v1207_v11 = vld [vmem:[%s14517_s16 + $0xb0] sm:$0xff]  ;;  %1204 = vst [vmem:[%s14522_s17 + $0x48] sm:$0xff] %v1203_v9 }
  0x72   : > { %1206 = vst [vmem:[%s14522_s17 + $0x50] sm:$0xff] %v1205_v10  ;;  %1208 = vst [vmem:[%s14522_s17 + $0x58] sm:$0xff] %v1207_v11  ;;  %v1209_v12 = vld [vmem:[%s14517_s16 + $0xc0] sm:$0xff]  ;;  %v1211_v13 = vld [vmem:[%s14517_s16 + $0xd0] sm:$0xff] }
  0x73   : > { %v1213_v14 = vld [vmem:[%s14517_s16 + $0xe0] sm:$0xff]  ;;  %1210 = vst [vmem:[%s14522_s17 + $0x60] sm:$0xff] %v1209_v12  ;;  %1212 = vst [vmem:[%s14522_s17 + $0x68] sm:$0xff] %v1211_v13  ;;  %v1215_v15 = vld [vmem:[%s14517_s16 + $0xf0] sm:$0xff] }
  0x74   : > { %1214 = vst [vmem:[%s14522_s17 + $0x70] sm:$0xff] %v1213_v14  ;;  %v1217_v16 = vld [vmem:[%s14517_s16 + $0x100] sm:$0xff]  ;;  %v1219_v17 = vld [vmem:[%s14517_s16 + $0x110] sm:$0xff]  ;;  %1216 = vst [vmem:[%s14522_s17 + $0x78] sm:$0xff] %v1215_v15 }
  0x75   : > { %1218 = vst [vmem:[%s14522_s17 + $0x80] sm:$0xff] %v1217_v16  ;;  %1220 = vst [vmem:[%s14522_s17 + $0x88] sm:$0xff] %v1219_v17  ;;  %v1221_v18 = vld [vmem:[%s14517_s16 + $0x120] sm:$0xff]  ;;  %v1223_v19 = vld [vmem:[%s14517_s16 + $0x130] sm:$0xff] }
  0x76   : > { %v1225_v20 = vld [vmem:[%s14517_s16 + $0x140] sm:$0xff]  ;;  %1222 = vst [vmem:[%s14522_s17 + $0x90] sm:$0xff] %v1221_v18  ;;  %1224 = vst [vmem:[%s14522_s17 + $0x98] sm:$0xff] %v1223_v19  ;;  %v1227_v21 = vld [vmem:[%s14517_s16 + $0x150] sm:$0xff] }
  0x77   : > { %1226 = vst [vmem:[%s14522_s17 + $0xa0] sm:$0xff] %v1225_v20  ;;  %v1229_v22 = vld [vmem:[%s14517_s16 + $0x160] sm:$0xff]  ;;  %v1231_v23 = vld [vmem:[%s14517_s16 + $0x170] sm:$0xff]  ;;  %1228 = vst [vmem:[%s14522_s17 + $0xa8] sm:$0xff] %v1227_v21 }
  0x78   : > { %1230 = vst [vmem:[%s14522_s17 + $0xb0] sm:$0xff] %v1229_v22  ;;  %1232 = vst [vmem:[%s14522_s17 + $0xb8] sm:$0xff] %v1231_v23  ;;  %v1233_v24 = vld [vmem:[%s14517_s16 + $0x180] sm:$0xff]  ;;  %v1235_v25 = vld [vmem:[%s14517_s16 + $0x190] sm:$0xff] }
  0x79   : > { %v1237_v26 = vld [vmem:[%s14517_s16 + $0x1a0] sm:$0xff]  ;;  %1234 = vst [vmem:[%s14522_s17 + $0xc0] sm:$0xff] %v1233_v24  ;;  %1236 = vst [vmem:[%s14522_s17 + $0xc8] sm:$0xff] %v1235_v25  ;;  %v1239_v27 = vld [vmem:[%s14517_s16 + $0x1b0] sm:$0xff] }
  0x7a   : > { %1238 = vst [vmem:[%s14522_s17 + $0xd0] sm:$0xff] %v1237_v26  ;;  %v1241_v28 = vld [vmem:[%s14517_s16 + $0x1c0] sm:$0xff]  ;;  %v1243_v29 = vld [vmem:[%s14517_s16 + $0x1d0] sm:$0xff]  ;;  %1240 = vst [vmem:[%s14522_s17 + $0xd8] sm:$0xff] %v1239_v27 }
  0x7b   : > { %1242 = vst [vmem:[%s14522_s17 + $0xe0] sm:$0xff] %v1241_v28  ;;  %1244 = vst [vmem:[%s14522_s17 + $0xe8] sm:$0xff] %v1243_v29  ;;  %v1245_v30 = vld [vmem:[%s14517_s16 + $0x1e0] sm:$0xff]  ;;  %v1247_v31 = vld [vmem:[%s14517_s16 + $0x1f0] sm:$0xff] }
  0x7c   : > { %1246 = vst [vmem:[%s14522_s17 + $0xf0] sm:$0xff] %v1245_v30  ;;  %1248 = vst [vmem:[%s14522_s17 + $0xf8] sm:$0xff] %v1247_v31 }
  0x7d PF: > { %1254 = sbr.rel (!%p14236_p6) target bundleno = 193 (0xc1), region = 148  ;;  %s1256_s15 = sand.u32 (%p14236_p6), 1, %s14073_s28  }
  0x7e   : > { %s11646_s20 = sshll.u32 (%p14236_p6), %s14085_s0, 8  ;;  %s10978_s18 = sshll.u32 (%p14236_p6), %s1256_s15, 10 }
  0x7f   : > { %s14592_s23 = scalar_lea.vmem (%p14236_p6), %s18665_s3, %s11646_s20  ;;  %s14597_s16 = scalar_lea.vmem (%p14236_p6), [#allocation4], %s10978_s18 }
  0x80   : > { %v1544_v32 = vld [vmem:[%s14592_s23] sm:$0xff] (%p14236_p6)  ;;  %v1546_v33 = vld [vmem:[%s14592_s23 + $0x8] sm:$0xff] (%p14236_p6)  ;;  %v1548_v34 = vld [vmem:[%s14592_s23 + $0x10] sm:$0xff] (%p14236_p6) }
  0x81   : > { %1545 = vst [vmem:[%s14597_s16] sm:$0xff] (%p14236_p6), %v1544_v32  ;;  %1547 = vst [vmem:[%s14597_s16 + $0x8] sm:$0xff] (%p14236_p6), %v1546_v33  ;;  %v1550_v35 = vld [vmem:[%s14592_s23 + $0x18] sm:$0xff] (%p14236_p6)  ;;  %v1552_v36 = vld [vmem:[%s14592_s23 + $0x20] sm:$0xff] (%p14236_p6) }
  0x82   : > { %1549 = vst [vmem:[%s14597_s16 + $0x10] sm:$0xff] %v1548_v34  ;;  %v1554_v37 = vld [vmem:[%s14592_s23 + $0x28] sm:$0xff]  ;;  %1551 = vst [vmem:[%s14597_s16 + $0x18] sm:$0xff] %v1550_v35  ;;  %v1556_v38 = vld [vmem:[%s14592_s23 + $0x30] sm:$0xff] }
  0x83   : > { %1553 = vst [vmem:[%s14597_s16 + $0x20] sm:$0xff] %v1552_v36  ;;  %1555 = vst [vmem:[%s14597_s16 + $0x28] sm:$0xff] %v1554_v37  ;;  %v1558_v39 = vld [vmem:[%s14592_s23 + $0x38] sm:$0xff]  ;;  %v1560_v40 = vld [vmem:[%s14592_s23 + $0x40] sm:$0xff] }
  0x84   : > { %1557 = vst [vmem:[%s14597_s16 + $0x30] sm:$0xff] %v1556_v38  ;;  %1559 = vst [vmem:[%s14597_s16 + $0x38] sm:$0xff] %v1558_v39  ;;  %v1562_v41 = vld [vmem:[%s14592_s23 + $0x48] sm:$0xff]  ;;  %v1564_v42 = vld [vmem:[%s14592_s23 + $0x50] sm:$0xff] }
  0x85   : > { %1561 = vst [vmem:[%s14597_s16 + $0x40] sm:$0xff] %v1560_v40  ;;  %v1566_v43 = vld [vmem:[%s14592_s23 + $0x58] sm:$0xff]  ;;  %1563 = vst [vmem:[%s14597_s16 + $0x48] sm:$0xff] %v1562_v41  ;;  %v1568_v44 = vld [vmem:[%s14592_s23 + $0x60] sm:$0xff] }
  0x86   : > { %1565 = vst [vmem:[%s14597_s16 + $0x50] sm:$0xff] %v1564_v42  ;;  %1567 = vst [vmem:[%s14597_s16 + $0x58] sm:$0xff] %v1566_v43  ;;  %v1570_v45 = vld [vmem:[%s14592_s23 + $0x68] sm:$0xff]  ;;  %v1572_v46 = vld [vmem:[%s14592_s23 + $0x70] sm:$0xff] }
  0x87   : > { %1569 = vst [vmem:[%s14597_s16 + $0x60] sm:$0xff] %v1568_v44  ;;  %1571 = vst [vmem:[%s14597_s16 + $0x68] sm:$0xff] %v1570_v45  ;;  %v1574_v47 = vld [vmem:[%s14592_s23 + $0x78] sm:$0xff]  ;;  %v1576_v48 = vld [vmem:[%s14592_s23 + $0x80] sm:$0xff] }
  0x88   : > { %1573 = vst [vmem:[%s14597_s16 + $0x70] sm:$0xff] %v1572_v46  ;;  %v1578_v49 = vld [vmem:[%s14592_s23 + $0x88] sm:$0xff]  ;;  %1575 = vst [vmem:[%s14597_s16 + $0x78] sm:$0xff] %v1574_v47  ;;  %v1580_v50 = vld [vmem:[%s14592_s23 + $0x90] sm:$0xff] }
  0x89   : > { %1577 = vst [vmem:[%s14597_s16 + $0x80] sm:$0xff] %v1576_v48  ;;  %1579 = vst [vmem:[%s14597_s16 + $0x88] sm:$0xff] %v1578_v49  ;;  %v1582_v51 = vld [vmem:[%s14592_s23 + $0x98] sm:$0xff]  ;;  %v1584_v52 = vld [vmem:[%s14592_s23 + $0xa0] sm:$0xff] }
  0x8a   : > { %1581 = vst [vmem:[%s14597_s16 + $0x90] sm:$0xff] %v1580_v50  ;;  %1583 = vst [vmem:[%s14597_s16 + $0x98] sm:$0xff] %v1582_v51  ;;  %v1586_v53 = vld [vmem:[%s14592_s23 + $0xa8] sm:$0xff]  ;;  %v1588_v54 = vld [vmem:[%s14592_s23 + $0xb0] sm:$0xff] }
  0x8b   : > { %1585 = vst [vmem:[%s14597_s16 + $0xa0] sm:$0xff] %v1584_v52  ;;  %v1590_v55 = vld [vmem:[%s14592_s23 + $0xb8] sm:$0xff]  ;;  %1587 = vst [vmem:[%s14597_s16 + $0xa8] sm:$0xff] %v1586_v53  ;;  %v1592_v56 = vld [vmem:[%s14592_s23 + $0xc0] sm:$0xff] }
  0x8c   : > { %1589 = vst [vmem:[%s14597_s16 + $0xb0] sm:$0xff] %v1588_v54  ;;  %1591 = vst [vmem:[%s14597_s16 + $0xb8] sm:$0xff] %v1590_v55  ;;  %v1594_v57 = vld [vmem:[%s14592_s23 + $0xc8] sm:$0xff]  ;;  %v1596_v58 = vld [vmem:[%s14592_s23 + $0xd0] sm:$0xff] }
  0x8d   : > { %1593 = vst [vmem:[%s14597_s16 + $0xc0] sm:$0xff] %v1592_v56  ;;  %1595 = vst [vmem:[%s14597_s16 + $0xc8] sm:$0xff] %v1594_v57  ;;  %v1598_v59 = vld [vmem:[%s14592_s23 + $0xd8] sm:$0xff]  ;;  %v1600_v60 = vld [vmem:[%s14592_s23 + $0xe0] sm:$0xff] }
  0x8e   : > { %1597 = vst [vmem:[%s14597_s16 + $0xd0] sm:$0xff] %v1596_v58  ;;  %v1602_v61 = vld [vmem:[%s14592_s23 + $0xe8] sm:$0xff]  ;;  %1599 = vst [vmem:[%s14597_s16 + $0xd8] sm:$0xff] %v1598_v59  ;;  %v1604_v62 = vld [vmem:[%s14592_s23 + $0xf0] sm:$0xff] }
  0x8f   : > { %1601 = vst [vmem:[%s14597_s16 + $0xe0] sm:$0xff] %v1600_v60  ;;  %1603 = vst [vmem:[%s14597_s16 + $0xe8] sm:$0xff] %v1602_v61  ;;  %v1606_v63 = vld [vmem:[%s14592_s23 + $0xf8] sm:$0xff]  ;;  %v1608_v0 = vld [vmem:[%s14592_s23 + $0x200] sm:$0xff] }
  0x90   : > { %1605 = vst [vmem:[%s14597_s16 + $0xf0] sm:$0xff] %v1604_v62  ;;  %1607 = vst [vmem:[%s14597_s16 + $0xf8] sm:$0xff] %v1606_v63  ;;  %v1610_v1 = vld [vmem:[%s14592_s23 + $0x208] sm:$0xff]  ;;  %v1612_v2 = vld [vmem:[%s14592_s23 + $0x210] sm:$0xff] }
  0x91   : > { %1609 = vst [vmem:[%s14597_s16 + $0x100] sm:$0xff] %v1608_v0  ;;  %v1614_v3 = vld [vmem:[%s14592_s23 + $0x218] sm:$0xff]  ;;  %1611 = vst [vmem:[%s14597_s16 + $0x108] sm:$0xff] %v1610_v1  ;;  %v1616_v4 = vld [vmem:[%s14592_s23 + $0x220] sm:$0xff] }
  0x92   : > { %1613 = vst [vmem:[%s14597_s16 + $0x110] sm:$0xff] %v1612_v2  ;;  %1615 = vst [vmem:[%s14597_s16 + $0x118] sm:$0xff] %v1614_v3  ;;  %v1618_v5 = vld [vmem:[%s14592_s23 + $0x228] sm:$0xff]  ;;  %v1620_v6 = vld [vmem:[%s14592_s23 + $0x230] sm:$0xff] }
  0x93   : > { %1617 = vst [vmem:[%s14597_s16 + $0x120] sm:$0xff] %v1616_v4  ;;  %1619 = vst [vmem:[%s14597_s16 + $0x128] sm:$0xff] %v1618_v5  ;;  %v1622_v7 = vld [vmem:[%s14592_s23 + $0x238] sm:$0xff]  ;;  %v1624_v8 = vld [vmem:[%s14592_s23 + $0x240] sm:$0xff] }
  0x94   : > { %1621 = vst [vmem:[%s14597_s16 + $0x130] sm:$0xff] %v1620_v6  ;;  %v1626_v9 = vld [vmem:[%s14592_s23 + $0x248] sm:$0xff]  ;;  %1623 = vst [vmem:[%s14597_s16 + $0x138] sm:$0xff] %v1622_v7  ;;  %v1628_v10 = vld [vmem:[%s14592_s23 + $0x250] sm:$0xff] }
  0x95   : > { %1625 = vst [vmem:[%s14597_s16 + $0x140] sm:$0xff] %v1624_v8  ;;  %1627 = vst [vmem:[%s14597_s16 + $0x148] sm:$0xff] %v1626_v9  ;;  %v1630_v11 = vld [vmem:[%s14592_s23 + $0x258] sm:$0xff]  ;;  %v1632_v12 = vld [vmem:[%s14592_s23 + $0x260] sm:$0xff] }
  0x96   : > { %1629 = vst [vmem:[%s14597_s16 + $0x150] sm:$0xff] %v1628_v10  ;;  %1631 = vst [vmem:[%s14597_s16 + $0x158] sm:$0xff] %v1630_v11  ;;  %v1634_v13 = vld [vmem:[%s14592_s23 + $0x268] sm:$0xff]  ;;  %v1636_v14 = vld [vmem:[%s14592_s23 + $0x270] sm:$0xff] }
  0x97   : > { %1633 = vst [vmem:[%s14597_s16 + $0x160] sm:$0xff] %v1632_v12  ;;  %v1638_v15 = vld [vmem:[%s14592_s23 + $0x278] sm:$0xff]  ;;  %1635 = vst [vmem:[%s14597_s16 + $0x168] sm:$0xff] %v1634_v13  ;;  %v1640_v16 = vld [vmem:[%s14592_s23 + $0x280] sm:$0xff] }
  0x98   : > { %1637 = vst [vmem:[%s14597_s16 + $0x170] sm:$0xff] %v1636_v14  ;;  %1639 = vst [vmem:[%s14597_s16 + $0x178] sm:$0xff] %v1638_v15  ;;  %v1642_v17 = vld [vmem:[%s14592_s23 + $0x288] sm:$0xff]  ;;  %v1644_v18 = vld [vmem:[%s14592_s23 + $0x290] sm:$0xff] }
  0x99   : > { %1641 = vst [vmem:[%s14597_s16 + $0x180] sm:$0xff] %v1640_v16  ;;  %1643 = vst [vmem:[%s14597_s16 + $0x188] sm:$0xff] %v1642_v17  ;;  %v1646_v19 = vld [vmem:[%s14592_s23 + $0x298] sm:$0xff]  ;;  %v1648_v20 = vld [vmem:[%s14592_s23 + $0x2a0] sm:$0xff] }
  0x9a   : > { %1645 = vst [vmem:[%s14597_s16 + $0x190] sm:$0xff] %v1644_v18  ;;  %v1650_v21 = vld [vmem:[%s14592_s23 + $0x2a8] sm:$0xff]  ;;  %1647 = vst [vmem:[%s14597_s16 + $0x198] sm:$0xff] %v1646_v19  ;;  %v1652_v22 = vld [vmem:[%s14592_s23 + $0x2b0] sm:$0xff] }
  0x9b   : > { %1649 = vst [vmem:[%s14597_s16 + $0x1a0] sm:$0xff] %v1648_v20  ;;  %1651 = vst [vmem:[%s14597_s16 + $0x1a8] sm:$0xff] %v1650_v21  ;;  %v1654_v23 = vld [vmem:[%s14592_s23 + $0x2b8] sm:$0xff]  ;;  %v1656_v24 = vld [vmem:[%s14592_s23 + $0x2c0] sm:$0xff] }
  0x9c   : > { %1653 = vst [vmem:[%s14597_s16 + $0x1b0] sm:$0xff] %v1652_v22  ;;  %1655 = vst [vmem:[%s14597_s16 + $0x1b8] sm:$0xff] %v1654_v23  ;;  %v1658_v25 = vld [vmem:[%s14592_s23 + $0x2c8] sm:$0xff]  ;;  %v1660_v26 = vld [vmem:[%s14592_s23 + $0x2d0] sm:$0xff] }
  0x9d   : > { %1657 = vst [vmem:[%s14597_s16 + $0x1c0] sm:$0xff] %v1656_v24  ;;  %v1662_v27 = vld [vmem:[%s14592_s23 + $0x2d8] sm:$0xff]  ;;  %1659 = vst [vmem:[%s14597_s16 + $0x1c8] sm:$0xff] %v1658_v25  ;;  %v1664_v28 = vld [vmem:[%s14592_s23 + $0x2e0] sm:$0xff] }
  0x9e   : > { %1661 = vst [vmem:[%s14597_s16 + $0x1d0] sm:$0xff] %v1660_v26  ;;  %1663 = vst [vmem:[%s14597_s16 + $0x1d8] sm:$0xff] %v1662_v27  ;;  %v1666_v29 = vld [vmem:[%s14592_s23 + $0x2e8] sm:$0xff]  ;;  %v1668_v30 = vld [vmem:[%s14592_s23 + $0x2f0] sm:$0xff] }
  0x9f   : > { %1665 = vst [vmem:[%s14597_s16 + $0x1e0] sm:$0xff] %v1664_v28  ;;  %1667 = vst [vmem:[%s14597_s16 + $0x1e8] sm:$0xff] %v1666_v29  ;;  %v1670_v31 = vld [vmem:[%s14592_s23 + $0x2f8] sm:$0xff]  ;;  %v1672_v32 = vld [vmem:[%s14592_s23 + $0x400] sm:$0xff] }
  0xa0   : > { %1669 = vst [vmem:[%s14597_s16 + $0x1f0] sm:$0xff] %v1668_v30  ;;  %v1674_v33 = vld [vmem:[%s14592_s23 + $0x408] sm:$0xff]  ;;  %1671 = vst [vmem:[%s14597_s16 + $0x1f8] sm:$0xff] %v1670_v31  ;;  %v1676_v34 = vld [vmem:[%s14592_s23 + $0x410] sm:$0xff] }
  0xa1   : > { %1673 = vst [vmem:[%s14597_s16 + $0x200] sm:$0xff] %v1672_v32  ;;  %1675 = vst [vmem:[%s14597_s16 + $0x208] sm:$0xff] %v1674_v33  ;;  %v1678_v35 = vld [vmem:[%s14592_s23 + $0x418] sm:$0xff]  ;;  %v1680_v36 = vld [vmem:[%s14592_s23 + $0x420] sm:$0xff] }
  0xa2   : > { %1677 = vst [vmem:[%s14597_s16 + $0x210] sm:$0xff] %v1676_v34  ;;  %1679 = vst [vmem:[%s14597_s16 + $0x218] sm:$0xff] %v1678_v35  ;;  %v1682_v37 = vld [vmem:[%s14592_s23 + $0x428] sm:$0xff]  ;;  %v1684_v38 = vld [vmem:[%s14592_s23 + $0x430] sm:$0xff] }
  0xa3   : > { %1681 = vst [vmem:[%s14597_s16 + $0x220] sm:$0xff] %v1680_v36  ;;  %v1686_v39 = vld [vmem:[%s14592_s23 + $0x438] sm:$0xff]  ;;  %1683 = vst [vmem:[%s14597_s16 + $0x228] sm:$0xff] %v1682_v37  ;;  %v1688_v40 = vld [vmem:[%s14592_s23 + $0x440] sm:$0xff] }
  0xa4   : > { %1685 = vst [vmem:[%s14597_s16 + $0x230] sm:$0xff] %v1684_v38  ;;  %1687 = vst [vmem:[%s14597_s16 + $0x238] sm:$0xff] %v1686_v39  ;;  %v1690_v41 = vld [vmem:[%s14592_s23 + $0x448] sm:$0xff]  ;;  %v1692_v42 = vld [vmem:[%s14592_s23 + $0x450] sm:$0xff] }
  0xa5   : > { %1689 = vst [vmem:[%s14597_s16 + $0x240] sm:$0xff] %v1688_v40  ;;  %1691 = vst [vmem:[%s14597_s16 + $0x248] sm:$0xff] %v1690_v41  ;;  %v1694_v43 = vld [vmem:[%s14592_s23 + $0x458] sm:$0xff]  ;;  %v1696_v44 = vld [vmem:[%s14592_s23 + $0x460] sm:$0xff] }
  0xa6   : > { %1693 = vst [vmem:[%s14597_s16 + $0x250] sm:$0xff] %v1692_v42  ;;  %v1698_v45 = vld [vmem:[%s14592_s23 + $0x468] sm:$0xff]  ;;  %1695 = vst [vmem:[%s14597_s16 + $0x258] sm:$0xff] %v1694_v43  ;;  %v1700_v46 = vld [vmem:[%s14592_s23 + $0x470] sm:$0xff] }
  0xa7   : > { %1697 = vst [vmem:[%s14597_s16 + $0x260] sm:$0xff] %v1696_v44  ;;  %1699 = vst [vmem:[%s14597_s16 + $0x268] sm:$0xff] %v1698_v45  ;;  %v1702_v47 = vld [vmem:[%s14592_s23 + $0x478] sm:$0xff]  ;;  %v1704_v48 = vld [vmem:[%s14592_s23 + $0x480] sm:$0xff] }
  0xa8   : > { %1701 = vst [vmem:[%s14597_s16 + $0x270] sm:$0xff] %v1700_v46  ;;  %1703 = vst [vmem:[%s14597_s16 + $0x278] sm:$0xff] %v1702_v47  ;;  %v1706_v49 = vld [vmem:[%s14592_s23 + $0x488] sm:$0xff]  ;;  %v1708_v50 = vld [vmem:[%s14592_s23 + $0x490] sm:$0xff] }
  0xa9   : > { %1705 = vst [vmem:[%s14597_s16 + $0x280] sm:$0xff] %v1704_v48  ;;  %v1710_v51 = vld [vmem:[%s14592_s23 + $0x498] sm:$0xff]  ;;  %1707 = vst [vmem:[%s14597_s16 + $0x288] sm:$0xff] %v1706_v49  ;;  %v1712_v52 = vld [vmem:[%s14592_s23 + $0x4a0] sm:$0xff] }
  0xaa   : > { %1709 = vst [vmem:[%s14597_s16 + $0x290] sm:$0xff] %v1708_v50  ;;  %1711 = vst [vmem:[%s14597_s16 + $0x298] sm:$0xff] %v1710_v51  ;;  %v1714_v53 = vld [vmem:[%s14592_s23 + $0x4a8] sm:$0xff]  ;;  %v1716_v54 = vld [vmem:[%s14592_s23 + $0x4b0] sm:$0xff] }
  0xab   : > { %1713 = vst [vmem:[%s14597_s16 + $0x2a0] sm:$0xff] %v1712_v52  ;;  %1715 = vst [vmem:[%s14597_s16 + $0x2a8] sm:$0xff] %v1714_v53  ;;  %v1718_v55 = vld [vmem:[%s14592_s23 + $0x4b8] sm:$0xff]  ;;  %v1720_v56 = vld [vmem:[%s14592_s23 + $0x4c0] sm:$0xff] }
  0xac   : > { %1717 = vst [vmem:[%s14597_s16 + $0x2b0] sm:$0xff] %v1716_v54  ;;  %v1722_v57 = vld [vmem:[%s14592_s23 + $0x4c8] sm:$0xff]  ;;  %1719 = vst [vmem:[%s14597_s16 + $0x2b8] sm:$0xff] %v1718_v55  ;;  %v1724_v58 = vld [vmem:[%s14592_s23 + $0x4d0] sm:$0xff] }
  0xad   : > { %1721 = vst [vmem:[%s14597_s16 + $0x2c0] sm:$0xff] %v1720_v56  ;;  %1723 = vst [vmem:[%s14597_s16 + $0x2c8] sm:$0xff] %v1722_v57  ;;  %v1726_v59 = vld [vmem:[%s14592_s23 + $0x4d8] sm:$0xff]  ;;  %v1728_v60 = vld [vmem:[%s14592_s23 + $0x4e0] sm:$0xff] }
  0xae   : > { %1725 = vst [vmem:[%s14597_s16 + $0x2d0] sm:$0xff] %v1724_v58  ;;  %1727 = vst [vmem:[%s14597_s16 + $0x2d8] sm:$0xff] %v1726_v59  ;;  %v1730_v61 = vld [vmem:[%s14592_s23 + $0x4e8] sm:$0xff]  ;;  %v1732_v62 = vld [vmem:[%s14592_s23 + $0x4f0] sm:$0xff] }
  0xaf   : > { %1729 = vst [vmem:[%s14597_s16 + $0x2e0] sm:$0xff] %v1728_v60  ;;  %v1734_v63 = vld [vmem:[%s14592_s23 + $0x4f8] sm:$0xff]  ;;  %1731 = vst [vmem:[%s14597_s16 + $0x2e8] sm:$0xff] %v1730_v61  ;;  %v1736_v0 = vld [vmem:[%s14592_s23 + $0x600] sm:$0xff] }
  0xb0   : > { %1733 = vst [vmem:[%s14597_s16 + $0x2f0] sm:$0xff] %v1732_v62  ;;  %1735 = vst [vmem:[%s14597_s16 + $0x2f8] sm:$0xff] %v1734_v63  ;;  %v1738_v1 = vld [vmem:[%s14592_s23 + $0x608] sm:$0xff]  ;;  %v1740_v2 = vld [vmem:[%s14592_s23 + $0x610] sm:$0xff] }
  0xb1   : > { %1737 = vst [vmem:[%s14597_s16 + $0x300] sm:$0xff] %v1736_v0  ;;  %1739 = vst [vmem:[%s14597_s16 + $0x308] sm:$0xff] %v1738_v1  ;;  %v1742_v3 = vld [vmem:[%s14592_s23 + $0x618] sm:$0xff]  ;;  %v1744_v4 = vld [vmem:[%s14592_s23 + $0x620] sm:$0xff] }
  0xb2   : > { %1741 = vst [vmem:[%s14597_s16 + $0x310] sm:$0xff] %v1740_v2  ;;  %v1746_v5 = vld [vmem:[%s14592_s23 + $0x628] sm:$0xff]  ;;  %1743 = vst [vmem:[%s14597_s16 + $0x318] sm:$0xff] %v1742_v3  ;;  %v1748_v6 = vld [vmem:[%s14592_s23 + $0x630] sm:$0xff] }
  0xb3   : > { %1745 = vst [vmem:[%s14597_s16 + $0x320] sm:$0xff] %v1744_v4  ;;  %1747 = vst [vmem:[%s14597_s16 + $0x328] sm:$0xff] %v1746_v5  ;;  %v1750_v7 = vld [vmem:[%s14592_s23 + $0x638] sm:$0xff]  ;;  %v1752_v8 = vld [vmem:[%s14592_s23 + $0x640] sm:$0xff] }
  0xb4   : > { %1749 = vst [vmem:[%s14597_s16 + $0x330] sm:$0xff] %v1748_v6  ;;  %1751 = vst [vmem:[%s14597_s16 + $0x338] sm:$0xff] %v1750_v7  ;;  %v1754_v9 = vld [vmem:[%s14592_s23 + $0x648] sm:$0xff]  ;;  %v1756_v10 = vld [vmem:[%s14592_s23 + $0x650] sm:$0xff] }
  0xb5   : > { %1753 = vst [vmem:[%s14597_s16 + $0x340] sm:$0xff] %v1752_v8  ;;  %v1758_v11 = vld [vmem:[%s14592_s23 + $0x658] sm:$0xff]  ;;  %1755 = vst [vmem:[%s14597_s16 + $0x348] sm:$0xff] %v1754_v9  ;;  %v1760_v12 = vld [vmem:[%s14592_s23 + $0x660] sm:$0xff] }
  0xb6   : > { %1757 = vst [vmem:[%s14597_s16 + $0x350] sm:$0xff] %v1756_v10  ;;  %1759 = vst [vmem:[%s14597_s16 + $0x358] sm:$0xff] %v1758_v11  ;;  %v1762_v13 = vld [vmem:[%s14592_s23 + $0x668] sm:$0xff]  ;;  %v1764_v14 = vld [vmem:[%s14592_s23 + $0x670] sm:$0xff] }
  0xb7   : > { %1761 = vst [vmem:[%s14597_s16 + $0x360] sm:$0xff] %v1760_v12  ;;  %1763 = vst [vmem:[%s14597_s16 + $0x368] sm:$0xff] %v1762_v13  ;;  %v1766_v15 = vld [vmem:[%s14592_s23 + $0x678] sm:$0xff]  ;;  %v1768_v16 = vld [vmem:[%s14592_s23 + $0x680] sm:$0xff] }
  0xb8   : > { %1765 = vst [vmem:[%s14597_s16 + $0x370] sm:$0xff] %v1764_v14  ;;  %v1770_v17 = vld [vmem:[%s14592_s23 + $0x688] sm:$0xff]  ;;  %1767 = vst [vmem:[%s14597_s16 + $0x378] sm:$0xff] %v1766_v15  ;;  %v1772_v18 = vld [vmem:[%s14592_s23 + $0x690] sm:$0xff] }
  0xb9   : > { %1769 = vst [vmem:[%s14597_s16 + $0x380] sm:$0xff] %v1768_v16  ;;  %1771 = vst [vmem:[%s14597_s16 + $0x388] sm:$0xff] %v1770_v17  ;;  %v1774_v19 = vld [vmem:[%s14592_s23 + $0x698] sm:$0xff]  ;;  %v1776_v20 = vld [vmem:[%s14592_s23 + $0x6a0] sm:$0xff] }
  0xba   : > { %1773 = vst [vmem:[%s14597_s16 + $0x390] sm:$0xff] %v1772_v18  ;;  %1775 = vst [vmem:[%s14597_s16 + $0x398] sm:$0xff] %v1774_v19  ;;  %v1778_v21 = vld [vmem:[%s14592_s23 + $0x6a8] sm:$0xff]  ;;  %v1780_v22 = vld [vmem:[%s14592_s23 + $0x6b0] sm:$0xff] }
  0xbb   : > { %1777 = vst [vmem:[%s14597_s16 + $0x3a0] sm:$0xff] %v1776_v20  ;;  %v1782_v23 = vld [vmem:[%s14592_s23 + $0x6b8] sm:$0xff]  ;;  %1779 = vst [vmem:[%s14597_s16 + $0x3a8] sm:$0xff] %v1778_v21  ;;  %v1784_v24 = vld [vmem:[%s14592_s23 + $0x6c0] sm:$0xff] }
  0xbc   : > { %1781 = vst [vmem:[%s14597_s16 + $0x3b0] sm:$0xff] %v1780_v22  ;;  %1783 = vst [vmem:[%s14597_s16 + $0x3b8] sm:$0xff] %v1782_v23  ;;  %v1786_v25 = vld [vmem:[%s14592_s23 + $0x6c8] sm:$0xff]  ;;  %v1788_v26 = vld [vmem:[%s14592_s23 + $0x6d0] sm:$0xff] }
  0xbd   : > { %1785 = vst [vmem:[%s14597_s16 + $0x3c0] sm:$0xff] %v1784_v24  ;;  %1787 = vst [vmem:[%s14597_s16 + $0x3c8] sm:$0xff] %v1786_v25  ;;  %v1790_v27 = vld [vmem:[%s14592_s23 + $0x6d8] sm:$0xff]  ;;  %v1792_v28 = vld [vmem:[%s14592_s23 + $0x6e0] sm:$0xff] }
  0xbe   : > { %1789 = vst [vmem:[%s14597_s16 + $0x3d0] sm:$0xff] %v1788_v26  ;;  %v1794_v29 = vld [vmem:[%s14592_s23 + $0x6e8] sm:$0xff]  ;;  %1791 = vst [vmem:[%s14597_s16 + $0x3d8] sm:$0xff] %v1790_v27  ;;  %v1796_v30 = vld [vmem:[%s14592_s23 + $0x6f0] sm:$0xff] }
  0xbf   : > { %1793 = vst [vmem:[%s14597_s16 + $0x3e0] sm:$0xff] %v1792_v28  ;;  %1795 = vst [vmem:[%s14597_s16 + $0x3e8] sm:$0xff] %v1794_v29  ;;  %v1798_v31 = vld [vmem:[%s14592_s23 + $0x6f8] sm:$0xff] }
  0xc0   : > { %1797 = vst [vmem:[%s14597_s16 + $0x3f0] sm:$0xff] %v1796_v30  ;;  %1799 = vst [vmem:[%s14597_s16 + $0x3f8] sm:$0xff] %v1798_v31 }
  0xc1 PF: > { %1815 = sbr.rel (!%p14227_p4) target bundleno = 201 (0xc9), region = 190  ;;  %s1817_s26 = sand.u32 (%p14227_p4), 1, %s14081_s30  }
  0xc2   : > { %s10983_s25 = sshll.u32 (%p14227_p4), %s14085_s0, 1  ;;  %s10981_s21 = sshll.u32 (%p14227_p4), %s1817_s26, 4 }
  0xc3   : > { %s11647_s22 = sshll.u32 (%p14227_p4), %s14085_s0, 3  ;;  %s1819_s19 = scalar_lea.vmem (%p14227_p4), [#allocation5], %s10981_s21 }
  0xc4   : > { %s1823_s2 = sadd.s32 (%p14227_p4), %s11647_s22, %s10983_s25 }
  0xc5   : > { %s10985_s17 = sshll.u32 (%p14227_p4), %s1823_s2, 2 }
  0xc6   : > { %s1825_s18 = scalar_lea.vmem %s18667_s5, %s10985_s17 }
  0xc7   : > { %v1856_v32 = vld [vmem:[%s1825_s18] sm:$0xff]  ;;  %v1858_v33 = vld [vmem:[%s1825_s18 + $0x10] sm:$0xff] }
  0xc8   : > { %1857 = vst [vmem:[%s1819_s19] sm:$0xff] %v1856_v32  ;;  %1859 = vst [vmem:[%s1819_s19 + $0x8] sm:$0xff] %v1858_v33 }
  0xc9 PF: > { %p10986_p8 = scmp.ge.s32.totalorder %s14085_s0, 1  ;;  %p1864_p9 = scmp.lt.s32.totalorder %s14085_s0, 3 }
  0xcb   : > { %p1865_p10 = pnand %p10986_p8, %p1864_p9 }
  0xcd   : > { %1868 = sbr.rel (%p1865_p10) target bundleno = 4593 (0x11f1), region = 228 }
  0xd2   : > { %v2043_v34 = vld [vmem:[%s18668_s6] sm:$0xf]  ;;  %vm2100_vm0 = vcmask 1043456   ;;  %s18890_s23 = sadd.s32 4294967295, %s14085_s0   ;;  %s18891_s22 = sld [smem:[#allocation198_spill]]  ;;  %vm2051_vm1 = vcmask 64512  }
  0xd3   : > { %s10991_s16 = sshll.u32 %s18890_s23, 5  ;;  %13413 = vmatprep.subr.msk.bf16.mxu0 %vm2100_vm0, %v2043_v34  ;;  %v2102_v35 = vsel %vm2100_vm0, %v2043_v34, 0  ;;  %13414 = vmatprep.subr.msk.bf16.mxu1 %vm2100_vm0, %v2043_v34  ;;  %v13466_v20 = vld [vmem:[%s18670_s8 + $0x14] ss:$8 sps:$4 sm:$0xff]   ;;  %v13464_v21 = vld [vmem:[%s18670_s8 + $0x10] ss:$8 sps:$4 sm:$0xff]  }
  0xd4   : > { %p1969_p11 = scmp.lt.s32.totalorder %s10991_s16, 63  ;;  %13146 = vmatpush3.bf16.msra.mxu0 %v2102_v35  ;;  %13412 = vmatpush3.bf16.msra.mxu1 %v2102_v35  ;;  %v13469_v22 = vld [vmem:[%s18670_s8 + $0x4] ss:$8 sps:$4 sm:$0xff]   ;;  %v13467_v23 = vld [vmem:[%s18670_s8] ss:$8 sps:$4 sm:$0xff]   ;;  %v18684_v24 = vmov 0  }
  0xd5   : > { %2398 = vmatprep.subr.bf16.mxu1 %v13466_v20  ;;  %13463 = vset.pattern.permute.xlu1 %v18684_v24  ;;  %v14941_v27 = vld [vmem:[%s18669_s7] ss:$0 sm:$0xff]  ;;  %vm2337_vm2 = vcmask 261120   ;;  %s14088_s21 = smov 96   ;;  %s1885_s20 = sand.u32 1, %s14069_s27   ;;  %vm14092_vm3 = vmmov 0  }
  0xd6   : > { %s19602_s16 = smov (!%p1969_p11, %s10991_s16), 63  ;;  %13462 = vset.pattern.permute.xlu0 %v18684_v24  ;;  %s10989_s18 = sshll.u32 %s1885_s20, 10  ;;  %vm10812_vm4 = vcmask 31744  }
  0xd7   : > { %s10992_s26 = sshll.u32 %s19602_s16, 3  ;;  %s15271_s19 = scalar_lea.vmem [#allocation4], %s10989_s18 }
  0xd8   : > { %s14873_s2 = scalar_lea.vmem %s18891_s22, %s10992_s26  ;;  %s14089_s22 = smov 64  }
  0xd9   : > { %v1995_v36 = vld [vmem:[%s14873_s2] sm:$0xff]  ;;  %v1996_v37 = vld [vmem:[%s14873_s2 + $0x8] sm:$0xff]  ;;  %v1997_v38 = vld [vmem:[%s14873_s2 + $0x10] sm:$0xff]  ;;  %s19591_s20 = sadd.s32 4294967295, %s14085_s0   ;;  %s19592_s27 = sld [smem:[#allocation203_spill]] }
  0xda   : > { %v2027_v39 = vpack.c.bf16 %v1996_v37, %v1995_v36  ;;  %v1998_v40 = vld [vmem:[%s14873_s2 + $0x18] sm:$0xff]  ;;  %v1999_v41 = vld [vmem:[%s14873_s2 + $0x20] sm:$0xff]  ;;  %v2000_v42 = vld [vmem:[%s14873_s2 + $0x28] sm:$0xff]  ;;  %s10995_s18 = sshll.u32 %s19591_s20, 1 }
  0xdb   : > { %v2028_v43 = vpack.c.bf16 %v1998_v40, %v1997_v38  ;;  %v2029_v44 = vpack.c.bf16 %v2000_v42, %v1999_v41  ;;  %v2001_v45 = vld [vmem:[%s14873_s2 + $0x30] sm:$0xff]  ;;  %v2002_v46 = vld [vmem:[%s14873_s2 + $0x38] sm:$0xff]  ;;  %v2003_v47 = vld [vmem:[%s14873_s2 + $0x40] sm:$0xff]  ;;  %p1989_p12 = scmp.lt.s32.totalorder %s10995_s18, 3 }
  0xdc   : > { %13147 = vmatprep.mubr.msk.bf16.mxu0 %vm2051_vm1, %v2027_v39  ;;  %v2004_v48 = vld [vmem:[%s14873_s2 + $0x48] sm:$0xff]  ;;  %v2030_v49 = vpack.c.bf16 %v2002_v46, %v2001_v45  ;;  %v2019_v50 = vld [vmem:[%s14873_s2 + $0xc0] sm:$0xff]  ;;  %v2021_v52 = vld [vmem:[%s14873_s2 + $0xd0] sm:$0xff] }
  0xdd   : > { %13148 = vmatmul.mubr.msk.bf16.vlgmr.msra.gmra.mxu0 %vm2051_vm1, %v2028_v43  ;;  %v2020_v51 = vld [vmem:[%s14873_s2 + $0xc8] sm:$0xff]  ;;  %v2031_v53 = vpack.c.bf16 %v2004_v48, %v2003_v47  ;;  %v2022_v55 = vld [vmem:[%s14873_s2 + $0xd8] sm:$0xff]  ;;  %v2023_v56 = vld [vmem:[%s14873_s2 + $0xe0] sm:$0xff]  ;;  %s19604_s18 = smov (!%p1989_p12, %s10995_s18), 3 }
  0xde   : > { %13151 = vmatprep.mubr.msk.bf16.mxu0 %vm2051_vm1, %v2029_v44  ;;  %v2039_v54 = vpack.c.bf16 %v2020_v51, %v2019_v50  ;;  %v2024_v57 = vld [vmem:[%s14873_s2 + $0xe8] sm:$0xff]  ;;  %v2040_v58 = vpack.c.bf16 %v2022_v55, %v2021_v52  ;;  %v2005_v60 = vld [vmem:[%s14873_s2 + $0x50] sm:$0xff]  ;;  %v2006_v61 = vld [vmem:[%s14873_s2 + $0x58] sm:$0xff] }
  0xdf   : > { %v2041_v59 = vpack.c.bf16 %v2024_v57, %v2023_v56  ;;  %v2025_v62 = vld [vmem:[%s14873_s2 + $0xf0] sm:$0xff]  ;;  %v2026_v63 = vld [vmem:[%s14873_s2 + $0xf8] sm:$0xff]  ;;  %v2007_v0 = vld [vmem:[%s14873_s2 + $0x60] sm:$0xff]  ;;  %v2032_v2 = vpack.c.bf16 %v2006_v61, %v2005_v60 }
  0xe0   : > { %13171 = vmatprep.mubr.msk.bf16.mxu1 %vm2051_vm1, %v2039_v54  ;;  %v2008_v1 = vld [vmem:[%s14873_s2 + $0x68] sm:$0xff]  ;;  %v2042_v3 = vpack.c.bf16 %v2026_v63, %v2025_v62  ;;  %v2009_v5 = vld [vmem:[%s14873_s2 + $0x70] sm:$0xff]  ;;  %v2010_v6 = vld [vmem:[%s14873_s2 + $0x78] sm:$0xff] }
  0xe1   : > { %13172 = vmatmul.mubr.msk.bf16.vlgmr.msra.gmra.mxu1 %vm2051_vm1, %v2040_v58  ;;  %v2033_v4 = vpack.c.bf16 %v2008_v1, %v2007_v0  ;;  %v2011_v7 = vld [vmem:[%s14873_s2 + $0x80] sm:$0xff]  ;;  %v2012_v8 = vld [vmem:[%s14873_s2 + $0x88] sm:$0xff]  ;;  %v2034_v9 = vpack.c.bf16 %v2010_v6, %v2009_v5  ;;  %v2013_v11 = vld [vmem:[%s14873_s2 + $0x90] sm:$0xff] }
  0xe2   : > { %13175 = vmatprep.mubr.msk.bf16.mxu1 %vm2051_vm1, %v2041_v59  ;;  %v2035_v10 = vpack.c.bf16 %v2012_v8, %v2011_v7  ;;  %v2014_v12 = vld [vmem:[%s14873_s2 + $0x98] sm:$0xff]  ;;  %v2015_v13 = vld [vmem:[%s14873_s2 + $0xa0] sm:$0xff]  ;;  %v2016_v14 = vld [vmem:[%s14873_s2 + $0xa8] sm:$0xff]  ;;  %2399 = vmatpush1.bf16.msra.mxu1 %v13464_v21 }
  0xe3   : > { %v2036_v15 = vpack.c.bf16 %v2014_v12, %v2013_v11  ;;  %v2037_v16 = vpack.c.bf16 %v2016_v14, %v2015_v13  ;;  %v2017_v17 = vld [vmem:[%s14873_s2 + $0xb0] sm:$0xff]  ;;  %v2018_v18 = vld [vmem:[%s14873_s2 + $0xb8] sm:$0xff]  ;;  %2400 = vmatprep.subr.bf16.mxu1 %v13469_v22  ;;  %s15218_s2 = sand.u32 1, %s14077_s29   ;;  %s14090_s29 = smov 32  }
  0xe4   : > { %v2038_v19 = vpack.c.bf16 %v2018_v18, %v2017_v17  ;;  %s10987_s17 = sshll.u32 %s15218_s2, 10  ;;  %s10988_s1 = sshll.u32 %s15218_s2, 8 }
  0xe5   : > { %13152 = vmatmul.mubr.msk.bf16.gmra.mxu0 %vm2051_vm1, %v2030_v49  ;;  %s15224_s15 = scalar_lea.vmem [#allocation2], %s10987_s17  ;;  %s16087_s23 = scalar_lea.vmem [#allocation3], %s10988_s1 }
  0xe6   : > { %13155 = vmatprep.mubr.msk.bf16.mxu0 %vm2051_vm1, %v2031_v53  ;;  %2401 = vmatpush1.bf16.msra.mxu1 %v13467_v23  ;;  %s13415_s1 = smul.u32 24, %s19602_s16  ;;  %s19590_s17 = sld [smem:[#allocation201_spill]] }
  0xe7   : > { %s19593_s16 = sld [smem:[#allocation204_spill]] }
  0xe8   : > { %s16666_s25 = scalar_lea.vmem %s18666_s4, %s13415_s1 }
  0xe9   : > { %13176 = vmatmul.mubr.msk.bf16.gmra.mxu1 %vm2051_vm1, %v2042_v3 }
  0xea   : > { %2418 = vmatprep.mubr.bf16.mxu1 %v18684_v24 }
  0xed   : > { %13156 = vmatmul.mubr.msk.bf16.gmra.mxu0 %vm2051_vm1, %v2032_v2 }
  0xee   : > { %13159 = vmatprep.mubr.msk.bf16.mxu0 %vm2051_vm1, %v2033_v4 }
  0xf5   : > { %13160 = vmatmul.mubr.msk.bf16.gmra.mxu0 %vm2051_vm1, %v2034_v9 }
  0xf6   : > { %13163 = vmatprep.mubr.msk.bf16.mxu0 %vm2051_vm1, %v2035_v10 }
  0xfd   : > { %13164 = vmatmul.mubr.msk.bf16.gmra.mxu0 %vm2051_vm1, %v2036_v15 }
  0xfe   : > { %13167 = vmatprep.mubr.msk.bf16.mxu0 %vm2051_vm1, %v2037_v16 }
 0x105   : > { %13168 = vmatmul.mubr.msk.bf16.gmra.mxu0 %vm2051_vm1, %v2038_v19 }
 0x19d   : > { %v13149_v25 = vpop.f32.mrf.mxu0 }
 0x19e   : > { %v2147_v39 = vadd.f32 %v13149_v25, %v14941_v27 }
 0x19f   : > { %v2138_v26 = vpop.f32.mrf.mxu0 }
 0x1a0   : > { %v2139_v29 = vadd.f32 %v14941_v27, %v2138_v26  ;;  %v2267_v42 = vmax.f32 %v2147_v39, 0.0 }
 0x1a1   : > { %v13150_v28 = vpop.f32.mrf.mxu0 }
 0x1a2   : > { %v2265_v33 = vmax.f32 %v2139_v29, 0.0  ;;  %v2150_v36 = vadd.f32 %v13150_v28, %v14941_v27 }
 0x1a3   : > { %v2141_v30 = vpop.f32.mrf.mxu0 }
 0x1a4   : > { %v2142_v31 = vadd.f32 %v14941_v27, %v2141_v30  ;;  %v2268_v40 = vmax.f32 %v2150_v36, 0.0 }
 0x1a5   : > { %v13153_v32 = vpop.f32.mrf.mxu0 }
 0x1a6   : > { %v2266_v34 = vmax.f32 %v2142_v31, 0.0  ;;  %v2298_v43 = vpack.c.bf16 %v2268_v40, %v2267_v42  ;;  %v2163_v50 = vadd.f32 %v13153_v32, %v14941_v27  ;;  %v13173_v40 = vpop.f32.mrf.mxu1 }
 0x1a7   : > { %v2154_v35 = vpop.f32.mrf.mxu0 }
 0x1a8   : > { %v2297_v37 = vpack.c.bf16 %v2266_v34, %v2265_v33  ;;  %v2155_v44 = vadd.f32 %v14941_v27, %v2154_v35  ;;  %v2271_v54 = vmax.f32 %v2163_v50, 0.0 }
 0x1a9   : > { %v13154_v38 = vpop.f32.mrf.mxu0 }
 0x1aa   : > { %11018 = vmatmul.mubr.msk.bf16.vlgmr.msra.gmra.mxu1 %vm2337_vm2, %v2297_v37  ;;  %v2269_v47 = vmax.f32 %v2155_v44, 0.0  ;;  %v2166_v51 = vadd.f32 %v13154_v38, %v14941_v27 }
 0x1ab   : > { %2428 = vmatprep.mubr.bf16.mxu1 %v18684_v24  ;;  %v2157_v41 = vpop.f32.mrf.mxu0 }
 0x1ac   : > { %v2158_v45 = vadd.f32 %v14941_v27, %v2157_v41  ;;  %v2272_v55 = vmax.f32 %v2166_v51, 0.0 }
 0x1ad   : > { %v13157_v46 = vpop.f32.mrf.mxu0 }
 0x1ae   : > { %v2270_v48 = vmax.f32 %v2158_v45, 0.0  ;;  %v2300_v57 = vpack.c.bf16 %v2272_v55, %v2271_v54  ;;  %v2179_v0 = vadd.f32 %v13157_v46, %v14941_v27 }
 0x1af   : > { %v2170_v49 = vpop.f32.mrf.mxu0 }
 0x1b0   : > { %v2299_v52 = vpack.c.bf16 %v2270_v48, %v2269_v47  ;;  %v2171_v58 = vadd.f32 %v14941_v27, %v2170_v49  ;;  %v2275_v4 = vmax.f32 %v2179_v0, 0.0 }
 0x1b1   : > { %v13158_v53 = vpop.f32.mrf.mxu0 }
 0x1b2   : > { %11019 = vmatmul.mubr.msk.bf16.gmra.mxu1 %vm2337_vm2, %v2298_v43  ;;  %v2273_v61 = vmax.f32 %v2171_v58, 0.0  ;;  %v2182_v1 = vadd.f32 %v13158_v53, %v14941_v27  ;;  %v2234_v43 = vpop.f32.mrf.mxu1  ;;  %v2243_v58 = vadd.f32 %v13173_v40, %v14941_v27 }
 0x1b3   : > { %2438 = vmatprep.mubr.bf16.mxu1 %v18684_v24  ;;  %v2173_v56 = vpop.f32.mrf.mxu0 }
 0x1b4   : > { %v2174_v59 = vadd.f32 %v14941_v27, %v2173_v56  ;;  %v2276_v5 = vmax.f32 %v2182_v1, 0.0  ;;  %v13174_v47 = vpop.f32.mrf.mxu1 }
 0x1b5   : > { %v13161_v60 = vpop.f32.mrf.mxu0 }
 0x1b6   : > { %v2274_v62 = vmax.f32 %v2174_v59, 0.0  ;;  %v2302_v7 = vpack.c.bf16 %v2276_v5, %v2275_v4  ;;  %v2195_v14 = vadd.f32 %v13161_v60, %v14941_v27  ;;  %v2237_v50 = vpop.f32.mrf.mxu1  ;;  %v2246_v59 = vadd.f32 %v13174_v47, %v14941_v27 }
 0x1b7   : > { %v2186_v63 = vpop.f32.mrf.mxu0  ;;  %v2238_v53 = vadd.f32 %v14941_v27, %v2237_v50 }
 0x1b8   : > { %v2301_v2 = vpack.c.bf16 %v2274_v62, %v2273_v61  ;;  %v2187_v8 = vadd.f32 %v14941_v27, %v2186_v63  ;;  %v2279_v18 = vmax.f32 %v2195_v14, 0.0  ;;  %v13177_v54 = vpop.f32.mrf.mxu1  ;;  %v2291_v62 = vmax.f32 %v2243_v58, 0.0 }
 0x1b9   : > { %v13162_v3 = vpop.f32.mrf.mxu0  ;;  %v2290_v56 = vmax.f32 %v2238_v53, 0.0  ;;  %v2292_v63 = vmax.f32 %v2246_v59, 0.0 }
 0x1ba   : > { %11020 = vmatmul.mubr.msk.bf16.gmra.mxu1 %vm2337_vm2, %v2299_v52  ;;  %v2277_v11 = vmax.f32 %v2187_v8, 0.0  ;;  %v2198_v15 = vadd.f32 %v13162_v3, %v14941_v27  ;;  %v2235_v52 = vadd.f32 %v14941_v27, %v2234_v43 }
 0x1bb   : > { %2448 = vmatprep.mubr.bf16.mxu1 %v18684_v24  ;;  %v2189_v6 = vpop.f32.mrf.mxu0  ;;  %v2310_v1 = vpack.c.bf16 %v2292_v63, %v2291_v62 }
 0x1bc   : > { %v2190_v9 = vadd.f32 %v14941_v27, %v2189_v6  ;;  %v2280_v19 = vmax.f32 %v2198_v15, 0.0  ;;  %v2289_v55 = vmax.f32 %v2235_v52, 0.0  ;;  %v2259_v6 = vadd.f32 %v13177_v54, %v14941_v27 }
 0x1bd   : > { %v13165_v10 = vpop.f32.mrf.mxu0 }
 0x1be   : > { %v2278_v12 = vmax.f32 %v2190_v9, 0.0  ;;  %v2304_v21 = vpack.c.bf16 %v2280_v19, %v2279_v18  ;;  %v2211_v30 = vadd.f32 %v13165_v10, %v14941_v27  ;;  %v2309_v60 = vpack.c.bf16 %v2290_v56, %v2289_v55 }
 0x1bf   : > { %v2202_v13 = vpop.f32.mrf.mxu0  ;;  %v2295_v9 = vmax.f32 %v2259_v6, 0.0 }
 0x1c0   : > { %v2303_v16 = vpack.c.bf16 %v2278_v12, %v2277_v11  ;;  %v2203_v22 = vadd.f32 %v14941_v27, %v2202_v13  ;;  %v2283_v34 = vmax.f32 %v2211_v30, 0.0 }
 0x1c1   : > { %v13166_v17 = vpop.f32.mrf.mxu0 }
 0x1c2   : > { %11021 = vmatmul.mubr.msk.bf16.gmra.mxu1 %vm2337_vm2, %v2300_v57  ;;  %v2281_v26 = vmax.f32 %v2203_v22, 0.0  ;;  %v2214_v31 = vadd.f32 %v13166_v17, %v14941_v27  ;;  %v2250_v57 = vpop.f32.mrf.mxu1 }
 0x1c3   : > { %2458 = vmatprep.mubr.bf16.mxu1 %v18684_v24  ;;  %v2205_v20 = vpop.f32.mrf.mxu0 }
 0x1c4   : > { %v2206_v23 = vadd.f32 %v14941_v27, %v2205_v20  ;;  %v2284_v35 = vmax.f32 %v2214_v31, 0.0  ;;  %v13178_v61 = vpop.f32.mrf.mxu1 }
 0x1c5   : > { %v13169_v25 = vpop.f32.mrf.mxu0 }
 0x1c6   : > { %v2282_v28 = vmax.f32 %v2206_v23, 0.0  ;;  %v2306_v37 = vpack.c.bf16 %v2284_v35, %v2283_v34  ;;  %v2227_v44 = vadd.f32 %v13169_v25, %v14941_v27  ;;  %v2253_v0 = vpop.f32.mrf.mxu1 }
 0x1c7   : > { %v2218_v29 = vpop.f32.mrf.mxu0  ;;  %v2254_v3 = vadd.f32 %v14941_v27, %v2253_v0 }
 0x1c8   : > { %v2305_v32 = vpack.c.bf16 %v2282_v28, %v2281_v26  ;;  %v2219_v38 = vadd.f32 %v14941_v27, %v2218_v29  ;;  %v2287_v48 = vmax.f32 %v2227_v44, 0.0 }
 0x1c9   : > { %v13170_v33 = vpop.f32.mrf.mxu0  ;;  %v2294_v5 = vmax.f32 %v2254_v3, 0.0 }
 0x1ca   : > { %11022 = vmatmul.mubr.msk.bf16.gmra.mxu1 %vm2337_vm2, %v2301_v2  ;;  %v2285_v41 = vmax.f32 %v2219_v38, 0.0  ;;  %v2230_v45 = vadd.f32 %v13170_v33, %v14941_v27  ;;  %v2251_v2 = vadd.f32 %v14941_v27, %v2250_v57 }
 0x1cb   : > { %2468 = vmatprep.mubr.bf16.mxu1 %v18684_v24  ;;  %v2221_v36 = vpop.f32.mrf.mxu0 }
 0x1cc   : > { %v2222_v39 = vadd.f32 %v14941_v27, %v2221_v36  ;;  %v2288_v49 = vmax.f32 %v2230_v45, 0.0  ;;  %v2293_v4 = vmax.f32 %v2251_v2, 0.0 }
 0x1ce   : > { %v2286_v42 = vmax.f32 %v2222_v39, 0.0  ;;  %v2308_v51 = vpack.c.bf16 %v2288_v49, %v2287_v48  ;;  %v2311_v8 = vpack.c.bf16 %v2294_v5, %v2293_v4 }
 0x1d0   : > { %v2307_v46 = vpack.c.bf16 %v2286_v42, %v2285_v41 }
 0x1d2   : > { %11023 = vmatmul.mubr.msk.bf16.gmra.mxu1 %vm2337_vm2, %v2302_v7  ;;  %v2262_v7 = vadd.f32 %v13178_v61, %v14941_v27 }
 0x1d3   : > { %2478 = vmatprep.mubr.bf16.mxu1 %v18684_v24 }
 0x1d4   : > { %v2296_v10 = vmax.f32 %v2262_v7, 0.0 }
 0x1d6   : > { %v2312_v11 = vpack.c.bf16 %v2296_v10, %v2295_v9 }
 0x1da   : > { %11024 = vmatmul.mubr.msk.bf16.gmra.mxu1 %vm2337_vm2, %v2303_v16 }
 0x1db   : > { %2488 = vmatprep.mubr.bf16.mxu1 %v18684_v24 }
 0x1e2   : > { %11025 = vmatmul.mubr.msk.bf16.gmra.mxu1 %vm2337_vm2, %v2304_v21 }
 0x1e3   : > { %2498 = vmatprep.mubr.bf16.mxu1 %v18684_v24 }
 0x1ea   : > { %11026 = vmatmul.mubr.msk.bf16.gmra.mxu1 %vm2337_vm2, %v2305_v32 }
 0x1eb   : > { %2508 = vmatprep.mubr.bf16.mxu1 %v18684_v24 }
 0x1f2   : > { %11027 = vmatmul.mubr.msk.bf16.gmra.mxu1 %vm2337_vm2, %v2306_v37 }
 0x1f3   : > { %2518 = vmatprep.mubr.bf16.mxu1 %v18684_v24 }
 0x1fa   : > { %11028 = vmatmul.mubr.msk.bf16.gmra.mxu1 %vm2337_vm2, %v2307_v46 }
 0x1fb   : > { %2528 = vmatprep.mubr.bf16.mxu1 %v18684_v24 }
 0x202   : > { %11029 = vmatmul.mubr.msk.bf16.gmra.mxu1 %vm2337_vm2, %v2308_v51 }
 0x203   : > { %2538 = vmatprep.mubr.bf16.mxu1 %v18684_v24 }
 0x20a   : > { %11030 = vmatmul.mubr.msk.bf16.gmra.mxu1 %vm2337_vm2, %v2309_v60 }
 0x20b   : > { %2548 = vmatprep.mubr.bf16.mxu1 %v18684_v24 }
 0x212   : > { %11031 = vmatmul.mubr.msk.bf16.gmra.mxu1 %vm2337_vm2, %v2310_v1 }
 0x213   : > { %2558 = vmatprep.mubr.bf16.mxu1 %v18684_v24 }
 0x21a   : > { %11032 = vmatmul.mubr.msk.bf16.gmra.mxu1 %vm2337_vm2, %v2311_v8 }
 0x21b   : > { %2568 = vmatprep.mubr.bf16.mxu1 %v18684_v24 }
 0x222   : > { %11033 = vmatmul.mubr.msk.bf16.gmra.mxu1 %vm2337_vm2, %v2312_v11 }
 0x26a   : > { %v15006_v12 = vpop.f32.mrf.mxu1 }
 0x26b   : > { %18892 = vst [vmem:[#allocation9_spill] sm:$0xff] %v15006_v12 }
 0x26c   : > { %v15008_v13 = vpop.f32.mrf.mxu1 }
 0x26e   : > { %v15010_v14 = vpop.f32.mrf.mxu1 }
 0x26f   : > { %18893 = vst [vmem:[#allocation10_spill] sm:$0xff] %v15010_v14  ;;  %v15014_v15 = vpack.c.bf16 %v15010_v14, %v15006_v12 }
 0x270   : > { %v15016_v27 = vpop.f32.mrf.mxu1 }
 0x272   : > { %v15018_v16 = vpop.f32.mrf.mxu1 }
 0x274   : > { %v15020_v17 = vpop.f32.mrf.mxu1 }
 0x276   : > { %v15022_v18 = vpop.f32.mrf.mxu1 }
 0x277   : > { %v15026_v19 = vpack.c.bf16 %v15022_v18, %v15018_v16 }
 0x278   : > { %v15028_v20 = vpop.f32.mrf.mxu1 }
 0x27a   : > { %v15030_v21 = vpop.f32.mrf.mxu1 }
 0x27c   : > { %v15032_v22 = vpop.f32.mrf.mxu1 }
 0x27e   : > { %v15034_v23 = vpop.f32.mrf.mxu1 }
 0x27f   : > { %v15038_v25 = vpack.c.bf16 %v15034_v23, %v15030_v21 }
 0x280   : > { %v15040_v26 = vpop.f32.mrf.mxu1 }
 0x282   : > { %v15042_v28 = vpop.f32.mrf.mxu1 }
 0x284   : > { %v15044_v29 = vpop.f32.mrf.mxu1 }
 0x286   : > { %v15046_v30 = vpop.f32.mrf.mxu1 }
 0x287   : > { %v15050_v31 = vpack.c.bf16 %v15046_v30, %v15042_v28 }
 0x288   : > { %v15052_v32 = vpop.f32.mrf.mxu1 }
 0x28a   : > { %v15054_v33 = vpop.f32.mrf.mxu1 }
 0x28c   : > { %v15056_v34 = vpop.f32.mrf.mxu1 }
 0x28e   : > { %v15058_v35 = vpop.f32.mrf.mxu1 }
 0x28f   : > { %v15062_v36 = vpack.c.bf16 %v15058_v35, %v15054_v33 }
 0x290   : > { %v15064_v37 = vpop.f32.mrf.mxu1 }
 0x291   : > { %2866 = vrot.lane.b32.xlu1 %v15062_v36, %s14088_s21 }
 0x292   : > { %v15068_v38 = vpop.f32.mrf.mxu1 }
 0x294   : > { %v15070_v39 = vpop.f32.mrf.mxu1 }
 0x295   : > { %3524 = vrot.lane.b32.xlu1 %v15062_v36, %s14089_s22 }
 0x296   : > { %v15074_v40 = vpop.f32.mrf.mxu1 }
 0x297   : > { %18894 = vst [vmem:[#allocation11_spill] sm:$0xff] %v15074_v40  ;;  %v15078_v41 = vpack.c.bf16 %v15074_v40, %v15068_v38  ;;  %v3093_v40 = vld [vmem:[%s15271_s19 + $0xd0] sm:$0xff] }
 0x298   : > { %v15080_v42 = vpop.f32.mrf.mxu1 }
 0x299   : > { %2868 = vrot.lane.b32.xlu1 %v15078_v41, %s14088_s21 }
 0x29a   : > { %v15084_v43 = vpop.f32.mrf.mxu1 }
 0x29b   : > { %18895 = vst [vmem:[#allocation12_spill] sm:$0xff] %v15084_v43 }
 0x29c   : > { %v15086_v44 = vpop.f32.mrf.mxu1 }
 0x29d   : > { %3526 = vrot.lane.b32.xlu1 %v15078_v41, %s14089_s22 }
 0x29e   : > { %v15090_v45 = vpop.f32.mrf.mxu1 }
 0x29f   : > { %18896 = vst [vmem:[#allocation13_spill] sm:$0xff] %v15090_v45  ;;  %v15094_v46 = vpack.c.bf16 %v15090_v45, %v15084_v43  ;;  %v3094_v43 = vld [vmem:[%s15271_s19 + $0xd8] sm:$0xff] }
 0x2a0   : > { %v15096_v47 = vpop.f32.mrf.mxu1 }
 0x2a1   : > { %2870 = vrot.lane.b32.xlu1 %v15094_v46, %s14088_s21 }
 0x2a2   : > { %v15100_v48 = vpop.f32.mrf.mxu1 }
 0x2a3   : > { %18897 = vst [vmem:[#allocation14_spill] sm:$0xff] %v15100_v48 }
 0x2a4   : > { %v15102_v49 = vpop.f32.mrf.mxu1 }
 0x2a5   : > { %3528 = vrot.lane.b32.xlu1 %v15094_v46, %s14089_s22 }
 0x2a6   : > { %v15106_v50 = vpop.f32.mrf.mxu1 }
 0x2a7   : > { %18898 = vst [vmem:[#allocation15_spill] sm:$0xff] %v15106_v50  ;;  %v15110_v51 = vpack.c.bf16 %v15106_v50, %v15100_v48 }
 0x2a8   : > { %v15112_v52 = vpop.f32.mrf.mxu1 }
 0x2a9   : > { %3530 = vrot.lane.b32.xlu1 %v15110_v51, %s14089_s22  ;;  %2872 = vrot.lane.b32.xlu0 %v15110_v51, %s14088_s21 }
 0x2aa   : > { %v15118_v53 = vpop.f32.mrf.mxu1 }
 0x2ab   : > { %18899 = vst [vmem:[#allocation16_spill] sm:$0xff] %v15118_v53 }
 0x2ac   : > { %v15120_v54 = vpop.f32.mrf.mxu1 }
 0x2ae   : > { %v15122_v55 = vpop.f32.mrf.mxu1 }
 0x2af   : > { %18900 = vst [vmem:[#allocation17_spill] sm:$0xff] %v15122_v55  ;;  %v15126_v56 = vpack.c.bf16 %v15122_v55, %v15118_v53 }
 0x2b0   : > { %v15128_v57 = vpop.f32.mrf.mxu1 }
 0x2b2   : > { %v15130_v58 = vpop.f32.mrf.mxu1 }
 0x2b3   : > { %18901 = vst [vmem:[#allocation18_spill] sm:$0xff] %v15130_v58 }
 0x2b4   : > { %v15132_v59 = vpop.f32.mrf.mxu1 }
 0x2b6   : > { %v15134_v60 = vpop.f32.mrf.mxu1 }
 0x2b7   : > { %18902 = vst [vmem:[#allocation19_spill] sm:$0xff] %v15134_v60  ;;  %v15138_v61 = vpack.c.bf16 %v15134_v60, %v15130_v58 }
 0x2b8   : > { %v15140_v62 = vpop.f32.mrf.mxu1 }
 0x2ba   : > { %v15142_v63 = vpop.f32.mrf.mxu1 }
 0x2bb   : > { %18903 = vst [vmem:[#allocation20_spill] sm:$0xff] %v15142_v63 }
 0x2bc   : > { %v15144_v0 = vpop.f32.mrf.mxu1 }
 0x2be   : > { %v15146_v1 = vpop.f32.mrf.mxu1 }
 0x2bf   : > { %18904 = vst [vmem:[#allocation21_spill] sm:$0xff] %v15146_v1 }
 0x2c0   : > { %v15148_v2 = vpop.f32.mrf.mxu1 }
 0x2c2   : > { %v15150_v3 = vpop.f32.mrf.mxu1 }
 0x2c3   : > { %18905 = vst [vmem:[#allocation22_spill] sm:$0xff] %v15150_v3 }
 0x2c4   : > { %v15152_v4 = vpop.f32.mrf.mxu1 }
 0x2c6   : > { %v15154_v5 = vpop.f32.mrf.mxu1 }
 0x2c7   : > { %18906 = vst [vmem:[#allocation23_spill] sm:$0xff] %v15154_v5 }
 0x2c8   : > { %v15156_v6 = vpop.f32.mrf.mxu1 }
 0x2ca   : > { %v15158_v7 = vpop.f32.mrf.mxu1 }
 0x2cb   : > { %18907 = vst [vmem:[#allocation24_spill] sm:$0xff] %v15158_v7 }
 0x2cc   : > { %v15160_v8 = vpop.f32.mrf.mxu1 }
 0x2ce   : > { %v15162_v9 = vpop.f32.mrf.mxu1 }
 0x2cf   : > { %18908 = vst [vmem:[#allocation25_spill] sm:$0xff] %v15162_v9  ;;  %v2642_v10 = vpack.c.bf16 %v15162_v9, %v15158_v7 }
 0x2d0   : > { %v15166_v11 = vpop.f32.mrf.mxu1 }
 0x2d1   : > { %2882 = vrot.lane.b32.xlu0 %v2642_v10, %s14088_s21 }
 0x2d2   : > { %v15169_v24 = vpop.f32.mrf.mxu1 }
 0x2d3   : > { %18909 = vst [vmem:[#allocation26_spill] sm:$0xff] %v15169_v24 }
 0x2d4   : > { %v15171_v60 = vpop.f32.mrf.mxu1 }
 0x2d5   : > { %3540 = vrot.lane.b32.xlu0 %v2642_v10, %s14089_s22 }
 0x2d6   : > { %v15174_v58 = vpop.f32.mrf.mxu1 }
 0x2d7   : > { %18910 = vst [vmem:[#allocation27_spill] sm:$0xff] %v15174_v58  ;;  %v2644_v55 = vpack.c.bf16 %v15174_v58, %v15169_v24 }
 0x2d8   : > { %v15178_v14 = vpop.f32.mrf.mxu1 }
 0x2d9   : > { %2884 = vrot.lane.b32.xlu0 %v2644_v55, %s14088_s21 }
 0x2da   : > { %v15181_v9 = vpop.f32.mrf.mxu1 }
 0x2db   : > { %18911 = vst [vmem:[#allocation28_spill] sm:$0xff] %v15181_v9 }
 0x2dc   : > { %v15183_v7 = vpop.f32.mrf.mxu1 }
 0x2dd   : > { %3542 = vrot.lane.b32.xlu0 %v2644_v55, %s14089_s22 }
 0x2de   : > { %v15186_v12 = vpop.f32.mrf.mxu1 }
 0x2df   : > { %18912 = vst [vmem:[#allocation29_spill] sm:$0xff] %v15186_v12  ;;  %v2646_v53 = vpack.c.bf16 %v15186_v12, %v15181_v9  ;;  %v2640_v12 = vpack.c.bf16 %v15154_v5, %v15150_v3  ;;  %v13475_v9 = vld [vmem:[%s15224_s15 + $0x104] ss:$8 sps:$4 sm:$0xff]   ;;  %v11337_v3 = vld [vmem:[%s15271_s19 + $0x370] sm:$0xff] }
 0x2e0   : > { %v15190_v50 = vpop.f32.mrf.mxu1  ;;  %3596 = vmatprep.mubr.bf16.mxu1 %v13475_v9  ;;  %v3080_v9 = vld [vmem:[%s15271_s19 + $0x68] sm:$0xff]  ;;  %v11143_v5 = vld [vmem:[%s15271_s19 + $0x160] sm:$0xff] }
 0x2e1   : > { %2886 = vrot.lane.b32.xlu0 %v2646_v53, %s14088_s21 }
 0x2e2   : > { %v15193_v58 = vpop.f32.mrf.mxu1 }
 0x2e3   : > { %18913 = vst [vmem:[#allocation30_spill] sm:$0xff] %v15193_v58 }
 0x2e4   : > { %v15195_v24 = vpop.f32.mrf.mxu1 }
 0x2e5   : > { %3544 = vrot.lane.b32.xlu0 %v2646_v53, %s14089_s22 }
 0x2e6   : > { %v15198_v48 = vpop.f32.mrf.mxu1 }
 0x2e7   : > { %18914 = vst [vmem:[#allocation31_spill] sm:$0xff] %v15198_v48  ;;  %v2648_v45 = vpack.c.bf16 %v15198_v48, %v15193_v58  ;;  %v2638_v48 = vpack.c.bf16 %v15146_v1, %v15142_v63  ;;  %v13472_v58 = vld [vmem:[%s15224_s15 + $0x4] ss:$8 sps:$4 sm:$0xff]  }
 0x2e8   : > { %2938 = vmatprep.mubr.bf16.mxu0 %v13472_v58 }
 0x2e9   : > { %3546 = vrot.lane.b32.xlu1 %v2648_v45, %s14089_s22  ;;  %2888 = vrot.lane.b32.xlu0 %v2648_v45, %s14088_s21 }
 0x2ed   : > { %2864 = vrot.lane.b32.xlu1 %v15050_v31, %s14088_s21  ;;  %2880 = vrot.lane.b32.xlu0 %v2640_v12, %s14088_s21 }
 0x2f1   : > { %3522 = vrot.lane.b32.xlu1 %v15050_v31, %s14089_s22  ;;  %3538 = vrot.lane.b32.xlu0 %v2640_v12, %s14089_s22 }
 0x2f5   : > { %2862 = vrot.lane.b32.xlu1 %v15038_v25, %s14088_s21  ;;  %2878 = vrot.lane.b32.xlu0 %v2638_v48, %s14088_s21 }
 0x2f9   : > { %3520 = vrot.lane.b32.xlu1 %v15038_v25, %s14089_s22  ;;  %3536 = vrot.lane.b32.xlu0 %v2638_v48, %s14089_s22 }
 0x2fd   : > { %2860 = vrot.lane.b32.xlu1 %v15026_v19, %s14088_s21  ;;  %2876 = vrot.lane.b32.xlu0 %v15138_v61, %s14088_s21 }
 0x301   : > { %3518 = vrot.lane.b32.xlu1 %v15026_v19, %s14089_s22  ;;  %3534 = vrot.lane.b32.xlu0 %v15138_v61, %s14089_s22 }
 0x305   : > { %2858 = vrot.lane.b32.xlu1 %v15014_v15, %s14088_s21  ;;  %2874 = vrot.lane.b32.xlu0 %v15126_v56, %s14088_s21 }
 0x309   : > { %3516 = vrot.lane.b32.xlu1 %v15014_v15, %s14089_s22  ;;  %3532 = vrot.lane.b32.xlu0 %v15126_v56, %s14089_s22 }
 0x30d   : > { %4189 = vrot.lane.b32.xlu1 %v15110_v51, %s14090_s29  ;;  %4205 = vrot.lane.b32.xlu0 %v2648_v45, %s14090_s29  ;;  %v11146_v45 = vld [vmem:[%s15271_s19 + $0x178] sm:$0xff]  ;;  %v3096_v51 = vld [vmem:[%s15271_s19 + $0xe8] sm:$0xff] }
 0x311   : > { %4187 = vrot.lane.b32.xlu1 %v15094_v46, %s14090_s29  ;;  %4203 = vrot.lane.b32.xlu0 %v2646_v53, %s14090_s29  ;;  %v11145_v46 = vld [vmem:[%s15271_s19 + $0x170] sm:$0xff]  ;;  %v3095_v53 = vld [vmem:[%s15271_s19 + $0xe0] sm:$0xff] }
 0x315   : > { %4185 = vrot.lane.b32.xlu1 %v15078_v41, %s14090_s29  ;;  %4201 = vrot.lane.b32.xlu0 %v2644_v55, %s14090_s29  ;;  %v15279_v41 = vpop.permute.xlu1 %2866  ;;  %v11258_v55 = vld [vmem:[%s15271_s19 + $0x2f8] sm:$0xff] }
 0x319   : > { %4183 = vrot.lane.b32.xlu1 %v15062_v36, %s14090_s29  ;;  %4199 = vrot.lane.b32.xlu0 %v2642_v10, %s14090_s29  ;;  %v11161_v36 = vld [vmem:[%s15271_s19 + $0x1f0] sm:$0xff]  ;;  %v3079_v10 = vld [vmem:[%s15271_s19 + $0x60] sm:$0xff] }
 0x31d   : > { %4181 = vrot.lane.b32.xlu1 %v15050_v31, %s14090_s29  ;;  %4197 = vrot.lane.b32.xlu0 %v2640_v12, %s14090_s29  ;;  %v3098_v12 = vld [vmem:[%s15271_s19 + $0xf8] sm:$0xff] }
 0x31e   : > { %v11162_v31 = vld [vmem:[%s15271_s19 + $0x1f8] sm:$0xff] }
 0x321   : > { %4179 = vrot.lane.b32.xlu1 %v15038_v25, %s14090_s29  ;;  %4195 = vrot.lane.b32.xlu0 %v2638_v48, %s14090_s29  ;;  %v3081_v25 = vld [vmem:[%s15271_s19 + $0x70] sm:$0xff]  ;;  %v15283_v48 = vpop.permute.xlu1 %3524 }
 0x325   : > { %4177 = vrot.lane.b32.xlu1 %v15026_v19, %s14090_s29  ;;  %4193 = vrot.lane.b32.xlu0 %v15138_v61, %s14090_s29  ;;  %v3097_v19 = vld [vmem:[%s15271_s19 + $0xf0] sm:$0xff]  ;;  %v15289_v58 = vpop.permute.xlu1 %2868  ;;  %v2873_v61 = vpop.permute.xlu0 %2872 }
 0x329   : > { %4175 = vrot.lane.b32.xlu1 %v15014_v15, %s14090_s29  ;;  %4191 = vrot.lane.b32.xlu0 %v15126_v56, %s14090_s29  ;;  %v3082_v15 = vld [vmem:[%s15271_s19 + $0x78] sm:$0xff]  ;;  %v11257_v56 = vld [vmem:[%s15271_s19 + $0x2f0] sm:$0xff] }
 0x32d   : > { %3256 = vperm.xlu1 %13463, %v3098_v12   ;;  %3251 = vperm.xlu0 %13462, %v3097_v19   ;;  %v3527_v19 = vpop.permute.xlu1 %3526 }
 0x331   : > { %3176 = vperm.xlu0 %13462, %v3082_v15   ;;  %3171 = vperm.xlu1 %13463, %v3081_v25   ;;  %v11242_v15 = vld [vmem:[%s15271_s19 + $0x278] sm:$0xff]  ;;  %v11241_v25 = vld [vmem:[%s15271_s19 + $0x270] sm:$0xff] }
 0x335   : > { %3915 = vperm.xlu0 %13462, %v11162_v31   ;;  %3910 = vperm.xlu1 %13463, %v11161_v36   ;;  %v11160_v36 = vld [vmem:[%s15271_s19 + $0x1e8] sm:$0xff] }
 0x339   : > { %3835 = vperm.xlu0 %13462, %v11146_v45   ;;  %3830 = vperm.xlu1 %13463, %v11145_v46   ;;  %v11159_v45 = vld [vmem:[%s15271_s19 + $0x1e0] sm:$0xff]  ;;  %v2871_v46 = vpop.permute.xlu1 %2870 }
 0x33d   : > { %3246 = vperm.xlu0 %13462, %v3096_v51   ;;  %3241 = vperm.xlu1 %13463, %v3095_v53   ;;  %v11354_v53 = vld [vmem:[%s15271_s19 + $0x3f8] sm:$0xff] }
 0x341   : > { %4574 = vperm.xlu0 %13462, %v11258_v55   ;;  %4569 = vperm.xlu1 %13463, %v11257_v56   ;;  %v11353_v55 = vld [vmem:[%s15271_s19 + $0x3f0] sm:$0xff] }
 0x343   : > { %v2883_v12 = vpop.permute.xlu0 %2882 }
 0x345   : > { %3166 = vperm.xlu0 %13462, %v3080_v9   ;;  %3161 = vperm.xlu1 %13463, %v3079_v10   ;;  %v3529_v9 = vpop.permute.xlu1 %3528  ;;  %v11144_v10 = vld [vmem:[%s15271_s19 + $0x168] sm:$0xff] }
 0x347   : > { %v3541_v31 = vpop.permute.xlu0 %3540 }
 0x349   : > { %4494 = vperm.xlu0 %13462, %v11242_v15   ;;  %4489 = vperm.xlu1 %13463, %v11241_v25   ;;  %v11338_v25 = vld [vmem:[%s15271_s19 + $0x378] sm:$0xff]  ;;  %v3531_v1 = vpop.permute.xlu1 %3530 }
 0x34b   : > { %v2885_v51 = vpop.permute.xlu0 %2884 }
 0x34d   : > { %3905 = vperm.xlu0 %13462, %v11160_v36   ;;  %3900 = vperm.xlu1 %13463, %v11159_v45  }
 0x34f   : > { %v3543_v56 = vpop.permute.xlu0 %3542 }
 0x351   : > { %5185 = vperm.xlu0 %13462, %v11354_v53   ;;  %5180 = vperm.xlu1 %13463, %v11353_v55   ;;  %v11256_v55 = vld [vmem:[%s15271_s19 + $0x2e8] sm:$0xff] }
 0x353   : > { %v2887_v15 = vpop.permute.xlu0 %2886 }
 0x355   : > { %3825 = vperm.xlu0 %13462, %v11144_v10   ;;  %3820 = vperm.xlu1 %13463, %v11143_v5   ;;  %v11255_v10 = vld [vmem:[%s15271_s19 + $0x2e0] sm:$0xff] }
 0x357   : > { %v3545_v63 = vpop.permute.xlu0 %3544 }
 0x359   : > { %5105 = vperm.xlu0 %13462, %v11338_v25   ;;  %5100 = vperm.xlu1 %13463, %v11337_v3  }
 0x35b   : > { %v3547_v36 = vpop.permute.xlu1 %3546  ;;  %v2889_v45 = vpop.permute.xlu0 %2888 }
 0x35c   : > { %11665 = vmatprep.subr.bf16.mxu0 %v2889_v45  ;;  %11777 = vmatprep.subr.bf16.mxu1 %v3547_v36  ;;  %v11142_v36 = vld [vmem:[%s15271_s19 + $0x158] sm:$0xff]  ;;  %v11141_v45 = vld [vmem:[%s15271_s19 + $0x150] sm:$0xff] }
 0x35d   : > { %11666 = vmatpush3.bf16.msra.mxu0 %v2873_v61  ;;  %11778 = vmatpush3.bf16.msra.mxu1 %v3531_v1  ;;  %v3077_v61 = vld [vmem:[%s15271_s19 + $0x50] sm:$0xff] }
 0x35e   : > { %3236 = vperm.xlu0 %13462, %v3094_v43   ;;  %3231 = vperm.xlu1 %13463, %v3093_v40   ;;  %v3078_v43 = vld [vmem:[%s15271_s19 + $0x58] sm:$0xff] }
 0x35f   : > { %11667 = vmatprep.subr.bf16.mxu0 %v2887_v15  ;;  %11779 = vmatprep.subr.bf16.mxu1 %v3545_v63  ;;  %v2865_v5 = vpop.permute.xlu1 %2864  ;;  %v2881_v53 = vpop.permute.xlu0 %2880 }
 0x361   : > { %11668 = vmatpush3.bf16.msra.mxu0 %v2871_v46  ;;  %11780 = vmatpush3.bf16.msra.mxu1 %v3529_v9  ;;  %v11240_v46 = vld [vmem:[%s15271_s19 + $0x268] sm:$0xff]  ;;  %v11239_v9 = vld [vmem:[%s15271_s19 + $0x260] sm:$0xff] }
 0x362   : > { %4564 = vperm.xlu0 %13462, %v11256_v55   ;;  %4559 = vperm.xlu1 %13463, %v11255_v10   ;;  %v11336_v55 = vld [vmem:[%s15271_s19 + $0x368] sm:$0xff]  ;;  %v11335_v10 = vld [vmem:[%s15271_s19 + $0x360] sm:$0xff] }
 0x363   : > { %11669 = vmatprep.subr.bf16.mxu0 %v2885_v51  ;;  %11781 = vmatprep.subr.bf16.mxu1 %v3543_v56  ;;  %v3523_v3 = vpop.permute.xlu1 %3522  ;;  %v3539_v1 = vpop.permute.xlu0 %3538  ;;  %v11158_v51 = vld [vmem:[%s15271_s19 + $0x1d8] sm:$0xff]  ;;  %v11157_v56 = vld [vmem:[%s15271_s19 + $0x1d0] sm:$0xff] }
 0x365   : > { %11670 = vmatpush3.bf16.msra.mxu0 %v15289_v58  ;;  %11782 = vmatpush3.bf16.msra.mxu1 %v3527_v19 }
 0x366   : > { %3156 = vperm.xlu0 %13462, %v3078_v43   ;;  %3151 = vperm.xlu1 %13463, %v3077_v61   ;;  %v2576_v43 = vpop.f32.mrf.mxu1 }
 0x367   : > { %11671 = vmatprep.subr.bf16.mxu0 %v2883_v12  ;;  %11783 = vmatprep.subr.bf16.mxu1 %v3541_v31  ;;  %v2863_v40 = vpop.permute.xlu1 %2862  ;;  %v2879_v63 = vpop.permute.xlu0 %2878  ;;  %v11352_v12 = vld [vmem:[%s15271_s19 + $0x3e8] sm:$0xff]  ;;  %v11351_v31 = vld [vmem:[%s15271_s19 + $0x3e0] sm:$0xff] }
 0x369   : > { %11672 = vmatpush3.bf16.msra.mxu0 %v15279_v41  ;;  %11784 = vmatpush3.bf16.msra.mxu1 %v15283_v48 }
 0x36a   : > { %4484 = vperm.xlu0 %13462, %v11240_v46   ;;  %4479 = vperm.xlu1 %13463, %v11239_v9   ;;  %v3091_v46 = vld [vmem:[%s15271_s19 + $0xc0] sm:$0xff] }
 0x36b   : > { %11673 = vmatprep.subr.bf16.mxu0 %v2881_v53  ;;  %11785 = vmatprep.subr.bf16.mxu1 %v3539_v1  ;;  %v3521_v58 = vpop.permute.xlu1 %3520  ;;  %v3537_v19 = vpop.permute.xlu0 %3536  ;;  %v13476_v1 = vld [vmem:[%s15224_s15 + $0x14] ss:$8 sps:$4 sm:$0xff]   ;;  %v13473_v9 = vld [vmem:[%s15224_s15 + $0x100] ss:$8 sps:$4 sm:$0xff]  }
 0x36d   : > { %11674 = vmatpush3.bf16.msra.mxu0 %v2865_v5  ;;  %11786 = vmatpush3.bf16.msra.mxu1 %v3523_v3  ;;  %v13470_v3 = vld [vmem:[%s15224_s15] ss:$8 sps:$4 sm:$0xff]  }
 0x36e   : > { %3895 = vperm.xlu0 %13462, %v11158_v51   ;;  %3890 = vperm.xlu1 %13463, %v11157_v56  }
 0x36f   : > { %11675 = vmatprep.subr.bf16.mxu0 %v2879_v63  ;;  %11787 = vmatprep.subr.bf16.mxu1 %v3537_v19  ;;  %v2861_v41 = vpop.permute.xlu1 %2860  ;;  %v2877_v48 = vpop.permute.xlu0 %2876  ;;  %v3092_v63 = vld [vmem:[%s15271_s19 + $0xc8] sm:$0xff]  ;;  %v2633_v19 = vpack.c.bf16 %v15112_v52, %v15102_v49  ;;  %v2631_v49 = vpack.c.bf16 %v15096_v47, %v15086_v44  ;;  %v2629_v44 = vpack.c.bf16 %v15080_v42, %v15070_v39 }
 0x370   : > { %v2627_v39 = vpack.c.bf16 %v15064_v37, %v15056_v34  ;;  %v2625_v34 = vpack.c.bf16 %v15052_v32, %v15044_v29  ;;  %v2623_v29 = vpack.c.bf16 %v15040_v26, %v15032_v22  ;;  %v2621_v22 = vpack.c.bf16 %v15028_v20, %v15020_v17 }
 0x371   : > { %11676 = vmatpush3.bf16.msra.mxu0 %v2863_v40  ;;  %11788 = vmatpush3.bf16.msra.mxu1 %v3521_v58  ;;  %v2649_v58 = vpack.c.bf16 %v2576_v43, %v15195_v24  ;;  %v2647_v24 = vpack.c.bf16 %v15190_v50, %v15183_v7  ;;  %v13481_v50 = vld [vmem:[%s15224_s15 + $0x110] ss:$8 sps:$4 sm:$0xff]   ;;  %v2645_v7 = vpack.c.bf16 %v15178_v14, %v15171_v60  ;;  %v13484_v14 = vld [vmem:[%s15224_s15 + $0x20] ss:$8 sps:$4 sm:$0xff]  }
 0x372   : > { %5175 = vperm.xlu0 %13462, %v11352_v12   ;;  %5170 = vperm.xlu1 %13463, %v11351_v31   ;;  %v13479_v12 = vld [vmem:[%s15224_s15 + $0x114] ss:$8 sps:$4 sm:$0xff]   ;;  %v13478_v31 = vld [vmem:[%s15224_s15 + $0x10] ss:$8 sps:$4 sm:$0xff]   ;;  %v2643_v60 = vpack.c.bf16 %v15166_v11, %v15160_v8  ;;  %v11155_v43 = vld [vmem:[%s15271_s19 + $0x1c0] sm:$0xff]  ;;  %v2641_v11 = vpack.c.bf16 %v15156_v6, %v15152_v4  ;;  %v2639_v6 = vpack.c.bf16 %v15148_v2, %v15144_v0 }
 0x373   : > { %11677 = vmatprep.subr.bf16.mxu0 %v2877_v48  ;;  %v3519_v15 = vpop.permute.xlu1 %3518  ;;  %v3535_v25 = vpop.permute.xlu0 %3534  ;;  %v11253_v48 = vld [vmem:[%s15271_s19 + $0x2d0] sm:$0xff]  ;;  %v13487_v8 = vld [vmem:[%s15224_s15 + $0x120] ss:$8 sps:$4 sm:$0xff]   ;;  %v2637_v2 = vpack.c.bf16 %v15140_v62, %v15132_v59  ;;  %v2635_v62 = vpack.c.bf16 %v15128_v57, %v15120_v54  ;;  %v2619_v17 = vpack.c.bf16 %v15016_v27, %v15008_v13 }
 0x374   : > { %11789 = vmatprep.subr.bf16.mxu1 %v3535_v25  ;;  %v3076_v25 = vld [vmem:[%s15271_s19 + $0x48] sm:$0xff]  ;;  %v13490_v4 = vld [vmem:[%s15224_s15 + $0x30] ss:$8 sps:$4 sm:$0xff]   ;;  %v13503_v13 = vld [vmem:[%s15224_s15 + $0x154] ss:$8 sps:$4 sm:$0xff]  }
 0x375   : > { %11678 = vmatpush3.bf16.msra.mxu0 %v2861_v41  ;;  %11790 = vmatpush3.bf16.msra.mxu1 %v3519_v15  ;;  %v11254_v41 = vld [vmem:[%s15271_s19 + $0x2d8] sm:$0xff]  ;;  %v13496_v59 = vld [vmem:[%s15224_s15 + $0x40] ss:$8 sps:$4 sm:$0xff]  }
 0x376   : > { %3815 = vperm.xlu0 %13462, %v11142_v36   ;;  %3810 = vperm.xlu1 %13463, %v11141_v45   ;;  %v3075_v36 = vld [vmem:[%s15271_s19 + $0x40] sm:$0xff]  ;;  %v13493_v0 = vld [vmem:[%s15224_s15 + $0x130] ss:$8 sps:$4 sm:$0xff]   ;;  %v11252_v27 = vld [vmem:[%s15271_s19 + $0x2c8] sm:$0xff] }
 0x377   : > { %v2859_v5 = vpop.permute.xlu1 %2858  ;;  %v2875_v53 = vpop.permute.xlu0 %2874  ;;  %v13482_v45 = vld [vmem:[%s15224_s15 + $0x24] ss:$8 sps:$4 sm:$0xff]   ;;  %v13499_v54 = vld [vmem:[%s15224_s15 + $0x140] ss:$8 sps:$4 sm:$0xff]  }
 0x378   : > { %11679 = vmatprep.subr.bf16.mxu0 %v2875_v53  ;;  %v11238_v53 = vld [vmem:[%s15271_s19 + $0x258] sm:$0xff]  ;;  %v11251_v57 = vld [vmem:[%s15271_s19 + $0x2c0] sm:$0xff] }
 0x379   : > { %11680 = vmatpush3.bf16.msra.mxu0 %v2859_v5 }
 0x37a   : > { %5095 = vperm.xlu0 %13462, %v11336_v55   ;;  %5090 = vperm.xlu1 %13463, %v11335_v10   ;;  %v11237_v55 = vld [vmem:[%s15271_s19 + $0x250] sm:$0xff]  ;;  %v13485_v10 = vld [vmem:[%s15224_s15 + $0x124] ss:$8 sps:$4 sm:$0xff]  }
 0x37b   : > { %v3517_v61 = vpop.permute.xlu1 %3516  ;;  %v3533_v40 = vpop.permute.xlu0 %3532 }
 0x37c   : > { %2939 = vmatmul.mubr.bf16.vlgmr.msra.gmra.mxu0 %v13470_v3  ;;  %11791 = vmatprep.subr.bf16.mxu1 %v3533_v40 }
 0x37d   : > { %11792 = vmatpush3.bf16.msra.mxu1 %v3517_v61  ;;  %2946 = vmatprep.mubr.bf16.mxu0 %v13476_v1  ;;  %v11156_v1 = vld [vmem:[%s15271_s19 + $0x1c8] sm:$0xff]  ;;  %v13488_v61 = vld [vmem:[%s15224_s15 + $0x34] ss:$8 sps:$4 sm:$0xff]  }
 0x37e   : > { %3226 = vperm.xlu0 %13462, %v3092_v63   ;;  %3221 = vperm.xlu1 %13463, %v3091_v46   ;;  %v11350_v63 = vld [vmem:[%s15271_s19 + $0x3d8] sm:$0xff]  ;;  %v11349_v46 = vld [vmem:[%s15271_s19 + $0x3d0] sm:$0xff] }
 0x37f   : > { %12001 = vmatprep.subr.bf16.mxu1 %v2649_v58  ;;  %v4190_v51 = vpop.permute.xlu1 %4189  ;;  %v4206_v56 = vpop.permute.xlu0 %4205 }
 0x380   : > { %3597 = vmatmul.mubr.bf16.vlgmr.msra.gmra.mxu1 %v13473_v9  ;;  %11889 = vmatprep.subr.bf16.mxu0 %v4206_v56  ;;  %v13491_v9 = vld [vmem:[%s15224_s15 + $0x134] ss:$8 sps:$4 sm:$0xff]   ;;  %v13494_v56 = vld [vmem:[%s15224_s15 + $0x44] ss:$8 sps:$4 sm:$0xff]  }
 0x381   : > { %11890 = vmatpush3.bf16.msra.mxu0 %v4190_v51  ;;  %12002 = vmatpush3.bf16.msra.mxu1 %v2633_v19  ;;  %v11140_v19 = vld [vmem:[%s15271_s19 + $0x148] sm:$0xff]  ;;  %v11139_v51 = vld [vmem:[%s15271_s19 + $0x140] sm:$0xff] }
 0x382   : > { %4554 = vperm.xlu0 %13462, %v11254_v41   ;;  %4549 = vperm.xlu1 %13463, %v11253_v48   ;;  %v11334_v48 = vld [vmem:[%s15271_s19 + $0x358] sm:$0xff] }
 0x383   : > { %12003 = vmatprep.subr.bf16.mxu1 %v2647_v24  ;;  %v4188_v52 = vpop.permute.xlu1 %4187  ;;  %v4204_v15 = vpop.permute.xlu0 %4203  ;;  %3604 = vmatprep.mubr.bf16.mxu1 %v13479_v12  ;;  %v11333_v12 = vld [vmem:[%s15271_s19 + $0x350] sm:$0xff] }
 0x384   : > { %2947 = vmatmul.mubr.bf16.gmra.mxu0 %v13478_v31  ;;  %11891 = vmatprep.subr.bf16.mxu0 %v4204_v15  ;;  %v13497_v31 = vld [vmem:[%s15224_s15 + $0x144] ss:$8 sps:$4 sm:$0xff]   ;;  %v13500_v15 = vld [vmem:[%s15224_s15 + $0x54] ss:$8 sps:$4 sm:$0xff]  }
 0x385   : > { %11892 = vmatpush3.bf16.msra.mxu0 %v4188_v52  ;;  %12004 = vmatpush3.bf16.msra.mxu1 %v2631_v49  ;;  %v3090_v49 = vld [vmem:[%s15271_s19 + $0xb8] sm:$0xff]  ;;  %v3089_v52 = vld [vmem:[%s15271_s19 + $0xb0] sm:$0xff] }
 0x386   : > { %3146 = vperm.xlu0 %13462, %v3076_v25   ;;  %3141 = vperm.xlu1 %13463, %v3075_v36   ;;  %v13502_v25 = vld [vmem:[%s15224_s15 + $0x50] ss:$8 sps:$4 sm:$0xff]   ;;  %v13506_v36 = vld [vmem:[%s15224_s15 + $0x64] ss:$8 sps:$4 sm:$0xff]  }
 0x387   : > { %12005 = vmatprep.subr.bf16.mxu1 %v2645_v7  ;;  %v4186_v47 = vpop.permute.xlu1 %4185  ;;  %v4202_v5 = vpop.permute.xlu0 %4201  ;;  %2954 = vmatprep.mubr.bf16.mxu0 %v13482_v45  ;;  %v3074_v45 = vld [vmem:[%s15271_s19 + $0x38] sm:$0xff] }
 0x388   : > { %3605 = vmatmul.mubr.bf16.gmra.mxu1 %v13481_v50  ;;  %11893 = vmatprep.subr.bf16.mxu0 %v4202_v5  ;;  %v3073_v50 = vld [vmem:[%s15271_s19 + $0x30] sm:$0xff]  ;;  %v11235_v5 = vld [vmem:[%s15271_s19 + $0x240] sm:$0xff] }
 0x389   : > { %11894 = vmatpush3.bf16.msra.mxu0 %v4186_v47  ;;  %12006 = vmatpush3.bf16.msra.mxu1 %v2629_v44  ;;  %v13505_v7 = vld [vmem:[%s15224_s15 + $0x150] ss:$8 sps:$4 sm:$0xff]   ;;  %v13509_v44 = vld [vmem:[%s15224_s15 + $0x164] ss:$8 sps:$4 sm:$0xff]  }
 0x38a   : > { %4474 = vperm.xlu0 %13462, %v11238_v53   ;;  %4469 = vperm.xlu1 %13463, %v11237_v55   ;;  %v11236_v47 = vld [vmem:[%s15271_s19 + $0x248] sm:$0xff] }
 0x38b   : > { %12007 = vmatprep.subr.bf16.mxu1 %v2643_v60  ;;  %v4184_v42 = vpop.permute.xlu1 %4183  ;;  %v4200_v3 = vpop.permute.xlu0 %4199  ;;  %3612 = vmatprep.mubr.bf16.mxu1 %v13485_v10  ;;  %v13508_v10 = vld [vmem:[%s15224_s15 + $0x60] ss:$8 sps:$4 sm:$0xff]   ;;  %v11154_v60 = vld [vmem:[%s15271_s19 + $0x1b8] sm:$0xff] }
 0x38c   : > { %2955 = vmatmul.mubr.bf16.gmra.mxu0 %v13484_v14  ;;  %11895 = vmatprep.subr.bf16.mxu0 %v4200_v3  ;;  %v13512_v14 = vld [vmem:[%s15224_s15 + $0x74] ss:$8 sps:$4 sm:$0xff]  }
 0x38d   : > { %11896 = vmatpush3.bf16.msra.mxu0 %v4184_v42  ;;  %12008 = vmatpush3.bf16.msra.mxu1 %v2627_v39  ;;  %v11153_v39 = vld [vmem:[%s15271_s19 + $0x1b0] sm:$0xff] }
 0x38e   : > { %3885 = vperm.xlu0 %13462, %v11156_v1   ;;  %3880 = vperm.xlu1 %13463, %v11155_v43   ;;  %v13511_v1 = vld [vmem:[%s15224_s15 + $0x160] ss:$8 sps:$4 sm:$0xff]   ;;  %v13515_v43 = vld [vmem:[%s15224_s15 + $0x174] ss:$8 sps:$4 sm:$0xff]  }
 0x38f   : > { %12009 = vmatprep.subr.bf16.mxu1 %v2641_v11  ;;  %v4182_v37 = vpop.permute.xlu1 %4181  ;;  %v4198_v40 = vpop.permute.xlu0 %4197  ;;  %2962 = vmatprep.mubr.bf16.mxu0 %v13488_v61  ;;  %v11348_v61 = vld [vmem:[%s15271_s19 + $0x3c8] sm:$0xff] }
 0x390   : > { %3613 = vmatmul.mubr.bf16.gmra.mxu1 %v13487_v8  ;;  %11897 = vmatprep.subr.bf16.mxu0 %v4198_v40  ;;  %v11347_v8 = vld [vmem:[%s15271_s19 + $0x3c0] sm:$0xff] }
 0x391   : > { %11898 = vmatpush3.bf16.msra.mxu0 %v4182_v37  ;;  %12010 = vmatpush3.bf16.msra.mxu1 %v2625_v34  ;;  %v13514_v37 = vld [vmem:[%s15224_s15 + $0x70] ss:$8 sps:$4 sm:$0xff]   ;;  %v13518_v40 = vld [vmem:[%s15224_s15 + $0x84] ss:$8 sps:$4 sm:$0xff]  }
 0x392   : > { %5165 = vperm.xlu0 %13462, %v11350_v63   ;;  %5160 = vperm.xlu1 %13463, %v11349_v46   ;;  %v11138_v63 = vld [vmem:[%s15271_s19 + $0x138] sm:$0xff]  ;;  %v11137_v46 = vld [vmem:[%s15271_s19 + $0x130] sm:$0xff] }
 0x393   : > { %12011 = vmatprep.subr.bf16.mxu1 %v2639_v6  ;;  %v4180_v32 = vpop.permute.xlu1 %4179  ;;  %v4196_v58 = vpop.permute.xlu0 %4195  ;;  %3620 = vmatprep.mubr.bf16.mxu1 %v13491_v9  ;;  %v13517_v6 = vld [vmem:[%s15224_s15 + $0x170] ss:$8 sps:$4 sm:$0xff]  }
 0x394   : > { %2963 = vmatmul.mubr.bf16.gmra.mxu0 %v13490_v4  ;;  %11899 = vmatprep.subr.bf16.mxu0 %v4196_v58  ;;  %v11331_v58 = vld [vmem:[%s15271_s19 + $0x340] sm:$0xff] }
 0x395   : > { %11900 = vmatpush3.bf16.msra.mxu0 %v4180_v32  ;;  %12012 = vmatpush3.bf16.msra.mxu1 %v2623_v29  ;;  %v13521_v29 = vld [vmem:[%s15224_s15 + $0x184] ss:$8 sps:$4 sm:$0xff]  }
 0x396   : > { %3805 = vperm.xlu0 %13462, %v11140_v19   ;;  %3800 = vperm.xlu1 %13463, %v11139_v51   ;;  %v11332_v32 = vld [vmem:[%s15271_s19 + $0x348] sm:$0xff] }
 0x397   : > { %12013 = vmatprep.subr.bf16.mxu1 %v2637_v2  ;;  %v4178_v26 = vpop.permute.xlu1 %4177  ;;  %v4194_v41 = vpop.permute.xlu0 %4193  ;;  %2970 = vmatprep.mubr.bf16.mxu0 %v13494_v56  ;;  %v13520_v56 = vld [vmem:[%s15224_s15 + $0x80] ss:$8 sps:$4 sm:$0xff]  }
 0x398   : > { %3621 = vmatmul.mubr.bf16.gmra.mxu1 %v13493_v0  ;;  %11901 = vmatprep.subr.bf16.mxu0 %v4194_v41  ;;  %v13524_v0 = vld [vmem:[%s15224_s15 + $0x94] ss:$8 sps:$4 sm:$0xff]   ;;  %v3088_v2 = vld [vmem:[%s15271_s19 + $0xa8] sm:$0xff] }
 0x399   : > { %11902 = vmatpush3.bf16.msra.mxu0 %v4178_v26  ;;  %12014 = vmatpush3.bf16.msra.mxu1 %v2621_v22  ;;  %v3087_v22 = vld [vmem:[%s15271_s19 + $0xa0] sm:$0xff] }
 0x39a   : > { %5085 = vperm.xlu0 %13462, %v11334_v48   ;;  %5080 = vperm.xlu1 %13463, %v11333_v12   ;;  %v13523_v48 = vld [vmem:[%s15224_s15 + $0x180] ss:$8 sps:$4 sm:$0xff]   ;;  %v13527_v12 = vld [vmem:[%s15224_s15 + $0x194] ss:$8 sps:$4 sm:$0xff]  }
 0x39b   : > { %12015 = vmatprep.subr.bf16.mxu1 %v2635_v62  ;;  %v4176_v20 = vpop.permute.xlu1 %4175  ;;  %v4192_v24 = vpop.permute.xlu0 %4191  ;;  %3628 = vmatprep.mubr.bf16.mxu1 %v13497_v31  ;;  %v11250_v31 = vld [vmem:[%s15271_s19 + $0x2b8] sm:$0xff] }
 0x39c   : > { %2971 = vmatmul.mubr.bf16.gmra.mxu0 %v13496_v59  ;;  %11903 = vmatprep.subr.bf16.mxu0 %v4192_v24  ;;  %v11249_v59 = vld [vmem:[%s15271_s19 + $0x2b0] sm:$0xff]  ;;  %v13530_v24 = vld [vmem:[%s15224_s15 + $0xa4] ss:$8 sps:$4 sm:$0xff]  }
 0x39d   : > { %11904 = vmatpush3.bf16.msra.mxu0 %v4176_v20  ;;  %12016 = vmatpush3.bf16.msra.mxu1 %v2619_v17  ;;  %v13526_v20 = vld [vmem:[%s15224_s15 + $0x90] ss:$8 sps:$4 sm:$0xff]  }
 0x39e   : > { %3216 = vperm.xlu0 %13462, %v3090_v49   ;;  %3211 = vperm.xlu1 %13463, %v3089_v52   ;;  %v3072_v49 = vld [vmem:[%s15271_s19 + $0x28] sm:$0xff]  ;;  %v3071_v52 = vld [vmem:[%s15271_s19 + $0x20] sm:$0xff] }
 0x39f   : > { %2978 = vmatprep.mubr.bf16.mxu0 %v13500_v15 }
 0x3a0   : > { %3629 = vmatmul.mubr.bf16.gmra.mxu1 %v13499_v54 }
 0x3a1   : > { %3636 = vmatprep.mubr.bf16.mxu1 %v13503_v13  ;;  %v13529_v13 = vld [vmem:[%s15224_s15 + $0x190] ss:$8 sps:$4 sm:$0xff]  }
 0x3a2   : > { %4544 = vperm.xlu0 %13462, %v11252_v27   ;;  %4539 = vperm.xlu1 %13463, %v11251_v57   ;;  %v13535_v27 = vld [vmem:[%s15224_s15 + $0x1a4] ss:$8 sps:$4 sm:$0xff]   ;;  %v11234_v57 = vld [vmem:[%s15271_s19 + $0x238] sm:$0xff] }
 0x3a4   : > { %2979 = vmatmul.mubr.bf16.gmra.mxu0 %v13502_v25  ;;  %v11233_v25 = vld [vmem:[%s15271_s19 + $0x230] sm:$0xff] }
 0x3a5   : > { %2986 = vmatprep.mubr.bf16.mxu0 %v13506_v36 }
 0x3a6   : > { %3136 = vperm.xlu0 %13462, %v3074_v45   ;;  %3131 = vperm.xlu1 %13463, %v3073_v50   ;;  %v13532_v50 = vld [vmem:[%s15224_s15 + $0xa0] ss:$8 sps:$4 sm:$0xff]  }
 0x3a8   : > { %v15401_v53 = vpop.permute.xlu1 %3256  ;;  %v15403_v55 = vpop.permute.xlu0 %3251  ;;  %3637 = vmatmul.mubr.bf16.gmra.mxu1 %v13505_v7  ;;  %v13536_v7 = vld [vmem:[%s15224_s15 + $0xb4] ss:$8 sps:$4 sm:$0xff]  }
 0x3a9   : > { %18915 = vst [vmem:[#allocation32_spill] sm:$0xff] %v15401_v53  ;;  %18916 = vst [vmem:[#allocation33_spill] sm:$0xff] %v15403_v55  ;;  %3644 = vmatprep.mubr.bf16.mxu1 %v13509_v44  ;;  %v11152_v44 = vld [vmem:[%s15271_s19 + $0x1a8] sm:$0xff]  ;;  %v13623_v53 = vld [vmem:[%s15224_s15 + $0x390] ss:$8 sps:$4 sm:$0xff]  }
 0x3aa   : > { %4464 = vperm.xlu0 %13462, %v11236_v47   ;;  %4459 = vperm.xlu1 %13463, %v11235_v5   ;;  %v11151_v47 = vld [vmem:[%s15271_s19 + $0x1a0] sm:$0xff] }
 0x3ab   : > { %v13631_v55 = vld [vmem:[%s15224_s15 + $0x3a4] ss:$8 sps:$4 sm:$0xff]  }
 0x3ac   : > { %v15409_v42 = vpop.permute.xlu0 %3176  ;;  %v15411_v3 = vpop.permute.xlu1 %3171  ;;  %2987 = vmatmul.mubr.bf16.gmra.mxu0 %v13508_v10 }
 0x3ad   : > { %18917 = vst [vmem:[#allocation34_spill] sm:$0xff] %v15409_v42  ;;  %18918 = vst [vmem:[#allocation35_spill] sm:$0xff] %v15411_v3  ;;  %2994 = vmatprep.mubr.bf16.mxu0 %v13512_v14  ;;  %v13533_v14 = vld [vmem:[%s15224_s15 + $0x1a0] ss:$8 sps:$4 sm:$0xff]  }
 0x3ae   : > { %3875 = vperm.xlu0 %13462, %v11154_v60   ;;  %3870 = vperm.xlu1 %13463, %v11153_v39   ;;  %v13541_v60 = vld [vmem:[%s15224_s15 + $0x1b4] ss:$8 sps:$4 sm:$0xff]  }
 0x3af   : > { %v11346_v39 = vld [vmem:[%s15271_s19 + $0x3b8] sm:$0xff] }
 0x3b0   : > { %v15417_v11 = vpop.permute.xlu0 %3915  ;;  %v15419_v34 = vpop.permute.xlu1 %3910  ;;  %3645 = vmatmul.mubr.bf16.gmra.mxu1 %v13511_v1  ;;  %v11345_v1 = vld [vmem:[%s15271_s19 + $0x3b0] sm:$0xff] }
 0x3b1   : > { %18919 = vst [vmem:[#allocation36_spill] sm:$0xff] %v15417_v11  ;;  %18920 = vst [vmem:[#allocation37_spill] sm:$0xff] %v15419_v34  ;;  %3652 = vmatprep.mubr.bf16.mxu1 %v13515_v43 }
 0x3b2   : > { %5155 = vperm.xlu0 %13462, %v11348_v61   ;;  %5150 = vperm.xlu1 %13463, %v11347_v8   ;;  %v13538_v8 = vld [vmem:[%s15224_s15 + $0xb0] ss:$8 sps:$4 sm:$0xff]  }
 0x3b4   : > { %v15425_v9 = vpop.permute.xlu0 %3835  ;;  %v15427_v4 = vpop.permute.xlu1 %3830  ;;  %2995 = vmatmul.mubr.bf16.gmra.mxu0 %v13514_v37  ;;  %v13542_v37 = vld [vmem:[%s15224_s15 + $0xc4] ss:$8 sps:$4 sm:$0xff]  }
 0x3b5   : > { %18921 = vst [vmem:[#allocation38_spill] sm:$0xff] %v15425_v9  ;;  %18922 = vst [vmem:[#allocation39_spill] sm:$0xff] %v15427_v4  ;;  %3002 = vmatprep.mubr.bf16.mxu0 %v13518_v40  ;;  %v11136_v40 = vld [vmem:[%s15271_s19 + $0x128] sm:$0xff] }
 0x3b6   : > { %3795 = vperm.xlu0 %13462, %v11138_v63   ;;  %3790 = vperm.xlu1 %13463, %v11137_v46   ;;  %v11135_v63 = vld [vmem:[%s15271_s19 + $0x120] sm:$0xff] }
 0x3b8   : > { %v15433_v19 = vpop.permute.xlu0 %3246  ;;  %v15435_v51 = vpop.permute.xlu1 %3241  ;;  %3653 = vmatmul.mubr.bf16.gmra.mxu1 %v13517_v6 }
 0x3b9   : > { %18923 = vst [vmem:[#allocation40_spill] sm:$0xff] %v15433_v19  ;;  %18924 = vst [vmem:[#allocation41_spill] sm:$0xff] %v15435_v51  ;;  %3660 = vmatprep.mubr.bf16.mxu1 %v13521_v29  ;;  %v13539_v29 = vld [vmem:[%s15224_s15 + $0x1b0] ss:$8 sps:$4 sm:$0xff]  }
 0x3ba   : > { %5075 = vperm.xlu0 %13462, %v11332_v32   ;;  %5070 = vperm.xlu1 %13463, %v11331_v58   ;;  %v13547_v32 = vld [vmem:[%s15224_s15 + $0x1c4] ss:$8 sps:$4 sm:$0xff]   ;;  %v11330_v58 = vld [vmem:[%s15271_s19 + $0x338] sm:$0xff] }
 0x3bc   : > { %v15441_v26 = vpop.permute.xlu0 %4574  ;;  %v15443_v41 = vpop.permute.xlu1 %4569  ;;  %3003 = vmatmul.mubr.bf16.gmra.mxu0 %v13520_v56  ;;  %v11329_v56 = vld [vmem:[%s15271_s19 + $0x330] sm:$0xff] }
 0x3bd   : > { %18925 = vst [vmem:[#allocation42_spill] sm:$0xff] %v15441_v26  ;;  %18926 = vst [vmem:[#allocation43_spill] sm:$0xff] %v15443_v41  ;;  %3010 = vmatprep.mubr.bf16.mxu0 %v13524_v0  ;;  %v13544_v0 = vld [vmem:[%s15224_s15 + $0xc0] ss:$8 sps:$4 sm:$0xff]   ;;  %v11229_v26 = vld [vmem:[%s15271_s19 + $0x210] sm:$0xff] }
 0x3be   : > { %3206 = vperm.xlu0 %13462, %v3088_v2   ;;  %3201 = vperm.xlu1 %13463, %v3087_v22   ;;  %v13584_v41 = vld [vmem:[%s15224_s15 + $0x234] ss:$8 sps:$4 sm:$0xff]  }
 0x3c0   : > { %v15449_v62 = vpop.permute.xlu0 %3166  ;;  %v15451_v17 = vpop.permute.xlu1 %3161  ;;  %3661 = vmatmul.mubr.bf16.gmra.mxu1 %v13523_v48  ;;  %v13548_v48 = vld [vmem:[%s15224_s15 + $0xd4] ss:$8 sps:$4 sm:$0xff]  }
 0x3c1   : > { %18927 = vst [vmem:[#allocation44_spill] sm:$0xff] %v15449_v62  ;;  %18928 = vst [vmem:[#allocation45_spill] sm:$0xff] %v15451_v17  ;;  %3668 = vmatprep.mubr.bf16.mxu1 %v13527_v12  ;;  %v3086_v12 = vld [vmem:[%s15271_s19 + $0x98] sm:$0xff] }
 0x3c2   : > { %4534 = vperm.xlu0 %13462, %v11250_v31   ;;  %4529 = vperm.xlu1 %13463, %v11249_v59   ;;  %v3085_v31 = vld [vmem:[%s15271_s19 + $0x90] sm:$0xff]  ;;  %v13545_v59 = vld [vmem:[%s15224_s15 + $0x1c0] ss:$8 sps:$4 sm:$0xff]  }
 0x3c4   : > { %v15457_v15 = vpop.permute.xlu0 %4494  ;;  %v15459_v54 = vpop.permute.xlu1 %4489  ;;  %3011 = vmatmul.mubr.bf16.gmra.mxu0 %v13526_v20 }
 0x3c5   : > { %18929 = vst [vmem:[#allocation46_spill] sm:$0xff] %v15457_v15  ;;  %18930 = vst [vmem:[#allocation47_spill] sm:$0xff] %v15459_v54  ;;  %3018 = vmatprep.mubr.bf16.mxu0 %v13530_v24  ;;  %v11227_v15 = vld [vmem:[%s15271_s19 + $0x200] sm:$0xff] }
 0x3c6   : > { %3126 = vperm.xlu0 %13462, %v3072_v49   ;;  %3121 = vperm.xlu1 %13463, %v3071_v52   ;;  %v13553_v49 = vld [vmem:[%s15224_s15 + $0x1d4] ss:$8 sps:$4 sm:$0xff]   ;;  %v11248_v52 = vld [vmem:[%s15271_s19 + $0x2a8] sm:$0xff]  ;;  %v11323_v54 = vld [vmem:[%s15271_s19 + $0x300] sm:$0xff] }
 0x3c8   : > { %v15465_v36 = vpop.permute.xlu0 %3905  ;;  %v15467_v45 = vpop.permute.xlu1 %3900  ;;  %3669 = vmatmul.mubr.bf16.gmra.mxu1 %v13529_v13  ;;  %v11247_v13 = vld [vmem:[%s15271_s19 + $0x2a0] sm:$0xff] }
 0x3c9   : > { %18931 = vst [vmem:[#allocation48_spill] sm:$0xff] %v15465_v36  ;;  %18932 = vst [vmem:[#allocation49_spill] sm:$0xff] %v15467_v45  ;;  %3676 = vmatprep.mubr.bf16.mxu1 %v13535_v27  ;;  %v13550_v27 = vld [vmem:[%s15224_s15 + $0xd0] ss:$8 sps:$4 sm:$0xff]  }
 0x3ca   : > { %4454 = vperm.xlu0 %13462, %v11234_v57   ;;  %4449 = vperm.xlu1 %13463, %v11233_v25  }
 0x3cc   : > { %v15473_v5 = vpop.permute.xlu0 %5185  ;;  %v15475_v10 = vpop.permute.xlu1 %5180  ;;  %3019 = vmatmul.mubr.bf16.gmra.mxu0 %v13532_v50  ;;  %v13554_v50 = vld [vmem:[%s15224_s15 + $0xe4] ss:$8 sps:$4 sm:$0xff]  }
 0x3cd   : > { %18933 = vst [vmem:[#allocation50_spill] sm:$0xff] %v15473_v5  ;;  %18934 = vst [vmem:[#allocation51_spill] sm:$0xff] %v15475_v10  ;;  %3026 = vmatprep.mubr.bf16.mxu0 %v13536_v7  ;;  %v3070_v7 = vld [vmem:[%s15271_s19 + $0x18] sm:$0xff]  ;;  %v3067_v5 = vld [vmem:[%s15271_s19] sm:$0xff] }
 0x3ce   : > { %3865 = vperm.xlu0 %13462, %v11152_v44   ;;  %3860 = vperm.xlu1 %13463, %v11151_v47   ;;  %v3069_v44 = vld [vmem:[%s15271_s19 + $0x10] sm:$0xff]  ;;  %v13583_v10 = vld [vmem:[%s15224_s15 + $0x324] ss:$8 sps:$4 sm:$0xff]  }
 0x3cf   : > { %v13551_v47 = vld [vmem:[%s15224_s15 + $0x1d0] ss:$8 sps:$4 sm:$0xff]  }
 0x3d0   : > { %v15481_v43 = vpop.permute.xlu0 %3825  ;;  %v15483_v61 = vpop.permute.xlu1 %3820  ;;  %3677 = vmatmul.mubr.bf16.gmra.mxu1 %v13533_v14 }
 0x3d1   : > { %18935 = vst [vmem:[#allocation52_spill] sm:$0xff] %v15481_v43  ;;  %18936 = vst [vmem:[#allocation53_spill] sm:$0xff] %v15483_v61  ;;  %3684 = vmatprep.mubr.bf16.mxu1 %v13541_v60 }
 0x3d2   : > { %5145 = vperm.xlu0 %13462, %v11346_v39   ;;  %5140 = vperm.xlu1 %13463, %v11345_v1   ;;  %v13559_v39 = vld [vmem:[%s15224_s15 + $0x1e4] ss:$8 sps:$4 sm:$0xff]  }
 0x3d3   : > { %v11232_v1 = vld [vmem:[%s15271_s19 + $0x228] sm:$0xff] }
 0x3d4   : > { %v15489_v46 = vpop.permute.xlu0 %5105  ;;  %v15491_v6 = vpop.permute.xlu1 %5100  ;;  %3027 = vmatmul.mubr.bf16.gmra.mxu0 %v13538_v8  ;;  %v11231_v8 = vld [vmem:[%s15271_s19 + $0x220] sm:$0xff] }
 0x3d5   : > { %18937 = vst [vmem:[#allocation54_spill] sm:$0xff] %v15489_v46  ;;  %18938 = vst [vmem:[#allocation55_spill] sm:$0xff] %v15491_v6  ;;  %3034 = vmatprep.mubr.bf16.mxu0 %v13542_v37  ;;  %v13556_v37 = vld [vmem:[%s15224_s15 + $0xe0] ss:$8 sps:$4 sm:$0xff]   ;;  %v13601_v6 = vld [vmem:[%s15224_s15 + $0x354] ss:$8 sps:$4 sm:$0xff]  }
 0x3d6   : > { %3785 = vperm.xlu0 %13462, %v11136_v40   ;;  %3780 = vperm.xlu1 %13463, %v11135_v63   ;;  %v11243_v46 = vld [vmem:[%s15271_s19 + $0x280] sm:$0xff] }
 0x3d8   : > { %3685 = vmatmul.mubr.bf16.gmra.mxu1 %v13539_v29  ;;  %v13560_v29 = vld [vmem:[%s15224_s15 + $0xf4] ss:$8 sps:$4 sm:$0xff]  }
 0x3d9   : > { %v15498_v2 = vpop.permute.xlu0 %3236  ;;  %v15500_v22 = vpop.permute.xlu1 %3231  ;;  %3692 = vmatprep.mubr.bf16.mxu1 %v13547_v32  ;;  %v11150_v32 = vld [vmem:[%s15271_s19 + $0x198] sm:$0xff] }
 0x3da   : > { %18939 = vst [vmem:[#allocation56_spill] sm:$0xff] %v15498_v2  ;;  %18940 = vst [vmem:[#allocation57_spill] sm:$0xff] %v15500_v22  ;;  %5065 = vperm.xlu0 %13462, %v11330_v58   ;;  %5060 = vperm.xlu1 %13463, %v11329_v56   ;;  %v11149_v58 = vld [vmem:[%s15271_s19 + $0x190] sm:$0xff]  ;;  %v13557_v56 = vld [vmem:[%s15224_s15 + $0x1e0] ss:$8 sps:$4 sm:$0xff]  }
 0x3db   : > { %v13637_v2 = vld [vmem:[%s15224_s15 + $0x3b4] ss:$8 sps:$4 sm:$0xff]  }
 0x3dc   : > { %3035 = vmatmul.mubr.bf16.gmra.mxu0 %v13544_v0 }
 0x3dd   : > { %v15506_v20 = vpop.permute.xlu0 %4564  ;;  %v15508_v24 = vpop.permute.xlu1 %4559  ;;  %3042 = vmatprep.mubr.bf16.mxu0 %v13548_v48 }
 0x3de   : > { %18941 = vst [vmem:[#allocation58_spill] sm:$0xff] %v15506_v20  ;;  %18942 = vst [vmem:[#allocation59_spill] sm:$0xff] %v15508_v24  ;;  %3196 = vperm.xlu0 %13462, %v3086_v12   ;;  %3191 = vperm.xlu1 %13463, %v3085_v31   ;;  %v13565_v12 = vld [vmem:[%s15224_s15 + $0x1f4] ss:$8 sps:$4 sm:$0xff]   ;;  %v11344_v31 = vld [vmem:[%s15271_s19 + $0x3a8] sm:$0xff] }
 0x3df   : > { %v11341_v20 = vld [vmem:[%s15271_s19 + $0x390] sm:$0xff]  ;;  %v13590_v24 = vld [vmem:[%s15224_s15 + $0x244] ss:$8 sps:$4 sm:$0xff]  }
 0x3e0   : > { %3693 = vmatmul.mubr.bf16.gmra.mxu1 %v13545_v59  ;;  %v11343_v59 = vld [vmem:[%s15271_s19 + $0x3a0] sm:$0xff] }
 0x3e1   : > { %v15514_v57 = vpop.permute.xlu0 %3156  ;;  %v15516_v25 = vpop.permute.xlu1 %3151  ;;  %3700 = vmatprep.mubr.bf16.mxu1 %v13553_v49  ;;  %v13562_v49 = vld [vmem:[%s15224_s15 + $0xf0] ss:$8 sps:$4 sm:$0xff]  }
 0x3e2   : > { %18943 = vst [vmem:[#allocation60_spill] sm:$0xff] %v15514_v57  ;;  %18944 = vst [vmem:[#allocation61_spill] sm:$0xff] %v15516_v25  ;;  %4524 = vperm.xlu0 %13462, %v11248_v52   ;;  %4519 = vperm.xlu1 %13463, %v11247_v13  }
 0x3e4   : > { %3043 = vmatmul.mubr.bf16.gmra.mxu0 %v13550_v27  ;;  %v13568_v27 = vld [vmem:[%s15224_s15 + $0x204] ss:$8 sps:$4 sm:$0xff]  }
 0x3e5   : > { %v15522_v14 = vpop.permute.xlu0 %4484  ;;  %v15524_v60 = vpop.permute.xlu1 %4479  ;;  %3050 = vmatprep.mubr.bf16.mxu0 %v13554_v50  ;;  %v11134_v50 = vld [vmem:[%s15271_s19 + $0x118] sm:$0xff] }
 0x3e6   : > { %18945 = vst [vmem:[#allocation62_spill] sm:$0xff] %v15522_v14  ;;  %18946 = vst [vmem:[#allocation63_spill] sm:$0xff] %v15524_v60  ;;  %3116 = vperm.xlu0 %13462, %v3070_v7   ;;  %3111 = vperm.xlu1 %13463, %v3069_v44   ;;  %v11133_v7 = vld [vmem:[%s15271_s19 + $0x110] sm:$0xff] }
 0x3e7   : > { %v13563_v44 = vld [vmem:[%s15224_s15 + $0x1f0] ss:$8 sps:$4 sm:$0xff]  }
 0x3e8   : > { %3701 = vmatmul.mubr.bf16.gmra.mxu1 %v13551_v47  ;;  %v13608_v14 = vld [vmem:[%s15224_s15 + $0x270] ss:$8 sps:$4 sm:$0xff]  }
 0x3e9   : > { %v15530_v40 = vpop.permute.xlu0 %3895  ;;  %v15532_v63 = vpop.permute.xlu1 %3890  ;;  %3708 = vmatprep.mubr.bf16.mxu1 %v13559_v39 }
 0x3ea   : > { %18947 = vst [vmem:[#allocation64_spill] sm:$0xff] %v15530_v40  ;;  %18948 = vst [vmem:[#allocation65_spill] sm:$0xff] %v15532_v63  ;;  %4444 = vperm.xlu0 %13462, %v11232_v1   ;;  %4439 = vperm.xlu1 %13463, %v11231_v8   ;;  %v13571_v1 = vld [vmem:[%s15224_s15 + $0x304] ss:$8 sps:$4 sm:$0xff]  }
 0x3eb   : > { %v11328_v8 = vld [vmem:[%s15271_s19 + $0x328] sm:$0xff] }
 0x3ec   : > { %3051 = vmatmul.mubr.bf16.gmra.mxu0 %v13556_v37  ;;  %v11327_v37 = vld [vmem:[%s15271_s19 + $0x320] sm:$0xff] }
 0x3ed   : > { %v15538_v0 = vpop.permute.xlu0 %5175  ;;  %v15540_v48 = vpop.permute.xlu1 %5170  ;;  %3058 = vmatprep.mubr.bf16.mxu0 %v13560_v29  ;;  %v13566_v29 = vld [vmem:[%s15224_s15 + $0x200] ss:$8 sps:$4 sm:$0xff]  }
 0x3ee   : > { %18949 = vst [vmem:[#allocation66_spill] sm:$0xff] %v15538_v0  ;;  %18950 = vst [vmem:[#allocation67_spill] sm:$0xff] %v15540_v48  ;;  %3855 = vperm.xlu0 %13462, %v11150_v32   ;;  %3850 = vperm.xlu1 %13463, %v11149_v58   ;;  %v11147_v0 = vld [vmem:[%s15271_s19 + $0x180] sm:$0xff]  ;;  %v13589_v48 = vld [vmem:[%s15224_s15 + $0x334] ss:$8 sps:$4 sm:$0xff]  }
 0x3f0   : > { %3709 = vmatmul.mubr.bf16.gmra.mxu1 %v13557_v56  ;;  %v13572_v56 = vld [vmem:[%s15224_s15 + $0x214] ss:$8 sps:$4 sm:$0xff]  }
 0x3f1   : > { %v15546_v52 = vpop.permute.xlu0 %3815  ;;  %v15548_v13 = vpop.permute.xlu1 %3810  ;;  %3716 = vmatprep.mubr.bf16.mxu1 %v13565_v12  ;;  %v3084_v12 = vld [vmem:[%s15271_s19 + $0x88] sm:$0xff] }
 0x3f2   : > { %18951 = vst [vmem:[#allocation68_spill] sm:$0xff] %v15546_v52  ;;  %18952 = vst [vmem:[#allocation69_spill] sm:$0xff] %v15548_v13  ;;  %5135 = vperm.xlu0 %13462, %v11344_v31   ;;  %5130 = vperm.xlu1 %13463, %v11343_v59   ;;  %v3083_v31 = vld [vmem:[%s15271_s19 + $0x80] sm:$0xff] }
 0x3f3   : > { %v13569_v59 = vld [vmem:[%s15224_s15 + $0x300] ss:$8 sps:$4 sm:$0xff]  }
 0x3f4   : > { %3059 = vmatmul.mubr.bf16.gmra.mxu0 %v13562_v49 }
 0x3f5   : > { %v15554_v47 = vpop.permute.xlu0 %5095  ;;  %v15556_v39 = vpop.permute.xlu1 %5090  ;;  %4255 = vmatprep.mubr.bf16.mxu0 %v13568_v27 }
 0x3f6   : > { %18953 = vst [vmem:[#allocation70_spill] sm:$0xff] %v15554_v47  ;;  %18954 = vst [vmem:[#allocation71_spill] sm:$0xff] %v15556_v39  ;;  %3775 = vperm.xlu0 %13462, %v11134_v50   ;;  %3770 = vperm.xlu1 %13463, %v11133_v7   ;;  %v13577_v50 = vld [vmem:[%s15224_s15 + $0x314] ss:$8 sps:$4 sm:$0xff]   ;;  %v13607_v47 = vld [vmem:[%s15224_s15 + $0x364] ss:$8 sps:$4 sm:$0xff]  }
 0x3f7   : > { %v11246_v7 = vld [vmem:[%s15271_s19 + $0x298] sm:$0xff] }
 0x3f8   : > { %3717 = vmatmul.mubr.bf16.gmra.mxu1 %v13563_v44  ;;  %v11245_v44 = vld [vmem:[%s15271_s19 + $0x290] sm:$0xff] }
 0x3f9   : > { %v15562_v32 = vpop.permute.xlu0 %3226  ;;  %v15564_v58 = vpop.permute.xlu1 %3221  ;;  %4866 = vmatprep.mubr.bf16.mxu1 %v13571_v1  ;;  %v13574_v1 = vld [vmem:[%s15224_s15 + $0x210] ss:$8 sps:$4 sm:$0xff]  }
 0x3fa   : > { %18955 = vst [vmem:[#allocation72_spill] sm:$0xff] %v15562_v32  ;;  %18956 = vst [vmem:[#allocation73_spill] sm:$0xff] %v15564_v58  ;;  %5055 = vperm.xlu0 %13462, %v11328_v8   ;;  %5050 = vperm.xlu1 %13463, %v11327_v37  }
 0x3fc   : > { %4256 = vmatmul.mubr.bf16.vlgmr.msra.gmra.mxu0 %v13566_v29  ;;  %v13578_v29 = vld [vmem:[%s15224_s15 + $0x224] ss:$8 sps:$4 sm:$0xff]  }
 0x3fd   : > { %v15570_v49 = vpop.permute.xlu0 %4554  ;;  %v15572_v27 = vpop.permute.xlu1 %4549  ;;  %4263 = vmatprep.mubr.bf16.mxu0 %v13572_v56  ;;  %v3068_v56 = vld [vmem:[%s15271_s19 + $0x8] sm:$0xff] }
 0x3fe   : > { %18957 = vst [vmem:[#allocation74_spill] sm:$0xff] %v15570_v49  ;;  %18958 = vst [vmem:[#allocation75_spill] sm:$0xff] %v15572_v27  ;;  %3186 = vperm.xlu0 %13462, %v3084_v12   ;;  %3181 = vperm.xlu1 %13463, %v3083_v31   ;;  %v13575_v12 = vld [vmem:[%s15224_s15 + $0x310] ss:$8 sps:$4 sm:$0xff]   ;;  %v13596_v27 = vld [vmem:[%s15224_s15 + $0x254] ss:$8 sps:$4 sm:$0xff]  }
 0x3ff   : > { %v11325_v49 = vld [vmem:[%s15271_s19 + $0x310] sm:$0xff] }
 0x400   : > { %4867 = vmatmul.mubr.bf16.vlgmr.msra.gmra.mxu1 %v13569_v59 }
 0x401   : > { %v15578_v8 = vpop.permute.xlu0 %3146  ;;  %v15580_v37 = vpop.permute.xlu1 %3141  ;;  %4874 = vmatprep.mubr.bf16.mxu1 %v13577_v50  ;;  %v11230_v50 = vld [vmem:[%s15271_s19 + $0x218] sm:$0xff] }
 0x402   : > { %18959 = vst [vmem:[#allocation76_spill] sm:$0xff] %v15578_v8  ;;  %18960 = vst [vmem:[#allocation77_spill] sm:$0xff] %v15580_v37  ;;  %4514 = vperm.xlu0 %13462, %v11246_v7   ;;  %4509 = vperm.xlu1 %13463, %v11245_v44   ;;  %v13580_v7 = vld [vmem:[%s15224_s15 + $0x220] ss:$8 sps:$4 sm:$0xff]  }
 0x404   : > { %4264 = vmatmul.mubr.bf16.gmra.mxu0 %v13574_v1 }
 0x405   : > { %v15586_v31 = vpop.permute.xlu0 %4474  ;;  %v15588_v59 = vpop.permute.xlu1 %4469  ;;  %4271 = vmatprep.mubr.bf16.mxu0 %v13578_v29  ;;  %v11148_v29 = vld [vmem:[%s15271_s19 + $0x188] sm:$0xff] }
 0x406   : > { %18961 = vst [vmem:[#allocation78_spill] sm:$0xff] %v15586_v31  ;;  %18962 = vst [vmem:[#allocation79_spill] sm:$0xff] %v15588_v59  ;;  %3106 = vperm.xlu0 %13462, %v3068_v56   ;;  %3101 = vperm.xlu1 %13463, %v3067_v5   ;;  %v13581_v5 = vld [vmem:[%s15224_s15 + $0x320] ss:$8 sps:$4 sm:$0xff]  }
 0x408   : > { %4875 = vmatmul.mubr.bf16.gmra.mxu1 %v13575_v12 }
 0x409   : > { %v15594_v44 = vpop.permute.xlu0 %3885  ;;  %v15596_v1 = vpop.permute.xlu1 %3880  ;;  %4882 = vmatprep.mubr.bf16.mxu1 %v13583_v10  ;;  %v11342_v10 = vld [vmem:[%s15271_s19 + $0x398] sm:$0xff] }
 0x40a   : > { %18963 = vst [vmem:[#allocation80_spill] sm:$0xff] %v15594_v44  ;;  %18964 = vst [vmem:[#allocation81_spill] sm:$0xff] %v15596_v1  ;;  %4434 = vperm.xlu0 %13462, %v11230_v50   ;;  %4429 = vperm.xlu1 %13463, %v11229_v26   ;;  %v13586_v26 = vld [vmem:[%s15224_s15 + $0x230] ss:$8 sps:$4 sm:$0xff]  }
 0x40c   : > { %4272 = vmatmul.mubr.bf16.gmra.mxu0 %v13580_v7 }
 0x40d   : > { %v15602_v56 = vpop.permute.xlu0 %5165  ;;  %v15604_v12 = vpop.permute.xlu1 %5160  ;;  %4279 = vmatprep.mubr.bf16.mxu0 %v13584_v41  ;;  %v11132_v41 = vld [vmem:[%s15271_s19 + $0x108] sm:$0xff] }
 0x40e   : > { %18965 = vst [vmem:[#allocation82_spill] sm:$0xff] %v15602_v56  ;;  %18966 = vst [vmem:[#allocation83_spill] sm:$0xff] %v15604_v12  ;;  %3845 = vperm.xlu0 %13462, %v11148_v29   ;;  %3840 = vperm.xlu1 %13463, %v11147_v0   ;;  %v11131_v56 = vld [vmem:[%s15271_s19 + $0x100] sm:$0xff]  ;;  %v13587_v0 = vld [vmem:[%s15224_s15 + $0x330] ss:$8 sps:$4 sm:$0xff]  }
 0x40f   : > { %v13595_v12 = vld [vmem:[%s15224_s15 + $0x344] ss:$8 sps:$4 sm:$0xff]  }
 0x410   : > { %4883 = vmatmul.mubr.bf16.gmra.mxu1 %v13581_v5 }
 0x411   : > { %v15610_v50 = vpop.permute.xlu0 %3805  ;;  %v15612_v7 = vpop.permute.xlu1 %3800  ;;  %4890 = vmatprep.mubr.bf16.mxu1 %v13589_v48  ;;  %v11326_v48 = vld [vmem:[%s15271_s19 + $0x318] sm:$0xff] }
 0x412   : > { %18967 = vst [vmem:[#allocation84_spill] sm:$0xff] %v15610_v50  ;;  %18968 = vst [vmem:[#allocation85_spill] sm:$0xff] %v15612_v7  ;;  %5125 = vperm.xlu0 %13462, %v11342_v10   ;;  %5120 = vperm.xlu1 %13463, %v11341_v20   ;;  %v13592_v20 = vld [vmem:[%s15224_s15 + $0x240] ss:$8 sps:$4 sm:$0xff]  }
 0x414   : > { %4280 = vmatmul.mubr.bf16.gmra.mxu0 %v13586_v26 }
 0x415   : > { %v15618_v29 = vpop.permute.xlu0 %5085  ;;  %v15620_v5 = vpop.permute.xlu1 %5080  ;;  %4287 = vmatprep.mubr.bf16.mxu0 %v13590_v24  ;;  %v11244_v24 = vld [vmem:[%s15271_s19 + $0x288] sm:$0xff] }
 0x416   : > { %18969 = vst [vmem:[#allocation86_spill] sm:$0xff] %v15618_v29  ;;  %18970 = vst [vmem:[#allocation87_spill] sm:$0xff] %v15620_v5  ;;  %3765 = vperm.xlu0 %13462, %v11132_v41   ;;  %3760 = vperm.xlu1 %13463, %v11131_v56   ;;  %v13593_v56 = vld [vmem:[%s15224_s15 + $0x340] ss:$8 sps:$4 sm:$0xff]  }
 0x418   : > { %4891 = vmatmul.mubr.bf16.gmra.mxu1 %v13587_v0 }
 0x419   : > { %v15626_v10 = vpop.permute.xlu0 %3216  ;;  %v15628_v26 = vpop.permute.xlu1 %3211  ;;  %4898 = vmatprep.mubr.bf16.mxu1 %v13595_v12  ;;  %v11228_v12 = vld [vmem:[%s15271_s19 + $0x208] sm:$0xff] }
 0x41a   : > { %18971 = vst [vmem:[#allocation88_spill] sm:$0xff] %v15626_v10  ;;  %18972 = vst [vmem:[#allocation89_spill] sm:$0xff] %v15628_v26  ;;  %5045 = vperm.xlu0 %13462, %v11326_v48   ;;  %5040 = vperm.xlu1 %13463, %v11325_v49   ;;  %v13598_v49 = vld [vmem:[%s15224_s15 + $0x250] ss:$8 sps:$4 sm:$0xff]  }
 0x41c   : > { %4288 = vmatmul.mubr.bf16.gmra.mxu0 %v13592_v20 }
 0x41d   : > { %v15634_v41 = vpop.permute.xlu0 %4544  ;;  %v15636_v0 = vpop.permute.xlu1 %4539  ;;  %4295 = vmatprep.mubr.bf16.mxu0 %v13596_v27  ;;  %v11340_v27 = vld [vmem:[%s15271_s19 + $0x388] sm:$0xff] }
 0x41e   : > { %18973 = vst [vmem:[#allocation90_spill] sm:$0xff] %v15634_v41  ;;  %18974 = vst [vmem:[#allocation91_spill] sm:$0xff] %v15636_v0  ;;  %4504 = vperm.xlu0 %13462, %v11244_v24   ;;  %4499 = vperm.xlu1 %13463, %v11243_v46   ;;  %v13604_v41 = vld [vmem:[%s15224_s15 + $0x264] ss:$8 sps:$4 sm:$0xff]   ;;  %v13599_v46 = vld [vmem:[%s15224_s15 + $0x350] ss:$8 sps:$4 sm:$0xff]  }
 0x41f   : > { %v11339_v0 = vld [vmem:[%s15271_s19 + $0x380] sm:$0xff] }
 0x420   : > { %4899 = vmatmul.mubr.bf16.gmra.mxu1 %v13593_v56 }
 0x421   : > { %v15642_v48 = vpop.permute.xlu0 %3136  ;;  %v15644_v20 = vpop.permute.xlu1 %3131  ;;  %4906 = vmatprep.mubr.bf16.mxu1 %v13601_v6  ;;  %v11324_v6 = vld [vmem:[%s15271_s19 + $0x308] sm:$0xff] }
 0x422   : > { %18975 = vst [vmem:[#allocation92_spill] sm:$0xff] %v15642_v48  ;;  %18976 = vst [vmem:[#allocation93_spill] sm:$0xff] %v15644_v20  ;;  %4424 = vperm.xlu0 %13462, %v11228_v12   ;;  %4419 = vperm.xlu1 %13463, %v11227_v15   ;;  %v13602_v15 = vld [vmem:[%s15224_s15 + $0x260] ss:$8 sps:$4 sm:$0xff]  }
 0x424   : > { %4296 = vmatmul.mubr.bf16.gmra.mxu0 %v13598_v49  ;;  %v13610_v49 = vld [vmem:[%s15224_s15 + $0x274] ss:$8 sps:$4 sm:$0xff]  }
 0x425   : > { %v15650_v24 = vpop.permute.xlu0 %4464  ;;  %v15652_v56 = vpop.permute.xlu1 %4459  ;;  %4303 = vmatprep.mubr.bf16.mxu0 %v13604_v41  ;;  %v13605_v41 = vld [vmem:[%s15224_s15 + $0x360] ss:$8 sps:$4 sm:$0xff]  }
 0x426   : > { %18977 = vst [vmem:[#allocation94_spill] sm:$0xff] %v15650_v24  ;;  %18978 = vst [vmem:[#allocation95_spill] sm:$0xff] %v15652_v56  ;;  %5115 = vperm.xlu0 %13462, %v11340_v27   ;;  %5110 = vperm.xlu1 %13463, %v11339_v0   ;;  %v13620_v56 = vld [vmem:[%s15224_s15 + $0x290] ss:$8 sps:$4 sm:$0xff]  }
 0x428   : > { %4907 = vmatmul.mubr.bf16.gmra.mxu1 %v13599_v46  ;;  %v13613_v46 = vld [vmem:[%s15224_s15 + $0x374] ss:$8 sps:$4 sm:$0xff]  }
 0x429   : > { %v15658_v12 = vpop.permute.xlu0 %3875  ;;  %v15660_v39 = vpop.permute.xlu1 %3870  ;;  %4914 = vmatprep.mubr.bf16.mxu1 %v13607_v47 }
 0x42a   : > { %18979 = vst [vmem:[#allocation96_spill] sm:$0xff] %v15658_v12  ;;  %18980 = vst [vmem:[#allocation97_spill] sm:$0xff] %v15660_v39  ;;  %5035 = vperm.xlu0 %13462, %v11324_v6   ;;  %5030 = vperm.xlu1 %13463, %v11323_v54   ;;  %v13616_v54 = vld [vmem:[%s15224_s15 + $0x284] ss:$8 sps:$4 sm:$0xff]   ;;  %v13611_v6 = vld [vmem:[%s15224_s15 + $0x370] ss:$8 sps:$4 sm:$0xff]  }
 0x42b   : > { %v13635_v39 = vld [vmem:[%s15224_s15 + $0x3b0] ss:$8 sps:$4 sm:$0xff]  }
 0x42c   : > { %4304 = vmatmul.mubr.bf16.gmra.mxu0 %v13602_v15 }
 0x42d   : > { %v15664_v0 = vpop.permute.xlu0 %5155  ;;  %v15666_v27 = vpop.permute.xlu1 %5150  ;;  %4311 = vmatprep.mubr.bf16.mxu0 %v13610_v49  ;;  %v13619_v49 = vld [vmem:[%s15224_s15 + $0x384] ss:$8 sps:$4 sm:$0xff]  }
 0x42e   : > { %18981 = vst [vmem:[#allocation98_spill] sm:$0xff] %v15664_v0  ;;  %18982 = vst [vmem:[#allocation99_spill] sm:$0xff] %v15666_v27 }
 0x430   : > { %4915 = vmatmul.mubr.bf16.gmra.mxu1 %v13605_v41  ;;  %v13614_v41 = vld [vmem:[%s15224_s15 + $0x280] ss:$8 sps:$4 sm:$0xff]  }
 0x431   : > { %v15670_v29 = vpop.permute.xlu0 %3795  ;;  %v15672_v47 = vpop.permute.xlu1 %3790  ;;  %4922 = vmatprep.mubr.bf16.mxu1 %v13613_v46  ;;  %v13622_v46 = vld [vmem:[%s15224_s15 + $0x294] ss:$8 sps:$4 sm:$0xff]  }
 0x432   : > { %18983 = vst [vmem:[#allocation100_spill] sm:$0xff] %v15670_v29  ;;  %18984 = vst [vmem:[#allocation101_spill] sm:$0xff] %v15672_v47 }
 0x434   : > { %4312 = vmatmul.mubr.bf16.gmra.mxu0 %v13608_v14  ;;  %v13617_v14 = vld [vmem:[%s15224_s15 + $0x380] ss:$8 sps:$4 sm:$0xff]  }
 0x435   : > { %v15676_v15 = vpop.permute.xlu0 %5075  ;;  %v15678_v0 = vpop.permute.xlu1 %5070  ;;  %4319 = vmatprep.mubr.bf16.mxu0 %v13616_v54  ;;  %v13625_v54 = vld [vmem:[%s15224_s15 + $0x394] ss:$8 sps:$4 sm:$0xff]  }
 0x436   : > { %18985 = vst [vmem:[#allocation102_spill] sm:$0xff] %v15676_v15  ;;  %18986 = vst [vmem:[#allocation103_spill] sm:$0xff] %v15678_v0 }
 0x438   : > { %4923 = vmatmul.mubr.bf16.gmra.mxu1 %v13611_v6 }
 0x439   : > { %v15682_v27 = vpop.permute.xlu0 %3206  ;;  %v15684_v60 = vpop.permute.xlu1 %3201  ;;  %4930 = vmatprep.mubr.bf16.mxu1 %v13619_v49 }
 0x43a   : > { %18987 = vst [vmem:[#allocation104_spill] sm:$0xff] %v15682_v27  ;;  %18988 = vst [vmem:[#allocation105_spill] sm:$0xff] %v15684_v60 }
 0x43c   : > { %v11681_v5 = vpop.f32.mrf.mxu0  ;;  %4320 = vmatmul.mubr.bf16.gmra.mxu0 %v13614_v41  ;;  %v13628_v41 = vld [vmem:[%s15224_s15 + $0x2a4] ss:$8 sps:$4 sm:$0xff]  }
 0x43d   : > { %v15688_v31 = vpop.permute.xlu0 %4534  ;;  %v15690_v15 = vpop.permute.xlu1 %4529  ;;  %4327 = vmatprep.mubr.bf16.mxu0 %v13622_v46 }
 0x43e   : > { %18989 = vst [vmem:[#allocation106_spill] sm:$0xff] %v15688_v31  ;;  %18990 = vst [vmem:[#allocation107_spill] sm:$0xff] %v15690_v15  ;;  %v11682_v59 = vpop.f32.mrf.mxu0 }
 0x43f   : > { %v15693_v6 = vadd.f32 %v11682_v59, %v11681_v5 }
 0x440   : > { %v11684_v0 = vpop.f32.mrf.mxu0  ;;  %v11793_v24 = vpop.f32.mrf.mxu1  ;;  %4931 = vmatmul.mubr.bf16.gmra.mxu1 %v13617_v14 }
 0x441   : > { %v15696_v49 = vpop.permute.xlu0 %3126  ;;  %v15698_v11 = vpop.permute.xlu1 %3121  ;;  %4938 = vmatprep.mubr.bf16.mxu1 %v13625_v54 }
 0x442   : > { %18991 = vst [vmem:[#allocation108_spill] sm:$0xff] %v15696_v49  ;;  %18992 = vst [vmem:[#allocation109_spill] sm:$0xff] %v15698_v11  ;;  %v11685_v31 = vpop.f32.mrf.mxu0  ;;  %v11794_v34 = vpop.f32.mrf.mxu1 }
 0x443   : > { %v15701_v15 = vadd.f32 %v11685_v31, %v11684_v0  ;;  %v15703_v46 = vadd.f32 %v11794_v34, %v11793_v24  ;;  %v13626_v0 = vld [vmem:[%s15224_s15 + $0x2a0] ss:$8 sps:$4 sm:$0xff]  }
 0x444   : > { %v11687_v59 = vpop.f32.mrf.mxu0  ;;  %v11796_v5 = vpop.f32.mrf.mxu1  ;;  %4328 = vmatmul.mubr.bf16.gmra.mxu0 %v13620_v56 }
 0x445   : > { %v15706_v14 = vpop.permute.xlu0 %4454  ;;  %v15708_v36 = vpop.permute.xlu1 %4449  ;;  %4335 = vmatprep.mubr.bf16.mxu0 %v13628_v41 }
 0x446   : > { %18993 = vst [vmem:[#allocation110_spill] sm:$0xff] %v15706_v14  ;;  %18994 = vst [vmem:[#allocation111_spill] sm:$0xff] %v15708_v36  ;;  %v11688_v54 = vpop.f32.mrf.mxu0  ;;  %v11797_v45 = vpop.f32.mrf.mxu1  ;;  %v13634_v14 = vld [vmem:[%s15224_s15 + $0x2b4] ss:$8 sps:$4 sm:$0xff]  }
 0x447   : > { %v15711_v19 = vadd.f32 %v11688_v54, %v11687_v59  ;;  %v15713_v31 = vadd.f32 %v11797_v45, %v11796_v5  ;;  %v13629_v54 = vld [vmem:[%s15224_s15 + $0x3a0] ss:$8 sps:$4 sm:$0xff]  }
 0x448   : > { %v11690_v34 = vpop.f32.mrf.mxu0  ;;  %v11799_v24 = vpop.f32.mrf.mxu1  ;;  %4939 = vmatmul.mubr.bf16.gmra.mxu1 %v13623_v53 }
 0x449   : > { %v15716_v56 = vpop.permute.xlu0 %3865  ;;  %v15718_v40 = vpop.permute.xlu1 %3860  ;;  %4946 = vmatprep.mubr.bf16.mxu1 %v13631_v55 }
 0x44a   : > { %18995 = vst [vmem:[#allocation112_spill] sm:$0xff] %v15716_v56  ;;  %18996 = vst [vmem:[#allocation113_spill] sm:$0xff] %v15718_v40  ;;  %v11691_v41 = vpop.f32.mrf.mxu0  ;;  %v11800_v36 = vpop.f32.mrf.mxu1 }
 0x44b   : > { %v15721_v51 = vadd.f32 %v11691_v41, %v11690_v34  ;;  %v15723_v59 = vadd.f32 %v11800_v36, %v11799_v24  ;;  %v15736_v36 = vld [vmem:[%s18671_s9] ss:$0 sm:$0xff] }
 0x44c   : > { %v11693_v45 = vpop.f32.mrf.mxu0  ;;  %v11802_v5 = vpop.f32.mrf.mxu1  ;;  %4336 = vmatmul.mubr.bf16.gmra.mxu0 %v13626_v0  ;;  %v13632_v0 = vld [vmem:[%s15224_s15 + $0x2b0] ss:$8 sps:$4 sm:$0xff]  }
 0x44d   : > { %v15726_v53 = vpop.permute.xlu0 %5145  ;;  %v15728_v63 = vpop.permute.xlu1 %5140  ;;  %4343 = vmatprep.mubr.bf16.mxu0 %v13634_v14  ;;  %v2590_v14 = vadd.f32 %v15736_v36, %v15030_v21  ;;  %v2591_v21 = vadd.f32 %v15736_v36, %v15034_v23 }
 0x44e   : > { %18997 = vst [vmem:[#allocation114_spill] sm:$0xff] %v15726_v53  ;;  %18998 = vst [vmem:[#allocation115_spill] sm:$0xff] %v15728_v63  ;;  %v11694_v55 = vpop.f32.mrf.mxu0  ;;  %v11803_v44 = vpop.f32.mrf.mxu1 }
 0x44f   : > { %v11695_v22 = vadd.f32 %v11694_v55, %v11693_v45  ;;  %v15731_v1 = vadd.f32 %v11803_v44, %v11802_v5  ;;  %v13640_v44 = vld [vmem:[%s15224_s15 + $0x2c4] ss:$8 sps:$4 sm:$0xff]  }
 0x450   : > { %v11696_v34 = vpop.f32.mrf.mxu0  ;;  %v11805_v24 = vpop.f32.mrf.mxu1  ;;  %4947 = vmatmul.mubr.bf16.gmra.mxu1 %v13629_v54 }
 0x451   : > { %v3263_v41 = vmul.f32 %v11695_v22, %v15698_v11  ;;  %v15742_v53 = vpop.permute.xlu0 %3785  ;;  %v15744_v45 = vpop.permute.xlu1 %3780  ;;  %4954 = vmatprep.mubr.bf16.mxu1 %v13637_v2 }
 0x452   : > { %18999 = vst [vmem:[#allocation116_spill] sm:$0xff] %v15742_v53  ;;  %19000 = vst [vmem:[#allocation117_spill] sm:$0xff] %v15744_v45  ;;  %v11697_v5 = vpop.f32.mrf.mxu0  ;;  %v11806_v55 = vpop.f32.mrf.mxu1 }
 0x453   : > { %v3295_v63 = vadd.f32 %v3263_v41, %v2590_v14  ;;  %v11698_v32 = vadd.f32 %v11697_v5, %v11696_v34  ;;  %v11807_v12 = vadd.f32 %v11806_v55, %v11805_v24  ;;  %v13643_v14 = vld [vmem:[%s15224_s15 + $0x3c4] ss:$8 sps:$4 sm:$0xff]  }
 0x454   : > { %v11699_v54 = vpop.f32.mrf.mxu0  ;;  %v11808_v58 = vpop.f32.mrf.mxu1  ;;  %4344 = vmatmul.mubr.bf16.gmra.mxu0 %v13632_v0 }
 0x455   : > { %v3264_v22 = vmul.f32 %v11698_v32, %v15696_v49  ;;  %v3922_v11 = vmul.f32 %v11807_v12, %v15744_v45  ;;  %v15752_v2 = vpop.permute.xlu0 %5065  ;;  %v15754_v10 = vpop.permute.xlu1 %5060  ;;  %4351 = vmatprep.mubr.bf16.mxu0 %v13640_v44  ;;  %v13638_v32 = vld [vmem:[%s15224_s15 + $0x2c0] ss:$8 sps:$4 sm:$0xff]   ;;  %v2592_v12 = vadd.f32 %v15736_v36, %v15042_v28 }
 0x456   : > { %19001 = vst [vmem:[#allocation118_spill] sm:$0xff] %v15752_v2  ;;  %19002 = vst [vmem:[#allocation119_spill] sm:$0xff] %v15754_v10  ;;  %v11700_v34 = vpop.f32.mrf.mxu0  ;;  %v11809_v24 = vpop.f32.mrf.mxu1 }
 0x457   : > { %v3296_v41 = vadd.f32 %v3264_v22, %v2591_v21  ;;  %v15757_v0 = vadd.f32 %v3922_v11, %v3295_v63  ;;  %v11701_v5 = vadd.f32 %v11700_v34, %v11699_v54  ;;  %v11810_v55 = vadd.f32 %v11809_v24, %v11808_v58  ;;  %v13646_v11 = vld [vmem:[%s15224_s15 + $0x2d4] ss:$8 sps:$4 sm:$0xff]   ;;  %v13641_v24 = vld [vmem:[%s15224_s15 + $0x3c0] ss:$8 sps:$4 sm:$0xff]  }
 0x458   : > { %v11702_v23 = vpop.f32.mrf.mxu0  ;;  %v11811_v56 = vpop.f32.mrf.mxu1  ;;  %4955 = vmatmul.mubr.bf16.gmra.mxu1 %v13635_v39 }
 0x459   : > { %v3265_v45 = vmul.f32 %v11701_v5, %v15644_v20  ;;  %v3923_v44 = vmul.f32 %v11810_v55, %v15742_v53  ;;  %v15764_v49 = vpop.permute.xlu0 %3196  ;;  %v15766_v2 = vpop.permute.xlu1 %3191  ;;  %4962 = vmatprep.mubr.bf16.mxu1 %v13643_v14  ;;  %v2593_v5 = vadd.f32 %v15736_v36, %v15046_v30 }
 0x45a   : > { %19003 = vst [vmem:[#allocation120_spill] sm:$0xff] %v15764_v49  ;;  %19004 = vst [vmem:[#allocation121_spill] sm:$0xff] %v15766_v2  ;;  %v11703_v63 = vpop.f32.mrf.mxu0  ;;  %v11812_v58 = vpop.f32.mrf.mxu1 }
 0x45b   : > { %v3297_v54 = vadd.f32 %v3265_v45, %v2592_v12  ;;  %v15769_v39 = vadd.f32 %v3923_v44, %v3296_v41  ;;  %v11704_v21 = vadd.f32 %v11703_v63, %v11702_v23  ;;  %v11813_v22 = vadd.f32 %v11812_v58, %v11811_v56  ;;  %v13649_v45 = vld [vmem:[%s15224_s15 + $0x3d4] ss:$8 sps:$4 sm:$0xff]   ;;  %v13644_v58 = vld [vmem:[%s15224_s15 + $0x2d0] ss:$8 sps:$4 sm:$0xff]  }
 0x45c   : > { %v11705_v28 = vpop.f32.mrf.mxu0  ;;  %v11814_v34 = vpop.f32.mrf.mxu1  ;;  %4352 = vmatmul.mubr.bf16.gmra.mxu0 %v13638_v32 }
 0x45d   : > { %v3266_v55 = vmul.f32 %v11704_v21, %v15642_v48  ;;  %v3924_v14 = vmul.f32 %v11813_v22, %v15672_v47  ;;  %v15776_v53 = vpop.permute.xlu0 %4524  ;;  %v15778_v20 = vpop.permute.xlu1 %4519  ;;  %4359 = vmatprep.mubr.bf16.mxu0 %v13646_v11  ;;  %v2594_v21 = vadd.f32 %v15736_v36, %v15054_v33 }
 0x45e   : > { %19005 = vst [vmem:[#allocation122_spill] sm:$0xff] %v15776_v53  ;;  %19006 = vst [vmem:[#allocation123_spill] sm:$0xff] %v15778_v20  ;;  %v11706_v41 = vpop.f32.mrf.mxu0  ;;  %v11815_v56 = vpop.f32.mrf.mxu1 }
 0x45f   : > { %v3298_v23 = vadd.f32 %v3266_v55, %v2593_v5  ;;  %v15781_v32 = vadd.f32 %v3924_v14, %v3297_v54  ;;  %v11707_v12 = vadd.f32 %v11706_v41, %v11705_v28  ;;  %v11816_v44 = vadd.f32 %v11815_v56, %v11814_v34  ;;  %v13652_v54 = vld [vmem:[%s15224_s15 + $0x2e4] ss:$8 sps:$4 sm:$0xff]  }
 0x460   : > { %v11708_v30 = vpop.f32.mrf.mxu0  ;;  %v11817_v63 = vpop.f32.mrf.mxu1  ;;  %4963 = vmatmul.mubr.bf16.gmra.mxu1 %v13641_v24  ;;  %v2588_v28 = vadd.f32 %v15736_v36, %v15018_v16  ;;  %v2589_v34 = vadd.f32 %v15736_v36, %v15022_v18 }
 0x461   : > { %v3267_v22 = vmul.f32 %v11707_v12, %v15580_v37  ;;  %v3925_v11 = vmul.f32 %v11816_v44, %v15670_v29  ;;  %v15788_v47 = vpop.permute.xlu0 %3116  ;;  %v15790_v48 = vpop.permute.xlu1 %3111  ;;  %4970 = vmatprep.mubr.bf16.mxu1 %v13649_v45  ;;  %v13647_v29 = vld [vmem:[%s15224_s15 + $0x3d0] ss:$8 sps:$4 sm:$0xff]  }
 0x462   : > { %19007 = vst [vmem:[#allocation124_spill] sm:$0xff] %v15788_v47  ;;  %19008 = vst [vmem:[#allocation125_spill] sm:$0xff] %v15790_v48  ;;  %v3262_v33 = vmul.f32 %v15721_v51, %v15788_v47  ;;  %v3261_v24 = vmul.f32 %v15711_v19, %v15790_v48  ;;  %v11709_v5 = vpop.f32.mrf.mxu0  ;;  %v11818_v55 = vpop.f32.mrf.mxu1  ;;  %v2595_v51 = vadd.f32 %v15736_v36, %v15058_v35  ;;  %v19034_v47 = vld [vmem:[#allocation17_spill] sm:$0xff] }
 0x463   : > { %v3299_v14 = vadd.f32 %v3267_v22, %v2594_v21  ;;  %v15801_v41 = vadd.f32 %v3925_v11, %v3298_v23  ;;  %v11710_v45 = vadd.f32 %v11709_v5, %v11708_v30  ;;  %v11819_v56 = vadd.f32 %v11818_v55, %v11817_v63  ;;  %v13655_v63 = vld [vmem:[%s15224_s15 + $0x3e4] ss:$8 sps:$4 sm:$0xff]   ;;  %v13650_v5 = vld [vmem:[%s15224_s15 + $0x2e0] ss:$8 sps:$4 sm:$0xff]  }
 0x464   : > { %v15803_v12 = vadd.f32 %v3262_v33, %v2589_v34  ;;  %v15805_v16 = vadd.f32 %v3261_v24, %v2588_v28  ;;  %v11711_v44 = vpop.f32.mrf.mxu0  ;;  %v11820_v18 = vpop.f32.mrf.mxu1  ;;  %4360 = vmatmul.mubr.bf16.gmra.mxu0 %v13644_v58  ;;  %v2596_v55 = vadd.f32 %v15736_v36, %v15068_v38 }
 0x465   : > { %v3268_v19 = vmul.f32 %v11710_v45, %v15578_v8  ;;  %v3926_v21 = vmul.f32 %v11819_v56, %v15612_v7  ;;  %v15812_v23 = vpop.permute.xlu0 %4444  ;;  %v15814_v30 = vpop.permute.xlu1 %4439  ;;  %4367 = vmatprep.mubr.bf16.mxu0 %v13652_v54 }
 0x466   : > { %19009 = vst [vmem:[#allocation126_spill] sm:$0xff] %v15812_v23  ;;  %19010 = vst [vmem:[#allocation127_spill] sm:$0xff] %v15814_v30  ;;  %v11712_v22 = vpop.f32.mrf.mxu0  ;;  %v11821_v11 = vpop.f32.mrf.mxu1 }
 0x467   : > { %v3300_v28 = vadd.f32 %v3268_v19, %v2595_v51  ;;  %v15817_v58 = vadd.f32 %v3926_v21, %v3299_v14  ;;  %v11713_v34 = vadd.f32 %v11712_v22, %v11711_v44  ;;  %v11822_v33 = vadd.f32 %v11821_v11, %v11820_v18  ;;  %v13658_v14 = vld [vmem:[%s15224_s15 + $0x2f4] ss:$8 sps:$4 sm:$0xff]   ;;  %v13653_v11 = vld [vmem:[%s15224_s15 + $0x3e0] ss:$8 sps:$4 sm:$0xff]  }
 0x468   : > { %v11714_v35 = vpop.f32.mrf.mxu0  ;;  %v11823_v24 = vpop.f32.mrf.mxu1  ;;  %4971 = vmatmul.mubr.bf16.gmra.mxu1 %v13647_v29 }
 0x469   : > { %v3269_v45 = vmul.f32 %v11713_v34, %v15516_v25  ;;  %v3927_v54 = vmul.f32 %v11822_v33, %v15610_v50  ;;  %v15824_v56 = vpop.permute.xlu0 %3855  ;;  %v15826_v7 = vpop.permute.xlu1 %3850  ;;  %4978 = vmatprep.mubr.bf16.mxu1 %v13655_v63  ;;  %v19013_v34 = vld [vmem:[#allocation11_spill] sm:$0xff] }
 0x46a   : > { %19011 = vst [vmem:[#allocation128_spill] sm:$0xff] %v15824_v56  ;;  %19012 = vst [vmem:[#allocation129_spill] sm:$0xff] %v15826_v7  ;;  %v11715_v44 = vpop.f32.mrf.mxu0  ;;  %v11824_v18 = vpop.f32.mrf.mxu1  ;;  %v2597_v33 = vadd.f32 %v15736_v36, %v19013_v34  ;;  %v13656_v34 = vld [vmem:[%s15224_s15 + $0x2f0] ss:$8 sps:$4 sm:$0xff]  }
 0x46b   : > { %v3301_v51 = vadd.f32 %v3269_v45, %v2596_v55  ;;  %v15829_v29 = vadd.f32 %v3927_v54, %v3300_v28  ;;  %v11716_v19 = vadd.f32 %v11715_v44, %v11714_v35  ;;  %v11825_v21 = vadd.f32 %v11824_v18, %v11823_v24  ;;  %v13661_v28 = vld [vmem:[%s15224_s15 + $0x3f4] ss:$8 sps:$4 sm:$0xff]  }
 0x46c   : > { %v11717_v38 = vpop.f32.mrf.mxu0  ;;  %v11826_v22 = vpop.f32.mrf.mxu1  ;;  %4368 = vmatmul.mubr.bf16.gmra.mxu0 %v13650_v5 }
 0x46d   : > { %v3270_v50 = vmul.f32 %v11716_v19, %v15514_v57  ;;  %v3928_v63 = vmul.f32 %v11825_v21, %v15548_v13  ;;  %v15836_v25 = vpop.permute.xlu0 %5135  ;;  %v15838_v8 = vpop.permute.xlu1 %5130  ;;  %4375 = vmatprep.mubr.bf16.mxu0 %v13658_v14  ;;  %v19016_v19 = vld [vmem:[#allocation12_spill] sm:$0xff] }
 0x46e   : > { %19014 = vst [vmem:[#allocation11_spill] sm:$0xff] %v15836_v25  ;;  %19015 = vst [vmem:[#allocation130_spill] sm:$0xff] %v15838_v8  ;;  %v11718_v35 = vpop.f32.mrf.mxu0  ;;  %v11827_v24 = vpop.f32.mrf.mxu1  ;;  %v2598_v21 = vadd.f32 %v15736_v36, %v19016_v19  ;;  %v19019_v19 = vld [vmem:[#allocation13_spill] sm:$0xff] }
 0x46f   : > { %v3302_v55 = vadd.f32 %v3270_v50, %v2597_v33  ;;  %v15841_v45 = vadd.f32 %v3928_v63, %v3301_v51  ;;  %v11719_v5 = vadd.f32 %v11718_v35, %v11717_v38  ;;  %v11828_v54 = vadd.f32 %v11827_v24, %v11826_v22 }
 0x470   : > { %v11720_v44 = vpop.f32.mrf.mxu0  ;;  %v11829_v18 = vpop.f32.mrf.mxu1  ;;  %4979 = vmatmul.mubr.bf16.gmra.mxu1 %v13653_v11 }
 0x471   : > { %v3271_v13 = vmul.f32 %v11719_v5, %v15451_v17  ;;  %v3929_v57 = vmul.f32 %v11828_v54, %v15546_v52  ;;  %v15848_v14 = vpop.permute.xlu0 %3775  ;;  %v15850_v37 = vpop.permute.xlu1 %3770  ;;  %4986 = vmatprep.mubr.bf16.mxu1 %v13661_v28 }
 0x472   : > { %19017 = vst [vmem:[#allocation12_spill] sm:$0xff] %v15848_v14  ;;  %19018 = vst [vmem:[#allocation131_spill] sm:$0xff] %v15850_v37  ;;  %v3921_v50 = vmul.f32 %v15731_v1, %v15848_v14  ;;  %v3920_v51 = vmul.f32 %v15723_v59, %v15850_v37  ;;  %v11721_v38 = vpop.f32.mrf.mxu0  ;;  %v11830_v22 = vpop.f32.mrf.mxu1  ;;  %v13659_v1 = vld [vmem:[%s15224_s15 + $0x3f0] ss:$8 sps:$4 sm:$0xff]   ;;  %v2599_v59 = vadd.f32 %v15736_v36, %v19019_v19 }
 0x473   : > { %v3303_v11 = vadd.f32 %v3271_v13, %v2598_v21  ;;  %v15856_v33 = vadd.f32 %v3929_v57, %v3302_v55  ;;  %v11722_v63 = vadd.f32 %v11721_v38, %v11720_v44  ;;  %v11831_v35 = vadd.f32 %v11830_v22, %v11829_v18  ;;  %v19022_v38 = vld [vmem:[#allocation14_spill] sm:$0xff] }
 0x474   : > { %v15859_v24 = vadd.f32 %v3921_v50, %v15803_v12  ;;  %v15862_v5 = vadd.f32 %v3920_v51, %v15805_v16  ;;  %v11723_v28 = vpop.f32.mrf.mxu0  ;;  %v11832_v54 = vpop.f32.mrf.mxu1  ;;  %4376 = vmatmul.mubr.bf16.gmra.mxu0 %v13656_v34  ;;  %v2600_v22 = vadd.f32 %v15736_v36, %v19022_v38 }
 0x475   : > { %v3272_v52 = vmul.f32 %v11722_v63, %v15449_v62  ;;  %v3930_v57 = vmul.f32 %v11831_v35, %v15483_v61  ;;  %v15869_v13 = vpop.permute.xlu0 %5055  ;;  %v15871_v55 = vpop.permute.xlu1 %5050  ;;  %v19025_v62 = vmov 0  }
 0x476   : > { %19020 = vst [vmem:[#allocation13_spill] sm:$0xff] %v15869_v13  ;;  %19021 = vst [vmem:[#allocation132_spill] sm:$0xff] %v15871_v55  ;;  %v11724_v12 = vpop.f32.mrf.mxu0  ;;  %v11833_v44 = vpop.f32.mrf.mxu1 }
 0x477   : > { %v3304_v18 = vadd.f32 %v3272_v52, %v2599_v59  ;;  %v15873_v16 = vadd.f32 %v3930_v57, %v3303_v11  ;;  %v11725_v21 = vadd.f32 %v11724_v12, %v11723_v28  ;;  %v11834_v50 = vadd.f32 %v11833_v44, %v11832_v54  ;;  %v19026_v44 = vld [vmem:[#allocation15_spill] sm:$0xff] }
 0x478   : > { %v11726_v34 = vpop.f32.mrf.mxu0  ;;  %v11835_v51 = vpop.f32.mrf.mxu1  ;;  %4987 = vmatmul.mubr.bf16.gmra.mxu1 %v13659_v1 }
 0x479   : > { %v3273_v63 = vmul.f32 %v11725_v21, %v15411_v3  ;;  %v3931_v35 = vmul.f32 %v11834_v50, %v15481_v43  ;;  %v15879_v19 = vpop.permute.xlu0 %3186  ;;  %v15881_v61 = vpop.permute.xlu1 %3181  ;;  %5797 = vmatprep.mubr.bf16.mxu1 %v19025_v62  ;;  %v2601_v21 = vadd.f32 %v15736_v36, %v19026_v44 }
 0x47a   : > { %19023 = vst [vmem:[#allocation14_spill] sm:$0xff] %v15879_v19  ;;  %19024 = vst [vmem:[#allocation133_spill] sm:$0xff] %v15881_v61  ;;  %v11727_v52 = vpop.f32.mrf.mxu0  ;;  %v11836_v11 = vpop.f32.mrf.mxu1 }
 0x47b   : > { %v3305_v28 = vadd.f32 %v3273_v63, %v2600_v22  ;;  %v15884_v54 = vadd.f32 %v3931_v35, %v3304_v18  ;;  %v11728_v59 = vadd.f32 %v11727_v52, %v11726_v34  ;;  %v11837_v1 = vadd.f32 %v11836_v11, %v11835_v51  ;;  %v19029_v52 = vld [vmem:[#allocation16_spill] sm:$0xff] }
 0x47c   : > { %v11729_v57 = vpop.f32.mrf.mxu0  ;;  %v11838_v12 = vpop.f32.mrf.mxu1  ;;  %v2602_v11 = vadd.f32 %v15736_v36, %v19029_v52 }
 0x47d   : > { %v3274_v50 = vmul.f32 %v11728_v59, %v15409_v42  ;;  %v3932_v38 = vmul.f32 %v11837_v1, %v15427_v4  ;;  %v15890_v43 = vpop.permute.xlu0 %4514  ;;  %v15892_v3 = vpop.permute.xlu1 %4509  ;;  %v19032_v42 = vld [vmem:[#allocation9_spill] sm:$0xff] }
 0x47e   : > { %19027 = vst [vmem:[#allocation15_spill] sm:$0xff] %v15890_v43  ;;  %19028 = vst [vmem:[#allocation134_spill] sm:$0xff] %v15892_v3  ;;  %v11730_v17 = vpop.f32.mrf.mxu0  ;;  %v11839_v14 = vpop.f32.mrf.mxu1 }
 0x47f   : > { %v3306_v22 = vadd.f32 %v3274_v50, %v2601_v21  ;;  %v15894_v18 = vadd.f32 %v3932_v38, %v3305_v28  ;;  %v11731_v34 = vadd.f32 %v11730_v17, %v11729_v57  ;;  %v11840_v51 = vadd.f32 %v11839_v14, %v11838_v12  ;;  %v19033_v28 = vld [vmem:[#allocation10_spill] sm:$0xff] }
 0x480   : > { %v11732_v63 = vpop.f32.mrf.mxu0  ;;  %v11841_v35 = vpop.f32.mrf.mxu1  ;;  %v2586_v21 = vadd.f32 %v15736_v36, %v19032_v42  ;;  %v2587_v17 = vadd.f32 %v15736_v36, %v19033_v28  ;;  %v2603_v28 = vadd.f32 %v15736_v36, %v19034_v47 }
 0x481   : > { %v3275_v59 = vmul.f32 %v11731_v34, %v15881_v61  ;;  %v3933_v1 = vmul.f32 %v11840_v51, %v15425_v9  ;;  %v15900_v44 = vpop.permute.xlu0 %3106  ;;  %v15902_v4 = vpop.permute.xlu1 %3101 }
 0x482   : > { %19030 = vst [vmem:[#allocation16_spill] sm:$0xff] %v15900_v44  ;;  %19031 = vst [vmem:[#allocation135_spill] sm:$0xff] %v15902_v4  ;;  %v3260_v14 = vmul.f32 %v15701_v15, %v15900_v44  ;;  %v3259_v57 = vmul.f32 %v15693_v6, %v15902_v4  ;;  %v11733_v12 = vpop.f32.mrf.mxu0  ;;  %v11842_v50 = vpop.f32.mrf.mxu1 }
 0x483   : > { %v3307_v38 = vadd.f32 %v3275_v59, %v2602_v11  ;;  %v15912_v34 = vadd.f32 %v3933_v1, %v3306_v22  ;;  %v11734_v51 = vadd.f32 %v11733_v12, %v11732_v63  ;;  %v11843_v52 = vadd.f32 %v11842_v50, %v11841_v35  ;;  %v19037_v1 = vld [vmem:[#allocation18_spill] sm:$0xff] }
 0x484   : > { %v3292_v9 = vadd.f32 %v3260_v14, %v2587_v17  ;;  %v3291_v61 = vadd.f32 %v3259_v57, %v2586_v21  ;;  %v11735_v37 = vpop.f32.mrf.mxu0  ;;  %v11844_v42 = vpop.f32.mrf.mxu1  ;;  %v2604_v21 = vadd.f32 %v15736_v36, %v19037_v1 }
 0x485   : > { %v3276_v48 = vmul.f32 %v11734_v51, %v15879_v19  ;;  %v15917_v15 = vpop.permute.xlu0 %4434  ;;  %v15919_v44 = vpop.permute.xlu1 %4429 }
 0x486   : > { %19035 = vst [vmem:[#allocation9_spill] sm:$0xff] %v15917_v15  ;;  %19036 = vst [vmem:[#allocation10_spill] sm:$0xff] %v15919_v44  ;;  %v11736_v6 = vpop.f32.mrf.mxu0  ;;  %v11845_v4 = vpop.f32.mrf.mxu1 }
 0x487   : > { %v11737_v11 = vadd.f32 %v11736_v6, %v11735_v37  ;;  %v11846_v22 = vadd.f32 %v11845_v4, %v11844_v42  ;;  %v3308_v59 = vadd.f32 %v3276_v48, %v2603_v28 }
 0x488   : > { %v11738_v63 = vpop.f32.mrf.mxu0  ;;  %v11847_v35 = vpop.f32.mrf.mxu1 }
 0x489   : > { %v3277_v17 = vmul.f32 %v11737_v11, %v15766_v2  ;;  %v15924_v14 = vpop.permute.xlu0 %3845  ;;  %v15926_v47 = vpop.permute.xlu1 %3840  ;;  %v19040_v11 = vld [vmem:[#allocation19_spill] sm:$0xff] }
 0x48a   : > { %19038 = vst [vmem:[#allocation17_spill] sm:$0xff] %v15924_v14  ;;  %19039 = vst [vmem:[#allocation18_spill] sm:$0xff] %v15926_v47  ;;  %v3935_v57 = vmul.f32 %v11846_v22, %v15924_v14  ;;  %v3934_v12 = vmul.f32 %v11843_v52, %v15926_v47  ;;  %v11739_v50 = vpop.f32.mrf.mxu0  ;;  %v11848_v51 = vpop.f32.mrf.mxu1  ;;  %v2605_v2 = vadd.f32 %v15736_v36, %v19040_v11 }
 0x48b   : > { %v3309_v37 = vadd.f32 %v3277_v17, %v2604_v21  ;;  %v11740_v4 = vadd.f32 %v11739_v50, %v11738_v63  ;;  %v11849_v48 = vadd.f32 %v11848_v51, %v11847_v35  ;;  %v19043_v50 = vld [vmem:[#allocation20_spill] sm:$0xff] }
 0x48c   : > { %v15930_v42 = vadd.f32 %v3935_v57, %v3308_v59  ;;  %v15932_v28 = vadd.f32 %v3934_v12, %v3307_v38  ;;  %v11741_v6 = vpop.f32.mrf.mxu0  ;;  %v11850_v1 = vpop.f32.mrf.mxu1  ;;  %v2606_v51 = vadd.f32 %v15736_v36, %v19043_v50 }
 0x48d   : > { %v3278_v19 = vmul.f32 %v11740_v4, %v15764_v49  ;;  %v3936_v22 = vmul.f32 %v11849_v48, %v15826_v7  ;;  %v15938_v14 = vpop.permute.xlu0 %5125  ;;  %v15940_v52 = vpop.permute.xlu1 %5120 }
 0x48e   : > { %19041 = vst [vmem:[#allocation19_spill] sm:$0xff] %v15938_v14  ;;  %19042 = vst [vmem:[#allocation136_spill] sm:$0xff] %v15940_v52  ;;  %v11742_v21 = vpop.f32.mrf.mxu0  ;;  %v11851_v63 = vpop.f32.mrf.mxu1 }
 0x48f   : > { %v3310_v35 = vadd.f32 %v3278_v19, %v2605_v2  ;;  %v15942_v59 = vadd.f32 %v3936_v22, %v3309_v37  ;;  %v11743_v38 = vadd.f32 %v11742_v21, %v11741_v6  ;;  %v11852_v17 = vadd.f32 %v11851_v63, %v11850_v1 }
 0x490   : > { %v11744_v57 = vpop.f32.mrf.mxu0  ;;  %v11853_v12 = vpop.f32.mrf.mxu1 }
 0x491   : > { %v3279_v4 = vmul.f32 %v11743_v38, %v15684_v60  ;;  %v3937_v48 = vmul.f32 %v11852_v17, %v15824_v56  ;;  %v15948_v11 = vpop.permute.xlu0 %3765  ;;  %v15950_v7 = vpop.permute.xlu1 %3760  ;;  %v19046_v60 = vld [vmem:[#allocation21_spill] sm:$0xff] }
 0x492   : > { %19044 = vst [vmem:[#allocation20_spill] sm:$0xff] %v15948_v11  ;;  %19045 = vst [vmem:[#allocation137_spill] sm:$0xff] %v15950_v7  ;;  %v3919_v2 = vmul.f32 %v15713_v31, %v15948_v11  ;;  %v3918_v19 = vmul.f32 %v15703_v46, %v15950_v7  ;;  %v11745_v37 = vpop.f32.mrf.mxu0  ;;  %v11854_v6 = vpop.f32.mrf.mxu1  ;;  %v2607_v49 = vadd.f32 %v15736_v36, %v19046_v60 }
 0x493   : > { %v3311_v1 = vadd.f32 %v3279_v4, %v2606_v51  ;;  %v15956_v22 = vadd.f32 %v3937_v48, %v3310_v35  ;;  %v11746_v21 = vadd.f32 %v11745_v37, %v11744_v57  ;;  %v11855_v63 = vadd.f32 %v11854_v6, %v11853_v12 }
 0x494   : > { %v15958_v38 = vadd.f32 %v3919_v2, %v3292_v9  ;;  %v15960_v17 = vadd.f32 %v3918_v19, %v3291_v61  ;;  %v11747_v50 = vpop.f32.mrf.mxu0  ;;  %v11856_v56 = vpop.f32.mrf.mxu1  ;;  %v19048_v61 = vld [vmem:[#allocation22_spill] sm:$0xff]  ;;  %v19049_v19 = vld [vmem:[#allocation112_spill] sm:$0xff] }
 0x495   : > { %v3280_v31 = vmul.f32 %v11746_v21, %v15682_v27  ;;  %v3938_v46 = vmul.f32 %v11855_v63, %v15718_v40  ;;  %v2608_v48 = vadd.f32 %v15736_v36, %v19048_v61 }
 0x496   : > { %v11748_v47 = vpop.f32.mrf.mxu0  ;;  %v11857_v11 = vpop.f32.mrf.mxu1 }
 0x497   : > { %v3312_v51 = vadd.f32 %v3280_v31, %v2607_v49  ;;  %v15966_v35 = vadd.f32 %v3938_v46, %v3311_v1  ;;  %v11749_v57 = vadd.f32 %v11748_v47, %v11747_v50  ;;  %v11858_v12 = vadd.f32 %v11857_v11, %v11856_v56  ;;  %v19051_v47 = vld [vmem:[#allocation23_spill] sm:$0xff]  ;;  %v19052_v11 = vld [vmem:[#allocation88_spill] sm:$0xff]  ;;  %v19053_v46 = vld [vmem:[#allocation97_spill] sm:$0xff] }
 0x498   : > { %v11750_v9 = vpop.f32.mrf.mxu0  ;;  %v11859_v4 = vpop.f32.mrf.mxu1  ;;  %v2609_v56 = vadd.f32 %v15736_v36, %v19051_v47 }
 0x499   : > { %19047 = vst [vmem:[#allocation21_spill] sm:$0xff] %v15966_v35  ;;  %v3281_v2 = vmul.f32 %v11749_v57, %v15628_v26  ;;  %v3939_v60 = vmul.f32 %v11858_v12, %v19049_v19 }
 0x49a   : > { %v11751_v37 = vpop.f32.mrf.mxu0  ;;  %v11860_v6 = vpop.f32.mrf.mxu1 }
 0x49b   : > { %v3313_v21 = vadd.f32 %v3281_v2, %v2608_v48  ;;  %v15972_v63 = vadd.f32 %v3939_v60, %v3312_v51  ;;  %v11752_v40 = vadd.f32 %v11751_v37, %v11750_v9  ;;  %v11861_v49 = vadd.f32 %v11860_v6, %v11859_v4  ;;  %v19055_v9 = vld [vmem:[#allocation24_spill] sm:$0xff]  ;;  %v19056_v60 = vld [vmem:[#allocation73_spill] sm:$0xff] }
 0x49c   : > { %v11753_v1 = vpop.f32.mrf.mxu0  ;;  %v11862_v31 = vpop.f32.mrf.mxu1  ;;  %v2610_v4 = vadd.f32 %v15736_v36, %v19055_v9  ;;  %v19057_v6 = vld [vmem:[#allocation96_spill] sm:$0xff] }
 0x49d   : > { %19050 = vst [vmem:[#allocation22_spill] sm:$0xff] %v15972_v63  ;;  %v3282_v50 = vmul.f32 %v11752_v40, %v19052_v11  ;;  %v3940_v61 = vmul.f32 %v11861_v49, %v19053_v46  ;;  %v19086_v63 = vld [vmem:[#allocation48_spill] sm:$0xff] }
 0x49e   : > { %v11754_v27 = vpop.f32.mrf.mxu0  ;;  %v11863_v57 = vpop.f32.mrf.mxu1 }
 0x49f   : > { %v3314_v26 = vadd.f32 %v3282_v50, %v2609_v56  ;;  %v15978_v12 = vadd.f32 %v3940_v61, %v3313_v21  ;;  %v11755_v19 = vadd.f32 %v11754_v27, %v11753_v1  ;;  %v11864_v48 = vadd.f32 %v11863_v57, %v11862_v31  ;;  %v19059_v27 = vld [vmem:[#allocation25_spill] sm:$0xff]  ;;  %v19060_v31 = vld [vmem:[#allocation72_spill] sm:$0xff] }
 0x4a0   : > { %v11756_v51 = vpop.f32.mrf.mxu0  ;;  %v11865_v2 = vpop.f32.mrf.mxu1  ;;  %v2611_v1 = vadd.f32 %v15736_v36, %v19059_v27  ;;  %v19061_v57 = vld [vmem:[#allocation81_spill] sm:$0xff] }
 0x4a1   : > { %19054 = vst [vmem:[#allocation23_spill] sm:$0xff] %v15978_v12  ;;  %v3283_v37 = vmul.f32 %v11755_v19, %v19056_v60  ;;  %v3941_v47 = vmul.f32 %v11864_v48, %v19057_v6 }
 0x4a2   : > { %v11757_v7 = vpop.f32.mrf.mxu0  ;;  %v11866_v40 = vpop.f32.mrf.mxu1 }
 0x4a3   : > { %v3315_v11 = vadd.f32 %v3283_v37, %v2610_v4  ;;  %v15984_v49 = vadd.f32 %v3941_v47, %v3314_v26  ;;  %v11758_v46 = vadd.f32 %v11757_v7, %v11756_v51  ;;  %v11867_v56 = vadd.f32 %v11866_v40, %v11865_v2  ;;  %v19063_v7 = vld [vmem:[#allocation26_spill] sm:$0xff]  ;;  %v19064_v2 = vld [vmem:[#allocation57_spill] sm:$0xff]  ;;  %v19065_v40 = vld [vmem:[#allocation80_spill] sm:$0xff] }
 0x4a4   : > { %v11759_v21 = vpop.f32.mrf.mxu0  ;;  %v11868_v50 = vpop.f32.mrf.mxu1  ;;  %v2612_v51 = vadd.f32 %v15736_v36, %v19063_v7  ;;  %v19070_v7 = vld [vmem:[#allocation65_spill] sm:$0xff] }
 0x4a5   : > { %19058 = vst [vmem:[#allocation24_spill] sm:$0xff] %v15984_v49  ;;  %v3284_v61 = vmul.f32 %v11758_v46, %v19060_v31  ;;  %v3942_v9 = vmul.f32 %v11867_v56, %v19061_v57  ;;  %v15996_v31 = vpop.permute.xlu1 %5040 }
 0x4a6   : > { %v11760_v62 = vpop.f32.mrf.mxu0  ;;  %v11869_v19 = vpop.f32.mrf.mxu1  ;;  %19066 = vst [vmem:[#allocation26_spill] sm:$0xff] %v15996_v31 }
 0x4a7   : > { %v3316_v60 = vadd.f32 %v3284_v61, %v2611_v1  ;;  %v15990_v48 = vadd.f32 %v3942_v9, %v3315_v11  ;;  %v11761_v6 = vadd.f32 %v11760_v62, %v11759_v21  ;;  %v11870_v4 = vadd.f32 %v11869_v19, %v11868_v50  ;;  %v19068_v50 = vld [vmem:[#allocation27_spill] sm:$0xff]  ;;  %v19069_v9 = vld [vmem:[#allocation56_spill] sm:$0xff] }
 0x4a8   : > { %v11762_v26 = vpop.f32.mrf.mxu0  ;;  %v11871_v37 = vpop.f32.mrf.mxu1  ;;  %v2613_v61 = vadd.f32 %v15736_v36, %v19068_v50  ;;  %v19076_v50 = vld [vmem:[#allocation64_spill] sm:$0xff] }
 0x4a9   : > { %19062 = vst [vmem:[#allocation25_spill] sm:$0xff] %v15990_v48  ;;  %v3285_v47 = vmul.f32 %v11761_v6, %v19064_v2  ;;  %v3943_v27 = vmul.f32 %v11870_v4, %v19065_v40  ;;  %v16004_v40 = vpop.permute.xlu0 %5045 }
 0x4aa   : > { %v11763_v49 = vpop.f32.mrf.mxu0  ;;  %v11872_v46 = vpop.f32.mrf.mxu1  ;;  %19071 = vst [vmem:[#allocation27_spill] sm:$0xff] %v16004_v40 }
 0x4ab   : > { %v3317_v56 = vadd.f32 %v3285_v47, %v2612_v51  ;;  %v15998_v57 = vadd.f32 %v3943_v27, %v3316_v60  ;;  %v11764_v11 = vadd.f32 %v11763_v49, %v11762_v26  ;;  %v11873_v1 = vadd.f32 %v11872_v46, %v11871_v37  ;;  %v19073_v37 = vld [vmem:[#allocation28_spill] sm:$0xff]  ;;  %v16010_v27 = vpop.permute.xlu1 %4499  ;;  %v19075_v46 = vld [vmem:[#allocation41_spill] sm:$0xff] }
 0x4ac   : > { %v11765_v62 = vpop.f32.mrf.mxu0  ;;  %v11874_v21 = vpop.f32.mrf.mxu1  ;;  %v2614_v47 = vadd.f32 %v15736_v36, %v19073_v37  ;;  %19074 = vst [vmem:[#allocation28_spill] sm:$0xff] %v16010_v27 }
 0x4ad   : > { %19067 = vst [vmem:[#allocation138_spill] sm:$0xff] %v15998_v57  ;;  %v3286_v19 = vmul.f32 %v11764_v11, %v19069_v9  ;;  %v3944_v6 = vmul.f32 %v11873_v1, %v19070_v7 }
 0x4ae   : > { %v11766_v2 = vpop.f32.mrf.mxu0  ;;  %v11875_v4 = vpop.f32.mrf.mxu1 }
 0x4af   : > { %v3318_v48 = vadd.f32 %v3286_v19, %v2613_v61  ;;  %v16006_v12 = vadd.f32 %v3944_v6, %v3317_v56  ;;  %v11767_v60 = vadd.f32 %v11766_v2, %v11765_v62  ;;  %v11876_v51 = vadd.f32 %v11875_v4, %v11874_v21  ;;  %v19078_v21 = vld [vmem:[#allocation29_spill] sm:$0xff]  ;;  %v16018_v6 = vpop.permute.xlu0 %4504  ;;  %v19080_v4 = vld [vmem:[#allocation40_spill] sm:$0xff] }
 0x4b0   : > { %v11768_v49 = vpop.f32.mrf.mxu0  ;;  %v11877_v26 = vpop.f32.mrf.mxu1  ;;  %v2615_v19 = vadd.f32 %v15736_v36, %v19078_v21  ;;  %19079 = vst [vmem:[#allocation29_spill] sm:$0xff] %v16018_v6  ;;  %v19085_v21 = vld [vmem:[#allocation33_spill] sm:$0xff] }
 0x4b1   : > { %19072 = vst [vmem:[#allocation139_spill] sm:$0xff] %v16006_v12  ;;  %v3287_v11 = vmul.f32 %v11767_v60, %v19075_v46  ;;  %v3945_v1 = vmul.f32 %v11876_v51, %v19076_v50  ;;  %v19081_v12 = vld [vmem:[#allocation49_spill] sm:$0xff]  ;;  %v16022_v50 = vpop.permute.xlu1 %4419 }
 0x4b2   : > { %v11769_v7 = vpop.f32.mrf.mxu0  ;;  %v11878_v9 = vpop.f32.mrf.mxu1  ;;  %19082 = vst [vmem:[#allocation141_spill] sm:$0xff] %v16022_v50 }
 0x4b3   : > { %v3319_v57 = vadd.f32 %v3287_v11, %v2614_v47  ;;  %v16014_v25 = vadd.f32 %v3945_v1, %v3318_v48  ;;  %v11770_v56 = vadd.f32 %v11769_v7, %v11768_v49  ;;  %v11879_v61 = vadd.f32 %v11878_v9, %v11877_v26  ;;  %v19084_v11 = vld [vmem:[#allocation30_spill] sm:$0xff] }
 0x4b4   : > { %v11771_v2 = vpop.f32.mrf.mxu0  ;;  %v11880_v62 = vpop.f32.mrf.mxu1  ;;  %v2616_v1 = vadd.f32 %v15736_v36, %v19084_v11  ;;  %v19091_v11 = vld [vmem:[#allocation37_spill] sm:$0xff] }
 0x4b5   : > { %19077 = vst [vmem:[#allocation140_spill] sm:$0xff] %v16014_v25  ;;  %v3288_v37 = vmul.f32 %v11770_v56, %v19080_v4  ;;  %v3946_v60 = vmul.f32 %v11879_v61, %v19081_v12  ;;  %v16030_v12 = vpop.permute.xlu0 %4424 }
 0x4b6   : > { %v11772_v46 = vpop.f32.mrf.mxu0  ;;  %v11881_v51 = vpop.f32.mrf.mxu1  ;;  %19087 = vst [vmem:[#allocation30_spill] sm:$0xff] %v16030_v12 }
 0x4b7   : > { %v3320_v47 = vadd.f32 %v3288_v37, %v2615_v19  ;;  %v16024_v48 = vadd.f32 %v3946_v60, %v3319_v57  ;;  %v11773_v7 = vadd.f32 %v11772_v46, %v11771_v2  ;;  %v11882_v9 = vadd.f32 %v11881_v51, %v11880_v62  ;;  %v19088_v62 = vld [vmem:[#allocation31_spill] sm:$0xff]  ;;  %v16036_v60 = vpop.permute.xlu1 %5110  ;;  %v19090_v51 = vld [vmem:[#allocation32_spill] sm:$0xff] }
 0x4b8   : > { %v11774_v49 = vpop.f32.mrf.mxu0  ;;  %v11883_v26 = vpop.f32.mrf.mxu1  ;;  %v2617_v37 = vadd.f32 %v15736_v36, %v19088_v62  ;;  %19089 = vst [vmem:[#allocation31_spill] sm:$0xff] %v16036_v60 }
 0x4b9   : > { %19083 = vst [vmem:[#allocation142_spill] sm:$0xff] %v16024_v48  ;;  %v3289_v25 = vmul.f32 %v11773_v7, %v19085_v21  ;;  %v3947_v56 = vmul.f32 %v11882_v9, %v19086_v63 }
 0x4ba   : > { %v11775_v4 = vpop.f32.mrf.mxu0  ;;  %v11884_v61 = vpop.f32.mrf.mxu1 }
 0x4bb   : > { %v3321_v8 = vadd.f32 %v3289_v25, %v2616_v1  ;;  %v16032_v53 = vadd.f32 %v3947_v56, %v3320_v47  ;;  %v11776_v57 = vadd.f32 %v11775_v4, %v11774_v49  ;;  %v11885_v19 = vadd.f32 %v11884_v61, %v11883_v26  ;;  %v16042_v26 = vpop.permute.xlu0 %5115  ;;  %v19093_v1 = vld [vmem:[#allocation36_spill] sm:$0xff] }
 0x4bc   : > { %v11886_v46 = vpop.f32.mrf.mxu1  ;;  %v11905_v2 = vpop.f32.mrf.mxu0  ;;  %19092 = vst [vmem:[#allocation143_spill] sm:$0xff] %v16042_v26 }
 0x4bd   : > { %v3290_v7 = vmul.f32 %v11776_v57, %v19090_v51  ;;  %v3948_v9 = vmul.f32 %v11885_v19, %v19091_v11  ;;  %v16046_v57 = vpop.permute.xlu1 %5030 }
 0x4be   : > { %v11887_v63 = vpop.f32.mrf.mxu1  ;;  %v11906_v21 = vpop.f32.mrf.mxu0  ;;  %19094 = vst [vmem:[#allocation144_spill] sm:$0xff] %v16046_v57 }
 0x4bf   : > { %v3322_v48 = vadd.f32 %v3290_v7, %v2617_v37  ;;  %v16040_v35 = vadd.f32 %v3948_v9, %v3321_v8  ;;  %v11888_v25 = vadd.f32 %v11887_v63, %v11886_v46  ;;  %v11907_v47 = vadd.f32 %v11906_v21, %v11905_v2 }
 0x4c0   : > { %v11908_v4 = vpop.f32.mrf.mxu0  ;;  %v12017_v49 = vpop.f32.mrf.mxu1 }
 0x4c1   : > { %v3949_v56 = vmul.f32 %v11888_v25, %v19093_v1  ;;  %v4577_v36 = vmul.f32 %v11907_v47, %v16022_v50  ;;  %v16053_v1 = vpop.permute.xlu0 %5035 }
 0x4c2   : > { %v11909_v61 = vpop.f32.mrf.mxu0  ;;  %v12018_v62 = vpop.f32.mrf.mxu1  ;;  %19096 = vst [vmem:[#allocation146_spill] sm:$0xff] %v16053_v1 }
 0x4c3   : > { %v16048_v19 = vadd.f32 %v3949_v56, %v3322_v48  ;;  %v4609_v37 = vadd.f32 %v4577_v36, %v15960_v17  ;;  %v11910_v8 = vadd.f32 %v11909_v61, %v11908_v4  ;;  %v12019_v7 = vadd.f32 %v12018_v62, %v12017_v49 }
 0x4c4   : > { %v11911_v63 = vpop.f32.mrf.mxu0  ;;  %v12020_v21 = vpop.f32.mrf.mxu1 }
 0x4c5   : > { %19095 = vst [vmem:[#allocation145_spill] sm:$0xff] %v16048_v19  ;;  %v4578_v46 = vmul.f32 %v11910_v8, %v16030_v12  ;;  %v5188_v2 = vmul.f32 %v12019_v7, %v16046_v57 }
 0x4c6   : > { %v11912_v9 = vpop.f32.mrf.mxu0  ;;  %v12021_v25 = vpop.f32.mrf.mxu1 }
 0x4c7   : > { %v4610_v47 = vadd.f32 %v4578_v46, %v15958_v38  ;;  %v5220_v50 = vadd.f32 %v5188_v2, %v4609_v37  ;;  %v11913_v11 = vadd.f32 %v11912_v9, %v11911_v63  ;;  %v12022_v48 = vadd.f32 %v12021_v25, %v12020_v21 }
 0x4c8   : > { %v11914_v56 = vpop.f32.mrf.mxu0  ;;  %v12023_v51 = vpop.f32.mrf.mxu1 }
 0x4c9   : > { %v4579_v17 = vmul.f32 %v11913_v11, %v15919_v44  ;;  %v5189_v4 = vmul.f32 %v12022_v48, %v16053_v1  ;;  %v5252_v63 = vmax.f32 %v5220_v50, 0.0 }
 0x4ca   : > { %v11915_v49 = vpop.f32.mrf.mxu0  ;;  %v12024_v36 = vpop.f32.mrf.mxu1 }
 0x4cb   : > { %v4611_v61 = vadd.f32 %v4579_v17, %v15862_v5  ;;  %v5221_v62 = vadd.f32 %v5189_v4, %v4610_v47  ;;  %v11916_v8 = vadd.f32 %v11915_v49, %v11914_v56  ;;  %v12025_v7 = vadd.f32 %v12024_v36, %v12023_v51 }
 0x4cc   : > { %v11917_v57 = vpop.f32.mrf.mxu0  ;;  %v12026_v12 = vpop.f32.mrf.mxu1 }
 0x4cd   : > { %v5253_v19 = vmax.f32 %v5221_v62, 0.0  ;;  %v4580_v38 = vmul.f32 %v11916_v8, %v15917_v15  ;;  %v5190_v37 = vmul.f32 %v12025_v7, %v15996_v31 }
 0x4ce   : > { %v11918_v21 = vpop.f32.mrf.mxu0  ;;  %v12027_v46 = vpop.f32.mrf.mxu1 }
 0x4cf   : > { %v4612_v11 = vadd.f32 %v4580_v38, %v15859_v24  ;;  %v5222_v2 = vadd.f32 %v5190_v37, %v4611_v61  ;;  %v11919_v9 = vadd.f32 %v11918_v21, %v11917_v57  ;;  %v12028_v25 = vadd.f32 %v12027_v46, %v12026_v12 }
 0x4d0   : > { %v11920_v48 = vpop.f32.mrf.mxu0  ;;  %v12029_v5 = vpop.f32.mrf.mxu1  ;;  %v16062_v47 = vpack.c.bf16 %v5253_v19, %v5252_v63 }
 0x4d1   : > { %v4581_v51 = vmul.f32 %v11919_v9, %v15814_v30  ;;  %v5191_v56 = vmul.f32 %v12028_v25, %v16004_v40  ;;  %v5254_v19 = vmax.f32 %v5222_v2, 0.0  ;;  %v19097_v25 = vld [vmem:[#allocation111_spill] sm:$0xff] }
 0x4d2   : > { %v11921_v17 = vpop.f32.mrf.mxu0  ;;  %v12030_v4 = vpop.f32.mrf.mxu1 }
 0x4d3   : > { %v4613_v49 = vadd.f32 %v4581_v51, %v15757_v0  ;;  %v5223_v50 = vadd.f32 %v5191_v56, %v4612_v11  ;;  %v11922_v36 = vadd.f32 %v11921_v17, %v11920_v48  ;;  %v12031_v62 = vadd.f32 %v12030_v4, %v12029_v5 }
 0x4d4   : > { %v11923_v8 = vpop.f32.mrf.mxu0  ;;  %v12032_v24 = vpop.f32.mrf.mxu1 }
 0x4d5   : > { %v5255_v61 = vmax.f32 %v5223_v50, 0.0  ;;  %v4582_v12 = vmul.f32 %v11922_v36, %v15812_v23  ;;  %v5192_v57 = vmul.f32 %v12031_v62, %v15871_v55  ;;  %v19098_v62 = vld [vmem:[#allocation110_spill] sm:$0xff] }
 0x4d6   : > { %v11924_v7 = vpop.f32.mrf.mxu0  ;;  %v12033_v38 = vpop.f32.mrf.mxu1 }
 0x4d7   : > { %v4614_v37 = vadd.f32 %v4582_v12, %v15769_v39  ;;  %v5224_v63 = vadd.f32 %v5192_v57, %v4613_v49  ;;  %v11925_v21 = vadd.f32 %v11924_v7, %v11923_v8  ;;  %v12034_v46 = vadd.f32 %v12033_v38, %v12032_v24 }
 0x4d8   : > { %v11926_v9 = vpop.f32.mrf.mxu0  ;;  %v12035_v0 = vpop.f32.mrf.mxu1  ;;  %v16070_v11 = vpack.c.bf16 %v5255_v61, %v5254_v19 }
 0x4d9   : > { %v4583_v48 = vmul.f32 %v11925_v21, %v19097_v25  ;;  %v5193_v5 = vmul.f32 %v12034_v46, %v15869_v13  ;;  %v5256_v61 = vmax.f32 %v5224_v63, 0.0 }
 0x4da   : > { %v11927_v51 = vpop.f32.mrf.mxu0  ;;  %v12036_v56 = vpop.f32.mrf.mxu1 }
 0x4db   : > { %v4615_v17 = vadd.f32 %v4583_v48, %v15781_v32  ;;  %v5225_v2 = vadd.f32 %v5193_v5, %v4614_v37  ;;  %v11928_v4 = vadd.f32 %v11927_v51, %v11926_v9  ;;  %v12037_v50 = vadd.f32 %v12036_v56, %v12035_v0  ;;  %v19099_v9 = vld [vmem:[#allocation95_spill] sm:$0xff]  ;;  %v19100_v48 = vld [vmem:[#allocation118_spill] sm:$0xff] }
 0x4dc   : > { %v11929_v36 = vpop.f32.mrf.mxu0  ;;  %v12038_v39 = vpop.f32.mrf.mxu1 }
 0x4dd   : > { %v5257_v49 = vmax.f32 %v5225_v2, 0.0  ;;  %v4584_v8 = vmul.f32 %v11928_v4, %v19098_v62  ;;  %v5194_v24 = vmul.f32 %v12037_v50, %v15754_v10 }
 0x4de   : > { %v11930_v12 = vpop.f32.mrf.mxu0  ;;  %v12039_v57 = vpop.f32.mrf.mxu1 }
 0x4df   : > { %v4616_v19 = vadd.f32 %v4584_v8, %v15801_v41  ;;  %v5226_v7 = vadd.f32 %v5194_v24, %v4615_v17  ;;  %v11931_v38 = vadd.f32 %v11930_v12, %v11929_v36  ;;  %v12040_v21 = vadd.f32 %v12039_v57, %v12038_v39  ;;  %v19101_v39 = vld [vmem:[#allocation94_spill] sm:$0xff]  ;;  %v19102_v24 = vld [vmem:[#allocation103_spill] sm:$0xff] }
 0x4e0   : > { %v11932_v46 = vpop.f32.mrf.mxu0  ;;  %v12041_v32 = vpop.f32.mrf.mxu1  ;;  %v16078_v37 = vpack.c.bf16 %v5257_v49, %v5256_v61 }
 0x4e1   : > { %v4585_v0 = vmul.f32 %v11931_v38, %v19099_v9  ;;  %v5195_v5 = vmul.f32 %v12040_v21, %v19100_v48  ;;  %v5258_v49 = vmax.f32 %v5226_v7, 0.0 }
 0x4e2   : > { %v11933_v51 = vpop.f32.mrf.mxu0  ;;  %v12042_v56 = vpop.f32.mrf.mxu1 }
 0x4e3   : > { %v4617_v63 = vadd.f32 %v4585_v0, %v15817_v58  ;;  %v5227_v2 = vadd.f32 %v5195_v5, %v4616_v19  ;;  %v11934_v4 = vadd.f32 %v11933_v51, %v11932_v46  ;;  %v12043_v50 = vadd.f32 %v12042_v56, %v12041_v32  ;;  %v13664_v32 = vld [vmem:[%s16087_s23 + $0x4] ss:$8 sps:$4 sm:$0xff]   ;;  %v19103_v0 = vld [vmem:[#allocation79_spill] sm:$0xff] }
 0x4e4   : > { %v11935_v41 = vpop.f32.mrf.mxu0  ;;  %v12044_v17 = vpop.f32.mrf.mxu1  ;;  %v19104_v51 = vld [vmem:[#allocation102_spill] sm:$0xff]  ;;  %5524 = vmatprep.mubr.bf16.mxu0 %v13664_v32 }
 0x4e5   : > { %v5259_v36 = vmax.f32 %v5227_v2, 0.0  ;;  %v4586_v8 = vmul.f32 %v11934_v4, %v19101_v39  ;;  %v5196_v12 = vmul.f32 %v12043_v50, %v19102_v24 }
 0x4e6   : > { %v11936_v61 = vpop.f32.mrf.mxu0  ;;  %v12045_v57 = vpop.f32.mrf.mxu1 }
 0x4e7   : > { %v4618_v38 = vadd.f32 %v4586_v8, %v15829_v29  ;;  %v5228_v21 = vadd.f32 %v5196_v12, %v4617_v63  ;;  %v11937_v48 = vadd.f32 %v11936_v61, %v11935_v41  ;;  %v12046_v9 = vadd.f32 %v12045_v57, %v12044_v17  ;;  %v19105_v12 = vld [vmem:[#allocation78_spill] sm:$0xff] }
 0x4e8   : > { %v11938_v58 = vpop.f32.mrf.mxu0  ;;  %v12047_v19 = vpop.f32.mrf.mxu1  ;;  %v16089_v46 = vpack.c.bf16 %v5259_v36, %v5258_v49  ;;  %v19106_v36 = vld [vmem:[#allocation87_spill] sm:$0xff] }
 0x4e9   : > { %v4587_v5 = vmul.f32 %v11937_v48, %v19103_v0  ;;  %v5197_v56 = vmul.f32 %v12046_v9, %v19104_v51  ;;  %v5260_v57 = vmax.f32 %v5228_v21, 0.0 }
 0x4ea   : > { %v11939_v7 = vpop.f32.mrf.mxu0  ;;  %v12048_v2 = vpop.f32.mrf.mxu1 }
 0x4eb   : > { %v4619_v29 = vadd.f32 %v4587_v5, %v15841_v45  ;;  %v5229_v63 = vadd.f32 %v5197_v56, %v4618_v38  ;;  %v11940_v4 = vadd.f32 %v11939_v7, %v11938_v58  ;;  %v12049_v50 = vadd.f32 %v12048_v2, %v12047_v19  ;;  %v19107_v58 = vld [vmem:[#allocation63_spill] sm:$0xff]  ;;  %v19108_v5 = vld [vmem:[#allocation86_spill] sm:$0xff] }
 0x4ec   : > { %v11941_v41 = vpop.f32.mrf.mxu0  ;;  %v12050_v17 = vpop.f32.mrf.mxu1 }
 0x4ed   : > { %v5261_v8 = vmax.f32 %v5229_v63, 0.0  ;;  %v4588_v61 = vmul.f32 %v11940_v4, %v19105_v12  ;;  %v5198_v49 = vmul.f32 %v12049_v50, %v19106_v36 }
 0x4ee   : > { %v11942_v24 = vpop.f32.mrf.mxu0  ;;  %v12051_v48 = vpop.f32.mrf.mxu1 }
 0x4ef   : > { %v4620_v9 = vadd.f32 %v4588_v61, %v15856_v33  ;;  %v5230_v51 = vadd.f32 %v5198_v49, %v4619_v29  ;;  %v11943_v0 = vadd.f32 %v11942_v24, %v11941_v41  ;;  %v12052_v32 = vadd.f32 %v12051_v48, %v12050_v17  ;;  %v19109_v24 = vld [vmem:[#allocation62_spill] sm:$0xff]  ;;  %v19110_v17 = vld [vmem:[#allocation71_spill] sm:$0xff] }
 0x4f0   : > { %v11944_v39 = vpop.f32.mrf.mxu0  ;;  %v12053_v45 = vpop.f32.mrf.mxu1  ;;  %v16098_v38 = vpack.c.bf16 %v5261_v8, %v5260_v57 }
 0x4f1   : > { %v4589_v19 = vmul.f32 %v11943_v0, %v19107_v58  ;;  %v5199_v56 = vmul.f32 %v12052_v32, %v19108_v5  ;;  %v5262_v8 = vmax.f32 %v5230_v51, 0.0 }
 0x4f2   : > { %v11945_v7 = vpop.f32.mrf.mxu0  ;;  %v12054_v2 = vpop.f32.mrf.mxu1 }
 0x4f3   : > { %v4621_v63 = vadd.f32 %v4589_v19, %v15873_v16  ;;  %v5231_v21 = vadd.f32 %v5199_v56, %v4620_v9  ;;  %v11946_v4 = vadd.f32 %v11945_v7, %v11944_v39  ;;  %v12055_v50 = vadd.f32 %v12054_v2, %v12053_v45  ;;  %v19111_v39 = vld [vmem:[#allocation47_spill] sm:$0xff]  ;;  %v19112_v19 = vld [vmem:[#allocation70_spill] sm:$0xff] }
 0x4f4   : > { %v11947_v36 = vpop.f32.mrf.mxu0  ;;  %v12056_v33 = vpop.f32.mrf.mxu1 }
 0x4f5   : > { %v5263_v29 = vmax.f32 %v5231_v21, 0.0  ;;  %v4590_v41 = vmul.f32 %v11946_v4, %v19109_v24  ;;  %v5200_v61 = vmul.f32 %v12055_v50, %v19110_v17 }
 0x4f6   : > { %v11948_v49 = vpop.f32.mrf.mxu0  ;;  %v12057_v57 = vpop.f32.mrf.mxu1 }
 0x4f7   : > { %v4622_v0 = vadd.f32 %v4590_v41, %v15884_v54  ;;  %v5232_v48 = vadd.f32 %v5200_v61, %v4621_v63  ;;  %v11949_v32 = vadd.f32 %v11948_v49, %v11947_v36  ;;  %v12058_v5 = vadd.f32 %v12057_v57, %v12056_v33  ;;  %v19113_v36 = vld [vmem:[#allocation46_spill] sm:$0xff]  ;;  %v19114_v41 = vld [vmem:[#allocation55_spill] sm:$0xff] }
 0x4f8   : > { %v11950_v58 = vpop.f32.mrf.mxu0  ;;  %v12059_v16 = vpop.f32.mrf.mxu1  ;;  %v16106_v9 = vpack.c.bf16 %v5263_v29, %v5262_v8 }
 0x4f9   : > { %v4591_v45 = vmul.f32 %v11949_v32, %v19111_v39  ;;  %v5201_v56 = vmul.f32 %v12058_v5, %v19112_v19  ;;  %v5264_v29 = vmax.f32 %v5232_v48, 0.0 }
 0x4fa   : > { %v11951_v7 = vpop.f32.mrf.mxu0  ;;  %v12060_v2 = vpop.f32.mrf.mxu1 }
 0x4fb   : > { %v4623_v21 = vadd.f32 %v4591_v45, %v15894_v18  ;;  %v5233_v51 = vadd.f32 %v5201_v56, %v4622_v0  ;;  %v11952_v4 = vadd.f32 %v11951_v7, %v11950_v58  ;;  %v12061_v50 = vadd.f32 %v12060_v2, %v12059_v16  ;;  %v19115_v16 = vld [vmem:[#allocation54_spill] sm:$0xff] }
 0x4fc   : > { %v11953_v17 = vpop.f32.mrf.mxu0  ;;  %v12062_v54 = vpop.f32.mrf.mxu1 }
 0x4fd   : > { %v5265_v63 = vmax.f32 %v5233_v51, 0.0  ;;  %v4592_v33 = vmul.f32 %v11952_v4, %v19113_v36  ;;  %v5202_v61 = vmul.f32 %v12061_v50, %v19114_v41 }
 0x4fe   : > { %v11954_v8 = vpop.f32.mrf.mxu0  ;;  %v12063_v49 = vpop.f32.mrf.mxu1 }
 0x4ff   : > { %v4624_v57 = vadd.f32 %v4592_v33, %v15912_v34  ;;  %v5234_v5 = vadd.f32 %v5202_v61, %v4623_v21  ;;  %v11955_v32 = vadd.f32 %v11954_v8, %v11953_v17  ;;  %v12064_v19 = vadd.f32 %v12063_v49, %v12062_v54 }
 0x500   : > { %v11956_v39 = vpop.f32.mrf.mxu0  ;;  %v12065_v18 = vpop.f32.mrf.mxu1  ;;  %v16114_v0 = vpack.c.bf16 %v5265_v63, %v5264_v29 }
 0x501   : > { %v4593_v58 = vmul.f32 %v11955_v32, %v16010_v27  ;;  %v5203_v45 = vmul.f32 %v12064_v19, %v19115_v16  ;;  %v5266_v63 = vmax.f32 %v5234_v5, 0.0 }
 0x502   : > { %v11957_v56 = vpop.f32.mrf.mxu0  ;;  %v12066_v7 = vpop.f32.mrf.mxu1 }
 0x503   : > { %v4625_v2 = vadd.f32 %v4593_v58, %v15932_v28  ;;  %v5235_v48 = vadd.f32 %v5203_v45, %v4624_v57  ;;  %v11958_v51 = vadd.f32 %v11957_v56, %v11956_v39  ;;  %v12067_v4 = vadd.f32 %v12066_v7, %v12065_v18 }
 0x504   : > { %v11959_v50 = vpop.f32.mrf.mxu0  ;;  %v12068_v34 = vpop.f32.mrf.mxu1 }
 0x505   : > { %v5267_v21 = vmax.f32 %v5235_v48, 0.0  ;;  %v4594_v17 = vmul.f32 %v11958_v51, %v16018_v6  ;;  %v5204_v54 = vmul.f32 %v12067_v4, %v16036_v60 }
 0x506   : > { %v11960_v33 = vpop.f32.mrf.mxu0  ;;  %v12069_v61 = vpop.f32.mrf.mxu1 }
 0x507   : > { %v4626_v29 = vadd.f32 %v4594_v17, %v15930_v42  ;;  %v5236_v19 = vadd.f32 %v5204_v54, %v4625_v2  ;;  %v11961_v8 = vadd.f32 %v11960_v33, %v11959_v50  ;;  %v12070_v49 = vadd.f32 %v12069_v61, %v12068_v34 }
 0x508   : > { %v11962_v32 = vpop.f32.mrf.mxu0  ;;  %v12071_v28 = vpop.f32.mrf.mxu1  ;;  %v16122_v57 = vpack.c.bf16 %v5267_v21, %v5266_v63 }
 0x509   : > { %v4595_v39 = vmul.f32 %v11961_v8, %v15892_v3  ;;  %v5205_v18 = vmul.f32 %v12070_v49, %v16042_v26  ;;  %v5268_v34 = vmax.f32 %v5236_v19, 0.0 }
 0x50a   : > { %v11963_v58 = vpop.f32.mrf.mxu0  ;;  %v12072_v45 = vpop.f32.mrf.mxu1 }
 0x50b   : > { %v4627_v56 = vadd.f32 %v4595_v39, %v15942_v59  ;;  %v5237_v5 = vadd.f32 %v5205_v18, %v4626_v29  ;;  %v11964_v7 = vadd.f32 %v11963_v58, %v11962_v32  ;;  %v12073_v48 = vadd.f32 %v12072_v45, %v12071_v28  ;;  %v19116_v18 = vld [vmem:[#allocation21_spill] sm:$0xff] }
 0x50c   : > { %v11965_v51 = vpop.f32.mrf.mxu0  ;;  %v12074_v42 = vpop.f32.mrf.mxu1 }
 0x50d   : > { %v4596_v2 = vmul.f32 %v11964_v7, %v15890_v43  ;;  %v5206_v4 = vmul.f32 %v12073_v48, %v15940_v52  ;;  %v5269_v50 = vmax.f32 %v5237_v5, 0.0 }
 0x50e   : > { %v11966_v21 = vpop.f32.mrf.mxu0  ;;  %v12075_v17 = vpop.f32.mrf.mxu1 }
 0x50f   : > { %v4628_v54 = vadd.f32 %v4596_v2, %v15956_v22  ;;  %v5238_v63 = vadd.f32 %v5206_v4, %v4627_v56  ;;  %v11967_v33 = vadd.f32 %v11966_v21, %v11965_v51  ;;  %v12076_v61 = vadd.f32 %v12075_v17, %v12074_v42  ;;  %v19117_v56 = vld [vmem:[#allocation122_spill] sm:$0xff] }
 0x510   : > { %v11968_v8 = vpop.f32.mrf.mxu0  ;;  %v12077_v59 = vpop.f32.mrf.mxu1  ;;  %v16130_v29 = vpack.c.bf16 %v5269_v50, %v5268_v34  ;;  %v19118_v51 = vld [vmem:[#allocation130_spill] sm:$0xff] }
 0x511   : > { %v4597_v49 = vmul.f32 %v11967_v33, %v15778_v20  ;;  %v5207_v32 = vmul.f32 %v12076_v61, %v15938_v14  ;;  %v5270_v4 = vmax.f32 %v5238_v63, 0.0 }
 0x512   : > { %v11969_v28 = vpop.f32.mrf.mxu0  ;;  %v12078_v39 = vpop.f32.mrf.mxu1 }
 0x513   : > { %v4629_v58 = vadd.f32 %v4597_v49, %v19116_v18  ;;  %v5239_v19 = vadd.f32 %v5207_v32, %v4628_v54  ;;  %v11970_v45 = vadd.f32 %v11969_v28, %v11968_v8  ;;  %v12079_v5 = vadd.f32 %v12078_v39, %v12077_v59  ;;  %v19119_v54 = vld [vmem:[#allocation22_spill] sm:$0xff]  ;;  %v19120_v59 = vld [vmem:[#allocation11_spill] sm:$0xff] }
 0x514   : > { %v11971_v7 = vpop.f32.mrf.mxu0  ;;  %v12080_v22 = vpop.f32.mrf.mxu1 }
 0x515   : > { %v4598_v48 = vmul.f32 %v11970_v45, %v19117_v56  ;;  %v5208_v42 = vmul.f32 %v12079_v5, %v19118_v51  ;;  %v5271_v2 = vmax.f32 %v5239_v19, 0.0  ;;  %v19121_v19 = vld [vmem:[#allocation107_spill] sm:$0xff] }
 0x516   : > { %v11972_v50 = vpop.f32.mrf.mxu0  ;;  %v12081_v34 = vpop.f32.mrf.mxu1 }
 0x517   : > { %v5240_v21 = vadd.f32 %v5208_v42, %v4629_v58  ;;  %v12082_v17 = vadd.f32 %v12081_v34, %v12080_v22  ;;  %v11973_v33 = vadd.f32 %v11972_v50, %v11971_v7  ;;  %v16137_v20 = vpack.c.bf16 %v5271_v2, %v5270_v4  ;;  %v19122_v58 = vld [vmem:[#allocation106_spill] sm:$0xff]  ;;  %v19123_v50 = vld [vmem:[#allocation115_spill] sm:$0xff] }
 0x518   : > { %v11974_v61 = vpop.f32.mrf.mxu0  ;;  %v12083_v14 = vpop.f32.mrf.mxu1  ;;  %v4630_v8 = vadd.f32 %v4598_v48, %v19119_v54  ;;  %v19124_v54 = vld [vmem:[#allocation23_spill] sm:$0xff] }
 0x519   : > { %v5209_v49 = vmul.f32 %v12082_v17, %v19120_v59  ;;  %v4599_v63 = vmul.f32 %v11973_v33, %v19121_v19  ;;  %v5272_v42 = vmax.f32 %v5240_v21, 0.0 }
 0x51a   : > { %v11975_v32 = vpop.f32.mrf.mxu0  ;;  %v12084_v28 = vpop.f32.mrf.mxu1 }
 0x51b   : > { %v5241_v39 = vadd.f32 %v5209_v49, %v4630_v8  ;;  %v11976_v18 = vadd.f32 %v11975_v32, %v11974_v61  ;;  %v12085_v45 = vadd.f32 %v12084_v28, %v12083_v14  ;;  %v4631_v17 = vadd.f32 %v4599_v63, %v19124_v54  ;;  %v19125_v14 = vld [vmem:[#allocation24_spill] sm:$0xff]  ;;  %v19126_v49 = vld [vmem:[#allocation114_spill] sm:$0xff] }
 0x51c   : > { %v11977_v5 = vpop.f32.mrf.mxu0  ;;  %v12086_v51 = vpop.f32.mrf.mxu1  ;;  %v19128_v63 = vld [vmem:[#allocation90_spill] sm:$0xff] }
 0x51d   : > { %v4600_v22 = vmul.f32 %v11976_v18, %v19122_v58  ;;  %v5273_v7 = vmax.f32 %v5241_v39, 0.0  ;;  %v5210_v2 = vmul.f32 %v12085_v45, %v19123_v50  ;;  %v19127_v50 = vld [vmem:[#allocation91_spill] sm:$0xff] }
 0x51e   : > { %v11978_v4 = vpop.f32.mrf.mxu0  ;;  %v12087_v34 = vpop.f32.mrf.mxu1 }
 0x51f   : > { %v12088_v48 = vadd.f32 %v12087_v34, %v12086_v51  ;;  %v11979_v59 = vadd.f32 %v11978_v4, %v11977_v5  ;;  %v16145_v61 = vpack.c.bf16 %v5273_v7, %v5272_v42  ;;  %v4632_v33 = vadd.f32 %v4600_v22, %v19125_v14  ;;  %v19129_v7 = vld [vmem:[#allocation99_spill] sm:$0xff] }
 0x520   : > { %v11980_v56 = vpop.f32.mrf.mxu0  ;;  %v12089_v8 = vpop.f32.mrf.mxu1  ;;  %v5242_v28 = vadd.f32 %v5210_v2, %v4631_v17 }
 0x521   : > { %v5211_v32 = vmul.f32 %v12088_v48, %v19126_v49  ;;  %v4601_v19 = vmul.f32 %v11979_v59, %v19127_v50  ;;  %v19130_v48 = vld [vmem:[#allocation25_spill] sm:$0xff] }
 0x522   : > { %v11981_v18 = vpop.f32.mrf.mxu0  ;;  %v12090_v39 = vpop.f32.mrf.mxu1  ;;  %v5274_v54 = vmax.f32 %v5242_v28, 0.0 }
 0x523   : > { %v5243_v21 = vadd.f32 %v5211_v32, %v4632_v33  ;;  %v11982_v58 = vadd.f32 %v11981_v18, %v11980_v56  ;;  %v12091_v45 = vadd.f32 %v12090_v39, %v12089_v8  ;;  %v4633_v2 = vadd.f32 %v4601_v19, %v19130_v48  ;;  %v19131_v8 = vld [vmem:[#allocation138_spill] sm:$0xff] }
 0x524   : > { %v11983_v51 = vpop.f32.mrf.mxu0  ;;  %v12092_v34 = vpop.f32.mrf.mxu1  ;;  %v19132_v32 = vld [vmem:[#allocation98_spill] sm:$0xff] }
 0x525   : > { %v4602_v5 = vmul.f32 %v11982_v58, %v19128_v63  ;;  %v5275_v4 = vmax.f32 %v5243_v21, 0.0  ;;  %v5212_v42 = vmul.f32 %v12091_v45, %v19129_v7  ;;  %v19133_v7 = vld [vmem:[#allocation75_spill] sm:$0xff]  ;;  %v19134_v19 = vld [vmem:[#allocation74_spill] sm:$0xff] }
 0x526   : > { %v11984_v52 = vpop.f32.mrf.mxu0  ;;  %v12093_v22 = vpop.f32.mrf.mxu1 }
 0x527   : > { %v12094_v14 = vadd.f32 %v12093_v22, %v12092_v34  ;;  %v11985_v17 = vadd.f32 %v11984_v52, %v11983_v51  ;;  %v16153_v56 = vpack.c.bf16 %v5275_v4, %v5274_v54  ;;  %v4634_v59 = vadd.f32 %v4602_v5, %v19131_v8  ;;  %v19135_v4 = vld [vmem:[#allocation83_spill] sm:$0xff] }
 0x528   : > { %v11986_v49 = vpop.f32.mrf.mxu0  ;;  %v12095_v33 = vpop.f32.mrf.mxu1  ;;  %v5244_v39 = vadd.f32 %v5212_v42, %v4633_v2  ;;  %v19136_v42 = vld [vmem:[#allocation139_spill] sm:$0xff] }
 0x529   : > { %v5213_v18 = vmul.f32 %v12094_v14, %v19132_v32  ;;  %v4603_v50 = vmul.f32 %v11985_v17, %v19133_v7 }
 0x52a   : > { %v11987_v58 = vpop.f32.mrf.mxu0  ;;  %v12096_v21 = vpop.f32.mrf.mxu1  ;;  %v5276_v48 = vmax.f32 %v5244_v39, 0.0  ;;  %v19139_v39 = vld [vmem:[#allocation59_spill] sm:$0xff] }
 0x52b   : > { %v5245_v28 = vadd.f32 %v5213_v18, %v4634_v59  ;;  %v11988_v63 = vadd.f32 %v11987_v58, %v11986_v49  ;;  %v12097_v45 = vadd.f32 %v12096_v21, %v12095_v33  ;;  %v4635_v2 = vadd.f32 %v4603_v50, %v19136_v42  ;;  %v19137_v33 = vld [vmem:[#allocation140_spill] sm:$0xff]  ;;  %v19138_v18 = vld [vmem:[#allocation82_spill] sm:$0xff] }
 0x52c   : > { %v11989_v34 = vpop.f32.mrf.mxu0  ;;  %v12098_v22 = vpop.f32.mrf.mxu1 }
 0x52d   : > { %v4604_v52 = vmul.f32 %v11988_v63, %v19134_v19  ;;  %v5277_v51 = vmax.f32 %v5245_v28, 0.0  ;;  %v5214_v54 = vmul.f32 %v12097_v45, %v19135_v4 }
 0x52e   : > { %v11990_v43 = vpop.f32.mrf.mxu0  ;;  %v12099_v5 = vpop.f32.mrf.mxu1 }
 0x52f   : > { %v11991_v8 = vadd.f32 %v11990_v43, %v11989_v34  ;;  %v12100_v14 = vadd.f32 %v12099_v5, %v12098_v22  ;;  %v16161_v49 = vpack.c.bf16 %v5277_v51, %v5276_v48  ;;  %v4636_v17 = vadd.f32 %v4604_v52, %v19137_v33  ;;  %v19140_v22 = vld [vmem:[#allocation58_spill] sm:$0xff]  ;;  %v19141_v5 = vld [vmem:[#allocation67_spill] sm:$0xff] }
 0x530   : > { %v11992_v32 = vpop.f32.mrf.mxu0  ;;  %v12101_v59 = vpop.f32.mrf.mxu1  ;;  %v5246_v21 = vadd.f32 %v5214_v54, %v4635_v2  ;;  %v19142_v33 = vld [vmem:[#allocation142_spill] sm:$0xff] }
 0x531   : > { %v5215_v58 = vmul.f32 %v12100_v14, %v19138_v18  ;;  %v4605_v19 = vmul.f32 %v11991_v8, %v19139_v39 }
 0x532   : > { %v11993_v63 = vpop.f32.mrf.mxu0  ;;  %v12102_v28 = vpop.f32.mrf.mxu1  ;;  %v5278_v48 = vmax.f32 %v5246_v21, 0.0 }
 0x533   : > { %v5247_v45 = vadd.f32 %v5215_v58, %v4636_v17  ;;  %v11994_v4 = vadd.f32 %v11993_v63, %v11992_v32  ;;  %v12103_v7 = vadd.f32 %v12102_v28, %v12101_v59  ;;  %v4637_v14 = vadd.f32 %v4605_v19, %v19142_v33  ;;  %v19143_v17 = vld [vmem:[#allocation66_spill] sm:$0xff]  ;;  %v19147_v33 = vld [vmem:[#allocation145_spill] sm:$0xff] }
 0x534   : > { %v11995_v43 = vpop.f32.mrf.mxu0  ;;  %v12104_v34 = vpop.f32.mrf.mxu1 }
 0x535   : > { %v4606_v50 = vmul.f32 %v11994_v4, %v19140_v22  ;;  %v5216_v42 = vmul.f32 %v12103_v7, %v19141_v5  ;;  %v5279_v51 = vmax.f32 %v5247_v45, 0.0  ;;  %v19144_v7 = vld [vmem:[#allocation43_spill] sm:$0xff] }
 0x536   : > { %v11996_v26 = vpop.f32.mrf.mxu0  ;;  %v12105_v52 = vpop.f32.mrf.mxu1 }
 0x537   : > { %v11997_v54 = vadd.f32 %v11996_v26, %v11995_v43  ;;  %v12106_v2 = vadd.f32 %v12105_v52, %v12104_v34  ;;  %v16169_v8 = vpack.c.bf16 %v5279_v51, %v5278_v48  ;;  %v4638_v32 = vadd.f32 %v4606_v50, %v16032_v53  ;;  %v19145_v26 = vld [vmem:[#allocation42_spill] sm:$0xff]  ;;  %v19146_v34 = vld [vmem:[#allocation51_spill] sm:$0xff] }
 0x538   : > { %v11998_v18 = vpop.f32.mrf.mxu0  ;;  %v12107_v3 = vpop.f32.mrf.mxu1  ;;  %v5248_v59 = vadd.f32 %v5216_v42, %v4637_v14 }
 0x539   : > { %v5217_v58 = vmul.f32 %v12106_v2, %v19143_v17  ;;  %v4607_v28 = vmul.f32 %v11997_v54, %v19144_v7  ;;  %v19148_v54 = vld [vmem:[#allocation50_spill] sm:$0xff] }
 0x53a   : > { %v11999_v4 = vpop.f32.mrf.mxu0  ;;  %v12108_v63 = vpop.f32.mrf.mxu1  ;;  %v5280_v19 = vmax.f32 %v5248_v59, 0.0 }
 0x53b   : > { %v5249_v21 = vadd.f32 %v5217_v58, %v4638_v32  ;;  %v12000_v45 = vadd.f32 %v11999_v4, %v11998_v18  ;;  %v12109_v5 = vadd.f32 %v12108_v63, %v12107_v3  ;;  %v4639_v53 = vadd.f32 %v4607_v28, %v16040_v35  ;;  %v13710_v35 = vld [vmem:[%s18673_s11 + $0x18] ss:$12 sps:$4 sm:$0xff]   ;;  %v13667_v4 = vld [vmem:[%s16087_s23 + $0x14] ss:$8 sps:$4 sm:$0xff]  }
 0x53c   : > { %v12110_v22 = vpop.f32.mrf.mxu1  ;;  %v13665_v63 = vld [vmem:[%s16087_s23 + $0x10] ss:$8 sps:$4 sm:$0xff]   ;;  %v13670_v28 = vld [vmem:[%s16087_s23 + $0x24] ss:$8 sps:$4 sm:$0xff]  }
 0x53d   : > { %v4608_v43 = vmul.f32 %v12000_v45, %v19145_v26  ;;  %v5218_v52 = vmul.f32 %v12109_v5, %v19146_v34  ;;  %v5281_v51 = vmax.f32 %v5249_v21, 0.0  ;;  %v13662_v5 = vld [vmem:[%s16087_s23] ss:$8 sps:$4 sm:$0xff]   ;;  %v13673_v45 = vld [vmem:[%s16087_s23 + $0x34] ss:$8 sps:$4 sm:$0xff]  }
 0x53e   : > { %v12111_v48 = vpop.f32.mrf.mxu1  ;;  %v13668_v21 = vld [vmem:[%s16087_s23 + $0x20] ss:$8 sps:$4 sm:$0xff]  }
 0x53f   : > { %v12112_v50 = vadd.f32 %v12111_v48, %v12110_v22  ;;  %v16177_v42 = vpack.c.bf16 %v5281_v51, %v5280_v19  ;;  %v4640_v14 = vadd.f32 %v4608_v43, %v19147_v33  ;;  %v5250_v2 = vadd.f32 %v5218_v52, %v4639_v53  ;;  %v13712_v22 = vld [vmem:[%s18673_s11 + $0x1c] ss:$12 sps:$4 sm:$0xff]   ;;  %v13671_v19 = vld [vmem:[%s16087_s23 + $0x30] ss:$8 sps:$4 sm:$0xff]   ;;  %v13676_v43 = vld [vmem:[%s16087_s23 + $0x44] ss:$8 sps:$4 sm:$0xff]  }
 0x540   : > { %5777 = vmatprep.subr.bf16.mxu1 %v13712_v22  ;;  %v13674_v52 = vld [vmem:[%s16087_s23 + $0x40] ss:$8 sps:$4 sm:$0xff]   ;;  %v13679_v51 = vld [vmem:[%s16087_s23 + $0x54] ss:$8 sps:$4 sm:$0xff]   ;;  %v13677_v48 = vld [vmem:[%s16087_s23 + $0x50] ss:$8 sps:$4 sm:$0xff]  }
 0x541   : > { %v5219_v32 = vmul.f32 %v12112_v50, %v19148_v54  ;;  %v5282_v3 = vmax.f32 %v5250_v2, 0.0  ;;  %5778 = vmatpush1.bf16.msra.mxu1 %v13710_v35  ;;  %v13682_v53 = vld [vmem:[%s16087_s23 + $0x64] ss:$8 sps:$4 sm:$0xff]   ;;  %v13680_v50 = vld [vmem:[%s16087_s23 + $0x60] ss:$8 sps:$4 sm:$0xff]  }
 0x542   : > { %v13685_v33 = vld [vmem:[%s16087_s23 + $0x74] ss:$8 sps:$4 sm:$0xff]   ;;  %v13688_v2 = vld [vmem:[%s16087_s23 + $0x84] ss:$8 sps:$4 sm:$0xff]  }
 0x543   : > { %v5251_v18 = vadd.f32 %v5219_v32, %v4640_v14  ;;  %v13683_v14 = vld [vmem:[%s16087_s23 + $0x70] ss:$8 sps:$4 sm:$0xff]   ;;  %v13686_v32 = vld [vmem:[%s16087_s23 + $0x80] ss:$8 sps:$4 sm:$0xff]  }
 0x544   : > { %v13715_v35 = vld [vmem:[%s18673_s11 + $0x4] ss:$12 sps:$4 sm:$0xff]   ;;  %v13713_v22 = vld [vmem:[%s18673_s11] ss:$12 sps:$4 sm:$0xff]  }
 0x545   : > { %v5283_v58 = vmax.f32 %v5251_v18, 0.0  ;;  %v13691_v18 = vld [vmem:[%s16087_s23 + $0x94] ss:$8 sps:$4 sm:$0xff]   ;;  %5779 = vmatprep.subr.bf16.mxu1 %v13715_v35 }
 0x546   : > { %5780 = vmatpush1.bf16.msra.mxu1 %v13713_v22 }
 0x547   : > { %v16181_v59 = vpack.c.bf16 %v5283_v58, %v5282_v3  ;;  %v13689_v3 = vld [vmem:[%s16087_s23 + $0x90] ss:$8 sps:$4 sm:$0xff]   ;;  %v13694_v58 = vld [vmem:[%s16087_s23 + $0xa4] ss:$8 sps:$4 sm:$0xff]  }
 0x549   : > { %12113 = vmatprep.subr.bf16.mxu0 %v16181_v59 }
 0x54a   : > { %12114 = vmatpush3.bf16.msra.mxu0 %v16122_v57 }
 0x54b   : > { %12115 = vmatprep.subr.bf16.mxu0 %v16177_v42 }
 0x54e   : > { %12116 = vmatpush3.bf16.msra.mxu0 %v16114_v0 }
 0x54f   : > { %12117 = vmatprep.subr.bf16.mxu0 %v16169_v8 }
 0x552   : > { %12118 = vmatpush3.bf16.msra.mxu0 %v16106_v9 }
 0x553   : > { %12119 = vmatprep.subr.bf16.mxu0 %v16161_v49 }
 0x556   : > { %12120 = vmatpush3.bf16.msra.mxu0 %v16098_v38 }
 0x557   : > { %12121 = vmatprep.subr.bf16.mxu0 %v16153_v56 }
 0x55a   : > { %12122 = vmatpush3.bf16.msra.mxu0 %v16089_v46 }
 0x55b   : > { %12123 = vmatprep.subr.bf16.mxu0 %v16145_v61 }
 0x55e   : > { %12124 = vmatpush3.bf16.msra.mxu0 %v16078_v37 }
 0x55f   : > { %12125 = vmatprep.subr.bf16.mxu0 %v16137_v20 }
 0x562   : > { %12126 = vmatpush3.bf16.msra.mxu0 %v16070_v11 }
 0x563   : > { %12127 = vmatprep.subr.bf16.mxu0 %v16130_v29 }
 0x566   : > { %12128 = vmatpush3.bf16.msra.mxu0 %v16062_v47 }
 0x569   : > { %5525 = vmatmul.mubr.bf16.vlgmr.msra.gmra.mxu0 %v13662_v5  ;;  %v13716_v5 = vld [vmem:[%s18673_s11 + $0x20] ss:$12 sps:$4 sm:$0xff]  }
 0x56a   : > { %5532 = vmatprep.mubr.bf16.mxu0 %v13667_v4  ;;  %v13692_v4 = vld [vmem:[%s16087_s23 + $0xa0] ss:$8 sps:$4 sm:$0xff]   ;;  %13179 = vmatprep.subr.bf16.mxu0 %v13716_v5 }
 0x56b   : > { %13180 = vmatpush3.bf16.msra.mxu0 %v13716_v5 }
 0x571   : > { %5533 = vmatmul.mubr.bf16.gmra.mxu0 %v13665_v63  ;;  %v13697_v63 = vld [vmem:[%s16087_s23 + $0xb4] ss:$8 sps:$4 sm:$0xff]  }
 0x572   : > { %5540 = vmatprep.mubr.bf16.mxu0 %v13670_v28  ;;  %v13717_v28 = vld [vmem:[%s18673_s11 + $0x8] ss:$12 sps:$4 sm:$0xff]  }
 0x573   : > { %13181 = vmatprep.subr.bf16.mxu0 %v13717_v28 }
 0x574   : > { %13182 = vmatpush3.bf16.msra.mxu0 %v13717_v28 }
 0x579   : > { %5541 = vmatmul.mubr.bf16.gmra.mxu0 %v13668_v21  ;;  %v13695_v21 = vld [vmem:[%s16087_s23 + $0xb0] ss:$8 sps:$4 sm:$0xff]  }
 0x57a   : > { %5548 = vmatprep.mubr.bf16.mxu0 %v13673_v45  ;;  %v13700_v45 = vld [vmem:[%s16087_s23 + $0xc4] ss:$8 sps:$4 sm:$0xff]  }
 0x581   : > { %5549 = vmatmul.mubr.bf16.gmra.mxu0 %v13671_v19  ;;  %v13698_v19 = vld [vmem:[%s16087_s23 + $0xc0] ss:$8 sps:$4 sm:$0xff]  }
 0x582   : > { %5556 = vmatprep.mubr.bf16.mxu0 %v13676_v43  ;;  %v13703_v43 = vld [vmem:[%s16087_s23 + $0xd4] ss:$8 sps:$4 sm:$0xff]  }
 0x589   : > { %5557 = vmatmul.mubr.bf16.gmra.mxu0 %v13674_v52  ;;  %v13701_v52 = vld [vmem:[%s16087_s23 + $0xd0] ss:$8 sps:$4 sm:$0xff]  }
 0x58a   : > { %5564 = vmatprep.mubr.bf16.mxu0 %v13679_v51  ;;  %v13706_v51 = vld [vmem:[%s16087_s23 + $0xe4] ss:$8 sps:$4 sm:$0xff]  }
 0x591   : > { %5565 = vmatmul.mubr.bf16.gmra.mxu0 %v13677_v48  ;;  %v13704_v48 = vld [vmem:[%s16087_s23 + $0xe0] ss:$8 sps:$4 sm:$0xff]  }
 0x592   : > { %5572 = vmatprep.mubr.bf16.mxu0 %v13682_v53  ;;  %v13709_v53 = vld [vmem:[%s16087_s23 + $0xf4] ss:$8 sps:$4 sm:$0xff]  }
 0x599   : > { %5573 = vmatmul.mubr.bf16.gmra.mxu0 %v13680_v50  ;;  %v13707_v50 = vld [vmem:[%s16087_s23 + $0xf0] ss:$8 sps:$4 sm:$0xff]  }
 0x59a   : > { %5580 = vmatprep.mubr.bf16.mxu0 %v13685_v33  ;;  %v13718_v33 = vld [vmem:[%s18672_s10 + $0x20] ss:$12 sps:$4 sm:$0xff]  }
 0x59b   : > { %13215 = vmatprep.subr.bf16.mxu1 %v13718_v33 }
 0x5a1   : > { %5581 = vmatmul.mubr.bf16.gmra.mxu0 %v13683_v14 }
 0x5a2   : > { %5588 = vmatprep.mubr.bf16.mxu0 %v13688_v2 }
 0x5a9   : > { %5589 = vmatmul.mubr.bf16.gmra.mxu0 %v13686_v32  ;;  %v13721_v32 = vld [vmem:[%s18672_s10 + $0x1c] ss:$12 sps:$4 sm:$0xff]  }
 0x5aa   : > { %5596 = vmatprep.mubr.bf16.mxu0 %v13691_v18  ;;  %6211 = vmatprep.subr.bf16.mxu0 %v13721_v32 }
 0x5b1   : > { %5597 = vmatmul.mubr.bf16.gmra.mxu0 %v13689_v3 }
 0x5b2   : > { %5604 = vmatprep.mubr.bf16.mxu0 %v13694_v58 }
 0x5b9   : > { %5605 = vmatmul.mubr.bf16.gmra.mxu0 %v13692_v4  ;;  %v13725_v4 = vld [vmem:[%s18672_s10 + $0x8] ss:$12 sps:$4 sm:$0xff]  }
 0x5ba   : > { %5612 = vmatprep.mubr.bf16.mxu0 %v13697_v63 }
 0x5c1   : > { %5613 = vmatmul.mubr.bf16.gmra.mxu0 %v13695_v21  ;;  %v19149_v21 = vmov 0  }
 0x5c2   : > { %5620 = vmatprep.mubr.bf16.mxu0 %v13700_v45 }
 0x5c9   : > { %5621 = vmatmul.mubr.bf16.gmra.mxu0 %v13698_v19 }
 0x5ca   : > { %5628 = vmatprep.mubr.bf16.mxu0 %v13703_v43 }
 0x5d1   : > { %5629 = vmatmul.mubr.bf16.gmra.mxu0 %v13701_v52 }
 0x5d2   : > { %5636 = vmatprep.mubr.bf16.mxu0 %v13706_v51  ;;  %v13719_v51 = vld [vmem:[%s18672_s10 + $0x18] ss:$12 sps:$4 sm:$0xff]  }
 0x5d9   : > { %5637 = vmatmul.mubr.bf16.gmra.mxu0 %v13704_v48 }
 0x5da   : > { %5644 = vmatprep.mubr.bf16.mxu0 %v13709_v53  ;;  %v13724_v53 = vld [vmem:[%s18672_s10 + $0x4] ss:$12 sps:$4 sm:$0xff]  }
 0x5e1   : > { %5645 = vmatmul.mubr.bf16.gmra.mxu0 %v13707_v50 }
 0x629   : > { %v12129_v14 = vpop.f32.mrf.mxu0 }
 0x62b   : > { %v12130_v2 = vpop.f32.mrf.mxu0 }
 0x62c   : > { %v12131_v58 = vadd.f32 %v12130_v2, %v12129_v14  ;;  %v13722_v14 = vld [vmem:[%s18672_s10] ss:$12 sps:$4 sm:$0xff]  }
 0x62d   : > { %v12132_v18 = vpop.f32.mrf.mxu0 }
 0x62f   : > { %v12133_v3 = vpop.f32.mrf.mxu0 }
 0x630   : > { %v12134_v35 = vadd.f32 %v12133_v3, %v12132_v18 }
 0x631   : > { %v12135_v22 = vpop.f32.mrf.mxu0 }
 0x632   : > { %v5661_v5 = vpack.c.bf16 %v12134_v35, %v12131_v58 }
 0x633   : > { %v12136_v63 = vpop.f32.mrf.mxu0 }
 0x634   : > { %11393 = vmatmul.mubr.msk.bf16.vlgmr.msra.gmra.mxu1 %vm2337_vm2, %v5661_v5  ;;  %13183 = vmatprep.mubr.msk.bf16.mxu0 %vm2337_vm2, %v5661_v5  ;;  %v12137_v19 = vadd.f32 %v12136_v63, %v12135_v22 }
 0x635   : > { %v12138_v28 = vpop.f32.mrf.mxu0  ;;  %5807 = vmatprep.mubr.bf16.mxu1 %v19149_v21  ;;  %13216 = vmatpush3.bf16.msra.mxu1 %v13718_v33 }
 0x636   : > { %13217 = vmatprep.subr.bf16.mxu1 %v13725_v4 }
 0x637   : > { %v12139_v45 = vpop.f32.mrf.mxu0 }
 0x638   : > { %v12140_v43 = vadd.f32 %v12139_v45, %v12138_v28 }
 0x639   : > { %v12141_v52 = vpop.f32.mrf.mxu0  ;;  %13218 = vmatpush3.bf16.msra.mxu1 %v13725_v4 }
 0x63a   : > { %v5662_v48 = vpack.c.bf16 %v12140_v43, %v12137_v19 }
 0x63b   : > { %v12142_v50 = vpop.f32.mrf.mxu0 }
 0x63c   : > { %11394 = vmatmul.mubr.msk.bf16.gmra.mxu1 %vm2337_vm2, %v5662_v48  ;;  %13184 = vmatmul.mubr.msk.bf16.vlgmr.msra.gmra.mxu0 %vm2337_vm2, %v5662_v48  ;;  %v12143_v32 = vadd.f32 %v12142_v50, %v12141_v52 }
 0x63d   : > { %v12144_v33 = vpop.f32.mrf.mxu0  ;;  %5817 = vmatprep.mubr.bf16.mxu1 %v19149_v21  ;;  %6212 = vmatpush1.bf16.msra.mxu0 %v13719_v51 }
 0x63e   : > { %6213 = vmatprep.subr.bf16.mxu0 %v13724_v53 }
 0x63f   : > { %v12145_v2 = vpop.f32.mrf.mxu0 }
 0x640   : > { %v12146_v18 = vadd.f32 %v12145_v2, %v12144_v33 }
 0x641   : > { %v12147_v3 = vpop.f32.mrf.mxu0  ;;  %6214 = vmatpush1.bf16.msra.mxu0 %v13722_v14 }
 0x642   : > { %v5663_v58 = vpack.c.bf16 %v12146_v18, %v12143_v32 }
 0x643   : > { %v12148_v35 = vpop.f32.mrf.mxu0 }
 0x644   : > { %11395 = vmatmul.mubr.msk.bf16.gmra.mxu1 %vm2337_vm2, %v5663_v58  ;;  %13187 = vmatprep.mubr.msk.bf16.mxu0 %vm2337_vm2, %v5663_v58  ;;  %v12149_v4 = vadd.f32 %v12148_v35, %v12147_v3 }
 0x645   : > { %v12150_v22 = vpop.f32.mrf.mxu0  ;;  %5827 = vmatprep.mubr.bf16.mxu1 %v19149_v21 }
 0x647   : > { %v12151_v5 = vpop.f32.mrf.mxu0 }
 0x648   : > { %v12152_v63 = vadd.f32 %v12151_v5, %v12150_v22 }
 0x649   : > { %v12153_v28 = vpop.f32.mrf.mxu0 }
 0x64a   : > { %v5664_v45 = vpack.c.bf16 %v12152_v63, %v12149_v4 }
 0x64b   : > { %v12154_v19 = vpop.f32.mrf.mxu0 }
 0x64c   : > { %11396 = vmatmul.mubr.msk.bf16.gmra.mxu1 %vm2337_vm2, %v5664_v45  ;;  %13188 = vmatmul.mubr.msk.bf16.gmra.mxu0 %vm2337_vm2, %v5664_v45  ;;  %v12155_v51 = vadd.f32 %v12154_v19, %v12153_v28 }
 0x64d   : > { %v12156_v43 = vpop.f32.mrf.mxu0  ;;  %5837 = vmatprep.mubr.bf16.mxu1 %v19149_v21 }
 0x64f   : > { %v12157_v52 = vpop.f32.mrf.mxu0 }
 0x650   : > { %v12158_v48 = vadd.f32 %v12157_v52, %v12156_v43 }
 0x651   : > { %v12159_v53 = vpop.f32.mrf.mxu0 }
 0x652   : > { %v5665_v50 = vpack.c.bf16 %v12158_v48, %v12155_v51 }
 0x653   : > { %v12160_v33 = vpop.f32.mrf.mxu0 }
 0x654   : > { %11397 = vmatmul.mubr.msk.bf16.gmra.mxu1 %vm2337_vm2, %v5665_v50  ;;  %13191 = vmatprep.mubr.msk.bf16.mxu0 %vm2337_vm2, %v5665_v50  ;;  %v12161_v32 = vadd.f32 %v12160_v33, %v12159_v53 }
 0x655   : > { %v12162_v14 = vpop.f32.mrf.mxu0  ;;  %5847 = vmatprep.mubr.bf16.mxu1 %v19149_v21 }
 0x657   : > { %v12163_v2 = vpop.f32.mrf.mxu0 }
 0x658   : > { %v12164_v18 = vadd.f32 %v12163_v2, %v12162_v14 }
 0x659   : > { %v12165_v3 = vpop.f32.mrf.mxu0 }
 0x65a   : > { %v5666_v58 = vpack.c.bf16 %v12164_v18, %v12161_v32 }
 0x65b   : > { %v12166_v35 = vpop.f32.mrf.mxu0 }
 0x65c   : > { %11398 = vmatmul.mubr.msk.bf16.gmra.mxu1 %vm2337_vm2, %v5666_v58  ;;  %13192 = vmatmul.mubr.msk.bf16.gmra.mxu0 %vm2337_vm2, %v5666_v58  ;;  %v12167_v4 = vadd.f32 %v12166_v35, %v12165_v3 }
 0x65d   : > { %v12168_v22 = vpop.f32.mrf.mxu0  ;;  %5857 = vmatprep.mubr.bf16.mxu1 %v19149_v21 }
 0x65f   : > { %v12169_v5 = vpop.f32.mrf.mxu0 }
 0x660   : > { %v12170_v63 = vadd.f32 %v12169_v5, %v12168_v22 }
 0x661   : > { %v12171_v28 = vpop.f32.mrf.mxu0 }
 0x662   : > { %v5667_v45 = vpack.c.bf16 %v12170_v63, %v12167_v4 }
 0x663   : > { %v12172_v19 = vpop.f32.mrf.mxu0 }
 0x664   : > { %11399 = vmatmul.mubr.msk.bf16.gmra.mxu1 %vm2337_vm2, %v5667_v45  ;;  %13195 = vmatprep.mubr.msk.bf16.mxu0 %vm2337_vm2, %v5667_v45  ;;  %v12173_v51 = vadd.f32 %v12172_v19, %v12171_v28 }
 0x665   : > { %v12174_v43 = vpop.f32.mrf.mxu0  ;;  %5867 = vmatprep.mubr.bf16.mxu1 %v19149_v21 }
 0x667   : > { %v12175_v52 = vpop.f32.mrf.mxu0 }
 0x668   : > { %v12176_v48 = vadd.f32 %v12175_v52, %v12174_v43 }
 0x669   : > { %v12177_v53 = vpop.f32.mrf.mxu0 }
 0x66a   : > { %v5668_v50 = vpack.c.bf16 %v12176_v48, %v12173_v51 }
 0x66b   : > { %v12178_v33 = vpop.f32.mrf.mxu0 }
 0x66c   : > { %11400 = vmatmul.mubr.msk.bf16.gmra.mxu1 %vm2337_vm2, %v5668_v50  ;;  %13196 = vmatmul.mubr.msk.bf16.gmra.mxu0 %vm2337_vm2, %v5668_v50  ;;  %v12179_v32 = vadd.f32 %v12178_v33, %v12177_v53 }
 0x66d   : > { %v12180_v14 = vpop.f32.mrf.mxu0  ;;  %5877 = vmatprep.mubr.bf16.mxu1 %v19149_v21 }
 0x66f   : > { %v12181_v2 = vpop.f32.mrf.mxu0 }
 0x670   : > { %v12182_v18 = vadd.f32 %v12181_v2, %v12180_v14 }
 0x671   : > { %v12183_v3 = vpop.f32.mrf.mxu0 }
 0x672   : > { %v5669_v58 = vpack.c.bf16 %v12182_v18, %v12179_v32 }
 0x673   : > { %v12184_v35 = vpop.f32.mrf.mxu0 }
 0x674   : > { %11401 = vmatmul.mubr.msk.bf16.gmra.mxu1 %vm2337_vm2, %v5669_v58  ;;  %13199 = vmatprep.mubr.msk.bf16.mxu0 %vm2337_vm2, %v5669_v58  ;;  %v12185_v4 = vadd.f32 %v12184_v35, %v12183_v3 }
 0x675   : > { %v12186_v22 = vpop.f32.mrf.mxu0  ;;  %5887 = vmatprep.mubr.bf16.mxu1 %v19149_v21 }
 0x677   : > { %v12187_v5 = vpop.f32.mrf.mxu0 }
 0x678   : > { %v12188_v63 = vadd.f32 %v12187_v5, %v12186_v22 }
 0x679   : > { %v12189_v28 = vpop.f32.mrf.mxu0 }
 0x67a   : > { %v5670_v45 = vpack.c.bf16 %v12188_v63, %v12185_v4 }
 0x67b   : > { %v12190_v19 = vpop.f32.mrf.mxu0 }
 0x67c   : > { %11402 = vmatmul.mubr.msk.bf16.gmra.mxu1 %vm2337_vm2, %v5670_v45  ;;  %13200 = vmatmul.mubr.msk.bf16.gmra.mxu0 %vm2337_vm2, %v5670_v45  ;;  %v12191_v51 = vadd.f32 %v12190_v19, %v12189_v28 }
 0x67d   : > { %v12192_v43 = vpop.f32.mrf.mxu0  ;;  %5897 = vmatprep.mubr.bf16.mxu1 %v19149_v21 }
 0x67f   : > { %v12193_v52 = vpop.f32.mrf.mxu0 }
 0x680   : > { %v12194_v48 = vadd.f32 %v12193_v52, %v12192_v43 }
 0x681   : > { %v12195_v53 = vpop.f32.mrf.mxu0 }
 0x682   : > { %v5671_v50 = vpack.c.bf16 %v12194_v48, %v12191_v51 }
 0x683   : > { %v12196_v33 = vpop.f32.mrf.mxu0 }
 0x684   : > { %11403 = vmatmul.mubr.msk.bf16.gmra.mxu1 %vm2337_vm2, %v5671_v50  ;;  %13203 = vmatprep.mubr.msk.bf16.mxu0 %vm2337_vm2, %v5671_v50  ;;  %v12197_v32 = vadd.f32 %v12196_v33, %v12195_v53 }
 0x685   : > { %v12198_v14 = vpop.f32.mrf.mxu0  ;;  %5907 = vmatprep.mubr.bf16.mxu1 %v19149_v21 }
 0x687   : > { %v12199_v2 = vpop.f32.mrf.mxu0 }
 0x688   : > { %v12200_v18 = vadd.f32 %v12199_v2, %v12198_v14 }
 0x689   : > { %v12201_v3 = vpop.f32.mrf.mxu0 }
 0x68a   : > { %v5672_v58 = vpack.c.bf16 %v12200_v18, %v12197_v32 }
 0x68b   : > { %v12202_v35 = vpop.f32.mrf.mxu0 }
 0x68c   : > { %11404 = vmatmul.mubr.msk.bf16.gmra.mxu1 %vm2337_vm2, %v5672_v58  ;;  %13204 = vmatmul.mubr.msk.bf16.gmra.mxu0 %vm2337_vm2, %v5672_v58  ;;  %v12203_v4 = vadd.f32 %v12202_v35, %v12201_v3 }
 0x68d   : > { %v12204_v22 = vpop.f32.mrf.mxu0  ;;  %5917 = vmatprep.mubr.bf16.mxu1 %v19149_v21 }
 0x68f   : > { %v12205_v5 = vpop.f32.mrf.mxu0 }
 0x690   : > { %v12206_v63 = vadd.f32 %v12205_v5, %v12204_v22 }
 0x691   : > { %v12207_v28 = vpop.f32.mrf.mxu0 }
 0x692   : > { %v5673_v45 = vpack.c.bf16 %v12206_v63, %v12203_v4 }
 0x693   : > { %v12208_v19 = vpop.f32.mrf.mxu0 }
 0x694   : > { %11405 = vmatmul.mubr.msk.bf16.gmra.mxu1 %vm2337_vm2, %v5673_v45  ;;  %13207 = vmatprep.mubr.msk.bf16.mxu0 %vm2337_vm2, %v5673_v45  ;;  %v12209_v51 = vadd.f32 %v12208_v19, %v12207_v28  ;;  %v13733_v45 = vld [vmem:[%s18675_s13 + $0x60] sm:$0xff]  }
 0x695   : > { %v12210_v43 = vpop.f32.mrf.mxu0  ;;  %5927 = vmatprep.mubr.bf16.mxu1 %v19149_v21  ;;  %v13734_v19 = vld [vmem:[%s18675_s13 + $0x20] sm:$0xff]  }
 0x697   : > { %v12211_v52 = vpop.f32.mrf.mxu0 }
 0x698   : > { %v12212_v48 = vadd.f32 %v12211_v52, %v12210_v43  ;;  %v13736_v52 = vld [vmem:[%s18675_s13 + $0x18] sm:$0xff]  }
 0x699   : > { %v12213_v53 = vpop.f32.mrf.mxu0 }
 0x69a   : > { %v5674_v50 = vpack.c.bf16 %v12212_v48, %v12209_v51  ;;  %v13737_v48 = vld [vmem:[%s18675_s13 + $0x50] sm:$0xff]  }
 0x69b   : > { %v12214_v33 = vpop.f32.mrf.mxu0 }
 0x69c   : > { %11406 = vmatmul.mubr.msk.bf16.gmra.mxu1 %vm2337_vm2, %v5674_v50  ;;  %13208 = vmatmul.mubr.msk.bf16.gmra.mxu0 %vm2337_vm2, %v5674_v50  ;;  %v12215_v32 = vadd.f32 %v12214_v33, %v12213_v53  ;;  %v13739_v33 = vld [vmem:[%s18675_s13 + $0x48] sm:$0xff]  }
 0x69d   : > { %v12216_v14 = vpop.f32.mrf.mxu0  ;;  %5937 = vmatprep.mubr.bf16.mxu1 %v19149_v21 }
 0x69f   : > { %v12217_v2 = vpop.f32.mrf.mxu0 }
 0x6a0   : > { %v12218_v18 = vadd.f32 %v12217_v2, %v12216_v14  ;;  %v13740_v2 = vld [vmem:[%s18675_s13 + $0x8] sm:$0xff]  }
 0x6a1   : > { %v12219_v3 = vpop.f32.mrf.mxu0 }
 0x6a2   : > { %v5675_v58 = vpack.c.bf16 %v12218_v18, %v12215_v32  ;;  %v13741_v18 = vld [vmem:[%s18675_s13 + $0x40] sm:$0xff]  }
 0x6a3   : > { %v12220_v35 = vpop.f32.mrf.mxu0 }
 0x6a4   : > { %11407 = vmatmul.mubr.msk.bf16.gmra.mxu1 %vm2337_vm2, %v5675_v58  ;;  %13211 = vmatprep.mubr.msk.bf16.mxu0 %vm2337_vm2, %v5675_v58  ;;  %v12221_v4 = vadd.f32 %v12220_v35, %v12219_v3  ;;  %v13743_v58 = vld [vmem:[%s18675_s13] sm:$0xff]  }
 0x6a5   : > { %v12222_v22 = vpop.f32.mrf.mxu0  ;;  %5947 = vmatprep.mubr.bf16.mxu1 %v19149_v21 }
 0x6a7   : > { %v12223_v5 = vpop.f32.mrf.mxu0 }
 0x6a8   : > { %v12224_v63 = vadd.f32 %v12223_v5, %v12222_v22 }
 0x6aa   : > { %v5676_v28 = vpack.c.bf16 %v12224_v63, %v12221_v4 }
 0x6ac   : > { %11408 = vmatmul.mubr.msk.bf16.gmra.mxu1 %vm2337_vm2, %v5676_v28  ;;  %13212 = vmatmul.mubr.msk.bf16.gmra.mxu0 %vm2337_vm2, %v5676_v28 }
 0x6ad   : > { %13219 = vmatprep.mubr.msk.bf16.mxu1 %vm2337_vm2, %v16062_v47  ;;  %6231 = vmatprep.mubr.bf16.mxu0 %v19149_v21 }
 0x6b4   : > { %11431 = vmatmul.mubr.msk.bf16.vlgmr.msra.gmra.mxu0 %vm2337_vm2, %v16062_v47  ;;  %13220 = vmatmul.mubr.msk.bf16.vlgmr.msra.gmra.mxu1 %vm2337_vm2, %v16070_v11  ;;  %v13726_v47 = vld [vmem:[%s18675_s13 + $0x78] sm:$0xff]  }
 0x6b5   : > { %13223 = vmatprep.mubr.msk.bf16.mxu1 %vm2337_vm2, %v16078_v37  ;;  %6241 = vmatprep.mubr.bf16.mxu0 %v19149_v21 }
 0x6b6   : > { %12261 = vmatprep.subr.bf16.mxu1 %v13726_v47 }
 0x6bc   : > { %11432 = vmatmul.mubr.msk.bf16.gmra.mxu0 %vm2337_vm2, %v16070_v11  ;;  %13224 = vmatmul.mubr.msk.bf16.gmra.mxu1 %vm2337_vm2, %v16089_v46  ;;  %v13727_v11 = vld [vmem:[%s18675_s13 + $0x38] sm:$0xff]  }
 0x6bd   : > { %13227 = vmatprep.mubr.msk.bf16.mxu1 %vm2337_vm2, %v16098_v38  ;;  %6251 = vmatprep.mubr.bf16.mxu0 %v19149_v21 }
 0x6be   : > { %12262 = vmatpush3.bf16.msra.mxu1 %v13727_v11 }
 0x6c4   : > { %11433 = vmatmul.mubr.msk.bf16.gmra.mxu0 %vm2337_vm2, %v16078_v37  ;;  %13228 = vmatmul.mubr.msk.bf16.gmra.mxu1 %vm2337_vm2, %v16106_v9  ;;  %v13728_v37 = vld [vmem:[%s18675_s13 + $0x88] sm:$0xff]  }
 0x6c5   : > { %13231 = vmatprep.mubr.msk.bf16.mxu1 %vm2337_vm2, %v16114_v0  ;;  %6261 = vmatprep.mubr.bf16.mxu0 %v19149_v21 }
 0x6c6   : > { %13251 = vmatprep.subr.bf16.mxu0 %v13728_v37 }
 0x6c7   : > { %13252 = vmatpush3.bf16.msra.mxu0 %v13728_v37 }
 0x6cc   : > { %11434 = vmatmul.mubr.msk.bf16.gmra.mxu0 %vm2337_vm2, %v16089_v46  ;;  %13232 = vmatmul.mubr.msk.bf16.gmra.mxu1 %vm2337_vm2, %v16122_v57  ;;  %v13729_v46 = vld [vmem:[%s18675_s13 + $0x70] sm:$0xff]  }
 0x6cd   : > { %13235 = vmatprep.mubr.msk.bf16.mxu1 %vm2337_vm2, %v16130_v29  ;;  %6271 = vmatprep.mubr.bf16.mxu0 %v19149_v21 }
 0x6ce   : > { %12263 = vmatprep.subr.bf16.mxu1 %v13729_v46 }
 0x6d4   : > { %11435 = vmatmul.mubr.msk.bf16.gmra.mxu0 %vm2337_vm2, %v16098_v38  ;;  %13236 = vmatmul.mubr.msk.bf16.gmra.mxu1 %vm2337_vm2, %v16137_v20  ;;  %v13730_v38 = vld [vmem:[%s18675_s13 + $0x30] sm:$0xff]  }
 0x6d5   : > { %13239 = vmatprep.mubr.msk.bf16.mxu1 %vm2337_vm2, %v16145_v61  ;;  %6281 = vmatprep.mubr.bf16.mxu0 %v19149_v21 }
 0x6d6   : > { %12264 = vmatpush3.bf16.msra.mxu1 %v13730_v38 }
 0x6dc   : > { %11436 = vmatmul.mubr.msk.bf16.gmra.mxu0 %vm2337_vm2, %v16106_v9  ;;  %13240 = vmatmul.mubr.msk.bf16.gmra.mxu1 %vm2337_vm2, %v16153_v56  ;;  %v13731_v9 = vld [vmem:[%s18675_s13 + $0x68] sm:$0xff]  }
 0x6dd   : > { %13243 = vmatprep.mubr.msk.bf16.mxu1 %vm2337_vm2, %v16161_v49  ;;  %6291 = vmatprep.mubr.bf16.mxu0 %v19149_v21 }
 0x6de   : > { %12265 = vmatprep.subr.bf16.mxu1 %v13731_v9 }
 0x6e4   : > { %11437 = vmatmul.mubr.msk.bf16.gmra.mxu0 %vm2337_vm2, %v16114_v0  ;;  %13244 = vmatmul.mubr.msk.bf16.gmra.mxu1 %vm2337_vm2, %v16169_v8  ;;  %v13732_v0 = vld [vmem:[%s18675_s13 + $0x28] sm:$0xff]  }
 0x6e5   : > { %13247 = vmatprep.mubr.msk.bf16.mxu1 %vm2337_vm2, %v16177_v42  ;;  %6301 = vmatprep.mubr.bf16.mxu0 %v19149_v21 }
 0x6e6   : > { %12266 = vmatpush3.bf16.msra.mxu1 %v13732_v0 }
 0x6e7   : > { %12267 = vmatprep.subr.bf16.mxu1 %v13733_v45 }
 0x6ea   : > { %12268 = vmatpush3.bf16.msra.mxu1 %v13734_v19 }
 0x6ec   : > { %11438 = vmatmul.mubr.msk.bf16.gmra.mxu0 %vm2337_vm2, %v16122_v57  ;;  %13248 = vmatmul.mubr.msk.bf16.gmra.mxu1 %vm2337_vm2, %v16181_v59  ;;  %v13735_v57 = vld [vmem:[%s18675_s13 + $0x58] sm:$0xff]  }
 0x6ed   : > { %6311 = vmatprep.mubr.bf16.mxu0 %v19149_v21  ;;  %12269 = vmatprep.subr.bf16.mxu1 %v13735_v57 }
 0x6ee   : > { %12270 = vmatpush3.bf16.msra.mxu1 %v13736_v52 }
 0x6ef   : > { %12271 = vmatprep.subr.bf16.mxu1 %v13737_v48 }
 0x6f4   : > { %v16400_v43 = vpop.f32.mrf.mxu1  ;;  %11439 = vmatmul.mubr.msk.bf16.gmra.mxu0 %vm2337_vm2, %v16130_v29  ;;  %v13738_v29 = vld [vmem:[%s18675_s13 + $0x10] sm:$0xff]  }
 0x6f5   : > { %6321 = vmatprep.mubr.bf16.mxu0 %v19149_v21  ;;  %12272 = vmatpush3.bf16.msra.mxu1 %v13738_v29 }
 0x6f6   : > { %v16408_v51 = vpop.f32.mrf.mxu1  ;;  %12273 = vmatprep.subr.bf16.mxu1 %v13739_v33 }
 0x6f8   : > { %v16413_v53 = vpop.f32.mrf.mxu1 }
 0x6f9   : > { %12274 = vmatpush3.bf16.msra.mxu1 %v13740_v2 }
 0x6fa   : > { %v16418_v50 = vpop.f32.mrf.mxu1  ;;  %12275 = vmatprep.subr.bf16.mxu1 %v13741_v18 }
 0x6fc   : > { %v16423_v14 = vpop.f32.mrf.mxu1  ;;  %11440 = vmatmul.mubr.msk.bf16.gmra.mxu0 %vm2337_vm2, %v16137_v20  ;;  %v13742_v20 = vld [vmem:[%s18675_s13 + $0x80] sm:$0xff]   ;;  %v16455_v63 = vpop.f32.mrf.mxu0 }
 0x6fd   : > { %6331 = vmatprep.mubr.bf16.mxu0 %v19149_v21  ;;  %13253 = vmatprep.subr.bf16.mxu0 %v13742_v20 }
 0x6fe   : > { %v16431_v32 = vpop.f32.mrf.mxu1  ;;  %12276 = vmatpush3.bf16.msra.mxu1 %v13743_v58  ;;  %13254 = vmatpush3.bf16.msra.mxu0 %v13742_v20  ;;  %v16464_v11 = vpop.f32.mrf.mxu0 }
 0x700   : > { %v16436_v3 = vpop.f32.mrf.mxu1  ;;  %v16470_v46 = vpop.f32.mrf.mxu0 }
 0x702   : > { %v16444_v35 = vpop.f32.mrf.mxu1 }
 0x704   : > { %v16446_v22 = vpop.f32.mrf.mxu1  ;;  %11441 = vmatmul.mubr.msk.bf16.gmra.mxu0 %vm2337_vm2, %v16145_v61 }
 0x705   : > { %6341 = vmatprep.mubr.bf16.mxu0 %v19149_v21 }
 0x706   : > { %v16451_v5 = vpop.f32.mrf.mxu1 }
 0x708   : > { %v16453_v4 = vpop.f32.mrf.mxu1 }
 0x70a   : > { %v16457_v28 = vpop.f32.mrf.mxu1 }
 0x70c   : > { %v16459_v47 = vpop.f32.mrf.mxu1  ;;  %11442 = vmatmul.mubr.msk.bf16.gmra.mxu0 %vm2337_vm2, %v16153_v56  ;;  %v16479_v56 = vpop.f32.mrf.mxu0 }
 0x70d   : > { %6351 = vmatprep.mubr.bf16.mxu0 %v19149_v21 }
 0x70e   : > { %v16466_v61 = vpop.f32.mrf.mxu1  ;;  %v16483_v45 = vpop.f32.mrf.mxu0 }
 0x710   : > { %v16468_v37 = vpop.f32.mrf.mxu1  ;;  %v16489_v52 = vpop.f32.mrf.mxu0 }
 0x712   : > { %v16472_v38 = vpop.f32.mrf.mxu1  ;;  %v16498_v29 = vpop.f32.mrf.mxu0 }
 0x714   : > { %v16474_v9 = vpop.f32.mrf.mxu1  ;;  %11443 = vmatmul.mubr.msk.bf16.gmra.mxu0 %vm2337_vm2, %v16161_v49  ;;  %v16504_v18 = vpop.f32.mrf.mxu0 }
 0x715   : > { %6361 = vmatprep.mubr.bf16.mxu0 %v19149_v21 }
 0x716   : > { %v16481_v0 = vpop.f32.mrf.mxu1 }
 0x718   : > { %v16485_v19 = vpop.f32.mrf.mxu1 }
 0x719   : > { %19150 = vst [vmem:[#allocation21_spill] sm:$0xff] %v16485_v19 }
 0x71a   : > { %v16487_v57 = vpop.f32.mrf.mxu1 }
 0x71b   : > { %19151 = vst [vmem:[#allocation22_spill] sm:$0xff] %v16487_v57 }
 0x71c   : > { %v16491_v48 = vpop.f32.mrf.mxu1  ;;  %11444 = vmatmul.mubr.msk.bf16.gmra.mxu0 %vm2337_vm2, %v16169_v8  ;;  %v16511_v8 = vpop.f32.mrf.mxu0 }
 0x71d   : > { %19152 = vst [vmem:[#allocation23_spill] sm:$0xff] %v16491_v48  ;;  %6371 = vmatprep.mubr.bf16.mxu0 %v19149_v21 }
 0x71e   : > { %v16496_v49 = vpop.f32.mrf.mxu1  ;;  %v16517_v34 = vpop.f32.mrf.mxu0 }
 0x71f   : > { %19153 = vst [vmem:[#allocation24_spill] sm:$0xff] %v16496_v49 }
 0x720   : > { %v16500_v33 = vpop.f32.mrf.mxu1  ;;  %v16525_v17 = vpop.f32.mrf.mxu0 }
 0x721   : > { %19154 = vst [vmem:[#allocation25_spill] sm:$0xff] %v16500_v33 }
 0x722   : > { %v16502_v2 = vpop.f32.mrf.mxu1  ;;  %v16531_v60 = vpop.f32.mrf.mxu0 }
 0x723   : > { %19155 = vst [vmem:[#allocation138_spill] sm:$0xff] %v16502_v2  ;;  %v6671_v2 = vld [vmem:[%s16666_s25 + $0x28] sm:$0xff] }
 0x724   : > { %v16506_v20 = vpop.f32.mrf.mxu1  ;;  %11445 = vmatmul.mubr.msk.bf16.gmra.mxu0 %vm2337_vm2, %v16177_v42 }
 0x725   : > { %19156 = vst [vmem:[#allocation139_spill] sm:$0xff] %v16506_v20  ;;  %6381 = vmatprep.mubr.bf16.mxu0 %v19149_v21 }
 0x726   : > { %v16513_v58 = vpop.f32.mrf.mxu1 }
 0x727   : > { %19157 = vst [vmem:[#allocation140_spill] sm:$0xff] %v16513_v58 }
 0x728   : > { %v16515_v54 = vpop.f32.mrf.mxu1 }
 0x729   : > { %19158 = vst [vmem:[#allocation142_spill] sm:$0xff] %v16515_v54 }
 0x72a   : > { %v16519_v26 = vpop.f32.mrf.mxu1 }
 0x72b   : > { %19159 = vst [vmem:[#allocation145_spill] sm:$0xff] %v16519_v26 }
 0x72c   : > { %v16521_v7 = vpop.f32.mrf.mxu1  ;;  %11446 = vmatmul.mubr.msk.bf16.gmra.mxu0 %vm2337_vm2, %v16181_v59  ;;  %v16535_v16 = vpop.f32.mrf.mxu0 }
 0x72d   : > { %19160 = vst [vmem:[#allocation147_spill] sm:$0xff] %v16521_v7 }
 0x72e   : > { %v16527_v42 = vpop.f32.mrf.mxu1  ;;  %v16541_v36 = vpop.f32.mrf.mxu0 }
 0x72f   : > { %19161 = vst [vmem:[#allocation148_spill] sm:$0xff] %v16527_v42 }
 0x730   : > { %v16529_v39 = vpop.f32.mrf.mxu1  ;;  %v16547_v12 = vpop.f32.mrf.mxu0 }
 0x731   : > { %19162 = vst [vmem:[#allocation149_spill] sm:$0xff] %v16529_v39 }
 0x732   : > { %v16533_v6 = vpop.f32.mrf.mxu1  ;;  %v16553_v13 = vpop.f32.mrf.mxu0 }
 0x733   : > { %19163 = vst [vmem:[#allocation150_spill] sm:$0xff] %v16533_v6 }
 0x734   : > { %v16537_v27 = vpop.f32.mrf.mxu1 }
 0x735   : > { %19164 = vst [vmem:[#allocation151_spill] sm:$0xff] %v16537_v27 }
 0x736   : > { %v16539_v41 = vpop.f32.mrf.mxu1 }
 0x737   : > { %19165 = vst [vmem:[#allocation152_spill] sm:$0xff] %v16539_v41 }
 0x738   : > { %v16543_v24 = vpop.f32.mrf.mxu1 }
 0x739   : > { %19166 = vst [vmem:[#allocation153_spill] sm:$0xff] %v16543_v24 }
 0x73a   : > { %v16545_v59 = vpop.f32.mrf.mxu1 }
 0x73b   : > { %19167 = vst [vmem:[#allocation154_spill] sm:$0xff] %v16545_v59 }
 0x73c   : > { %v16549_v10 = vpop.f32.mrf.mxu1  ;;  %v16557_v55 = vpop.f32.mrf.mxu0 }
 0x73d   : > { %19168 = vst [vmem:[#allocation155_spill] sm:$0xff] %v16549_v10 }
 0x73e   : > { %v16551_v62 = vpop.f32.mrf.mxu1  ;;  %v16563_v30 = vpop.f32.mrf.mxu0 }
 0x73f   : > { %19169 = vst [vmem:[#allocation156_spill] sm:$0xff] %v16551_v62 }
 0x740   : > { %v16555_v25 = vpop.f32.mrf.mxu1  ;;  %v16569_v1 = vpop.f32.mrf.mxu0 }
 0x741   : > { %19170 = vst [vmem:[#allocation157_spill] sm:$0xff] %v16555_v25  ;;  %19175 = vst [vmem:[#allocation162_spill] sm:$0xff] %v16569_v1 }
 0x742   : > { %v16559_v23 = vpop.f32.mrf.mxu1  ;;  %v16575_v21 = vpop.f32.mrf.mxu0 }
 0x743   : > { %19171 = vst [vmem:[#allocation158_spill] sm:$0xff] %v16559_v23  ;;  %19178 = vst [vmem:[#allocation165_spill] sm:$0xff] %v16575_v21 }
 0x744   : > { %v16561_v40 = vpop.f32.mrf.mxu1 }
 0x745   : > { %19172 = vst [vmem:[#allocation159_spill] sm:$0xff] %v16561_v40 }
 0x746   : > { %v16565_v31 = vpop.f32.mrf.mxu1 }
 0x747   : > { %19173 = vst [vmem:[#allocation160_spill] sm:$0xff] %v16565_v31 }
 0x748   : > { %v16567_v15 = vpop.f32.mrf.mxu1 }
 0x749   : > { %19174 = vst [vmem:[#allocation161_spill] sm:$0xff] %v16567_v15 }
 0x74a   : > { %v16571_v44 = vpop.f32.mrf.mxu1 }
 0x74b   : > { %19176 = vst [vmem:[#allocation163_spill] sm:$0xff] %v16571_v44 }
 0x74c   : > { %v16573_v10 = vpop.f32.mrf.mxu1  ;;  %v16579_v62 = vpop.f32.mrf.mxu0 }
 0x74d   : > { %19177 = vst [vmem:[#allocation164_spill] sm:$0xff] %v16573_v10  ;;  %19180 = vst [vmem:[#allocation167_spill] sm:$0xff] %v16579_v62 }
 0x74e   : > { %v16577_v25 = vpop.f32.mrf.mxu1  ;;  %v16585_v59 = vpop.f32.mrf.mxu0 }
 0x74f   : > { %19179 = vst [vmem:[#allocation166_spill] sm:$0xff] %v16577_v25  ;;  %19183 = vst [vmem:[#allocation170_spill] sm:$0xff] %v16585_v59  ;;  %v6677_v59 = vld [vmem:[%s16666_s25 + $0x58] sm:$0xff] }
 0x750   : > { %v16581_v23 = vpop.f32.mrf.mxu1  ;;  %v16591_v24 = vpop.f32.mrf.mxu0 }
 0x751   : > { %19181 = vst [vmem:[#allocation168_spill] sm:$0xff] %v16581_v23  ;;  %19186 = vst [vmem:[#allocation173_spill] sm:$0xff] %v16591_v24 }
 0x752   : > { %v16583_v40 = vpop.f32.mrf.mxu1  ;;  %v16597_v27 = vpop.f32.mrf.mxu0 }
 0x753   : > { %19182 = vst [vmem:[#allocation169_spill] sm:$0xff] %v16583_v40  ;;  %19189 = vst [vmem:[#allocation176_spill] sm:$0xff] %v16597_v27  ;;  %v6667_v27 = vld [vmem:[%s16666_s25 + $0x8] sm:$0xff] }
 0x754   : > { %v16587_v31 = vpop.f32.mrf.mxu1 }
 0x755   : > { %19184 = vst [vmem:[#allocation171_spill] sm:$0xff] %v16587_v31 }
 0x756   : > { %v16589_v15 = vpop.f32.mrf.mxu1 }
 0x757   : > { %19185 = vst [vmem:[#allocation172_spill] sm:$0xff] %v16589_v15 }
 0x758   : > { %v16593_v44 = vpop.f32.mrf.mxu1 }
 0x759   : > { %19187 = vst [vmem:[#allocation174_spill] sm:$0xff] %v16593_v44 }
 0x75a   : > { %v16595_v10 = vpop.f32.mrf.mxu1 }
 0x75b   : > { %19188 = vst [vmem:[#allocation175_spill] sm:$0xff] %v16595_v10 }
 0x75c   : > { %v16599_v25 = vpop.f32.mrf.mxu1  ;;  %v16601_v41 = vpop.f32.mrf.mxu0 }
 0x75d   : > { %19190 = vst [vmem:[#allocation177_spill] sm:$0xff] %v16599_v25  ;;  %19191 = vst [vmem:[#allocation178_spill] sm:$0xff] %v16601_v41 }
 0x75e   : > { %v16603_v23 = vpop.f32.mrf.mxu1  ;;  %v16607_v6 = vpop.f32.mrf.mxu0 }
 0x75f   : > { %19192 = vst [vmem:[#allocation179_spill] sm:$0xff] %v16603_v23  ;;  %19194 = vst [vmem:[#allocation181_spill] sm:$0xff] %v16607_v6  ;;  %v6555_v23 = vlaneseq }
 0x760   : > { %v16605_v40 = vpop.f32.mrf.mxu1  ;;  %v16613_v39 = vpop.f32.mrf.mxu0 }
 0x761   : > { %19193 = vst [vmem:[#allocation180_spill] sm:$0xff] %v16605_v40  ;;  %19197 = vst [vmem:[#allocation184_spill] sm:$0xff] %v16613_v39 }
 0x762   : > { %v16609_v31 = vpop.f32.mrf.mxu1  ;;  %v16619_v42 = vpop.f32.mrf.mxu0 }
 0x763   : > { %19195 = vst [vmem:[#allocation182_spill] sm:$0xff] %v16609_v31  ;;  %19200 = vst [vmem:[#allocation187_spill] sm:$0xff] %v16619_v42 }
 0x764   : > { %v16611_v15 = vpop.f32.mrf.mxu1 }
 0x765   : > { %19196 = vst [vmem:[#allocation183_spill] sm:$0xff] %v16611_v15  ;;  %v16631_v15 = vshrl.u32 %v6555_v23, 7 }
 0x766   : > { %v16615_v44 = vpop.f32.mrf.mxu1 }
 0x767   : > { %19198 = vst [vmem:[#allocation185_spill] sm:$0xff] %v16615_v44  ;;  %19206 = vst [vmem:[#allocation193_spill] sm:$0xff] %v16631_v15 }
 0x768   : > { %v16617_v10 = vpop.f32.mrf.mxu1 }
 0x769   : > { %19199 = vst [vmem:[#allocation186_spill] sm:$0xff] %v16617_v10 }
 0x76a   : > { %v16621_v25 = vpop.f32.mrf.mxu1 }
 0x76b   : > { %19201 = vst [vmem:[#allocation188_spill] sm:$0xff] %v16621_v25  ;;  %v18840_v25 = vsub.s32 0, %v16631_v15 }
 0x76c   : > { %v16623_v7 = vpop.f32.mrf.mxu1  ;;  %v16625_v40 = vpop.f32.mrf.mxu0 }
 0x76d   : > { %19202 = vst [vmem:[#allocation189_spill] sm:$0xff] %v16623_v7  ;;  %19203 = vst [vmem:[#allocation190_spill] sm:$0xff] %v16625_v40  ;;  %v6553_v7 = vld [vmem:[%s18674_s12] sm:$0x7] }
 0x76e   : > { %v16627_v26 = vpop.f32.mrf.mxu1  ;;  %v16629_v31 = vpop.f32.mrf.mxu0 }
 0x76f   : > { %19204 = vst [vmem:[#allocation191_spill] sm:$0xff] %v16627_v26  ;;  %19205 = vst [vmem:[#allocation192_spill] sm:$0xff] %v16629_v31  ;;  %v18839_v26 = vsub.s32 2, %v16631_v15  ;;  %v18838_v31 = vsub.s32 1, %v16631_v15  ;;  %v6674_v15 = vld [vmem:[%s16666_s25 + $0x40] sm:$0xff] }
 0x770   : > { %v16633_v39 = vpop.f32.mrf.mxu1  ;;  %v16635_v44 = vpop.f32.mrf.mxu0 }
 0x771   : > { %19207 = vst [vmem:[#allocation194_spill] sm:$0xff] %v16633_v39  ;;  %19208 = vst [vmem:[#allocation195_spill] sm:$0xff] %v16635_v44  ;;  %v16656_v6 = vrot.slane %v6553_v7, %v18839_v26  ;;  %v16661_v41 = vrot.slane %v6553_v7, %v18838_v31  ;;  %v6666_v26 = vld [vmem:[%s16666_s25] sm:$0xff] }
 0x772   : > { %v16637_v10 = vpop.f32.mrf.mxu1  ;;  %v16639_v42 = vpop.f32.mrf.mxu0 }
 0x773   : > { %19209 = vst [vmem:[#allocation196_spill] sm:$0xff] %v16637_v10  ;;  %19210 = vst [vmem:[#allocation197_spill] sm:$0xff] %v16639_v42  ;;  %v16651_v10 = vrot.slane %v6553_v7, %v18840_v25 }
 0x774   : > { %v6233_v23 = vpop.f32.mrf.mxu0  ;;  %v13221_v40 = vpop.f32.mrf.mxu1 }
 0x775   : > { %v6234_v39 = vadd.f32 %v6233_v23, %v16400_v43  ;;  %v6435_v54 = vadd.f32 %v13221_v40, %v16455_v63 }
 0x776   : > { %v6235_v42 = vpop.f32.mrf.mxu0  ;;  %v6426_v44 = vpop.f32.mrf.mxu1 }
 0x777   : > { %v6236_v58 = vadd.f32 %v6235_v42, %v16408_v51  ;;  %v6427_v40 = vadd.f32 %v6426_v44, %v16464_v11  ;;  %v6570_v23 = vadd.f32 %v16651_v10, %v6234_v39  ;;  %v6578_v25 = vadd.f32 %v16656_v6, %v6435_v54  ;;  %v6669_v11 = vld [vmem:[%s16666_s25 + $0x18] sm:$0xff]  ;;  %v6668_v54 = vld [vmem:[%s16666_s25 + $0x10] sm:$0xff] }
 0x778   : > { %v6237_v43 = vpop.f32.mrf.mxu0  ;;  %v13222_v63 = vpop.f32.mrf.mxu1 }
 0x779   : > { %v6238_v51 = vadd.f32 %v6237_v43, %v16413_v53  ;;  %v6438_v7 = vadd.f32 %v13222_v63, %v16470_v46  ;;  %v6571_v44 = vadd.f32 %v16661_v41, %v6236_v58  ;;  %v6572_v53 = vadd.f32 %v16656_v6, %v6427_v40  ;;  %v6670_v63 = vld [vmem:[%s16666_s25 + $0x20] sm:$0xff] }
 0x77a   : > { %v6239_v42 = vpop.f32.mrf.mxu0  ;;  %v6429_v31 = vpop.f32.mrf.mxu1  ;;  %v6770_v62 = vmul.f32 %v6674_v15, %v6578_v25 }
 0x77b   : > { %v6240_v20 = vadd.f32 %v6239_v42, %v16418_v50  ;;  %v6430_v39 = vadd.f32 %v6429_v31, %v16479_v56  ;;  %v6573_v46 = vadd.f32 %v16651_v10, %v6238_v51  ;;  %v6581_v43 = vadd.f32 %v16656_v6, %v6438_v7 }
 0x77c   : > { %v6243_v24 = vpop.f32.mrf.mxu0  ;;  %v13225_v33 = vpop.f32.mrf.mxu1  ;;  %v6762_v31 = vmul.f32 %v6666_v26, %v6570_v23  ;;  %v6763_v51 = vmul.f32 %v6667_v27, %v6571_v44  ;;  %v6764_v21 = vmul.f32 %v6668_v54, %v6572_v53  ;;  %v6673_v23 = vld [vmem:[%s16666_s25 + $0x38] sm:$0xff]  ;;  %v6676_v53 = vld [vmem:[%s16666_s25 + $0x50] sm:$0xff] }
 0x77d   : > { %v6574_v58 = vadd.f32 %v16661_v41, %v6240_v20  ;;  %v6575_v49 = vadd.f32 %v16656_v6, %v6430_v39  ;;  %v6244_v50 = vadd.f32 %v6243_v24, %v16423_v14  ;;  %v6765_v56 = vmul.f32 %v6669_v11, %v6573_v46  ;;  %v6680_v11 = vld [vmem:[%s16666_s25 + $0x70] sm:$0xff]  ;;  %v6683_v46 = vld [vmem:[%s16666_s25 + $0x88] sm:$0xff] }
 0x77e   : > { %v6245_v42 = vpop.f32.mrf.mxu0  ;;  %v6442_v40 = vpop.f32.mrf.mxu1  ;;  %v6773_v57 = vmul.f32 %v6677_v59, %v6581_v43  ;;  %v6451_v26 = vadd.f32 %v13225_v33, %v16483_v45  ;;  %v6672_v59 = vld [vmem:[%s16666_s25 + $0x30] sm:$0xff]  ;;  %v6689_v43 = vld [vmem:[%s16666_s25 + $0xb8] sm:$0xff] }
 0x77f   : > { %v6766_v48 = vmul.f32 %v6670_v63, %v6574_v58  ;;  %v6767_v7 = vmul.f32 %v6671_v2, %v6575_v49  ;;  %v6246_v1 = vadd.f32 %v6245_v42, %v16431_v32  ;;  %v6443_v20 = vadd.f32 %v6442_v40, %v16489_v52 }
 0x780   : > { %v6247_v19 = vpop.f32.mrf.mxu0  ;;  %v13226_v39 = vpop.f32.mrf.mxu1  ;;  %v6576_v24 = vadd.f32 %v16651_v10, %v6244_v50  ;;  %v6858_v25 = vpack.c.bf16 %v6765_v56, %v6762_v31  ;;  %v6863_v33 = vpack.c.bf16 %v6773_v57, %v6770_v62  ;;  %v6590_v62 = vadd.f32 %v16656_v6, %v6451_v26  ;;  %v6686_v31 = vld [vmem:[%s16666_s25 + $0xa0] sm:$0xff] }
 0x781   : > { %v6248_v15 = vadd.f32 %v6247_v19, %v16436_v3  ;;  %v6454_v27 = vadd.f32 %v13226_v39, %v16498_v29  ;;  %v6577_v14 = vadd.f32 %v16661_v41, %v6246_v1  ;;  %v6859_v52 = vpack.c.bf16 %v6766_v48, %v6763_v51  ;;  %v6675_v3 = vld [vmem:[%s16666_s25 + $0x48] sm:$0xff] }
 0x782   : > { %v6249_v32 = vpop.f32.mrf.mxu0  ;;  %v6445_v49 = vpop.f32.mrf.mxu1  ;;  %v6860_v2 = vpack.c.bf16 %v6767_v7, %v6764_v21  ;;  %v6584_v44 = vadd.f32 %v16656_v6, %v6443_v20 }
 0x783   : > { %v6579_v45 = vadd.f32 %v16651_v10, %v6248_v15  ;;  %v6250_v19 = vadd.f32 %v6249_v32, %v16444_v35  ;;  %v6446_v29 = vadd.f32 %v6445_v49, %v16504_v18  ;;  %v6593_v1 = vadd.f32 %v16656_v6, %v6454_v27  ;;  %7130 = vmatprep.mubr.bf16.mxu1 %v6859_v52 }
 0x784   : > { %13255 = vmatprep.mubr.msk.bf16.mxu0 %vm2337_vm2, %v6860_v2  ;;  %v6253_v21 = vpop.f32.mrf.mxu0  ;;  %v13229_v48 = vpop.f32.mrf.mxu1  ;;  %7131 = vmatmul.mubr.bf16.vlgmr.msra.gmra.mxu1 %v6858_v25  ;;  %v6768_v35 = vmul.f32 %v6672_v59, %v6576_v24  ;;  %v6769_v56 = vmul.f32 %v6673_v23, %v6577_v14  ;;  %v6776_v42 = vmul.f32 %v6680_v11, %v6584_v44  ;;  %v6678_v2 = vld [vmem:[%s16666_s25 + $0x60] sm:$0xff]  ;;  %v6679_v59 = vld [vmem:[%s16666_s25 + $0x68] sm:$0xff]  ;;  %v6681_v23 = vld [vmem:[%s16666_s25 + $0x78] sm:$0xff] }
 0x785   : > { %v6580_v63 = vadd.f32 %v16661_v41, %v6250_v19  ;;  %v6587_v54 = vadd.f32 %v16656_v6, %v6446_v29  ;;  %v6771_v57 = vmul.f32 %v6675_v3, %v6579_v45  ;;  %v6254_v18 = vadd.f32 %v6253_v21, %v16446_v22  ;;  %13256 = vmatmul.mubr.msk.bf16.vlgmr.msra.gmra.mxu0 %vm2337_vm2, %v6863_v33  ;;  %v6692_v29 = vld [vmem:[%s16666_s25 + $0xd0] sm:$0xff]  ;;  %v6682_v11 = vld [vmem:[%s16666_s25 + $0x80] sm:$0xff] }
 0x786   : > { %v6255_v58 = vpop.f32.mrf.mxu0  ;;  %v6458_v50 = vpop.f32.mrf.mxu1  ;;  %v6785_v7 = vmul.f32 %v6689_v43, %v6593_v1  ;;  %v6467_v20 = vadd.f32 %v13229_v48, %v16511_v8  ;;  %v6782_v32 = vmul.f32 %v6686_v31, %v6590_v62  ;;  %v6695_v1 = vld [vmem:[%s16666_s25 + $0xe8] sm:$0xff]  ;;  %v6698_v21 = vld [vmem:[%s16666_s25 + $0x100] sm:$0xff]  ;;  %v6701_v48 = vld [vmem:[%s16666_s25 + $0x118] sm:$0xff] }
 0x787   : > { %v6772_v40 = vmul.f32 %v6676_v53, %v6580_v63  ;;  %v6779_v51 = vmul.f32 %v6683_v46, %v6587_v54  ;;  %v6256_v39 = vadd.f32 %v6255_v58, %v16451_v5  ;;  %v6459_v24 = vadd.f32 %v6458_v50, %v16517_v34 }
 0x788   : > { %v6257_v26 = vpop.f32.mrf.mxu0  ;;  %v13230_v22 = vpop.f32.mrf.mxu1  ;;  %v6861_v49 = vpack.c.bf16 %v6771_v57, %v6768_v35  ;;  %v6582_v52 = vadd.f32 %v16651_v10, %v6254_v18  ;;  %v6869_v3 = vpack.c.bf16 %v6785_v7, %v6782_v32  ;;  %v6602_v19 = vadd.f32 %v16656_v6, %v6467_v20  ;;  %v6687_v32 = vld [vmem:[%s16666_s25 + $0xa8] sm:$0xff] }
 0x789   : > { %v6258_v15 = vadd.f32 %v6257_v26, %v16453_v4  ;;  %v6470_v27 = vadd.f32 %v13230_v22, %v16525_v17  ;;  %v6862_v25 = vpack.c.bf16 %v6772_v40, %v6769_v56  ;;  %v6866_v14 = vpack.c.bf16 %v6779_v51, %v6776_v42 }
 0x78a   : > { %v6583_v8 = vadd.f32 %v16661_v41, %v6256_v39  ;;  %v6259_v5 = vpop.f32.mrf.mxu0  ;;  %v6461_v34 = vpop.f32.mrf.mxu1  ;;  %v6596_v4 = vadd.f32 %v16656_v6, %v6459_v24  ;;  %v6794_v31 = vmul.f32 %v6698_v21, %v6602_v19 }
 0x78b   : > { %v6585_v17 = vadd.f32 %v16651_v10, %v6258_v15  ;;  %v6260_v44 = vadd.f32 %v6259_v5, %v16457_v28  ;;  %v6462_v45 = vadd.f32 %v6461_v34, %v16531_v60  ;;  %7138 = vmatprep.mubr.bf16.mxu1 %v6862_v25  ;;  %v6605_v33 = vadd.f32 %v16656_v6, %v6470_v27  ;;  %v6684_v25 = vld [vmem:[%s16666_s25 + $0x90] sm:$0xff] }
 0x78c   : > { %13259 = vmatprep.mubr.msk.bf16.mxu0 %vm2337_vm2, %v6866_v14  ;;  %v6263_v53 = vpop.f32.mrf.mxu0  ;;  %v13233_v46 = vpop.f32.mrf.mxu1  ;;  %7139 = vmatmul.mubr.bf16.gmra.mxu1 %v6861_v49  ;;  %v6774_v60 = vmul.f32 %v6678_v2, %v6582_v52  ;;  %v6775_v57 = vmul.f32 %v6679_v59, %v6583_v8  ;;  %v6788_v18 = vmul.f32 %v6692_v29, %v6596_v4  ;;  %v6685_v14 = vld [vmem:[%s16666_s25 + $0x98] sm:$0xff]  ;;  %v6688_v34 = vld [vmem:[%s16666_s25 + $0xb0] sm:$0xff]  ;;  %v6707_v2 = vld [vmem:[%s16666_s25 + $0x148] sm:$0xff] }
 0x78d   : > { %v6586_v43 = vadd.f32 %v16661_v41, %v6260_v44  ;;  %v6599_v28 = vadd.f32 %v16656_v6, %v6462_v45  ;;  %v6777_v63 = vmul.f32 %v6681_v23, %v6585_v17  ;;  %v6264_v54 = vadd.f32 %v6263_v53, %v16459_v47  ;;  %13260 = vmatmul.mubr.msk.bf16.gmra.mxu0 %vm2337_vm2, %v6869_v3  ;;  %v6713_v17 = vld [vmem:[%s16666_s25 + $0x178] sm:$0xff] }
 0x78e   : > { %v6265_v35 = vpop.f32.mrf.mxu0  ;;  %v6474_v62 = vpop.f32.mrf.mxu1  ;;  %v6797_v56 = vmul.f32 %v6701_v48, %v6605_v33  ;;  %v6483_v15 = vadd.f32 %v13233_v46, %v16535_v16  ;;  %v6704_v16 = vld [vmem:[%s16666_s25 + $0x130] sm:$0xff]  ;;  %v6710_v33 = vld [vmem:[%s16666_s25 + $0x160] sm:$0xff] }
 0x78f   : > { %v6778_v58 = vmul.f32 %v6682_v11, %v6586_v43  ;;  %v6791_v50 = vmul.f32 %v6695_v1, %v6599_v28  ;;  %v6266_v42 = vadd.f32 %v6265_v35, %v16466_v61  ;;  %v6475_v40 = vadd.f32 %v6474_v62, %v16541_v36  ;;  %v19212_v35 = vld [vmem:[#allocation162_spill] sm:$0xff] }
 0x790   : > { %v6267_v51 = vpop.f32.mrf.mxu0  ;;  %v13234_v7 = vpop.f32.mrf.mxu1  ;;  %v6864_v26 = vpack.c.bf16 %v6777_v63, %v6774_v60  ;;  %v6588_v22 = vadd.f32 %v16651_v10, %v6264_v54  ;;  %v6875_v8 = vpack.c.bf16 %v6797_v56, %v6794_v31  ;;  %v19211_v63 = vld [vmem:[#allocation21_spill] sm:$0xff] }
 0x791   : > { %v6268_v47 = vadd.f32 %v6267_v51, %v16468_v37  ;;  %v6486_v20 = vadd.f32 %v13234_v7, %v16547_v12  ;;  %v6865_v39 = vpack.c.bf16 %v6778_v58, %v6775_v57  ;;  %v6872_v24 = vpack.c.bf16 %v6791_v50, %v6788_v18  ;;  %v6690_v56 = vld [vmem:[%s16666_s25 + $0xc0] sm:$0xff]  ;;  %v6693_v7 = vld [vmem:[%s16666_s25 + $0xd8] sm:$0xff] }
 0x792   : > { %v6589_v61 = vadd.f32 %v16661_v41, %v6266_v42  ;;  %v6269_v36 = vpop.f32.mrf.mxu0  ;;  %v6477_v27 = vpop.f32.mrf.mxu1  ;;  %v6608_v37 = vadd.f32 %v16656_v6, %v6475_v40  ;;  %v6691_v42 = vld [vmem:[%s16666_s25 + $0xc8] sm:$0xff] }
 0x793   : > { %v6591_v12 = vadd.f32 %v16651_v10, %v6268_v47  ;;  %v6270_v49 = vadd.f32 %v6269_v36, %v16472_v38  ;;  %v6478_v52 = vadd.f32 %v6477_v27, %v16553_v13  ;;  %7146 = vmatprep.mubr.bf16.mxu1 %v6865_v39  ;;  %v6617_v5 = vadd.f32 %v16656_v6, %v6486_v20  ;;  %v19213_v47 = vld [vmem:[#allocation22_spill] sm:$0xff]  ;;  %v19214_v39 = vld [vmem:[#allocation165_spill] sm:$0xff] }
 0x794   : > { %13263 = vmatprep.mubr.msk.bf16.mxu0 %vm2337_vm2, %v6872_v24  ;;  %v6273_v59 = vpop.f32.mrf.mxu0  ;;  %v13237_v4 = vpop.f32.mrf.mxu1  ;;  %7147 = vmatmul.mubr.bf16.gmra.mxu1 %v6864_v26  ;;  %v6780_v38 = vmul.f32 %v6684_v25, %v6588_v22  ;;  %v6614_v13 = vadd.f32 %v16656_v6, %v6483_v15  ;;  %v6781_v11 = vmul.f32 %v6685_v14, %v6589_v61  ;;  %v6716_v15 = vld [vmem:[%s16666_s25 + $0x190] sm:$0xff]  ;;  %v6694_v36 = vld [vmem:[%s16666_s25 + $0xe0] sm:$0xff]  ;;  %v6719_v27 = vld [vmem:[%s16666_s25 + $0x1a8] sm:$0xff] }
 0x795   : > { %v6592_v23 = vadd.f32 %v16661_v41, %v6270_v49  ;;  %v6611_v44 = vadd.f32 %v16656_v6, %v6478_v52  ;;  %v6783_v45 = vmul.f32 %v6687_v32, %v6591_v12  ;;  %v6274_v3 = vadd.f32 %v6273_v59, %v16474_v9  ;;  %13264 = vmatmul.mubr.msk.bf16.gmra.mxu0 %vm2337_vm2, %v6875_v8  ;;  %v6725_v12 = vld [vmem:[%s16666_s25 + $0x1d8] sm:$0xff] }
 0x796   : > { %v6275_v19 = vpop.f32.mrf.mxu0  ;;  %v6490_v29 = vpop.f32.mrf.mxu1  ;;  %v6800_v1 = vmul.f32 %v6704_v16, %v6608_v37  ;;  %v6809_v21 = vmul.f32 %v6713_v17, %v6617_v5  ;;  %v6499_v48 = vadd.f32 %v13237_v4, %v16557_v55  ;;  %v6806_v58 = vmul.f32 %v6710_v33, %v6614_v13  ;;  %v6722_v37 = vld [vmem:[%s16666_s25 + $0x1c0] sm:$0xff]  ;;  %v19215_v16 = vld [vmem:[#allocation23_spill] sm:$0xff] }
 0x797   : > { %v6784_v53 = vmul.f32 %v6688_v34, %v6592_v23  ;;  %v6803_v46 = vmul.f32 %v6707_v2, %v6611_v44  ;;  %v6276_v43 = vadd.f32 %v6275_v19, %v16481_v0  ;;  %v6491_v28 = vadd.f32 %v6490_v29, %v16563_v30  ;;  %v19216_v34 = vld [vmem:[#allocation167_spill] sm:$0xff]  ;;  %v19218_v29 = vld [vmem:[#allocation170_spill] sm:$0xff] }
 0x798   : > { %v6277_v60 = vpop.f32.mrf.mxu0  ;;  %v13238_v9 = vpop.f32.mrf.mxu1  ;;  %v6867_v50 = vpack.c.bf16 %v6783_v45, %v6780_v38  ;;  %v6594_v31 = vadd.f32 %v16651_v10, %v6274_v3  ;;  %v6881_v26 = vpack.c.bf16 %v6809_v21, %v6806_v58  ;;  %v6626_v22 = vadd.f32 %v16656_v6, %v6499_v48  ;;  %v19217_v3 = vld [vmem:[#allocation24_spill] sm:$0xff]  ;;  %v19220_v21 = vld [vmem:[#allocation173_spill] sm:$0xff] }
 0x799   : > { %v6278_v54 = vadd.f32 %v6277_v60, %v19211_v63  ;;  %v6502_v62 = vadd.f32 %v13238_v9, %v19212_v35  ;;  %v6868_v57 = vpack.c.bf16 %v6784_v53, %v6781_v11  ;;  %v6878_v18 = vpack.c.bf16 %v6803_v46, %v6800_v1  ;;  %v19219_v53 = vld [vmem:[#allocation25_spill] sm:$0xff]  ;;  %v6696_v63 = vld [vmem:[%s16666_s25 + $0xf0] sm:$0xff]  ;;  %v6697_v58 = vld [vmem:[%s16666_s25 + $0xf8] sm:$0xff] }
 0x79a   : > { %v6595_v55 = vadd.f32 %v16661_v41, %v6276_v43  ;;  %v6279_v0 = vpop.f32.mrf.mxu0  ;;  %v6493_v30 = vpop.f32.mrf.mxu1  ;;  %v6620_v40 = vadd.f32 %v16656_v6, %v6491_v28  ;;  %v6786_v52 = vmul.f32 %v6690_v56, %v6594_v31  ;;  %v6818_v13 = vmul.f32 %v6722_v37, %v6626_v22  ;;  %v19222_v56 = vld [vmem:[#allocation176_spill] sm:$0xff] }
 0x79b   : > { %v6597_v51 = vadd.f32 %v16651_v10, %v6278_v54  ;;  %v6280_v20 = vadd.f32 %v6279_v0, %v19213_v47  ;;  %v6494_v24 = vadd.f32 %v6493_v30, %v19214_v39  ;;  %7154 = vmatprep.mubr.bf16.mxu1 %v6868_v57  ;;  %v6629_v61 = vadd.f32 %v16656_v6, %v6502_v62  ;;  %v19221_v0 = vld [vmem:[#allocation138_spill] sm:$0xff]  ;;  %v6700_v47 = vld [vmem:[%s16666_s25 + $0x110] sm:$0xff] }
 0x79c   : > { %13267 = vmatprep.mubr.msk.bf16.mxu0 %vm2337_vm2, %v6878_v18  ;;  %v6283_v25 = vpop.f32.mrf.mxu0  ;;  %v13241_v14 = vpop.f32.mrf.mxu1  ;;  %7155 = vmatmul.mubr.bf16.gmra.mxu1 %v6867_v50  ;;  %v6787_v17 = vmul.f32 %v6691_v42, %v6595_v55  ;;  %v6812_v23 = vmul.f32 %v6716_v15, %v6620_v40  ;;  %v6734_v18 = vld [vmem:[%s16666_s25 + $0x220] sm:$0xff]  ;;  %v6699_v55 = vld [vmem:[%s16666_s25 + $0x108] sm:$0xff] }
 0x79d   : > { %v6598_v32 = vadd.f32 %v16661_v41, %v6280_v20  ;;  %v6623_v49 = vadd.f32 %v16656_v6, %v6494_v24  ;;  %v6789_v8 = vmul.f32 %v6693_v7, %v6597_v51  ;;  %v6284_v5 = vadd.f32 %v6283_v25, %v19215_v16  ;;  %13268 = vmatmul.mubr.msk.bf16.gmra.mxu0 %vm2337_vm2, %v6881_v26  ;;  %v6728_v51 = vld [vmem:[%s16666_s25 + $0x1f0] sm:$0xff]  ;;  %v6731_v20 = vld [vmem:[%s16666_s25 + $0x208] sm:$0xff]  ;;  %v6737_v26 = vld [vmem:[%s16666_s25 + $0x238] sm:$0xff] }
 0x79e   : > { %v6515_v2 = vadd.f32 %v13241_v14, %v19216_v34  ;;  %v6285_v59 = vpop.f32.mrf.mxu0  ;;  %v6506_v4 = vpop.f32.mrf.mxu1  ;;  %v6821_v45 = vmul.f32 %v6725_v12, %v6629_v61  ;;  %v19223_v25 = vld [vmem:[#allocation139_spill] sm:$0xff] }
 0x79f   : > { %v6790_v44 = vmul.f32 %v6694_v36, %v6598_v32  ;;  %v6815_v38 = vmul.f32 %v6719_v27, %v6623_v49  ;;  %v6286_v19 = vadd.f32 %v6285_v59, %v19217_v3  ;;  %v6507_v33 = vadd.f32 %v6506_v4, %v19218_v29  ;;  %v19226_v4 = vld [vmem:[#allocation181_spill] sm:$0xff] }
 0x7a0   : > { %v6287_v11 = vpop.f32.mrf.mxu0  ;;  %v13242_v1 = vpop.f32.mrf.mxu1  ;;  %v6870_v60 = vpack.c.bf16 %v6789_v8, %v6786_v52  ;;  %v6600_v9 = vadd.f32 %v16651_v10, %v6284_v5  ;;  %v6638_v54 = vadd.f32 %v16656_v6, %v6515_v2  ;;  %v6887_v40 = vpack.c.bf16 %v6821_v45, %v6818_v13  ;;  %v19224_v5 = vld [vmem:[#allocation178_spill] sm:$0xff]  ;;  %v19225_v2 = vld [vmem:[#allocation140_spill] sm:$0xff] }
 0x7a1   : > { %v6288_v46 = vadd.f32 %v6287_v11, %v19219_v53  ;;  %v6518_v48 = vadd.f32 %v13242_v1, %v19220_v21  ;;  %v6871_v43 = vpack.c.bf16 %v6790_v44, %v6787_v17  ;;  %v6884_v28 = vpack.c.bf16 %v6815_v38, %v6812_v23  ;;  %v19227_v38 = vld [vmem:[#allocation142_spill] sm:$0xff]  ;;  %v19228_v45 = vld [vmem:[#allocation184_spill] sm:$0xff]  ;;  %v6702_v1 = vld [vmem:[%s16666_s25 + $0x120] sm:$0xff] }
 0x7a2   : > { %v6601_v35 = vadd.f32 %v16661_v41, %v6286_v19  ;;  %v6289_v62 = vpop.f32.mrf.mxu0  ;;  %v6509_v57 = vpop.f32.mrf.mxu1  ;;  %v6632_v50 = vadd.f32 %v16656_v6, %v6507_v33  ;;  %v6792_v61 = vmul.f32 %v6696_v63, %v6600_v9  ;;  %v6830_v36 = vmul.f32 %v6734_v18, %v6638_v54  ;;  %v6705_v9 = vld [vmem:[%s16666_s25 + $0x138] sm:$0xff]  ;;  %v19229_v54 = vld [vmem:[#allocation145_spill] sm:$0xff] }
 0x7a3   : > { %v6603_v31 = vadd.f32 %v16651_v10, %v6288_v46  ;;  %v6290_v30 = vadd.f32 %v6289_v62, %v19221_v0  ;;  %v6510_v42 = vadd.f32 %v6509_v57, %v19222_v56  ;;  %7162 = vmatprep.mubr.bf16.mxu1 %v6871_v43  ;;  %v6641_v7 = vadd.f32 %v16656_v6, %v6518_v48  ;;  %v6703_v43 = vld [vmem:[%s16666_s25 + $0x128] sm:$0xff]  ;;  %v19230_v62 = vld [vmem:[#allocation187_spill] sm:$0xff] }
 0x7a4   : > { %13271 = vmatprep.mubr.msk.bf16.mxu0 %vm2337_vm2, %v6884_v28  ;;  %v6293_v39 = vpop.f32.mrf.mxu0  ;;  %v13245_v24 = vpop.f32.mrf.mxu1  ;;  %7163 = vmatmul.mubr.bf16.gmra.mxu1 %v6870_v60  ;;  %v6793_v32 = vmul.f32 %v6697_v58, %v6601_v35  ;;  %v6824_v49 = vmul.f32 %v6728_v51, %v6632_v50  ;;  %v6740_v28 = vld [vmem:[%s16666_s25 + $0x250] sm:$0xff]  ;;  %v6749_v58 = vld [vmem:[%s16666_s25 + $0x298] sm:$0xff]  ;;  %v6706_v50 = vld [vmem:[%s16666_s25 + $0x140] sm:$0xff] }
 0x7a5   : > { %v6604_v22 = vadd.f32 %v16661_v41, %v6290_v30  ;;  %v6635_v15 = vadd.f32 %v16656_v6, %v6510_v42  ;;  %v6795_v27 = vmul.f32 %v6699_v55, %v6603_v31  ;;  %v6294_v14 = vadd.f32 %v6293_v39, %v19223_v25  ;;  %13272 = vmatmul.mubr.msk.bf16.gmra.mxu0 %vm2337_vm2, %v6887_v40  ;;  %v6743_v31 = vld [vmem:[%s16666_s25 + $0x268] sm:$0xff] }
 0x7a6   : > { %v6295_v37 = vpop.f32.mrf.mxu0  ;;  %v6522_v12 = vpop.f32.mrf.mxu1  ;;  %v6833_v16 = vmul.f32 %v6737_v26, %v6641_v7  ;;  %v6531_v34 = vadd.f32 %v13245_v24, %v19224_v5  ;;  %v6746_v26 = vld [vmem:[%s16666_s25 + $0x280] sm:$0xff] }
 0x7a7   : > { %v6796_v52 = vmul.f32 %v6700_v47, %v6604_v22  ;;  %v6827_v8 = vmul.f32 %v6731_v20, %v6635_v15  ;;  %v6296_v59 = vadd.f32 %v6295_v37, %v19225_v2  ;;  %v6523_v17 = vadd.f32 %v6522_v12, %v19226_v4  ;;  %v19231_v47 = vld [vmem:[#allocation190_spill] sm:$0xff]  ;;  %v19233_v37 = vld [vmem:[#allocation148_spill] sm:$0xff] }
 0x7a8   : > { %v6297_v23 = vpop.f32.mrf.mxu0  ;;  %v13246_v44 = vpop.f32.mrf.mxu1  ;;  %v6873_v33 = vpack.c.bf16 %v6795_v27, %v6792_v61  ;;  %v6606_v11 = vadd.f32 %v16651_v10, %v6294_v14  ;;  %v6893_v18 = vpack.c.bf16 %v6833_v16, %v6830_v36  ;;  %v6650_v30 = vadd.f32 %v16656_v6, %v6531_v34  ;;  %v19232_v27 = vld [vmem:[#allocation147_spill] sm:$0xff]  ;;  %v19235_v16 = vld [vmem:[#allocation149_spill] sm:$0xff] }
 0x7a9   : > { %v6298_v13 = vadd.f32 %v6297_v23, %v19227_v38  ;;  %v6534_v3 = vadd.f32 %v13246_v44, %v19228_v45  ;;  %v6874_v19 = vpack.c.bf16 %v6796_v52, %v6793_v32  ;;  %v6890_v29 = vpack.c.bf16 %v6827_v8, %v6824_v49  ;;  %v19234_v32 = vld [vmem:[#allocation192_spill] sm:$0xff]  ;;  %v19236_v34 = vld [vmem:[#allocation195_spill] sm:$0xff]  ;;  %v6758_v44 = vld [vmem:[%s16666_s25 + $0x2e0] sm:$0xff] }
 0x7aa   : > { %v6607_v53 = vadd.f32 %v16661_v41, %v6296_v59  ;;  %v6644_v46 = vadd.f32 %v16656_v6, %v6523_v17  ;;  %v6299_v21 = vpop.f32.mrf.mxu0  ;;  %v6525_v48 = vpop.f32.mrf.mxu1  ;;  %v6798_v40 = vmul.f32 %v6702_v1, %v6606_v11  ;;  %v6842_v17 = vmul.f32 %v6746_v26, %v6650_v30  ;;  %v6761_v45 = vld [vmem:[%s16666_s25 + $0x2f8] sm:$0xff]  ;;  %v6711_v11 = vld [vmem:[%s16666_s25 + $0x168] sm:$0xff] }
 0x7ab   : > { %v6609_v60 = vadd.f32 %v16651_v10, %v6298_v13  ;;  %v6653_v63 = vadd.f32 %v16656_v6, %v6534_v3  ;;  %v6300_v35 = vadd.f32 %v6299_v21, %v19229_v54  ;;  %v6526_v57 = vadd.f32 %v6525_v48, %v19230_v62  ;;  %7170 = vmatprep.mubr.bf16.mxu1 %v6874_v19  ;;  %v19238_v21 = vld [vmem:[#allocation197_spill] sm:$0xff] }
 0x7ac   : > { %13275 = vmatprep.mubr.msk.bf16.mxu0 %vm2337_vm2, %v6890_v29  ;;  %v6303_v55 = vpop.f32.mrf.mxu0  ;;  %v13249_v0 = vpop.f32.mrf.mxu1  ;;  %7171 = vmatmul.mubr.bf16.gmra.mxu1 %v6873_v33  ;;  %v6799_v51 = vmul.f32 %v6703_v43, %v6607_v53  ;;  %v6836_v22 = vmul.f32 %v6740_v28, %v6644_v46  ;;  %v6709_v29 = vld [vmem:[%s16666_s25 + $0x158] sm:$0xff]  ;;  %v19237_v53 = vld [vmem:[#allocation150_spill] sm:$0xff] }
 0x7ad   : > { %v6610_v56 = vadd.f32 %v16661_v41, %v6300_v35  ;;  %v6647_v42 = vadd.f32 %v16656_v6, %v6526_v57  ;;  %v6801_v7 = vmul.f32 %v6705_v9, %v6609_v60  ;;  %v6547_v20 = vadd.f32 %v13249_v0, %v19231_v47  ;;  %13276 = vmatmul.mubr.msk.bf16.gmra.mxu0 %vm2337_vm2, %v6893_v18  ;;  %v6752_v60 = vld [vmem:[%s16666_s25 + $0x2b0] sm:$0xff] }
 0x7ae   : > { %v6305_v39 = vpop.f32.mrf.mxu0  ;;  %v6538_v24 = vpop.f32.mrf.mxu1  ;;  %v6845_v15 = vmul.f32 %v6749_v58, %v6653_v63  ;;  %v6304_v25 = vadd.f32 %v6303_v55, %v19232_v27  ;;  %v6712_v9 = vld [vmem:[%s16666_s25 + $0x170] sm:$0xff]  ;;  %v6755_v63 = vld [vmem:[%s16666_s25 + $0x2c8] sm:$0xff] }
 0x7af   : > { %v6802_v61 = vmul.f32 %v6706_v50, %v6610_v56  ;;  %v6839_v36 = vmul.f32 %v6743_v31, %v6647_v42  ;;  %v6662_v14 = vadd.f32 %v16656_v6, %v6547_v20  ;;  %v6306_v12 = vadd.f32 %v6305_v39, %v19233_v37  ;;  %v6708_v35 = vld [vmem:[%s16666_s25 + $0x150] sm:$0xff]  ;;  %v6715_v37 = vld [vmem:[%s16666_s25 + $0x188] sm:$0xff] }
 0x7b0   : > { %v6539_v49 = vadd.f32 %v6538_v24, %v19234_v32  ;;  %v6307_v52 = vpop.f32.mrf.mxu0  ;;  %v13250_v8 = vpop.f32.mrf.mxu1  ;;  %v6876_v23 = vpack.c.bf16 %v6801_v7, %v6798_v40  ;;  %v6899_v43 = vpack.c.bf16 %v6845_v15, %v6842_v17  ;;  %v6612_v28 = vadd.f32 %v16651_v10, %v6304_v25  ;;  %v19240_v20 = vld [vmem:[#allocation151_spill] sm:$0xff]  ;;  %v19242_v25 = vld [vmem:[#allocation154_spill] sm:$0xff]  ;;  %v6718_v32 = vld [vmem:[%s16666_s25 + $0x1a0] sm:$0xff] }
 0x7b1   : > { %v6308_v5 = vadd.f32 %v6307_v52, %v19235_v16  ;;  %v6550_v2 = vadd.f32 %v13250_v8, %v19236_v34  ;;  %v6877_v59 = vpack.c.bf16 %v6802_v61, %v6799_v51  ;;  %v6896_v4 = vpack.c.bf16 %v6839_v36, %v6836_v22  ;;  %v19239_v51 = vld [vmem:[#allocation152_spill] sm:$0xff]  ;;  %v6714_v16 = vld [vmem:[%s16666_s25 + $0x180] sm:$0xff] }
 0x7b2   : > { %v6613_v38 = vadd.f32 %v16661_v41, %v6306_v12  ;;  %v6656_v13 = vadd.f32 %v16656_v6, %v6539_v49  ;;  %v6309_v3 = vpop.f32.mrf.mxu0  ;;  %v6541_v19 = vpop.f32.mrf.mxu1  ;;  %v6854_v62 = vmul.f32 %v6758_v44, %v6662_v14  ;;  %v6804_v40 = vmul.f32 %v6708_v35, %v6612_v28  ;;  %v6717_v12 = vld [vmem:[%s16666_s25 + $0x198] sm:$0xff]  ;;  %v6724_v28 = vld [vmem:[%s16666_s25 + $0x1d0] sm:$0xff] }
 0x7b3   : > { %v6615_v33 = vadd.f32 %v16651_v10, %v6308_v5  ;;  %v6665_v1 = vadd.f32 %v16656_v6, %v6550_v2  ;;  %v6310_v46 = vadd.f32 %v6309_v3, %v19237_v53  ;;  %v6542_v48 = vadd.f32 %v6541_v19, %v19238_v21  ;;  %7178 = vmatprep.mubr.bf16.mxu1 %v6877_v59  ;;  %v19246_v3 = vld [vmem:[#allocation157_spill] sm:$0xff] }
 0x7b4   : > { %13279 = vmatprep.mubr.msk.bf16.mxu0 %vm2337_vm2, %v6896_v4  ;;  %v6313_v54 = vpop.f32.mrf.mxu0  ;;  %7179 = vmatmul.mubr.bf16.gmra.mxu1 %v6876_v23  ;;  %v6805_v50 = vmul.f32 %v6709_v29, %v6613_v38  ;;  %v6848_v0 = vmul.f32 %v6752_v60, %v6656_v13  ;;  %v19243_v4 = vld [vmem:[#allocation156_spill] sm:$0xff]  ;;  %v19244_v23 = vmov 0   ;;  %v19245_v13 = vld [vmem:[#allocation155_spill] sm:$0xff] }
 0x7b5   : > { %v6857_v57 = vmul.f32 %v6761_v45, %v6665_v1  ;;  %v6616_v18 = vadd.f32 %v16661_v41, %v6310_v46  ;;  %v6659_v58 = vadd.f32 %v16656_v6, %v6542_v48  ;;  %v6807_v31 = vmul.f32 %v6711_v11, %v6615_v33  ;;  %13280 = vmatmul.mubr.msk.bf16.gmra.mxu0 %vm2337_vm2, %v6899_v43  ;;  %v19241_v6 = vld [vmem:[#allocation153_spill] sm:$0xff]  ;;  %v19247_v46 = vld [vmem:[#allocation158_spill] sm:$0xff]  ;;  %v6721_v48 = vld [vmem:[%s16666_s25 + $0x1b8] sm:$0xff] }
 0x7b6   : > { %v6315_v55 = vpop.f32.mrf.mxu0  ;;  %v6314_v39 = vadd.f32 %v6313_v54, %v19240_v20  ;;  %v6723_v43 = vld [vmem:[%s16666_s25 + $0x1c8] sm:$0xff]  ;;  %v6720_v54 = vld [vmem:[%s16666_s25 + $0x1b0] sm:$0xff] }
 0x7b7   : > { %v6905_v30 = vpack.c.bf16 %v6857_v57, %v6854_v62  ;;  %v6808_v56 = vmul.f32 %v6712_v9, %v6616_v18  ;;  %v6851_v42 = vmul.f32 %v6755_v63, %v6659_v58  ;;  %v6316_v7 = vadd.f32 %v6315_v55, %v19239_v51  ;;  %v19248_v58 = vld [vmem:[#allocation160_spill] sm:$0xff]  ;;  %v6727_v20 = vld [vmem:[%s16666_s25 + $0x1e8] sm:$0xff] }
 0x7b8   : > { %v6317_v47 = vpop.f32.mrf.mxu0  ;;  %v6879_v15 = vpack.c.bf16 %v6807_v31, %v6804_v40  ;;  %v6618_v52 = vadd.f32 %v16651_v10, %v6314_v39 }
 0x7b9   : > { %v6318_v24 = vadd.f32 %v6317_v47, %v19241_v6  ;;  %v6880_v26 = vpack.c.bf16 %v6808_v56, %v6805_v50  ;;  %v6902_v22 = vpack.c.bf16 %v6851_v42, %v6848_v0  ;;  %v6619_v36 = vadd.f32 %v16661_v41, %v6316_v7  ;;  %v19249_v0 = vld [vmem:[#allocation159_spill] sm:$0xff]  ;;  %v19250_v56 = vld [vmem:[#allocation161_spill] sm:$0xff] }
 0x7ba   : > { %v6319_v61 = vpop.f32.mrf.mxu0  ;;  %v6810_v38 = vmul.f32 %v6714_v16, %v6618_v52  ;;  %v19251_v6 = vld [vmem:[#allocation163_spill] sm:$0xff]  ;;  %v19252_v52 = vld [vmem:[#allocation166_spill] sm:$0xff] }
 0x7bb   : > { %v6621_v27 = vadd.f32 %v16651_v10, %v6318_v24  ;;  %v6320_v14 = vadd.f32 %v6319_v61, %v19242_v25  ;;  %7186 = vmatprep.mubr.bf16.mxu1 %v6880_v26  ;;  %13283 = vmatprep.mubr.msk.bf16.mxu0 %vm2337_vm2, %v6902_v22  ;;  %v6811_v34 = vmul.f32 %v6715_v37, %v6619_v36  ;;  %v13746_v26 = vld [vmem:[%s18670_s8 + $0x34] ss:$8 sps:$4 sm:$0xff]   ;;  %v13744_v36 = vld [vmem:[%s18670_s8 + $0x30] ss:$8 sps:$4 sm:$0xff]   ;;  %v13749_v16 = vld [vmem:[%s18670_s8 + $0x24] ss:$8 sps:$4 sm:$0xff]  }
 0x7bc   : > { %v6323_v49 = vpop.f32.mrf.mxu0  ;;  %7187 = vmatmul.mubr.bf16.gmra.mxu1 %v6879_v15  ;;  %v6729_v22 = vld [vmem:[%s16666_s25 + $0x1f8] sm:$0xff]  ;;  %v6730_v15 = vld [vmem:[%s16666_s25 + $0x200] sm:$0xff]  ;;  %7553 = vmatprep.subr.bf16.mxu0 %v13746_v26 }
 0x7bd   : > { %v6622_v8 = vadd.f32 %v16661_v41, %v6320_v14  ;;  %13284 = vmatmul.mubr.msk.bf16.gmra.mxu0 %vm2337_vm2, %v6905_v30  ;;  %v6813_v2 = vmul.f32 %v6717_v12, %v6621_v27  ;;  %v6324_v45 = vadd.f32 %v6323_v49, %v19245_v13  ;;  %v6726_v14 = vld [vmem:[%s16666_s25 + $0x1e0] sm:$0xff] }
 0x7be   : > { %v6325_v5 = vpop.f32.mrf.mxu0  ;;  %7573 = vmatprep.mubr.bf16.mxu0 %v19244_v23  ;;  %7554 = vmatpush1.bf16.msra.mxu0 %v13744_v36  ;;  %v6738_v26 = vld [vmem:[%s16666_s25 + $0x240] sm:$0xff] }
 0x7bf   : > { %v6814_v59 = vmul.f32 %v6718_v32, %v6622_v8  ;;  %v6326_v17 = vadd.f32 %v6325_v5, %v19243_v4  ;;  %v6882_v11 = vpack.c.bf16 %v6813_v2, %v6810_v38  ;;  %v6624_v9 = vadd.f32 %v16651_v10, %v6324_v45  ;;  %7555 = vmatprep.subr.bf16.mxu0 %v13749_v16 }
 0x7c0   : > { %v6327_v44 = vpop.f32.mrf.mxu0 }
 0x7c1   : > { %v6328_v19 = vadd.f32 %v6327_v44, %v19246_v3  ;;  %v6883_v29 = vpack.c.bf16 %v6814_v59, %v6811_v34  ;;  %v6625_v1 = vadd.f32 %v16661_v41, %v6326_v17  ;;  %v6816_v55 = vmul.f32 %v6720_v54, %v6624_v9  ;;  %v13747_v34 = vld [vmem:[%s18670_s8 + $0x20] ss:$8 sps:$4 sm:$0xff]   ;;  %v19253_v59 = vld [vmem:[#allocation164_spill] sm:$0xff] }
 0x7c2   : > { %v6329_v33 = vpop.f32.mrf.mxu0  ;;  %v19254_v17 = vld [vmem:[#allocation168_spill] sm:$0xff]  ;;  %7556 = vmatpush1.bf16.msra.mxu0 %v13747_v34 }
 0x7c3   : > { %v6627_v53 = vadd.f32 %v16651_v10, %v6328_v19  ;;  %v6330_v21 = vadd.f32 %v6329_v33, %v19247_v46  ;;  %7194 = vmatprep.mubr.bf16.mxu1 %v6883_v29  ;;  %v6817_v62 = vmul.f32 %v6721_v48, %v6625_v1  ;;  %v19255_v29 = vld [vmem:[#allocation169_spill] sm:$0xff]  ;;  %v6735_v1 = vld [vmem:[%s16666_s25 + $0x228] sm:$0xff]  ;;  %v19256_v54 = vld [vmem:[#allocation172_spill] sm:$0xff] }
 0x7c4   : > { %v6333_v60 = vpop.f32.mrf.mxu0  ;;  %7195 = vmatmul.mubr.bf16.gmra.mxu1 %v6882_v11  ;;  %v6733_v11 = vld [vmem:[%s16666_s25 + $0x218] sm:$0xff] }
 0x7c5   : > { %v6628_v63 = vadd.f32 %v16661_v41, %v6330_v21  ;;  %v6819_v57 = vmul.f32 %v6723_v43, %v6627_v53  ;;  %v6334_v30 = vadd.f32 %v6333_v60, %v19249_v0  ;;  %v6736_v53 = vld [vmem:[%s16666_s25 + $0x230] sm:$0xff] }
 0x7c6   : > { %v6335_v35 = vpop.f32.mrf.mxu0  ;;  %v6732_v43 = vld [vmem:[%s16666_s25 + $0x210] sm:$0xff] }
 0x7c7   : > { %v6820_v18 = vmul.f32 %v6724_v28, %v6628_v63  ;;  %v6336_v50 = vadd.f32 %v6335_v35, %v19248_v58  ;;  %v6885_v7 = vpack.c.bf16 %v6819_v57, %v6816_v55  ;;  %v6630_v27 = vadd.f32 %v16651_v10, %v6334_v30 }
 0x7c8   : > { %v6337_v31 = vpop.f32.mrf.mxu0 }
 0x7c9   : > { %v6338_v42 = vadd.f32 %v6337_v31, %v19250_v56  ;;  %v6886_v40 = vpack.c.bf16 %v6820_v18, %v6817_v62  ;;  %v6631_v47 = vadd.f32 %v16661_v41, %v6336_v50  ;;  %v6822_v2 = vmul.f32 %v6726_v14, %v6630_v27  ;;  %v19257_v18 = vld [vmem:[#allocation171_spill] sm:$0xff]  ;;  %v19258_v50 = vld [vmem:[#allocation174_spill] sm:$0xff] }
 0x7ca   : > { %v6339_v51 = vpop.f32.mrf.mxu0  ;;  %v19260_v27 = vld [vmem:[#allocation179_spill] sm:$0xff] }
 0x7cb   : > { %v6633_v39 = vadd.f32 %v16651_v10, %v6338_v42  ;;  %v6340_v24 = vadd.f32 %v6339_v51, %v19251_v6  ;;  %7202 = vmatprep.mubr.bf16.mxu1 %v6886_v40  ;;  %v6823_v12 = vmul.f32 %v6727_v20, %v6631_v47  ;;  %v19259_v40 = vld [vmem:[#allocation175_spill] sm:$0xff]  ;;  %v6741_v47 = vld [vmem:[%s16666_s25 + $0x258] sm:$0xff]  ;;  %v6742_v20 = vld [vmem:[%s16666_s25 + $0x260] sm:$0xff] }
 0x7cc   : > { %v6343_v61 = vpop.f32.mrf.mxu0  ;;  %7203 = vmatmul.mubr.bf16.gmra.mxu1 %v6885_v7  ;;  %v6739_v7 = vld [vmem:[%s16666_s25 + $0x248] sm:$0xff] }
 0x7cd   : > { %v6634_v25 = vadd.f32 %v16661_v41, %v6340_v24  ;;  %v6825_v32 = vmul.f32 %v6729_v22, %v6633_v39  ;;  %v6344_v4 = vadd.f32 %v6343_v61, %v19253_v59  ;;  %v19263_v59 = vld [vmem:[#allocation182_spill] sm:$0xff] }
 0x7ce   : > { %v6345_v37 = vpop.f32.mrf.mxu0 }
 0x7cf   : > { %v6826_v49 = vmul.f32 %v6730_v15, %v6634_v25  ;;  %v6346_v8 = vadd.f32 %v6345_v37, %v19252_v52  ;;  %v6888_v45 = vpack.c.bf16 %v6825_v32, %v6822_v2  ;;  %v6636_v21 = vadd.f32 %v16651_v10, %v6344_v4 }
 0x7d0   : > { %v6347_v5 = vpop.f32.mrf.mxu0 }
 0x7d1   : > { %v6348_v44 = vadd.f32 %v6347_v5, %v19254_v17  ;;  %v6889_v38 = vpack.c.bf16 %v6826_v49, %v6823_v12  ;;  %v6637_v3 = vadd.f32 %v16661_v41, %v6346_v8  ;;  %v6828_v57 = vmul.f32 %v6732_v43, %v6636_v21  ;;  %v19261_v12 = vld [vmem:[#allocation177_spill] sm:$0xff]  ;;  %v19262_v49 = vld [vmem:[#allocation180_spill] sm:$0xff]  ;;  %v19265_v43 = vld [vmem:[#allocation183_spill] sm:$0xff] }
 0x7d2   : > { %v6349_v13 = vpop.f32.mrf.mxu0  ;;  %v6745_v17 = vld [vmem:[%s16666_s25 + $0x278] sm:$0xff] }
 0x7d3   : > { %v6639_v19 = vadd.f32 %v16651_v10, %v6348_v44  ;;  %v6350_v33 = vadd.f32 %v6349_v13, %v19255_v29  ;;  %7210 = vmatprep.mubr.bf16.mxu1 %v6889_v38  ;;  %v6829_v60 = vmul.f32 %v6733_v11, %v6637_v3  ;;  %v6747_v44 = vld [vmem:[%s16666_s25 + $0x288] sm:$0xff]  ;;  %v6748_v38 = vld [vmem:[%s16666_s25 + $0x290] sm:$0xff] }
 0x7d4   : > { %v6353_v46 = vpop.f32.mrf.mxu0  ;;  %7211 = vmatmul.mubr.bf16.gmra.mxu1 %v6888_v45 }
 0x7d5   : > { %v6640_v48 = vadd.f32 %v16661_v41, %v6350_v33  ;;  %v6831_v9 = vmul.f32 %v6735_v1, %v6639_v19  ;;  %v6354_v58 = vadd.f32 %v6353_v46, %v19257_v18  ;;  %v6744_v19 = vld [vmem:[%s16666_s25 + $0x270] sm:$0xff]  ;;  %v19267_v18 = vld [vmem:[#allocation188_spill] sm:$0xff] }
 0x7d6   : > { %v6355_v28 = vpop.f32.mrf.mxu0 }
 0x7d7   : > { %v6832_v63 = vmul.f32 %v6736_v53, %v6640_v48  ;;  %v6356_v35 = vadd.f32 %v6355_v28, %v19256_v54  ;;  %v6891_v30 = vpack.c.bf16 %v6831_v9, %v6828_v57  ;;  %v6642_v6 = vadd.f32 %v16651_v10, %v6354_v58  ;;  %v19264_v53 = vld [vmem:[#allocation185_spill] sm:$0xff] }
 0x7d8   : > { %v6357_v62 = vpop.f32.mrf.mxu0 }
 0x7d9   : > { %v6358_v31 = vadd.f32 %v6357_v62, %v19258_v50  ;;  %v6892_v55 = vpack.c.bf16 %v6832_v63, %v6829_v60  ;;  %v6643_v56 = vadd.f32 %v16661_v41, %v6356_v35  ;;  %v6834_v37 = vmul.f32 %v6738_v26, %v6642_v6  ;;  %v19266_v60 = vld [vmem:[#allocation186_spill] sm:$0xff]  ;;  %v19269_v26 = vld [vmem:[#allocation189_spill] sm:$0xff] }
 0x7da   : > { %v6359_v0 = vpop.f32.mrf.mxu0  ;;  %v6751_v50 = vld [vmem:[%s16666_s25 + $0x2a8] sm:$0xff] }
 0x7db   : > { %v6645_v42 = vadd.f32 %v16651_v10, %v6358_v31  ;;  %v6360_v51 = vadd.f32 %v6359_v0, %v19259_v40  ;;  %7218 = vmatprep.mubr.bf16.mxu1 %v6892_v55  ;;  %v6835_v15 = vmul.f32 %v6739_v7, %v6643_v56  ;;  %v6753_v31 = vld [vmem:[%s16666_s25 + $0x2b8] sm:$0xff]  ;;  %v6754_v55 = vld [vmem:[%s16666_s25 + $0x2c0] sm:$0xff] }
 0x7dc   : > { %v6363_v39 = vpop.f32.mrf.mxu0  ;;  %7219 = vmatmul.mubr.bf16.gmra.mxu1 %v6891_v30 }
 0x7dd   : > { %v6646_v24 = vadd.f32 %v16661_v41, %v6360_v51  ;;  %v6837_v61 = vmul.f32 %v6741_v47, %v6645_v42  ;;  %v6364_v32 = vadd.f32 %v6363_v39, %v19261_v12  ;;  %v6750_v42 = vld [vmem:[%s16666_s25 + $0x2a0] sm:$0xff]  ;;  %v19271_v12 = vld [vmem:[#allocation196_spill] sm:$0xff] }
 0x7de   : > { %v6365_v22 = vpop.f32.mrf.mxu0 }
 0x7df   : > { %v6838_v36 = vmul.f32 %v6742_v20, %v6646_v24  ;;  %v6366_v25 = vadd.f32 %v6365_v22, %v19260_v27  ;;  %v6894_v5 = vpack.c.bf16 %v6837_v61, %v6834_v37  ;;  %v6648_v45 = vadd.f32 %v16651_v10, %v6364_v32  ;;  %v19268_v20 = vld [vmem:[#allocation191_spill] sm:$0xff] }
 0x7e0   : > { %v6367_v14 = vpop.f32.mrf.mxu0 }
 0x7e1   : > { %v6368_v52 = vadd.f32 %v6367_v14, %v19262_v49  ;;  %v6895_v8 = vpack.c.bf16 %v6838_v36, %v6835_v15  ;;  %v6649_v34 = vadd.f32 %v16661_v41, %v6366_v25  ;;  %v6840_v48 = vmul.f32 %v6744_v19, %v6648_v45  ;;  %v19270_v15 = vld [vmem:[#allocation194_spill] sm:$0xff]  ;;  %v6757_v49 = vld [vmem:[%s16666_s25 + $0x2d8] sm:$0xff] }
 0x7e2   : > { %v6369_v16 = vpop.f32.mrf.mxu0 }
 0x7e3   : > { %v6651_v2 = vadd.f32 %v16651_v10, %v6368_v52  ;;  %v6370_v4 = vadd.f32 %v6369_v16, %v19263_v59  ;;  %7226 = vmatprep.mubr.bf16.mxu1 %v6895_v8  ;;  %v6841_v33 = vmul.f32 %v6745_v17, %v6649_v34  ;;  %v6759_v52 = vld [vmem:[%s16666_s25 + $0x2e8] sm:$0xff]  ;;  %v6760_v8 = vld [vmem:[%s16666_s25 + $0x2f0] sm:$0xff] }
 0x7e4   : > { %v6373_v13 = vpop.f32.mrf.mxu0  ;;  %7227 = vmatmul.mubr.bf16.gmra.mxu1 %v6894_v5  ;;  %v6756_v34 = vld [vmem:[%s16666_s25 + $0x2d0] sm:$0xff] }
 0x7e5   : > { %v6652_v3 = vadd.f32 %v16661_v41, %v6370_v4  ;;  %v6843_v11 = vmul.f32 %v6747_v44, %v6651_v2  ;;  %v6374_v28 = vadd.f32 %v6373_v13, %v19265_v43  ;;  %v13773_v13 = vld [vmem:[%s15224_s15 + $0x4] ss:$8 sps:$4 sm:$0xff]  }
 0x7e6   : > { %v6375_v29 = vpop.f32.mrf.mxu0 }
 0x7e7   : > { %v6844_v1 = vmul.f32 %v6748_v38, %v6652_v3  ;;  %v6376_v46 = vadd.f32 %v6375_v29, %v19264_v53  ;;  %v6897_v35 = vpack.c.bf16 %v6843_v11, %v6840_v48  ;;  %v6654_v30 = vadd.f32 %v16651_v10, %v6374_v28 }
 0x7e8   : > { %v6377_v21 = vpop.f32.mrf.mxu0 }
 0x7e9   : > { %v6378_v9 = vadd.f32 %v6377_v21, %v19266_v60  ;;  %v6898_v63 = vpack.c.bf16 %v6844_v1, %v6841_v33  ;;  %v6655_v62 = vadd.f32 %v16661_v41, %v6376_v46  ;;  %v6846_v24 = vmul.f32 %v6750_v42, %v6654_v30 }
 0x7ea   : > { %v6379_v54 = vpop.f32.mrf.mxu0 }
 0x7eb   : > { %v6657_v57 = vadd.f32 %v16651_v10, %v6378_v9  ;;  %v6380_v58 = vadd.f32 %v6379_v54, %v19267_v18  ;;  %7234 = vmatprep.mubr.bf16.mxu1 %v6898_v63  ;;  %v6847_v51 = vmul.f32 %v6751_v50, %v6655_v62 }
 0x7ec   : > { %v6383_v0 = vpop.f32.mrf.mxu0  ;;  %7235 = vmatmul.mubr.bf16.gmra.mxu1 %v6897_v35 }
 0x7ed   : > { %v6658_v56 = vadd.f32 %v16661_v41, %v6380_v58  ;;  %v6849_v7 = vmul.f32 %v6753_v31, %v6657_v57  ;;  %v6384_v22 = vadd.f32 %v6383_v0, %v19269_v26 }
 0x7ee   : > { %v6385_v40 = vpop.f32.mrf.mxu0 }
 0x7ef   : > { %v6850_v47 = vmul.f32 %v6754_v55, %v6658_v56  ;;  %v6386_v39 = vadd.f32 %v6385_v40, %v19268_v20  ;;  %v6900_v25 = vpack.c.bf16 %v6849_v7, %v6846_v24  ;;  %v6660_v16 = vadd.f32 %v16651_v10, %v6384_v22 }
 0x7f0   : > { %v6387_v6 = vpop.f32.mrf.mxu0 }
 0x7f1   : > { %v6388_v61 = vadd.f32 %v6387_v6, %v19270_v15  ;;  %v6901_v36 = vpack.c.bf16 %v6850_v47, %v6847_v51  ;;  %v6661_v14 = vadd.f32 %v16661_v41, %v6386_v39  ;;  %v6852_v17 = vmul.f32 %v6756_v34, %v6660_v16 }
 0x7f2   : > { %v6389_v27 = vpop.f32.mrf.mxu0 }
 0x7f3   : > { %v6663_v37 = vadd.f32 %v16651_v10, %v6388_v61  ;;  %v6390_v32 = vadd.f32 %v6389_v27, %v19271_v12  ;;  %7242 = vmatprep.mubr.bf16.mxu1 %v6901_v36  ;;  %v6853_v2 = vmul.f32 %v6757_v49, %v6661_v14 }
 0x7f4   : > { %7243 = vmatmul.mubr.bf16.gmra.mxu1 %v6900_v25 }
 0x7f5   : > { %v6664_v5 = vadd.f32 %v16661_v41, %v6390_v32  ;;  %v6855_v59 = vmul.f32 %v6759_v52, %v6663_v37 }
 0x7f7   : > { %v6856_v4 = vmul.f32 %v6760_v8, %v6664_v5  ;;  %v6903_v38 = vpack.c.bf16 %v6855_v59, %v6852_v17 }
 0x7f9   : > { %v6904_v44 = vpack.c.bf16 %v6856_v4, %v6853_v2 }
 0x7fb   : > { %7250 = vmatprep.mubr.bf16.mxu1 %v6904_v44 }
 0x7fc   : > { %7251 = vmatmul.mubr.bf16.gmra.mxu1 %v6903_v38 }
 0x7fd   : > { %7902 = vmatprep.mubr.bf16.mxu1 %v13773_v13 }
 0x844   : > { %v12277_v45 = vpop.f32.mrf.mxu1 }
 0x845   : > { %v13257_v3 = vpop.f32.mrf.mxu0 }
 0x846   : > { %v12278_v19 = vpop.f32.mrf.mxu1 }
 0x847   : > { %v12279_v29 = vadd.f32 %v12278_v19, %v12277_v45  ;;  %v7293_v33 = vpop.f32.mrf.mxu0 }
 0x848   : > { %v12280_v10 = vpop.f32.mrf.mxu1 }
 0x849   : > { %v13258_v11 = vpop.f32.mrf.mxu0  ;;  %v7294_v1 = vadd.f32 %v12279_v29, %v7293_v33 }
 0x84a   : > { %v12281_v41 = vpop.f32.mrf.mxu1 }
 0x84b   : > { %v12282_v53 = vadd.f32 %v12281_v41, %v12280_v10  ;;  %v7296_v46 = vpop.f32.mrf.mxu0  ;;  %v7420_v28 = vmax.f32 %v7294_v1, 0.0 }
 0x84c   : > { %v12283_v21 = vpop.f32.mrf.mxu1 }
 0x84d   : > { %v7297_v48 = vadd.f32 %v12282_v53, %v7296_v46  ;;  %v13261_v63 = vpop.f32.mrf.mxu0 }
 0x84e   : > { %v12284_v43 = vpop.f32.mrf.mxu1 }
 0x84f   : > { %v7421_v60 = vmax.f32 %v7297_v48, 0.0  ;;  %v12285_v9 = vadd.f32 %v12284_v43, %v12283_v21  ;;  %v7309_v58 = vpop.f32.mrf.mxu0 }
 0x850   : > { %v12286_v54 = vpop.f32.mrf.mxu1 }
 0x851   : > { %v7452_v35 = vpack.c.bf16 %v7421_v60, %v7420_v28  ;;  %v7302_v57 = vadd.f32 %v13257_v3, %v12285_v9  ;;  %v13262_v42 = vpop.f32.mrf.mxu0 }
 0x852   : > { %v12287_v62 = vpop.f32.mrf.mxu1 }
 0x853   : > { %v12288_v18 = vadd.f32 %v12287_v62, %v12286_v54  ;;  %11505 = vmatmul.mubr.msk.bf16.vlgmr.msra.gmra.mxu0 %vm2337_vm2, %v7452_v35  ;;  %v7422_v0 = vmax.f32 %v7302_v57, 0.0  ;;  %v7312_v39 = vpop.f32.mrf.mxu0 }
 0x854   : > { %v12289_v50 = vpop.f32.mrf.mxu1  ;;  %7583 = vmatprep.mubr.bf16.mxu0 %v19244_v23 }
 0x855   : > { %v7305_v31 = vadd.f32 %v13258_v11, %v12288_v18  ;;  %v13265_v36 = vpop.f32.mrf.mxu0 }
 0x856   : > { %v12290_v55 = vpop.f32.mrf.mxu1 }
 0x857   : > { %v7423_v30 = vmax.f32 %v7305_v31, 0.0  ;;  %v12291_v56 = vadd.f32 %v12290_v55, %v12289_v50  ;;  %v7325_v32 = vpop.f32.mrf.mxu0 }
 0x858   : > { %v12292_v40 = vpop.f32.mrf.mxu1 }
 0x859   : > { %v7453_v51 = vpack.c.bf16 %v7423_v30, %v7422_v0  ;;  %v7310_v47 = vadd.f32 %v12291_v56, %v7309_v58  ;;  %v13266_v2 = vpop.f32.mrf.mxu0 }
 0x85a   : > { %v12293_v7 = vpop.f32.mrf.mxu1 }
 0x85b   : > { %v12294_v20 = vadd.f32 %v12293_v7, %v12292_v40  ;;  %11506 = vmatmul.mubr.msk.bf16.gmra.mxu0 %vm2337_vm2, %v7453_v51  ;;  %v7424_v22 = vmax.f32 %v7310_v47, 0.0  ;;  %v7328_v13 = vpop.f32.mrf.mxu0 }
 0x85c   : > { %v12295_v6 = vpop.f32.mrf.mxu1  ;;  %7593 = vmatprep.mubr.bf16.mxu0 %v19244_v23 }
 0x85d   : > { %v7313_v24 = vadd.f32 %v12294_v20, %v7312_v39  ;;  %v13269_v11 = vpop.f32.mrf.mxu0 }
 0x85e   : > { %v12296_v26 = vpop.f32.mrf.mxu1 }
 0x85f   : > { %v7425_v15 = vmax.f32 %v7313_v24, 0.0  ;;  %v12297_v61 = vadd.f32 %v12296_v26, %v12295_v6  ;;  %v7341_v48 = vpop.f32.mrf.mxu0 }
 0x860   : > { %v12298_v27 = vpop.f32.mrf.mxu1 }
 0x861   : > { %v7454_v25 = vpack.c.bf16 %v7425_v15, %v7424_v22  ;;  %v7318_v37 = vadd.f32 %v13261_v63, %v12297_v61  ;;  %v13270_v35 = vpop.f32.mrf.mxu0 }
 0x862   : > { %v12299_v14 = vpop.f32.mrf.mxu1 }
 0x863   : > { %v12300_v12 = vadd.f32 %v12299_v14, %v12298_v27  ;;  %11507 = vmatmul.mubr.msk.bf16.gmra.mxu0 %vm2337_vm2, %v7454_v25  ;;  %v7426_v16 = vmax.f32 %v7318_v37, 0.0  ;;  %v7344_v31 = vpop.f32.mrf.mxu0 }
 0x864   : > { %v12301_v49 = vpop.f32.mrf.mxu1  ;;  %7603 = vmatprep.mubr.bf16.mxu0 %v19244_v23 }
 0x865   : > { %v7321_v52 = vadd.f32 %v13262_v42, %v12300_v12  ;;  %v13273_v51 = vpop.f32.mrf.mxu0 }
 0x866   : > { %v12302_v8 = vpop.f32.mrf.mxu1 }
 0x867   : > { %v7427_v5 = vmax.f32 %v7321_v52, 0.0  ;;  %v12303_v34 = vadd.f32 %v12302_v8, %v12301_v49  ;;  %v7357_v24 = vpop.f32.mrf.mxu0 }
 0x868   : > { %v12304_v59 = vpop.f32.mrf.mxu1 }
 0x869   : > { %v7455_v4 = vpack.c.bf16 %v7427_v5, %v7426_v16  ;;  %v7326_v44 = vadd.f32 %v12303_v34, %v7325_v32  ;;  %v13274_v25 = vpop.f32.mrf.mxu0 }
 0x86a   : > { %v12305_v17 = vpop.f32.mrf.mxu1 }
 0x86b   : > { %v12306_v38 = vadd.f32 %v12305_v17, %v12304_v59  ;;  %11508 = vmatmul.mubr.msk.bf16.gmra.mxu0 %vm2337_vm2, %v7455_v4  ;;  %v7428_v29 = vmax.f32 %v7326_v44, 0.0  ;;  %v7360_v52 = vpop.f32.mrf.mxu0 }
 0x86c   : > { %v12307_v45 = vpop.f32.mrf.mxu1  ;;  %7613 = vmatprep.mubr.bf16.mxu0 %v19244_v23 }
 0x86d   : > { %v7329_v3 = vadd.f32 %v12306_v38, %v7328_v13  ;;  %v13277_v4 = vpop.f32.mrf.mxu0 }
 0x86e   : > { %v12308_v19 = vpop.f32.mrf.mxu1 }
 0x86f   : > { %v7429_v33 = vmax.f32 %v7329_v3, 0.0  ;;  %v12309_v10 = vadd.f32 %v12308_v19, %v12307_v45  ;;  %v7373_v3 = vpop.f32.mrf.mxu0 }
 0x870   : > { %v12310_v41 = vpop.f32.mrf.mxu1 }
 0x871   : > { %v7456_v1 = vpack.c.bf16 %v7429_v33, %v7428_v29  ;;  %v7334_v46 = vadd.f32 %v13265_v36, %v12309_v10 }
 0x872   : > { %v12311_v53 = vpop.f32.mrf.mxu1 }
 0x873   : > { %v12312_v21 = vadd.f32 %v12311_v53, %v12310_v41  ;;  %11509 = vmatmul.mubr.msk.bf16.gmra.mxu0 %vm2337_vm2, %v7456_v1  ;;  %v7430_v9 = vmax.f32 %v7334_v46, 0.0  ;;  %v13278_v1 = vpop.f32.mrf.mxu0 }
 0x874   : > { %v12313_v43 = vpop.f32.mrf.mxu1  ;;  %7623 = vmatprep.mubr.bf16.mxu0 %v19244_v23 }
 0x875   : > { %v7337_v28 = vadd.f32 %v13266_v2, %v12312_v21 }
 0x876   : > { %v12314_v60 = vpop.f32.mrf.mxu1 }
 0x877   : > { %v7431_v63 = vmax.f32 %v7337_v28, 0.0  ;;  %v12315_v54 = vadd.f32 %v12314_v60, %v12313_v43  ;;  %v7376_v28 = vpop.f32.mrf.mxu0 }
 0x878   : > { %v12316_v62 = vpop.f32.mrf.mxu1 }
 0x879   : > { %v7457_v57 = vpack.c.bf16 %v7431_v63, %v7430_v9  ;;  %v7342_v58 = vadd.f32 %v12315_v54, %v7341_v48 }
 0x87a   : > { %v12317_v18 = vpop.f32.mrf.mxu1 }
 0x87b   : > { %v12318_v50 = vadd.f32 %v12317_v18, %v12316_v62  ;;  %11510 = vmatmul.mubr.msk.bf16.gmra.mxu0 %vm2337_vm2, %v7457_v57  ;;  %v7432_v56 = vmax.f32 %v7342_v58, 0.0  ;;  %v13281_v57 = vpop.f32.mrf.mxu0 }
 0x87c   : > { %v12319_v55 = vpop.f32.mrf.mxu1  ;;  %7633 = vmatprep.mubr.bf16.mxu0 %v19244_v23 }
 0x87d   : > { %v7345_v0 = vadd.f32 %v12318_v50, %v7344_v31 }
 0x87e   : > { %v12320_v30 = vpop.f32.mrf.mxu1 }
 0x87f   : > { %v7433_v42 = vmax.f32 %v7345_v0, 0.0  ;;  %v12321_v40 = vadd.f32 %v12320_v30, %v12319_v55  ;;  %v7389_v0 = vpop.f32.mrf.mxu0 }
 0x880   : > { %v12322_v7 = vpop.f32.mrf.mxu1 }
 0x881   : > { %v7458_v47 = vpack.c.bf16 %v7433_v42, %v7432_v56  ;;  %v7350_v39 = vadd.f32 %v13269_v11, %v12321_v40 }
 0x882   : > { %v12323_v20 = vpop.f32.mrf.mxu1 }
 0x883   : > { %v12324_v6 = vadd.f32 %v12323_v20, %v12322_v7  ;;  %11511 = vmatmul.mubr.msk.bf16.gmra.mxu0 %vm2337_vm2, %v7458_v47  ;;  %v7434_v61 = vmax.f32 %v7350_v39, 0.0  ;;  %v13282_v47 = vpop.f32.mrf.mxu0 }
 0x884   : > { %v12325_v26 = vpop.f32.mrf.mxu1  ;;  %7643 = vmatprep.mubr.bf16.mxu0 %v19244_v23 }
 0x885   : > { %v7353_v22 = vadd.f32 %v13270_v35, %v12324_v6 }
 0x886   : > { %v12326_v15 = vpop.f32.mrf.mxu1 }
 0x887   : > { %v7435_v36 = vmax.f32 %v7353_v22, 0.0  ;;  %v12327_v27 = vadd.f32 %v12326_v15, %v12325_v26  ;;  %v7392_v22 = vpop.f32.mrf.mxu0 }
 0x888   : > { %v12328_v14 = vpop.f32.mrf.mxu1 }
 0x889   : > { %v7459_v37 = vpack.c.bf16 %v7435_v36, %v7434_v61  ;;  %v7358_v32 = vadd.f32 %v12327_v27, %v7357_v24 }
 0x88a   : > { %v12329_v12 = vpop.f32.mrf.mxu1 }
 0x88b   : > { %v12330_v49 = vadd.f32 %v12329_v12, %v12328_v14  ;;  %11512 = vmatmul.mubr.msk.bf16.gmra.mxu0 %vm2337_vm2, %v7459_v37  ;;  %v7436_v34 = vmax.f32 %v7358_v32, 0.0  ;;  %v13285_v37 = vpop.f32.mrf.mxu0 }
 0x88c   : > { %v12331_v8 = vpop.f32.mrf.mxu1  ;;  %7653 = vmatprep.mubr.bf16.mxu0 %v19244_v23 }
 0x88d   : > { %v7361_v16 = vadd.f32 %v12330_v49, %v7360_v52 }
 0x88e   : > { %v12332_v5 = vpop.f32.mrf.mxu1 }
 0x88f   : > { %v7437_v2 = vmax.f32 %v7361_v16, 0.0  ;;  %v12333_v59 = vadd.f32 %v12332_v5, %v12331_v8  ;;  %v7405_v16 = vpop.f32.mrf.mxu0 }
 0x890   : > { %v12334_v17 = vpop.f32.mrf.mxu1 }
 0x891   : > { %v7460_v44 = vpack.c.bf16 %v7437_v2, %v7436_v34  ;;  %v7366_v13 = vadd.f32 %v13273_v51, %v12333_v59 }
 0x892   : > { %v12335_v38 = vpop.f32.mrf.mxu1 }
 0x893   : > { %v12336_v45 = vadd.f32 %v12335_v38, %v12334_v17  ;;  %11513 = vmatmul.mubr.msk.bf16.gmra.mxu0 %vm2337_vm2, %v7460_v44  ;;  %v7438_v10 = vmax.f32 %v7366_v13, 0.0  ;;  %v13286_v44 = vpop.f32.mrf.mxu0 }
 0x894   : > { %v12337_v19 = vpop.f32.mrf.mxu1  ;;  %7663 = vmatprep.mubr.bf16.mxu0 %v19244_v23 }
 0x895   : > { %v7369_v29 = vadd.f32 %v13274_v25, %v12336_v45 }
 0x896   : > { %v12338_v33 = vpop.f32.mrf.mxu1 }
 0x897   : > { %v7439_v11 = vmax.f32 %v7369_v29, 0.0  ;;  %v12339_v41 = vadd.f32 %v12338_v33, %v12337_v19  ;;  %v7408_v29 = vpop.f32.mrf.mxu0 }
 0x898   : > { %v12340_v53 = vpop.f32.mrf.mxu1 }
 0x899   : > { %v7461_v46 = vpack.c.bf16 %v7439_v11, %v7438_v10  ;;  %v7374_v48 = vadd.f32 %v12339_v41, %v7373_v3 }
 0x89a   : > { %v12341_v21 = vpop.f32.mrf.mxu1 }
 0x89b   : > { %v12342_v43 = vadd.f32 %v12341_v21, %v12340_v53  ;;  %11514 = vmatmul.mubr.msk.bf16.gmra.mxu0 %vm2337_vm2, %v7461_v46  ;;  %v7440_v54 = vmax.f32 %v7374_v48, 0.0 }
 0x89c   : > { %v12343_v60 = vpop.f32.mrf.mxu1  ;;  %7673 = vmatprep.mubr.bf16.mxu0 %v19244_v23 }
 0x89d   : > { %v7377_v9 = vadd.f32 %v12342_v43, %v7376_v28 }
 0x89e   : > { %v12344_v63 = vpop.f32.mrf.mxu1 }
 0x89f   : > { %v7441_v35 = vmax.f32 %v7377_v9, 0.0  ;;  %v12345_v62 = vadd.f32 %v12344_v63, %v12343_v60 }
 0x8a0   : > { %v12346_v18 = vpop.f32.mrf.mxu1 }
 0x8a1   : > { %v7462_v58 = vpack.c.bf16 %v7441_v35, %v7440_v54  ;;  %v7382_v31 = vadd.f32 %v13277_v4, %v12345_v62  ;;  %v13774_v35 = vld [vmem:[%s15224_s15 + $0x104] ss:$8 sps:$4 sm:$0xff]  }
 0x8a2   : > { %v12347_v50 = vpop.f32.mrf.mxu1 }
 0x8a3   : > { %v12348_v55 = vadd.f32 %v12347_v50, %v12346_v18  ;;  %11515 = vmatmul.mubr.msk.bf16.gmra.mxu0 %vm2337_vm2, %v7462_v58  ;;  %v7442_v40 = vmax.f32 %v7382_v31, 0.0 }
 0x8a4   : > { %v12349_v30 = vpop.f32.mrf.mxu1  ;;  %7683 = vmatprep.mubr.bf16.mxu0 %v19244_v23 }
 0x8a5   : > { %v7385_v56 = vadd.f32 %v13278_v1, %v12348_v55 }
 0x8a6   : > { %v12350_v42 = vpop.f32.mrf.mxu1 }
 0x8a7   : > { %v7443_v51 = vmax.f32 %v7385_v56, 0.0  ;;  %v12351_v7 = vadd.f32 %v12350_v42, %v12349_v30 }
 0x8a8   : > { %v12352_v20 = vpop.f32.mrf.mxu1 }
 0x8a9   : > { %v7463_v39 = vpack.c.bf16 %v7443_v51, %v7442_v40  ;;  %v7390_v24 = vadd.f32 %v12351_v7, %v7389_v0 }
 0x8aa   : > { %v12353_v6 = vpop.f32.mrf.mxu1 }
 0x8ab   : > { %v12354_v26 = vadd.f32 %v12353_v6, %v12352_v20  ;;  %11516 = vmatmul.mubr.msk.bf16.gmra.mxu0 %vm2337_vm2, %v7463_v39  ;;  %v7444_v27 = vmax.f32 %v7390_v24, 0.0 }
 0x8ac   : > { %v12355_v15 = vpop.f32.mrf.mxu1  ;;  %7693 = vmatprep.mubr.bf16.mxu0 %v19244_v23 }
 0x8ad   : > { %v7393_v61 = vadd.f32 %v12354_v26, %v7392_v22 }
 0x8ae   : > { %v12356_v36 = vpop.f32.mrf.mxu1 }
 0x8af   : > { %v7445_v25 = vmax.f32 %v7393_v61, 0.0  ;;  %v12357_v14 = vadd.f32 %v12356_v36, %v12355_v15 }
 0x8b0   : > { %v12358_v12 = vpop.f32.mrf.mxu1 }
 0x8b1   : > { %v7464_v32 = vpack.c.bf16 %v7445_v25, %v7444_v27  ;;  %v7398_v52 = vadd.f32 %v13281_v57, %v12357_v14 }
 0x8b2   : > { %v12359_v49 = vpop.f32.mrf.mxu1 }
 0x8b3   : > { %v12360_v8 = vadd.f32 %v12359_v49, %v12358_v12  ;;  %11517 = vmatmul.mubr.msk.bf16.gmra.mxu0 %vm2337_vm2, %v7464_v32  ;;  %v7446_v59 = vmax.f32 %v7398_v52, 0.0 }
 0x8b4   : > { %v12361_v5 = vpop.f32.mrf.mxu1  ;;  %7703 = vmatprep.mubr.bf16.mxu0 %v19244_v23 }
 0x8b5   : > { %v7401_v34 = vadd.f32 %v13282_v47, %v12360_v8 }
 0x8b6   : > { %v12362_v2 = vpop.f32.mrf.mxu1 }
 0x8b7   : > { %v7447_v4 = vmax.f32 %v7401_v34, 0.0  ;;  %v12363_v17 = vadd.f32 %v12362_v2, %v12361_v5 }
 0x8b8   : > { %v12364_v38 = vpop.f32.mrf.mxu1 }
 0x8b9   : > { %v7465_v13 = vpack.c.bf16 %v7447_v4, %v7446_v59  ;;  %v7406_v3 = vadd.f32 %v12363_v17, %v7405_v16 }
 0x8ba   : > { %v12365_v45 = vpop.f32.mrf.mxu1 }
 0x8bb   : > { %v12366_v19 = vadd.f32 %v12365_v45, %v12364_v38  ;;  %11518 = vmatmul.mubr.msk.bf16.gmra.mxu0 %vm2337_vm2, %v7465_v13  ;;  %v7448_v41 = vmax.f32 %v7406_v3, 0.0 }
 0x8bc   : > { %v12367_v33 = vpop.f32.mrf.mxu1  ;;  %7713 = vmatprep.mubr.bf16.mxu0 %v19244_v23 }
 0x8bd   : > { %v7409_v10 = vadd.f32 %v12366_v19, %v7408_v29 }
 0x8be   : > { %v12368_v11 = vpop.f32.mrf.mxu1 }
 0x8bf   : > { %v7449_v1 = vmax.f32 %v7409_v10, 0.0  ;;  %v12369_v53 = vadd.f32 %v12368_v11, %v12367_v33 }
 0x8c0   : > { %v12370_v46 = vpop.f32.mrf.mxu1 }
 0x8c1   : > { %v7466_v21 = vpack.c.bf16 %v7449_v1, %v7448_v41  ;;  %v7414_v43 = vadd.f32 %v13285_v37, %v12369_v53 }
 0x8c2   : > { %v12371_v48 = vpop.f32.mrf.mxu1 }
 0x8c3   : > { %v12372_v28 = vadd.f32 %v12371_v48, %v12370_v46  ;;  %11519 = vmatmul.mubr.msk.bf16.gmra.mxu0 %vm2337_vm2, %v7466_v21  ;;  %v7450_v9 = vmax.f32 %v7414_v43, 0.0 }
 0x8c4   : > { %7723 = vmatprep.mubr.bf16.mxu0 %v19244_v23 }
 0x8c5   : > { %v7417_v60 = vadd.f32 %v13286_v44, %v12372_v28 }
 0x8c7   : > { %v7451_v63 = vmax.f32 %v7417_v60, 0.0 }
 0x8c9   : > { %v7467_v54 = vpack.c.bf16 %v7451_v63, %v7450_v9 }
 0x8cb   : > { %11520 = vmatmul.mubr.msk.bf16.gmra.mxu0 %vm2337_vm2, %v7467_v54 }
 0x8cc   : > { %8175 = vmatprep.mubr.bf16.mxu0 %v13774_v35 }
 0x913   : > { %v17015_v62 = vpop.f32.mrf.mxu0 }
 0x915   : > { %v17017_v57 = vpop.f32.mrf.mxu0 }
 0x917   : > { %v17019_v18 = vpop.f32.mrf.mxu0 }
 0x918   : > { %v17023_v58 = vpack.c.bf16 %v17019_v18, %v17015_v62 }
 0x919   : > { %v17025_v50 = vpop.f32.mrf.mxu0 }
 0x91b   : > { %v17027_v31 = vpop.f32.mrf.mxu0 }
 0x91d   : > { %v17029_v55 = vpop.f32.mrf.mxu0 }
 0x91f   : > { %v17031_v0 = vpop.f32.mrf.mxu0 }
 0x920   : > { %v17035_v30 = vpack.c.bf16 %v17031_v0, %v17027_v31 }
 0x921   : > { %v17037_v56 = vpop.f32.mrf.mxu0 }
 0x923   : > { %v17039_v42 = vpop.f32.mrf.mxu0 }
 0x925   : > { %v17041_v40 = vpop.f32.mrf.mxu0 }
 0x927   : > { %v17043_v51 = vpop.f32.mrf.mxu0 }
 0x928   : > { %v7778_v19 = vpack.c.bf16 %v17043_v51, %v17039_v42 }
 0x929   : > { %v17045_v7 = vpop.f32.mrf.mxu0 }
 0x92b   : > { %v17047_v47 = vpop.f32.mrf.mxu0 }
 0x92d   : > { %v17049_v20 = vpop.f32.mrf.mxu0 }
 0x92f   : > { %v17051_v39 = vpop.f32.mrf.mxu0 }
 0x930   : > { %19272 = vst [vmem:[#allocation21_spill] sm:$0xff] %v17051_v39  ;;  %v17055_v6 = vpack.c.bf16 %v17051_v39, %v17047_v47 }
 0x931   : > { %v17057_v24 = vpop.f32.mrf.mxu0 }
 0x932   : > { %7828 = vrot.lane.b32.xlu0 %v17055_v6, %s14088_s21 }
 0x933   : > { %v17061_v26 = vpop.f32.mrf.mxu0 }
 0x934   : > { %19273 = vst [vmem:[#allocation162_spill] sm:$0xff] %v17061_v26 }
 0x935   : > { %v17063_v22 = vpop.f32.mrf.mxu0 }
 0x937   : > { %v17065_v15 = vpop.f32.mrf.mxu0 }
 0x938   : > { %19274 = vst [vmem:[#allocation22_spill] sm:$0xff] %v17065_v15  ;;  %v17069_v61 = vpack.c.bf16 %v17065_v15, %v17061_v26 }
 0x939   : > { %v17071_v36 = vpop.f32.mrf.mxu0 }
 0x93a   : > { %7830 = vrot.lane.b32.xlu0 %v17069_v61, %s14088_s21 }
 0x93b   : > { %v17075_v27 = vpop.f32.mrf.mxu0 }
 0x93c   : > { %19275 = vst [vmem:[#allocation165_spill] sm:$0xff] %v17075_v27 }
 0x93d   : > { %v17077_v25 = vpop.f32.mrf.mxu0 }
 0x93e   : > { %8103 = vrot.lane.b32.xlu0 %v17069_v61, %s14089_s22 }
 0x93f   : > { %v17081_v14 = vpop.f32.mrf.mxu0 }
 0x940   : > { %19276 = vst [vmem:[#allocation23_spill] sm:$0xff] %v17081_v14  ;;  %v7784_v37 = vpack.c.bf16 %v17081_v14, %v17075_v27 }
 0x941   : > { %v17085_v12 = vpop.f32.mrf.mxu0 }
 0x942   : > { %7832 = vrot.lane.b32.xlu0 %v7784_v37, %s14088_s21 }
 0x943   : > { %v17088_v32 = vpop.f32.mrf.mxu0 }
 0x944   : > { %19277 = vst [vmem:[#allocation167_spill] sm:$0xff] %v17088_v32 }
 0x945   : > { %v17090_v49 = vpop.f32.mrf.mxu0 }
 0x946   : > { %8105 = vrot.lane.b32.xlu0 %v7784_v37, %s14089_s22 }
 0x947   : > { %v17093_v52 = vpop.f32.mrf.mxu0 }
 0x948   : > { %19278 = vst [vmem:[#allocation24_spill] sm:$0xff] %v17093_v52  ;;  %v7786_v8 = vpack.c.bf16 %v17093_v52, %v17088_v32 }
 0x949   : > { %v17097_v16 = vpop.f32.mrf.mxu0 }
 0x94a   : > { %7834 = vrot.lane.b32.xlu0 %v7786_v8, %s14088_s21 }
 0x94b   : > { %v17100_v5 = vpop.f32.mrf.mxu0 }
 0x94c   : > { %19279 = vst [vmem:[#allocation170_spill] sm:$0xff] %v17100_v5 }
 0x94d   : > { %v17102_v34 = vpop.f32.mrf.mxu0 }
 0x94e   : > { %8107 = vrot.lane.b32.xlu0 %v7786_v8, %s14089_s22 }
 0x94f   : > { %v17105_v2 = vpop.f32.mrf.mxu0 }
 0x950   : > { %19280 = vst [vmem:[#allocation25_spill] sm:$0xff] %v17105_v2  ;;  %v7788_v59 = vpack.c.bf16 %v17105_v2, %v17100_v5 }
 0x951   : > { %v17109_v4 = vpop.f32.mrf.mxu0 }
 0x952   : > { %7836 = vrot.lane.b32.xlu0 %v7788_v59, %s14088_s21 }
 0x953   : > { %v17112_v17 = vpop.f32.mrf.mxu0 }
 0x954   : > { %19281 = vst [vmem:[#allocation173_spill] sm:$0xff] %v17112_v17 }
 0x955   : > { %v17114_v44 = vpop.f32.mrf.mxu0 }
 0x956   : > { %8109 = vrot.lane.b32.xlu0 %v7788_v59, %s14089_s22 }
 0x957   : > { %v17117_v38 = vpop.f32.mrf.mxu0 }
 0x958   : > { %19282 = vst [vmem:[#allocation138_spill] sm:$0xff] %v17117_v38  ;;  %v17121_v13 = vpack.c.bf16 %v17117_v38, %v17112_v17 }
 0x959   : > { %v17123_v45 = vpop.f32.mrf.mxu0 }
 0x95a   : > { %8101 = vrot.lane.b32.xlu0 %v17055_v6, %s14089_s22 }
 0x95b   : > { %v17127_v3 = vpop.f32.mrf.mxu0 }
 0x95c   : > { %19283 = vst [vmem:[#allocation176_spill] sm:$0xff] %v17127_v3 }
 0x95d   : > { %v17131_v29 = vpop.f32.mrf.mxu0 }
 0x95e   : > { %7826 = vrot.lane.b32.xlu0 %v7778_v19, %s14088_s21 }
 0x95f   : > { %v17134_v33 = vpop.f32.mrf.mxu0 }
 0x960   : > { %19284 = vst [vmem:[#allocation139_spill] sm:$0xff] %v17134_v33  ;;  %v17138_v10 = vpack.c.bf16 %v17134_v33, %v17127_v3 }
 0x961   : > { %v17140_v11 = vpop.f32.mrf.mxu0 }
 0x962   : > { %8099 = vrot.lane.b32.xlu0 %v7778_v19, %s14089_s22 }
 0x963   : > { %v17143_v41 = vpop.f32.mrf.mxu0 }
 0x964   : > { %19285 = vst [vmem:[#allocation178_spill] sm:$0xff] %v17143_v41 }
 0x965   : > { %v17145_v1 = vpop.f32.mrf.mxu0 }
 0x966   : > { %7824 = vrot.lane.b32.xlu0 %v17035_v30, %s14088_s21 }
 0x967   : > { %v17149_v53 = vpop.f32.mrf.mxu0 }
 0x968   : > { %19286 = vst [vmem:[#allocation140_spill] sm:$0xff] %v17149_v53 }
 0x969   : > { %v17151_v46 = vpop.f32.mrf.mxu0 }
 0x96a   : > { %8097 = vrot.lane.b32.xlu0 %v17035_v30, %s14089_s22 }
 0x96b   : > { %v17155_v21 = vpop.f32.mrf.mxu0 }
 0x96c   : > { %19287 = vst [vmem:[#allocation181_spill] sm:$0xff] %v17155_v21 }
 0x96d   : > { %v17157_v48 = vpop.f32.mrf.mxu0 }
 0x96e   : > { %7822 = vrot.lane.b32.xlu0 %v17023_v58, %s14088_s21 }
 0x96f   : > { %v17161_v43 = vpop.f32.mrf.mxu0 }
 0x970   : > { %19288 = vst [vmem:[#allocation142_spill] sm:$0xff] %v17161_v43  ;;  %v7796_v28 = vpack.c.bf16 %v17161_v43, %v17155_v21 }
 0x971   : > { %v17165_v60 = vpop.f32.mrf.mxu0 }
 0x972   : > { %8095 = vrot.lane.b32.xlu0 %v17023_v58, %s14089_s22  ;;  %7844 = vrot.lane.b32.xlu1 %v7796_v28, %s14088_s21 }
 0x973   : > { %v17170_v9 = vpop.f32.mrf.mxu0 }
 0x974   : > { %19289 = vst [vmem:[#allocation184_spill] sm:$0xff] %v17170_v9 }
 0x975   : > { %v17172_v63 = vpop.f32.mrf.mxu0 }
 0x976   : > { %8382 = vrot.lane.b32.xlu0 %v7788_v59, %s14090_s29 }
 0x977   : > { %v17175_v54 = vpop.f32.mrf.mxu0 }
 0x978   : > { %19290 = vst [vmem:[#allocation145_spill] sm:$0xff] %v17175_v54  ;;  %v7798_v35 = vpack.c.bf16 %v17175_v54, %v17170_v9 }
 0x979   : > { %v17179_v33 = vpop.f32.mrf.mxu0 }
 0x97a   : > { %8380 = vrot.lane.b32.xlu0 %v7786_v8, %s14090_s29  ;;  %7846 = vrot.lane.b32.xlu1 %v7798_v35, %s14088_s21 }
 0x97b   : > { %v17183_v43 = vpop.f32.mrf.mxu0 }
 0x97c   : > { %19291 = vst [vmem:[#allocation187_spill] sm:$0xff] %v17183_v43 }
 0x97d   : > { %v17185_v21 = vpop.f32.mrf.mxu0 }
 0x97e   : > { %8378 = vrot.lane.b32.xlu0 %v7784_v37, %s14090_s29  ;;  %8119 = vrot.lane.b32.xlu1 %v7798_v35, %s14089_s22 }
 0x97f   : > { %v17189_v59 = vpop.f32.mrf.mxu0 }
 0x980   : > { %19292 = vst [vmem:[#allocation190_spill] sm:$0xff] %v17189_v59  ;;  %v7800_v3 = vpack.c.bf16 %v17189_v59, %v17183_v43 }
 0x981   : > { %v17193_v54 = vpop.f32.mrf.mxu0 }
 0x982   : > { %8376 = vrot.lane.b32.xlu0 %v17069_v61, %s14090_s29  ;;  %7848 = vrot.lane.b32.xlu1 %v7800_v3, %s14088_s21 }
 0x983   : > { %v17198_v8 = vpop.f32.mrf.mxu0 }
 0x984   : > { %19293 = vst [vmem:[#allocation147_spill] sm:$0xff] %v17198_v8 }
 0x985   : > { %v17200_v9 = vpop.f32.mrf.mxu0 }
 0x986   : > { %8374 = vrot.lane.b32.xlu0 %v17055_v6, %s14090_s29  ;;  %8121 = vrot.lane.b32.xlu1 %v7800_v3, %s14089_s22 }
 0x987   : > { %v17205_v37 = vpop.f32.mrf.mxu0 }
 0x988   : > { %19294 = vst [vmem:[#allocation148_spill] sm:$0xff] %v17205_v37  ;;  %v7802_v59 = vpack.c.bf16 %v17205_v37, %v17198_v8 }
 0x989   : > { %v17209_v43 = vpop.f32.mrf.mxu0 }
 0x98a   : > { %8372 = vrot.lane.b32.xlu0 %v7778_v19, %s14090_s29  ;;  %7850 = vrot.lane.b32.xlu1 %v7802_v59, %s14088_s21  ;;  %v7794_v19 = vpack.c.bf16 %v17149_v53, %v17143_v41 }
 0x98b   : > { %v17213_v61 = vpop.f32.mrf.mxu0 }
 0x98c   : > { %19295 = vst [vmem:[#allocation192_spill] sm:$0xff] %v17213_v61 }
 0x98d   : > { %v17215_v38 = vpop.f32.mrf.mxu0 }
 0x98e   : > { %8370 = vrot.lane.b32.xlu0 %v17035_v30, %s14090_s29  ;;  %8123 = vrot.lane.b32.xlu1 %v7802_v59, %s14089_s22 }
 0x98f   : > { %v17220_v6 = vpop.f32.mrf.mxu0 }
 0x990   : > { %19296 = vst [vmem:[#allocation149_spill] sm:$0xff] %v17220_v6  ;;  %v7804_v37 = vpack.c.bf16 %v17220_v6, %v17213_v61 }
 0x992   : > { %8368 = vrot.lane.b32.xlu0 %v17023_v58, %s14090_s29  ;;  %7852 = vrot.lane.b32.xlu1 %v7804_v37, %s14088_s21 }
 0x996   : > { %8125 = vrot.lane.b32.xlu1 %v7804_v37, %s14089_s22 }
 0x99a   : > { %8117 = vrot.lane.b32.xlu1 %v7796_v28, %s14089_s22 }
 0x99e   : > { %7842 = vrot.lane.b32.xlu1 %v7794_v19, %s14088_s21 }
 0x9a2   : > { %8115 = vrot.lane.b32.xlu1 %v7794_v19, %s14089_s22 }
 0x9a4   : > { %v7829_v58 = vpop.permute.xlu0 %7828 }
 0x9a6   : > { %7840 = vrot.lane.b32.xlu1 %v17138_v10, %s14088_s21 }
 0x9aa   : > { %8113 = vrot.lane.b32.xlu1 %v17138_v10, %s14089_s22 }
 0x9ac   : > { %v7831_v30 = vpop.permute.xlu0 %7830 }
 0x9ae   : > { %7838 = vrot.lane.b32.xlu1 %v17121_v13, %s14088_s21 }
 0x9b0   : > { %v8104_v6 = vpop.permute.xlu0 %8103 }
 0x9b2   : > { %8111 = vrot.lane.b32.xlu1 %v17121_v13, %s14089_s22  ;;  %s19589_s22 = sld [smem:[#allocation202_spill]] }
 0x9b4   : > { %v7833_v61 = vpop.permute.xlu0 %7832 }
 0x9b6   : > { %8398 = vrot.lane.b32.xlu1 %v7804_v37, %s14090_s29 }
 0x9b8   : > { %v8106_v37 = vpop.permute.xlu0 %8105 }
 0x9ba   : > { %8396 = vrot.lane.b32.xlu1 %v7802_v59, %s14090_s29 }
 0x9bc   : > { %v7835_v59 = vpop.permute.xlu0 %7834 }
 0x9be   : > { %8394 = vrot.lane.b32.xlu1 %v7800_v3, %s14090_s29 }
 0x9c0   : > { %v8108_v8 = vpop.permute.xlu0 %8107 }
 0x9c2   : > { %8392 = vrot.lane.b32.xlu1 %v7798_v35, %s14090_s29 }
 0x9c4   : > { %v7837_v53 = vpop.permute.xlu0 %7836 }
 0x9c6   : > { %8390 = vrot.lane.b32.xlu1 %v7796_v28, %s14090_s29 }
 0x9c8   : > { %v8110_v41 = vpop.permute.xlu0 %8109 }
 0x9ca   : > { %8388 = vrot.lane.b32.xlu1 %v7794_v19, %s14090_s29 }
 0x9cc   : > { %v8102_v2 = vpop.permute.xlu0 %8101 }
 0x9ce   : > { %8386 = vrot.lane.b32.xlu1 %v17138_v10, %s14090_s29 }
 0x9d0   : > { %v7827_v23 = vpop.permute.xlu0 %7826 }
 0x9d2   : > { %8384 = vrot.lane.b32.xlu1 %v17121_v13, %s14090_s29 }
 0x9d4   : > { %v8100_v52 = vpop.permute.xlu0 %8099 }
 0x9d8   : > { %v7825_v14 = vpop.permute.xlu0 %7824 }
 0x9dc   : > { %v8098_v27 = vpop.permute.xlu0 %8097 }
 0x9e0   : > { %v7823_v26 = vpop.permute.xlu0 %7822 }
 0x9e4   : > { %v7845_v3 = vpop.permute.xlu1 %7844 }
 0x9ec   : > { %v7847_v17 = vpop.permute.xlu1 %7846 }
 0x9f0   : > { %v8120_v35 = vpop.permute.xlu1 %8119 }
 0x9f4   : > { %v7849_v28 = vpop.permute.xlu1 %7848 }
 0x9f8   : > { %v8122_v5 = vpop.permute.xlu1 %8121 }
 0x9fc   : > { %v7851_v19 = vpop.permute.xlu1 %7850 }
 0xa00   : > { %v8124_v32 = vpop.permute.xlu1 %8123 }
 0xa04   : > { %v7853_v10 = vpop.permute.xlu1 %7852 }
 0xa05   : > { %12391 = vmatprep.subr.bf16.mxu1 %v7853_v10  ;;  %v13785_v10 = vld [vmem:[%s15224_s15 + $0x120] ss:$8 sps:$4 sm:$0xff]  }
 0xa06   : > { %12392 = vmatpush3.bf16.msra.mxu1 %v7837_v53 }
 0xa07   : > { %12393 = vmatprep.subr.bf16.mxu1 %v7851_v19  ;;  %v8096_v19 = vpop.permute.xlu0 %8095 }
 0xa08   : > { %v8126_v13 = vpop.permute.xlu1 %8125 }
 0xa09   : > { %12503 = vmatprep.subr.bf16.mxu0 %v8126_v13 }
 0xa0a   : > { %12394 = vmatpush3.bf16.msra.mxu1 %v7835_v59  ;;  %12504 = vmatpush3.bf16.msra.mxu0 %v8110_v41 }
 0xa0b   : > { %12395 = vmatprep.subr.bf16.mxu1 %v7849_v28  ;;  %12505 = vmatprep.subr.bf16.mxu0 %v8124_v32  ;;  %v8383_v32 = vpop.permute.xlu0 %8382 }
 0xa0c   : > { %v8118_v15 = vpop.permute.xlu1 %8117 }
 0xa0e   : > { %12396 = vmatpush3.bf16.msra.mxu1 %v7833_v61  ;;  %12506 = vmatpush3.bf16.msra.mxu0 %v8108_v8  ;;  %v7731_v61 = vpop.f32.mrf.mxu0 }
 0xa0f   : > { %12397 = vmatprep.subr.bf16.mxu1 %v7847_v17  ;;  %12507 = vmatprep.subr.bf16.mxu0 %v8122_v5  ;;  %v8381_v8 = vpop.permute.xlu0 %8380 }
 0xa10   : > { %v7843_v39 = vpop.permute.xlu1 %7842 }
 0xa12   : > { %12398 = vmatpush3.bf16.msra.mxu1 %v7831_v30  ;;  %12508 = vmatpush3.bf16.msra.mxu0 %v8106_v37  ;;  %v13779_v37 = vld [vmem:[%s15224_s15 + $0x10] ss:$8 sps:$4 sm:$0xff]  }
 0xa13   : > { %12399 = vmatprep.subr.bf16.mxu1 %v7845_v3  ;;  %12509 = vmatprep.subr.bf16.mxu0 %v8120_v35  ;;  %v7783_v3 = vpack.c.bf16 %v17071_v36, %v17063_v22  ;;  %v7795_v22 = vpack.c.bf16 %v17151_v46, %v17145_v1  ;;  %v13788_v46 = vld [vmem:[%s15224_s15 + $0x44] ss:$8 sps:$4 sm:$0xff]  }
 0xa14   : > { %v8116_v53 = vpop.permute.xlu1 %8115 }
 0xa16   : > { %12400 = vmatpush3.bf16.msra.mxu1 %v7829_v58  ;;  %12510 = vmatpush3.bf16.msra.mxu0 %v8104_v6  ;;  %v7787_v58 = vpack.c.bf16 %v17097_v16, %v17090_v49  ;;  %v7799_v49 = vpack.c.bf16 %v17179_v33, %v17172_v63  ;;  %v13781_v16 = vld [vmem:[%s15224_s15 + $0x110] ss:$8 sps:$4 sm:$0xff]   ;;  %v13784_v33 = vld [vmem:[%s15224_s15 + $0x34] ss:$8 sps:$4 sm:$0xff]   ;;  %v7781_v63 = vpack.c.bf16 %v17057_v24, %v17049_v20 }
 0xa17   : > { %12401 = vmatprep.subr.bf16.mxu1 %v7843_v39  ;;  %12511 = vmatprep.subr.bf16.mxu0 %v8118_v15  ;;  %v13775_v15 = vld [vmem:[%s15224_s15] ss:$8 sps:$4 sm:$0xff]   ;;  %v7793_v20 = vpack.c.bf16 %v17140_v11, %v17131_v29  ;;  %v13787_v24 = vld [vmem:[%s15224_s15 + $0x30] ss:$8 sps:$4 sm:$0xff]   ;;  %v13790_v29 = vld [vmem:[%s15224_s15 + $0x144] ss:$8 sps:$4 sm:$0xff]   ;;  %v7775_v11 = vpack.c.bf16 %v17025_v50, %v17017_v57 }
 0xa18   : > { %v7841_v41 = vpop.permute.xlu1 %7840  ;;  %v13795_v57 = vld [vmem:[%s15224_s15 + $0x50] ss:$8 sps:$4 sm:$0xff]   ;;  %v13796_v50 = vld [vmem:[%s15224_s15 + $0x64] ss:$8 sps:$4 sm:$0xff]  }
 0xa1a   : > { %12402 = vmatpush3.bf16.msra.mxu1 %v7827_v23  ;;  %12512 = vmatpush3.bf16.msra.mxu0 %v8102_v2  ;;  %v7805_v23 = vpack.c.bf16 %v7731_v61, %v17215_v38  ;;  %v13776_v2 = vld [vmem:[%s15224_s15 + $0x14] ss:$8 sps:$4 sm:$0xff]  }
 0xa1b   : > { %12403 = vmatprep.subr.bf16.mxu1 %v7841_v41  ;;  %12513 = vmatprep.subr.bf16.mxu0 %v8116_v53  ;;  %v13778_v38 = vld [vmem:[%s15224_s15 + $0x114] ss:$8 sps:$4 sm:$0xff]   ;;  %v7777_v53 = vpack.c.bf16 %v17037_v56, %v17029_v55  ;;  %v13793_v41 = vld [vmem:[%s15224_s15 + $0x140] ss:$8 sps:$4 sm:$0xff]  }
 0xa1c   : > { %v8114_v17 = vpop.permute.xlu1 %8113  ;;  %v13800_v61 = vld [vmem:[%s15224_s15 + $0x74] ss:$8 sps:$4 sm:$0xff]  }
 0xa1e   : > { %12404 = vmatpush3.bf16.msra.mxu1 %v7825_v14  ;;  %12514 = vmatpush3.bf16.msra.mxu0 %v8100_v52  ;;  %v8379_v14 = vpop.permute.xlu0 %8378  ;;  %v7789_v52 = vpack.c.bf16 %v17109_v4, %v17102_v34  ;;  %v7801_v34 = vpack.c.bf16 %v17193_v54, %v17185_v21  ;;  %v13782_v54 = vld [vmem:[%s15224_s15 + $0x124] ss:$8 sps:$4 sm:$0xff]  }
 0xa1f   : > { %12515 = vmatprep.subr.bf16.mxu0 %v8114_v17  ;;  %v13797_v17 = vld [vmem:[%s15224_s15 + $0x150] ss:$8 sps:$4 sm:$0xff]  }
 0xa20   : > { %v7839_v5 = vpop.permute.xlu1 %7838 }
 0xa21   : > { %12405 = vmatprep.subr.bf16.mxu1 %v7839_v5  ;;  %v13798_v5 = vld [vmem:[%s15224_s15 + $0x164] ss:$8 sps:$4 sm:$0xff]  }
 0xa22   : > { %12406 = vmatpush3.bf16.msra.mxu1 %v7823_v26  ;;  %12516 = vmatpush3.bf16.msra.mxu0 %v8098_v27  ;;  %v7803_v26 = vpack.c.bf16 %v17209_v43, %v17200_v9  ;;  %v13777_v27 = vld [vmem:[%s15224_s15 + $0x100] ss:$8 sps:$4 sm:$0xff]   ;;  %v8377_v4 = vpop.permute.xlu0 %8376  ;;  %v13780_v43 = vld [vmem:[%s15224_s15 + $0x24] ss:$8 sps:$4 sm:$0xff]   ;;  %v7785_v9 = vpack.c.bf16 %v17085_v12, %v17077_v25  ;;  %v7797_v25 = vpack.c.bf16 %v17165_v60, %v17157_v48  ;;  %v13786_v48 = vld [vmem:[%s15224_s15 + $0x134] ss:$8 sps:$4 sm:$0xff]  }
 0xa23   : > { %v13783_v12 = vld [vmem:[%s15224_s15 + $0x20] ss:$8 sps:$4 sm:$0xff]   ;;  %v7779_v60 = vpack.c.bf16 %v17045_v7, %v17041_v40  ;;  %v7791_v40 = vpack.c.bf16 %v17123_v45, %v17114_v44  ;;  %v13789_v7 = vld [vmem:[%s15224_s15 + $0x130] ss:$8 sps:$4 sm:$0xff]   ;;  %v13792_v45 = vld [vmem:[%s15224_s15 + $0x54] ss:$8 sps:$4 sm:$0xff]  }
 0xa24   : > { %v8112_v39 = vpop.permute.xlu1 %8111  ;;  %v13791_v44 = vld [vmem:[%s15224_s15 + $0x40] ss:$8 sps:$4 sm:$0xff]  }
 0xa25   : > { %7903 = vmatmul.mubr.bf16.vlgmr.msra.gmra.mxu1 %v13775_v15  ;;  %12517 = vmatprep.subr.bf16.mxu0 %v8112_v39  ;;  %v13801_v39 = vld [vmem:[%s15224_s15 + $0x160] ss:$8 sps:$4 sm:$0xff]   ;;  %v13803_v15 = vld [vmem:[%s15224_s15 + $0x70] ss:$8 sps:$4 sm:$0xff]  }
 0xa26   : > { %12518 = vmatpush3.bf16.msra.mxu0 %v8096_v19  ;;  %7910 = vmatprep.mubr.bf16.mxu1 %v13776_v2  ;;  %v8375_v21 = vpop.permute.xlu0 %8374  ;;  %v13804_v2 = vld [vmem:[%s15224_s15 + $0x84] ss:$8 sps:$4 sm:$0xff]  }
 0xa27   : > { %12727 = vmatprep.subr.bf16.mxu0 %v7805_v23  ;;  %v13802_v23 = vld [vmem:[%s15224_s15 + $0x174] ss:$8 sps:$4 sm:$0xff]  }
 0xa28   : > { %v8399_v6 = vpop.permute.xlu1 %8398 }
 0xa29   : > { %8176 = vmatmul.mubr.bf16.vlgmr.msra.gmra.mxu0 %v13777_v27  ;;  %12615 = vmatprep.subr.bf16.mxu1 %v8399_v6  ;;  %v13807_v6 = vld [vmem:[%s15224_s15 + $0x80] ss:$8 sps:$4 sm:$0xff]  }
 0xa2a   : > { %12616 = vmatpush3.bf16.msra.mxu1 %v8383_v32  ;;  %12728 = vmatpush3.bf16.msra.mxu0 %v7789_v52  ;;  %v8373_v36 = vpop.permute.xlu0 %8372  ;;  %v13794_v32 = vld [vmem:[%s15224_s15 + $0x154] ss:$8 sps:$4 sm:$0xff]   ;;  %v13806_v52 = vld [vmem:[%s15224_s15 + $0x184] ss:$8 sps:$4 sm:$0xff]   ;;  %v13809_v27 = vld [vmem:[%s15224_s15 + $0x180] ss:$8 sps:$4 sm:$0xff]  }
 0xa2b   : > { %12729 = vmatprep.subr.bf16.mxu0 %v7803_v26  ;;  %8183 = vmatprep.mubr.bf16.mxu0 %v13778_v38  ;;  %v13808_v26 = vld [vmem:[%s15224_s15 + $0x94] ss:$8 sps:$4 sm:$0xff]  }
 0xa2c   : > { %v8397_v30 = vpop.permute.xlu1 %8396  ;;  %v13810_v38 = vld [vmem:[%s15224_s15 + $0x194] ss:$8 sps:$4 sm:$0xff]  }
 0xa2d   : > { %7911 = vmatmul.mubr.bf16.gmra.mxu1 %v13779_v37  ;;  %12617 = vmatprep.subr.bf16.mxu1 %v8397_v30  ;;  %v13812_v30 = vld [vmem:[%s15224_s15 + $0xa4] ss:$8 sps:$4 sm:$0xff]   ;;  %v13815_v37 = vld [vmem:[%s15224_s15 + $0xa0] ss:$8 sps:$4 sm:$0xff]  }
 0xa2e   : > { %12618 = vmatpush3.bf16.msra.mxu1 %v8381_v8  ;;  %12730 = vmatpush3.bf16.msra.mxu0 %v7787_v58  ;;  %v8371_v1 = vpop.permute.xlu0 %8370  ;;  %v13799_v8 = vld [vmem:[%s15224_s15 + $0x60] ss:$8 sps:$4 sm:$0xff]   ;;  %v13811_v58 = vld [vmem:[%s15224_s15 + $0x90] ss:$8 sps:$4 sm:$0xff]  }
 0xa2f   : > { %12731 = vmatprep.subr.bf16.mxu0 %v7801_v34  ;;  %7918 = vmatprep.mubr.bf16.mxu1 %v13780_v43  ;;  %v13813_v34 = vld [vmem:[%s15224_s15 + $0x190] ss:$8 sps:$4 sm:$0xff]   ;;  %v13816_v43 = vld [vmem:[%s15224_s15 + $0xb4] ss:$8 sps:$4 sm:$0xff]  }
 0xa30   : > { %v8395_v59 = vpop.permute.xlu1 %8394 }
 0xa31   : > { %8184 = vmatmul.mubr.bf16.gmra.mxu0 %v13781_v16  ;;  %12619 = vmatprep.subr.bf16.mxu1 %v8395_v59  ;;  %v13818_v59 = vld [vmem:[%s15224_s15 + $0x1b4] ss:$8 sps:$4 sm:$0xff]   ;;  %v13820_v16 = vld [vmem:[%s15224_s15 + $0xc4] ss:$8 sps:$4 sm:$0xff]  }
 0xa32   : > { %12620 = vmatpush3.bf16.msra.mxu1 %v8379_v14  ;;  %12732 = vmatpush3.bf16.msra.mxu0 %v7785_v9  ;;  %v8369_v56 = vpop.permute.xlu0 %8368  ;;  %v13805_v14 = vld [vmem:[%s15224_s15 + $0x170] ss:$8 sps:$4 sm:$0xff]   ;;  %v13817_v9 = vld [vmem:[%s15224_s15 + $0x1a0] ss:$8 sps:$4 sm:$0xff]  }
 0xa33   : > { %12733 = vmatprep.subr.bf16.mxu0 %v7799_v49  ;;  %8191 = vmatprep.mubr.bf16.mxu0 %v13782_v54  ;;  %v13819_v49 = vld [vmem:[%s15224_s15 + $0xb0] ss:$8 sps:$4 sm:$0xff]   ;;  %v13822_v54 = vld [vmem:[%s15224_s15 + $0x1c4] ss:$8 sps:$4 sm:$0xff]  }
 0xa34   : > { %v8393_v35 = vpop.permute.xlu1 %8392 }
 0xa35   : > { %7919 = vmatmul.mubr.bf16.gmra.mxu1 %v13783_v12  ;;  %12621 = vmatprep.subr.bf16.mxu1 %v8393_v35  ;;  %v13824_v35 = vld [vmem:[%s15224_s15 + $0xd4] ss:$8 sps:$4 sm:$0xff]  }
 0xa36   : > { %12622 = vmatpush3.bf16.msra.mxu1 %v8377_v4  ;;  %12734 = vmatpush3.bf16.msra.mxu0 %v7783_v3  ;;  %v13814_v4 = vld [vmem:[%s15224_s15 + $0x1a4] ss:$8 sps:$4 sm:$0xff]   ;;  %v13823_v3 = vld [vmem:[%s15224_s15 + $0xc0] ss:$8 sps:$4 sm:$0xff]   ;;  %v13826_v12 = vld [vmem:[%s15224_s15 + $0x1d4] ss:$8 sps:$4 sm:$0xff]  }
 0xa37   : > { %12735 = vmatprep.subr.bf16.mxu0 %v7797_v25  ;;  %7926 = vmatprep.mubr.bf16.mxu1 %v13784_v33  ;;  %v13825_v25 = vld [vmem:[%s15224_s15 + $0x1c0] ss:$8 sps:$4 sm:$0xff]   ;;  %v13827_v33 = vld [vmem:[%s15224_s15 + $0xd0] ss:$8 sps:$4 sm:$0xff]  }
 0xa38   : > { %v8391_v28 = vpop.permute.xlu1 %8390 }
 0xa39   : > { %8192 = vmatmul.mubr.bf16.gmra.mxu0 %v13785_v10  ;;  %12623 = vmatprep.subr.bf16.mxu1 %v8391_v28  ;;  %v13829_v28 = vld [vmem:[%s15224_s15 + $0x1d0] ss:$8 sps:$4 sm:$0xff]   ;;  %v13832_v10 = vld [vmem:[%s15224_s15 + $0xf4] ss:$8 sps:$4 sm:$0xff]  }
 0xa3a   : > { %12624 = vmatpush3.bf16.msra.mxu1 %v8375_v21  ;;  %12736 = vmatpush3.bf16.msra.mxu0 %v7781_v63  ;;  %v13821_v21 = vld [vmem:[%s15224_s15 + $0x1b0] ss:$8 sps:$4 sm:$0xff]   ;;  %v13828_v63 = vld [vmem:[%s15224_s15 + $0xe4] ss:$8 sps:$4 sm:$0xff]  }
 0xa3b   : > { %12737 = vmatprep.subr.bf16.mxu0 %v7795_v22  ;;  %8199 = vmatprep.mubr.bf16.mxu0 %v13786_v48  ;;  %v13830_v22 = vld [vmem:[%s15224_s15 + $0x1e4] ss:$8 sps:$4 sm:$0xff]   ;;  %v13833_v48 = vld [vmem:[%s15224_s15 + $0x1e0] ss:$8 sps:$4 sm:$0xff]  }
 0xa3c   : > { %v8389_v13 = vpop.permute.xlu1 %8388 }
 0xa3d   : > { %7927 = vmatmul.mubr.bf16.gmra.mxu1 %v13787_v24  ;;  %12625 = vmatprep.subr.bf16.mxu1 %v8389_v13  ;;  %v13835_v13 = vld [vmem:[%s15224_s15 + $0xf0] ss:$8 sps:$4 sm:$0xff]  }
 0xa3e   : > { %12626 = vmatpush3.bf16.msra.mxu1 %v8373_v36  ;;  %12738 = vmatpush3.bf16.msra.mxu0 %v7779_v60  ;;  %v13831_v36 = vld [vmem:[%s15224_s15 + $0xe0] ss:$8 sps:$4 sm:$0xff]   ;;  %v13834_v60 = vld [vmem:[%s15224_s15 + $0x1f4] ss:$8 sps:$4 sm:$0xff]   ;;  %v13837_v24 = vld [vmem:[%s15224_s15 + $0x1f0] ss:$8 sps:$4 sm:$0xff]  }
 0xa3f   : > { %12739 = vmatprep.subr.bf16.mxu0 %v7793_v20  ;;  %7934 = vmatprep.mubr.bf16.mxu1 %v13788_v46  ;;  %v13836_v20 = vld [vmem:[%s15224_s15 + $0x204] ss:$8 sps:$4 sm:$0xff]   ;;  %v13839_v46 = vld [vmem:[%s15224_s15 + $0x200] ss:$8 sps:$4 sm:$0xff]  }
 0xa40   : > { %v8387_v19 = vpop.permute.xlu1 %8386 }
 0xa41   : > { %8200 = vmatmul.mubr.bf16.gmra.mxu0 %v13789_v7  ;;  %12627 = vmatprep.subr.bf16.mxu1 %v8387_v19  ;;  %v13841_v19 = vld [vmem:[%s15224_s15 + $0x300] ss:$8 sps:$4 sm:$0xff]   ;;  %v13843_v7 = vld [vmem:[%s15224_s15 + $0x210] ss:$8 sps:$4 sm:$0xff]  }
 0xa42   : > { %12628 = vmatpush3.bf16.msra.mxu1 %v8371_v1  ;;  %12740 = vmatpush3.bf16.msra.mxu0 %v7777_v53  ;;  %v13838_v1 = vld [vmem:[%s15224_s15 + $0x304] ss:$8 sps:$4 sm:$0xff]   ;;  %v13840_v53 = vld [vmem:[%s15224_s15 + $0x214] ss:$8 sps:$4 sm:$0xff]  }
 0xa43   : > { %12741 = vmatprep.subr.bf16.mxu0 %v7791_v40  ;;  %8207 = vmatprep.mubr.bf16.mxu0 %v13790_v29  ;;  %v13842_v40 = vld [vmem:[%s15224_s15 + $0x314] ss:$8 sps:$4 sm:$0xff]   ;;  %v13844_v29 = vld [vmem:[%s15224_s15 + $0x224] ss:$8 sps:$4 sm:$0xff]  }
 0xa44   : > { %v8385_v55 = vpop.permute.xlu1 %8384 }
 0xa45   : > { %7935 = vmatmul.mubr.bf16.gmra.mxu1 %v13791_v44  ;;  %12629 = vmatprep.subr.bf16.mxu1 %v8385_v55  ;;  %v13846_v55 = vld [vmem:[%s15224_s15 + $0x324] ss:$8 sps:$4 sm:$0xff]   ;;  %v13848_v44 = vld [vmem:[%s15224_s15 + $0x234] ss:$8 sps:$4 sm:$0xff]  }
 0xa46   : > { %12630 = vmatpush3.bf16.msra.mxu1 %v8369_v56  ;;  %12742 = vmatpush3.bf16.msra.mxu0 %v7775_v11  ;;  %v13845_v11 = vld [vmem:[%s15224_s15 + $0x310] ss:$8 sps:$4 sm:$0xff]   ;;  %v13847_v56 = vld [vmem:[%s15224_s15 + $0x220] ss:$8 sps:$4 sm:$0xff]  }
 0xa47   : > { %7942 = vmatprep.mubr.bf16.mxu1 %v13792_v45  ;;  %v13849_v45 = vld [vmem:[%s15224_s15 + $0x320] ss:$8 sps:$4 sm:$0xff]  }
 0xa49   : > { %8208 = vmatmul.mubr.bf16.gmra.mxu0 %v13793_v41  ;;  %v13850_v41 = vld [vmem:[%s15224_s15 + $0x334] ss:$8 sps:$4 sm:$0xff]  }
 0xa4a   : > { %8215 = vmatprep.mubr.bf16.mxu0 %v13794_v32  ;;  %v13851_v32 = vld [vmem:[%s15224_s15 + $0x230] ss:$8 sps:$4 sm:$0xff]  }
 0xa4d   : > { %7943 = vmatmul.mubr.bf16.gmra.mxu1 %v13795_v57  ;;  %v13852_v57 = vld [vmem:[%s15224_s15 + $0x244] ss:$8 sps:$4 sm:$0xff]  }
 0xa4e   : > { %7950 = vmatprep.mubr.bf16.mxu1 %v13796_v50  ;;  %v13853_v50 = vld [vmem:[%s15224_s15 + $0x330] ss:$8 sps:$4 sm:$0xff]  }
 0xa51   : > { %8216 = vmatmul.mubr.bf16.gmra.mxu0 %v13797_v17  ;;  %v13854_v17 = vld [vmem:[%s15224_s15 + $0x344] ss:$8 sps:$4 sm:$0xff]  }
 0xa52   : > { %8223 = vmatprep.mubr.bf16.mxu0 %v13798_v5  ;;  %v13855_v5 = vld [vmem:[%s15224_s15 + $0x240] ss:$8 sps:$4 sm:$0xff]  }
 0xa55   : > { %7951 = vmatmul.mubr.bf16.gmra.mxu1 %v13799_v8  ;;  %v13856_v8 = vld [vmem:[%s15224_s15 + $0x254] ss:$8 sps:$4 sm:$0xff]  }
 0xa56   : > { %7958 = vmatprep.mubr.bf16.mxu1 %v13800_v61  ;;  %v13857_v61 = vld [vmem:[%s15224_s15 + $0x340] ss:$8 sps:$4 sm:$0xff]  }
 0xa59   : > { %8224 = vmatmul.mubr.bf16.gmra.mxu0 %v13801_v39  ;;  %v13858_v39 = vld [vmem:[%s15224_s15 + $0x354] ss:$8 sps:$4 sm:$0xff]  }
 0xa5a   : > { %8231 = vmatprep.mubr.bf16.mxu0 %v13802_v23  ;;  %v13859_v23 = vld [vmem:[%s15224_s15 + $0x250] ss:$8 sps:$4 sm:$0xff]  }
 0xa5d   : > { %7959 = vmatmul.mubr.bf16.gmra.mxu1 %v13803_v15  ;;  %v13860_v15 = vld [vmem:[%s15224_s15 + $0x264] ss:$8 sps:$4 sm:$0xff]  }
 0xa5e   : > { %7966 = vmatprep.mubr.bf16.mxu1 %v13804_v2  ;;  %v13861_v2 = vld [vmem:[%s15224_s15 + $0x350] ss:$8 sps:$4 sm:$0xff]  }
 0xa61   : > { %8232 = vmatmul.mubr.bf16.gmra.mxu0 %v13805_v14  ;;  %v13862_v14 = vld [vmem:[%s15224_s15 + $0x364] ss:$8 sps:$4 sm:$0xff]  }
 0xa62   : > { %8239 = vmatprep.mubr.bf16.mxu0 %v13806_v52  ;;  %v13863_v52 = vld [vmem:[%s15224_s15 + $0x260] ss:$8 sps:$4 sm:$0xff]  }
 0xa65   : > { %7967 = vmatmul.mubr.bf16.gmra.mxu1 %v13807_v6  ;;  %v13864_v6 = vld [vmem:[%s15224_s15 + $0x274] ss:$8 sps:$4 sm:$0xff]  }
 0xa66   : > { %7974 = vmatprep.mubr.bf16.mxu1 %v13808_v26  ;;  %v13865_v26 = vld [vmem:[%s15224_s15 + $0x360] ss:$8 sps:$4 sm:$0xff]  }
 0xa69   : > { %8240 = vmatmul.mubr.bf16.gmra.mxu0 %v13809_v27  ;;  %v13866_v27 = vld [vmem:[%s15224_s15 + $0x374] ss:$8 sps:$4 sm:$0xff]  }
 0xa6a   : > { %8247 = vmatprep.mubr.bf16.mxu0 %v13810_v38  ;;  %v13867_v38 = vld [vmem:[%s15224_s15 + $0x270] ss:$8 sps:$4 sm:$0xff]  }
 0xa6d   : > { %7975 = vmatmul.mubr.bf16.gmra.mxu1 %v13811_v58  ;;  %v13868_v58 = vld [vmem:[%s15224_s15 + $0x284] ss:$8 sps:$4 sm:$0xff]  }
 0xa6e   : > { %7982 = vmatprep.mubr.bf16.mxu1 %v13812_v30  ;;  %v13869_v30 = vld [vmem:[%s15224_s15 + $0x370] ss:$8 sps:$4 sm:$0xff]  }
 0xa71   : > { %8248 = vmatmul.mubr.bf16.gmra.mxu0 %v13813_v34  ;;  %v13870_v34 = vld [vmem:[%s15224_s15 + $0x384] ss:$8 sps:$4 sm:$0xff]  }
 0xa72   : > { %8255 = vmatprep.mubr.bf16.mxu0 %v13814_v4 }
 0xa75   : > { %7983 = vmatmul.mubr.bf16.gmra.mxu1 %v13815_v37  ;;  %v13871_v37 = vld [vmem:[%s15224_s15 + $0x280] ss:$8 sps:$4 sm:$0xff]  }
 0xa76   : > { %7990 = vmatprep.mubr.bf16.mxu1 %v13816_v43  ;;  %v13872_v43 = vld [vmem:[%s15224_s15 + $0x294] ss:$8 sps:$4 sm:$0xff]  }
 0xa79   : > { %8256 = vmatmul.mubr.bf16.gmra.mxu0 %v13817_v9  ;;  %v17383_v9 = vld [vmem:[%s18671_s9 + $0x1] ss:$0 sm:$0xff] }
 0xa7a   : > { %8263 = vmatprep.mubr.bf16.mxu0 %v13818_v59 }
 0xa7d   : > { %7991 = vmatmul.mubr.bf16.gmra.mxu1 %v13819_v49 }
 0xa7e   : > { %7998 = vmatprep.mubr.bf16.mxu1 %v13820_v16 }
 0xa81   : > { %8264 = vmatmul.mubr.bf16.gmra.mxu0 %v13821_v21 }
 0xa82   : > { %8271 = vmatprep.mubr.bf16.mxu0 %v13822_v54  ;;  %v13873_v54 = vld [vmem:[%s15224_s15 + $0x380] ss:$8 sps:$4 sm:$0xff]  }
 0xa85   : > { %7999 = vmatmul.mubr.bf16.gmra.mxu1 %v13823_v3  ;;  %v7742_v3 = vadd.f32 %v17383_v9, %v17015_v62 }
 0xa86   : > { %8006 = vmatprep.mubr.bf16.mxu1 %v13824_v35  ;;  %v19297_v35 = vld [vmem:[#allocation135_spill] sm:$0xff] }
 0xa89   : > { %8272 = vmatmul.mubr.bf16.gmra.mxu0 %v13825_v25 }
 0xa8a   : > { %8279 = vmatprep.mubr.bf16.mxu0 %v13826_v12  ;;  %v13874_v12 = vld [vmem:[%s15224_s15 + $0x394] ss:$8 sps:$4 sm:$0xff]  }
 0xa8d   : > { %8007 = vmatmul.mubr.bf16.gmra.mxu1 %v13827_v33 }
 0xa8e   : > { %8014 = vmatprep.mubr.bf16.mxu1 %v13828_v63 }
 0xa91   : > { %8280 = vmatmul.mubr.bf16.gmra.mxu0 %v13829_v28 }
 0xa92   : > { %8287 = vmatprep.mubr.bf16.mxu0 %v13830_v22 }
 0xa95   : > { %8015 = vmatmul.mubr.bf16.gmra.mxu1 %v13831_v36 }
 0xa96   : > { %8022 = vmatprep.mubr.bf16.mxu1 %v13832_v10 }
 0xa99   : > { %8288 = vmatmul.mubr.bf16.gmra.mxu0 %v13833_v48 }
 0xa9a   : > { %8295 = vmatprep.mubr.bf16.mxu0 %v13834_v60  ;;  %v13875_v60 = vld [vmem:[%s15224_s15 + $0x290] ss:$8 sps:$4 sm:$0xff]  }
 0xa9d   : > { %8023 = vmatmul.mubr.bf16.gmra.mxu1 %v13835_v13  ;;  %v7743_v13 = vadd.f32 %v17383_v9, %v17019_v18  ;;  %v7744_v18 = vadd.f32 %v17383_v9, %v17027_v31  ;;  %v7745_v31 = vadd.f32 %v17383_v9, %v17031_v0  ;;  %v7746_v0 = vadd.f32 %v17383_v9, %v17039_v42 }
 0xa9e   : > { %8448 = vmatprep.mubr.bf16.mxu1 %v13836_v20  ;;  %v19298_v20 = vld [vmem:[#allocation16_spill] sm:$0xff]  ;;  %v7747_v42 = vadd.f32 %v17383_v9, %v17043_v51  ;;  %v7748_v51 = vadd.f32 %v17383_v9, %v17047_v47  ;;  %v19310_v47 = vld [vmem:[#allocation21_spill] sm:$0xff] }
 0xaa1   : > { %8296 = vmatmul.mubr.bf16.gmra.mxu0 %v13837_v24  ;;  %v19299_v24 = vld [vmem:[#allocation137_spill] sm:$0xff] }
 0xaa2   : > { %8673 = vmatprep.mubr.bf16.mxu0 %v13838_v1 }
 0xaa5   : > { %8449 = vmatmul.mubr.bf16.vlgmr.msra.gmra.mxu1 %v13839_v46  ;;  %v13876_v46 = vld [vmem:[%s15224_s15 + $0x2a4] ss:$8 sps:$4 sm:$0xff]  }
 0xaa6   : > { %8456 = vmatprep.mubr.bf16.mxu1 %v13840_v53 }
 0xaa9   : > { %8674 = vmatmul.mubr.bf16.vlgmr.msra.gmra.mxu0 %v13841_v19 }
 0xaaa   : > { %8681 = vmatprep.mubr.bf16.mxu0 %v13842_v40 }
 0xaad   : > { %8457 = vmatmul.mubr.bf16.gmra.mxu1 %v13843_v7 }
 0xaae   : > { %8464 = vmatprep.mubr.bf16.mxu1 %v13844_v29 }
 0xab1   : > { %8682 = vmatmul.mubr.bf16.gmra.mxu0 %v13845_v11 }
 0xab2   : > { %8689 = vmatprep.mubr.bf16.mxu0 %v13846_v55 }
 0xab5   : > { %8465 = vmatmul.mubr.bf16.gmra.mxu1 %v13847_v56 }
 0xab6   : > { %8472 = vmatprep.mubr.bf16.mxu1 %v13848_v44  ;;  %v13877_v44 = vld [vmem:[%s15224_s15 + $0x390] ss:$8 sps:$4 sm:$0xff]  }
 0xab9   : > { %8690 = vmatmul.mubr.bf16.gmra.mxu0 %v13849_v45  ;;  %v19300_v45 = vld [vmem:[#allocation125_spill] sm:$0xff] }
 0xaba   : > { %8697 = vmatprep.mubr.bf16.mxu0 %v13850_v41 }
 0xabd   : > { %8473 = vmatmul.mubr.bf16.gmra.mxu1 %v13851_v32  ;;  %v19301_v32 = vld [vmem:[#allocation20_spill] sm:$0xff] }
 0xabe   : > { %8480 = vmatprep.mubr.bf16.mxu1 %v13852_v57 }
 0xac1   : > { %8698 = vmatmul.mubr.bf16.gmra.mxu0 %v13853_v50  ;;  %v13878_v50 = vld [vmem:[%s15224_s15 + $0x3a4] ss:$8 sps:$4 sm:$0xff]  }
 0xac2   : > { %8705 = vmatprep.mubr.bf16.mxu0 %v13854_v17 }
 0xac5   : > { %8481 = vmatmul.mubr.bf16.gmra.mxu1 %v13855_v5 }
 0xac6   : > { %8488 = vmatprep.mubr.bf16.mxu1 %v13856_v8 }
 0xac9   : > { %8706 = vmatmul.mubr.bf16.gmra.mxu0 %v13857_v61 }
 0xaca   : > { %8713 = vmatprep.mubr.bf16.mxu0 %v13858_v39 }
 0xacd   : > { %8489 = vmatmul.mubr.bf16.gmra.mxu1 %v13859_v23 }
 0xace   : > { %8496 = vmatprep.mubr.bf16.mxu1 %v13860_v15 }
 0xad1   : > { %8714 = vmatmul.mubr.bf16.gmra.mxu0 %v13861_v2 }
 0xad2   : > { %8721 = vmatprep.mubr.bf16.mxu0 %v13862_v14  ;;  %v13879_v14 = vld [vmem:[%s15224_s15 + $0x2a0] ss:$8 sps:$4 sm:$0xff]  }
 0xad5   : > { %8497 = vmatmul.mubr.bf16.gmra.mxu1 %v13863_v52  ;;  %v19302_v52 = vld [vmem:[#allocation124_spill] sm:$0xff] }
 0xad6   : > { %8504 = vmatprep.mubr.bf16.mxu1 %v13864_v6 }
 0xad9   : > { %8722 = vmatmul.mubr.bf16.gmra.mxu0 %v13865_v26  ;;  %v19303_v26 = vld [vmem:[#allocation131_spill] sm:$0xff] }
 0xada   : > { %8729 = vmatprep.mubr.bf16.mxu0 %v13866_v27 }
 0xadd   : > { %8505 = vmatmul.mubr.bf16.gmra.mxu1 %v13867_v38  ;;  %v13880_v38 = vld [vmem:[%s15224_s15 + $0x2b4] ss:$8 sps:$4 sm:$0xff]  }
 0xade   : > { %8512 = vmatprep.mubr.bf16.mxu1 %v13868_v58 }
 0xae1   : > { %8730 = vmatmul.mubr.bf16.gmra.mxu0 %v13869_v30 }
 0xae2   : > { %8737 = vmatprep.mubr.bf16.mxu0 %v13870_v34 }
 0xae5   : > { %v12407_v4 = vpop.f32.mrf.mxu1  ;;  %8513 = vmatmul.mubr.bf16.gmra.mxu1 %v13871_v37 }
 0xae6   : > { %8520 = vmatprep.mubr.bf16.mxu1 %v13872_v43 }
 0xae7   : > { %v12408_v59 = vpop.f32.mrf.mxu1 }
 0xae8   : > { %v12409_v49 = vadd.f32 %v12408_v59, %v12407_v4 }
 0xae9   : > { %v12410_v16 = vpop.f32.mrf.mxu1  ;;  %v12519_v21 = vpop.f32.mrf.mxu0  ;;  %8738 = vmatmul.mubr.bf16.gmra.mxu0 %v13873_v54 }
 0xaea   : > { %v8031_v25 = vmul.f32 %v12409_v49, %v19297_v35  ;;  %8745 = vmatprep.mubr.bf16.mxu0 %v13874_v12 }
 0xaeb   : > { %v12411_v33 = vpop.f32.mrf.mxu1  ;;  %v12520_v63 = vpop.f32.mrf.mxu0 }
 0xaec   : > { %v8063_v28 = vadd.f32 %v8031_v25, %v7742_v3  ;;  %v12412_v22 = vadd.f32 %v12411_v33, %v12410_v16  ;;  %v12521_v36 = vadd.f32 %v12520_v63, %v12519_v21  ;;  %v13881_v16 = vld [vmem:[%s15224_s15 + $0x3a0] ss:$8 sps:$4 sm:$0xff]   ;;  %v19305_v3 = vld [vmem:[#allocation12_spill] sm:$0xff] }
 0xaed   : > { %v12413_v10 = vpop.f32.mrf.mxu1  ;;  %v12522_v48 = vpop.f32.mrf.mxu0  ;;  %8521 = vmatmul.mubr.bf16.gmra.mxu1 %v13875_v60  ;;  %v19304_v21 = vld [vmem:[#allocation109_spill] sm:$0xff]  ;;  %v13882_v25 = vld [vmem:[%s15224_s15 + $0x3b4] ss:$8 sps:$4 sm:$0xff]   ;;  %v13883_v60 = vld [vmem:[%s15224_s15 + $0x2b0] ss:$8 sps:$4 sm:$0xff]  }
 0xaee   : > { %v8032_v62 = vmul.f32 %v12412_v22, %v19298_v20  ;;  %v8304_v1 = vmul.f32 %v12521_v36, %v19299_v24  ;;  %8528 = vmatprep.mubr.bf16.mxu1 %v13876_v46 }
 0xaef   : > { %v12414_v53 = vpop.f32.mrf.mxu1  ;;  %v12523_v19 = vpop.f32.mrf.mxu0 }
 0xaf0   : > { %v8064_v40 = vadd.f32 %v8032_v62, %v7743_v13  ;;  %v17396_v7 = vadd.f32 %v8304_v1, %v8063_v28  ;;  %v12415_v29 = vadd.f32 %v12414_v53, %v12413_v10  ;;  %v12524_v11 = vadd.f32 %v12523_v19, %v12522_v48  ;;  %v19306_v13 = vld [vmem:[#allocation108_spill] sm:$0xff]  ;;  %v19307_v62 = vld [vmem:[#allocation117_spill] sm:$0xff] }
 0xaf1   : > { %v12416_v55 = vpop.f32.mrf.mxu1  ;;  %v12525_v56 = vpop.f32.mrf.mxu0  ;;  %8746 = vmatmul.mubr.bf16.gmra.mxu0 %v13877_v44  ;;  %v13884_v1 = vld [vmem:[%s15224_s15 + $0x2c4] ss:$8 sps:$4 sm:$0xff]   ;;  %v13885_v44 = vld [vmem:[%s15224_s15 + $0x3b0] ss:$8 sps:$4 sm:$0xff]  }
 0xaf2   : > { %v8033_v41 = vmul.f32 %v12415_v29, %v19300_v45  ;;  %v8305_v57 = vmul.f32 %v12524_v11, %v19301_v32  ;;  %8753 = vmatprep.mubr.bf16.mxu0 %v13878_v50 }
 0xaf3   : > { %v12417_v17 = vpop.f32.mrf.mxu1  ;;  %v12526_v5 = vpop.f32.mrf.mxu0 }
 0xaf4   : > { %v8065_v8 = vadd.f32 %v8033_v41, %v7744_v18  ;;  %v17404_v61 = vadd.f32 %v8305_v57, %v8064_v40  ;;  %v12418_v39 = vadd.f32 %v12417_v17, %v12416_v55  ;;  %v12527_v23 = vadd.f32 %v12526_v5, %v12525_v56  ;;  %v19308_v18 = vld [vmem:[#allocation93_spill] sm:$0xff]  ;;  %v19309_v41 = vld [vmem:[#allocation116_spill] sm:$0xff] }
 0xaf5   : > { %v12419_v15 = vpop.f32.mrf.mxu1  ;;  %v12528_v2 = vpop.f32.mrf.mxu0  ;;  %8529 = vmatmul.mubr.bf16.gmra.mxu1 %v13879_v14  ;;  %v13886_v57 = vld [vmem:[%s15224_s15 + $0x3c4] ss:$8 sps:$4 sm:$0xff]   ;;  %v13887_v14 = vld [vmem:[%s15224_s15 + $0x2c0] ss:$8 sps:$4 sm:$0xff]  }
 0xaf6   : > { %v8034_v6 = vmul.f32 %v12418_v39, %v19302_v52  ;;  %v8306_v27 = vmul.f32 %v12527_v23, %v19303_v26  ;;  %8536 = vmatprep.mubr.bf16.mxu1 %v13880_v38  ;;  %v19311_v52 = vld [vmem:[#allocation92_spill] sm:$0xff]  ;;  %v19312_v26 = vld [vmem:[#allocation101_spill] sm:$0xff] }
 0xaf7   : > { %v12420_v58 = vpop.f32.mrf.mxu1  ;;  %v12529_v30 = vpop.f32.mrf.mxu0  ;;  %v13888_v38 = vld [vmem:[%s15224_s15 + $0x2d4] ss:$8 sps:$4 sm:$0xff]  }
 0xaf8   : > { %v8066_v34 = vadd.f32 %v8034_v6, %v7745_v31  ;;  %v17412_v4 = vadd.f32 %v8306_v27, %v8065_v8  ;;  %v12421_v37 = vadd.f32 %v12420_v58, %v12419_v15  ;;  %v12530_v43 = vadd.f32 %v12529_v30, %v12528_v2 }
 0xaf9   : > { %v12422_v59 = vpop.f32.mrf.mxu1  ;;  %v12531_v49 = vpop.f32.mrf.mxu0  ;;  %8754 = vmatmul.mubr.bf16.gmra.mxu0 %v13881_v16  ;;  %v7749_v31 = vadd.f32 %v17383_v9, %v19310_v47 }
 0xafa   : > { %v8035_v54 = vmul.f32 %v12421_v37, %v19304_v21  ;;  %v8307_v35 = vmul.f32 %v12530_v43, %v19305_v3  ;;  %8761 = vmatprep.mubr.bf16.mxu0 %v13882_v25  ;;  %v19313_v21 = vld [vmem:[#allocation162_spill] sm:$0xff]  ;;  %v19314_v3 = vld [vmem:[#allocation77_spill] sm:$0xff]  ;;  %v19315_v25 = vld [vmem:[#allocation100_spill] sm:$0xff] }
 0xafb   : > { %v12423_v12 = vpop.f32.mrf.mxu1  ;;  %v12532_v33 = vpop.f32.mrf.mxu0 }
 0xafc   : > { %v8067_v63 = vadd.f32 %v8035_v54, %v7746_v0  ;;  %v17420_v28 = vadd.f32 %v8307_v35, %v8066_v34  ;;  %v12424_v22 = vadd.f32 %v12423_v12, %v12422_v59  ;;  %v12533_v36 = vadd.f32 %v12532_v33, %v12531_v49  ;;  %v13889_v0 = vld [vmem:[%s15224_s15 + $0x3c0] ss:$8 sps:$4 sm:$0xff]   ;;  %v13890_v33 = vld [vmem:[%s15224_s15 + $0x3d4] ss:$8 sps:$4 sm:$0xff]  }
 0xafd   : > { %v12425_v10 = vpop.f32.mrf.mxu1  ;;  %v12534_v48 = vpop.f32.mrf.mxu0  ;;  %8537 = vmatmul.mubr.bf16.gmra.mxu1 %v13883_v60  ;;  %v7750_v54 = vadd.f32 %v17383_v9, %v19313_v21 }
 0xafe   : > { %v8036_v20 = vmul.f32 %v12424_v22, %v19306_v13  ;;  %v8308_v24 = vmul.f32 %v12533_v36, %v19307_v62  ;;  %8544 = vmatprep.mubr.bf16.mxu1 %v13884_v1  ;;  %v19316_v62 = vld [vmem:[#allocation22_spill] sm:$0xff]  ;;  %v19317_v1 = vld [vmem:[#allocation76_spill] sm:$0xff] }
 0xaff   : > { %v12426_v46 = vpop.f32.mrf.mxu1  ;;  %v12535_v53 = vpop.f32.mrf.mxu0 }
 0xb00   : > { %v8068_v19 = vadd.f32 %v8036_v20, %v7747_v42  ;;  %v17428_v40 = vadd.f32 %v8308_v24, %v8067_v63  ;;  %v12427_v29 = vadd.f32 %v12426_v46, %v12425_v10  ;;  %v12536_v11 = vadd.f32 %v12535_v53, %v12534_v48  ;;  %v13891_v20 = vld [vmem:[%s15224_s15 + $0x2d0] ss:$8 sps:$4 sm:$0xff]   ;;  %v19318_v53 = vld [vmem:[#allocation85_spill] sm:$0xff] }
 0xb01   : > { %v12428_v55 = vpop.f32.mrf.mxu1  ;;  %v12537_v56 = vpop.f32.mrf.mxu0  ;;  %8762 = vmatmul.mubr.bf16.gmra.mxu0 %v13885_v44  ;;  %v7751_v24 = vadd.f32 %v17383_v9, %v19316_v62 }
 0xb02   : > { %v8037_v45 = vmul.f32 %v12427_v29, %v19308_v18  ;;  %v8309_v32 = vmul.f32 %v12536_v11, %v19309_v41  ;;  %8769 = vmatprep.mubr.bf16.mxu0 %v13886_v57  ;;  %v13892_v29 = vld [vmem:[%s15224_s15 + $0x2e4] ss:$8 sps:$4 sm:$0xff]  }
 0xb03   : > { %v12429_v50 = vpop.f32.mrf.mxu1  ;;  %v12538_v17 = vpop.f32.mrf.mxu0  ;;  %v19319_v57 = vld [vmem:[#allocation165_spill] sm:$0xff] }
 0xb04   : > { %v8069_v5 = vadd.f32 %v8037_v45, %v7748_v51  ;;  %v17436_v8 = vadd.f32 %v8309_v32, %v8068_v19  ;;  %v12430_v39 = vadd.f32 %v12429_v50, %v12428_v55  ;;  %v12539_v23 = vadd.f32 %v12538_v17, %v12537_v56  ;;  %v13893_v32 = vld [vmem:[%s15224_s15 + $0x3d0] ss:$8 sps:$4 sm:$0xff]   ;;  %v19320_v17 = vld [vmem:[#allocation61_spill] sm:$0xff] }
 0xb05   : > { %v12431_v15 = vpop.f32.mrf.mxu1  ;;  %v12540_v2 = vpop.f32.mrf.mxu0  ;;  %8545 = vmatmul.mubr.bf16.gmra.mxu1 %v13887_v14  ;;  %v7752_v50 = vadd.f32 %v17383_v9, %v19319_v57  ;;  %v13900_v57 = vld [vmem:[%s16087_s23 + $0x4] ss:$8 sps:$4 sm:$0xff]  }
 0xb06   : > { %v8038_v6 = vmul.f32 %v12430_v39, %v19311_v52  ;;  %v8310_v27 = vmul.f32 %v12539_v23, %v19312_v26  ;;  %8552 = vmatprep.mubr.bf16.mxu1 %v13888_v38  ;;  %v19321_v39 = vld [vmem:[#allocation84_spill] sm:$0xff]  ;;  %v13895_v38 = vld [vmem:[%s15224_s15 + $0x2e0] ss:$8 sps:$4 sm:$0xff]  }
 0xb07   : > { %v12432_v58 = vpop.f32.mrf.mxu1  ;;  %v12541_v30 = vpop.f32.mrf.mxu0 }
 0xb08   : > { %v8070_v34 = vadd.f32 %v8038_v6, %v7749_v31  ;;  %v17444_v37 = vadd.f32 %v8310_v27, %v8069_v5  ;;  %v12433_v43 = vadd.f32 %v12432_v58, %v12431_v15  ;;  %v12542_v59 = vadd.f32 %v12541_v30, %v12540_v2  ;;  %v13894_v15 = vld [vmem:[%s15224_s15 + $0x3e4] ss:$8 sps:$4 sm:$0xff]   ;;  %v19322_v58 = vld [vmem:[#allocation23_spill] sm:$0xff] }
 0xb09   : > { %v12434_v49 = vpop.f32.mrf.mxu1  ;;  %v12543_v16 = vpop.f32.mrf.mxu0  ;;  %8770 = vmatmul.mubr.bf16.gmra.mxu0 %v13889_v0  ;;  %v7753_v30 = vadd.f32 %v17383_v9, %v19322_v58 }
 0xb0a   : > { %v8039_v35 = vmul.f32 %v12433_v43, %v19314_v3  ;;  %v8311_v12 = vmul.f32 %v12542_v59, %v19315_v25  ;;  %8777 = vmatprep.mubr.bf16.mxu0 %v13890_v33  ;;  %v19324_v59 = vld [vmem:[#allocation69_spill] sm:$0xff] }
 0xb0b   : > { %v12435_v63 = vpop.f32.mrf.mxu1  ;;  %v12544_v22 = vpop.f32.mrf.mxu0 }
 0xb0c   : > { %v8071_v36 = vadd.f32 %v8039_v35, %v7750_v54  ;;  %v17452_v10 = vadd.f32 %v8311_v12, %v8070_v34  ;;  %v12436_v48 = vadd.f32 %v12435_v63, %v12434_v49  ;;  %v12545_v60 = vadd.f32 %v12544_v22, %v12543_v16  ;;  %v19323_v34 = vld [vmem:[#allocation60_spill] sm:$0xff]  ;;  %v13897_v63 = vld [vmem:[%s15224_s15 + $0x3e0] ss:$8 sps:$4 sm:$0xff]   ;;  %v19325_v22 = vld [vmem:[#allocation167_spill] sm:$0xff] }
 0xb0d   : > { %v12437_v42 = vpop.f32.mrf.mxu1  ;;  %v12546_v13 = vpop.f32.mrf.mxu0  ;;  %8553 = vmatmul.mubr.bf16.gmra.mxu1 %v13891_v20  ;;  %v13896_v16 = vld [vmem:[%s15224_s15 + $0x2f4] ss:$8 sps:$4 sm:$0xff]  }
 0xb0e   : > { %v8040_v46 = vmul.f32 %v12436_v48, %v19317_v1  ;;  %v8312_v19 = vmul.f32 %v12545_v60, %v19318_v53  ;;  %8560 = vmatprep.mubr.bf16.mxu1 %v13892_v29  ;;  %v19326_v48 = vld [vmem:[#allocation45_spill] sm:$0xff]  ;;  %v13898_v20 = vld [vmem:[%s15224_s15 + $0x3f4] ss:$8 sps:$4 sm:$0xff]  }
 0xb0f   : > { %v12438_v11 = vpop.f32.mrf.mxu1  ;;  %v12547_v55 = vpop.f32.mrf.mxu0 }
 0xb10   : > { %v8072_v56 = vadd.f32 %v8040_v46, %v7751_v24  ;;  %v17460_v44 = vadd.f32 %v8312_v19, %v8071_v36  ;;  %v12439_v51 = vadd.f32 %v12438_v11, %v12437_v42  ;;  %v12548_v18 = vadd.f32 %v12547_v55, %v12546_v13  ;;  %v19327_v42 = vld [vmem:[#allocation68_spill] sm:$0xff] }
 0xb11   : > { %v12440_v45 = vpop.f32.mrf.mxu1  ;;  %v12549_v41 = vpop.f32.mrf.mxu0  ;;  %8778 = vmatmul.mubr.bf16.gmra.mxu0 %v13893_v32  ;;  %v7754_v36 = vadd.f32 %v17383_v9, %v19325_v22  ;;  %v13899_v55 = vld [vmem:[%s15224_s15 + $0x2f0] ss:$8 sps:$4 sm:$0xff]  }
 0xb12   : > { %v8041_v5 = vmul.f32 %v12439_v51, %v19320_v17  ;;  %v8313_v23 = vmul.f32 %v12548_v18, %v19321_v39  ;;  %8785 = vmatprep.mubr.bf16.mxu0 %v13894_v15  ;;  %v19329_v18 = vld [vmem:[#allocation44_spill] sm:$0xff] }
 0xb13   : > { %v12441_v2 = vpop.f32.mrf.mxu1  ;;  %v12550_v14 = vpop.f32.mrf.mxu0 }
 0xb14   : > { %v8073_v47 = vadd.f32 %v8041_v5, %v7752_v50  ;;  %v17468_v31 = vadd.f32 %v8313_v23, %v8072_v56  ;;  %v12442_v52 = vadd.f32 %v12441_v2, %v12440_v45  ;;  %v12551_v6 = vadd.f32 %v12550_v14, %v12549_v41  ;;  %v19328_v56 = vld [vmem:[#allocation24_spill] sm:$0xff]  ;;  %v19330_v41 = vld [vmem:[#allocation53_spill] sm:$0xff] }
 0xb15   : > { %v12443_v26 = vpop.f32.mrf.mxu1  ;;  %v12552_v27 = vpop.f32.mrf.mxu0  ;;  %8561 = vmatmul.mubr.bf16.gmra.mxu1 %v13895_v38  ;;  %v7755_v51 = vadd.f32 %v17383_v9, %v19328_v56  ;;  %v19333_v38 = vld [vmem:[#allocation52_spill] sm:$0xff] }
 0xb16   : > { %v8042_v43 = vmul.f32 %v12442_v52, %v19323_v34  ;;  %v8314_v49 = vmul.f32 %v12551_v6, %v19324_v59  ;;  %8568 = vmatprep.mubr.bf16.mxu1 %v13896_v16  ;;  %v19331_v52 = vld [vmem:[#allocation170_spill] sm:$0xff] }
 0xb17   : > { %v12444_v0 = vpop.f32.mrf.mxu1  ;;  %v12553_v21 = vpop.f32.mrf.mxu0  ;;  %v7756_v6 = vadd.f32 %v17383_v9, %v19331_v52 }
 0xb18   : > { %v8074_v54 = vadd.f32 %v8042_v43, %v7753_v30  ;;  %v17476_v3 = vadd.f32 %v8314_v49, %v8073_v47  ;;  %v12445_v35 = vadd.f32 %v12444_v0, %v12443_v26  ;;  %v12554_v25 = vadd.f32 %v12553_v21, %v12552_v27  ;;  %v13901_v47 = vld [vmem:[%s15224_s15 + $0x3f0] ss:$8 sps:$4 sm:$0xff]  }
 0xb19   : > { %v12446_v12 = vpop.f32.mrf.mxu1  ;;  %v12555_v33 = vpop.f32.mrf.mxu0  ;;  %8786 = vmatmul.mubr.bf16.gmra.mxu0 %v13897_v63  ;;  %v19332_v26 = vld [vmem:[#allocation35_spill] sm:$0xff]  ;;  %v19334_v30 = vmov 0  }
 0xb1a   : > { %v8043_v60 = vmul.f32 %v12445_v35, %v19326_v48  ;;  %v8315_v13 = vmul.f32 %v12554_v25, %v19327_v42  ;;  %8793 = vmatprep.mubr.bf16.mxu0 %v13898_v20  ;;  %v19335_v35 = vld [vmem:[#allocation25_spill] sm:$0xff]  ;;  %v19337_v63 = vld [vmem:[#allocation39_spill] sm:$0xff] }
 0xb1b   : > { %v12447_v62 = vpop.f32.mrf.mxu1  ;;  %v12556_v24 = vpop.f32.mrf.mxu0  ;;  %v7757_v25 = vadd.f32 %v17383_v9, %v19335_v35 }
 0xb1c   : > { %v8075_v1 = vadd.f32 %v8043_v60, %v7754_v36  ;;  %v17484_v46 = vadd.f32 %v8315_v13, %v8074_v54  ;;  %v12448_v53 = vadd.f32 %v12447_v62, %v12446_v12  ;;  %v12557_v19 = vadd.f32 %v12556_v24, %v12555_v33  ;;  %v19336_v12 = vld [vmem:[#allocation34_spill] sm:$0xff] }
 0xb1d   : > { %v12449_v29 = vpop.f32.mrf.mxu1  ;;  %v12558_v11 = vpop.f32.mrf.mxu0  ;;  %8569 = vmatmul.mubr.bf16.gmra.mxu1 %v13899_v55 }
 0xb1e   : > { %v8044_v45 = vmul.f32 %v12448_v53, %v19329_v18  ;;  %v8316_v32 = vmul.f32 %v12557_v19, %v19330_v41  ;;  %8946 = vmatprep.mubr.bf16.mxu1 %v13900_v57  ;;  %v19339_v19 = vld [vmem:[#allocation133_spill] sm:$0xff] }
 0xb1f   : > { %v12450_v50 = vpop.f32.mrf.mxu1  ;;  %v12559_v17 = vpop.f32.mrf.mxu0 }
 0xb20   : > { %v8076_v5 = vadd.f32 %v8044_v45, %v7755_v51  ;;  %v17492_v39 = vadd.f32 %v8316_v32, %v8075_v1  ;;  %v12451_v23 = vadd.f32 %v12450_v50, %v12449_v29  ;;  %v12560_v15 = vadd.f32 %v12559_v17, %v12558_v11  ;;  %v19338_v1 = vld [vmem:[#allocation173_spill] sm:$0xff]  ;;  %v19340_v11 = vld [vmem:[#allocation38_spill] sm:$0xff] }
 0xb21   : > { %v12452_v2 = vpop.f32.mrf.mxu1  ;;  %v12561_v14 = vpop.f32.mrf.mxu0  ;;  %8794 = vmatmul.mubr.bf16.gmra.mxu0 %v13901_v47  ;;  %v7758_v53 = vadd.f32 %v17383_v9, %v19338_v1  ;;  %v19341_v17 = vld [vmem:[#allocation138_spill] sm:$0xff] }
 0xb22   : > { %v8045_v27 = vmul.f32 %v12451_v23, %v19332_v26  ;;  %v8317_v58 = vmul.f32 %v12560_v15, %v19333_v38  ;;  %9221 = vmatprep.mubr.bf16.mxu0 %v19334_v30  ;;  %v19342_v23 = vld [vmem:[#allocation14_spill] sm:$0xff] }
 0xb23   : > { %v12453_v34 = vpop.f32.mrf.mxu1  ;;  %v12562_v43 = vpop.f32.mrf.mxu0 }
 0xb24   : > { %v8077_v59 = vadd.f32 %v8045_v27, %v7756_v6  ;;  %v17500_v49 = vadd.f32 %v8317_v58, %v8076_v5  ;;  %v12454_v16 = vadd.f32 %v12453_v34, %v12452_v2  ;;  %v12563_v0 = vadd.f32 %v12562_v43, %v12561_v14  ;;  %v19343_v2 = vld [vmem:[#allocation18_spill] sm:$0xff]  ;;  %v19344_v43 = vld [vmem:[#allocation176_spill] sm:$0xff] }
 0xb25   : > { %v12455_v21 = vpop.f32.mrf.mxu1  ;;  %v12564_v54 = vpop.f32.mrf.mxu0  ;;  %v7759_v5 = vadd.f32 %v17383_v9, %v19341_v17  ;;  %v19352_v17 = vld [vmem:[#allocation128_spill] sm:$0xff] }
 0xb26   : > { %v8046_v33 = vmul.f32 %v12454_v16, %v19336_v12  ;;  %v8318_v22 = vmul.f32 %v12563_v0, %v19337_v63  ;;  %v19345_v16 = vld [vmem:[#allocation121_spill] sm:$0xff] }
 0xb27   : > { %v12456_v36 = vpop.f32.mrf.mxu1  ;;  %v12565_v48 = vpop.f32.mrf.mxu0 }
 0xb28   : > { %v8078_v60 = vadd.f32 %v8046_v33, %v7757_v25  ;;  %v17506_v42 = vadd.f32 %v8318_v22, %v8077_v59  ;;  %v12457_v13 = vadd.f32 %v12456_v36, %v12455_v21  ;;  %v12566_v20 = vadd.f32 %v12565_v48, %v12564_v54  ;;  %v19346_v21 = vld [vmem:[#allocation17_spill] sm:$0xff] }
 0xb29   : > { %v12458_v62 = vpop.f32.mrf.mxu1  ;;  %v12567_v24 = vpop.f32.mrf.mxu0  ;;  %v7760_v59 = vadd.f32 %v17383_v9, %v19344_v43 }
 0xb2a   : > { %v8047_v29 = vmul.f32 %v12457_v13, %v19339_v19  ;;  %v8319_v55 = vmul.f32 %v12566_v20, %v19340_v11  ;;  %v19348_v20 = vld [vmem:[#allocation120_spill] sm:$0xff] }
 0xb2b   : > { %v12459_v56 = vpop.f32.mrf.mxu1  ;;  %v12568_v51 = vpop.f32.mrf.mxu0 }
 0xb2c   : > { %v8079_v18 = vadd.f32 %v8047_v29, %v7758_v53  ;;  %v17512_v45 = vadd.f32 %v8319_v55, %v8078_v60  ;;  %v12460_v41 = vadd.f32 %v12459_v56, %v12458_v62  ;;  %v12569_v32 = vadd.f32 %v12568_v51, %v12567_v24  ;;  %v19347_v60 = vld [vmem:[#allocation139_spill] sm:$0xff]  ;;  %v19349_v24 = vld [vmem:[#allocation129_spill] sm:$0xff] }
 0xb2d   : > { %v12461_v57 = vpop.f32.mrf.mxu1  ;;  %v12570_v50 = vpop.f32.mrf.mxu0  ;;  %v7761_v13 = vadd.f32 %v17383_v9, %v19347_v60  ;;  %v19357_v60 = vld [vmem:[#allocation89_spill] sm:$0xff] }
 0xb2e   : > { %v8048_v15 = vmul.f32 %v12460_v41, %v19342_v23  ;;  %v8320_v14 = vmul.f32 %v12569_v32, %v19343_v2  ;;  %v19350_v41 = vld [vmem:[#allocation178_spill] sm:$0xff] }
 0xb2f   : > { %v12462_v47 = vpop.f32.mrf.mxu1  ;;  %v12571_v52 = vpop.f32.mrf.mxu0  ;;  %v7762_v32 = vadd.f32 %v17383_v9, %v19350_v41 }
 0xb30   : > { %v8080_v6 = vadd.f32 %v8048_v15, %v7759_v5  ;;  %v17518_v26 = vadd.f32 %v8320_v14, %v8079_v18  ;;  %v12463_v27 = vadd.f32 %v12462_v47, %v12461_v57  ;;  %v12572_v38 = vadd.f32 %v12571_v52, %v12570_v50  ;;  %v19351_v57 = vld [vmem:[#allocation105_spill] sm:$0xff] }
 0xb31   : > { %v12464_v58 = vpop.f32.mrf.mxu1  ;;  %v12573_v34 = vpop.f32.mrf.mxu0 }
 0xb32   : > { %v8049_v0 = vmul.f32 %v12463_v27, %v19345_v16  ;;  %v8321_v54 = vmul.f32 %v12572_v38, %v19346_v21  ;;  %v19353_v38 = vld [vmem:[#allocation140_spill] sm:$0xff] }
 0xb33   : > { %v12465_v35 = vpop.f32.mrf.mxu1  ;;  %v12574_v25 = vpop.f32.mrf.mxu0 }
 0xb34   : > { %v8081_v12 = vadd.f32 %v8049_v0, %v7760_v59  ;;  %v17524_v33 = vadd.f32 %v8321_v54, %v8080_v6  ;;  %v12466_v63 = vadd.f32 %v12465_v35, %v12464_v58  ;;  %v12575_v22 = vadd.f32 %v12574_v25, %v12573_v34  ;;  %v19354_v34 = vld [vmem:[#allocation104_spill] sm:$0xff]  ;;  %v19355_v59 = vld [vmem:[#allocation113_spill] sm:$0xff] }
 0xb35   : > { %v12467_v36 = vpop.f32.mrf.mxu1  ;;  %v12576_v48 = vpop.f32.mrf.mxu0  ;;  %v7763_v58 = vadd.f32 %v17383_v9, %v19353_v38  ;;  %v19362_v38 = vld [vmem:[#allocation184_spill] sm:$0xff] }
 0xb36   : > { %v8050_v62 = vmul.f32 %v12466_v63, %v19348_v20  ;;  %v8322_v1 = vmul.f32 %v12575_v22, %v19349_v24  ;;  %v19358_v20 = vld [vmem:[#allocation112_spill] sm:$0xff] }
 0xb37   : > { %v12468_v53 = vpop.f32.mrf.mxu1  ;;  %v12577_v19 = vpop.f32.mrf.mxu0 }
 0xb38   : > { %v8082_v29 = vadd.f32 %v8050_v62, %v7761_v13  ;;  %v17530_v11 = vadd.f32 %v8322_v1, %v8081_v12  ;;  %v12469_v55 = vadd.f32 %v12468_v53, %v12467_v36  ;;  %v12578_v56 = vadd.f32 %v12577_v19, %v12576_v48  ;;  %v19356_v36 = vld [vmem:[#allocation181_spill] sm:$0xff] }
 0xb39   : > { %v12470_v51 = vpop.f32.mrf.mxu1  ;;  %v12579_v18 = vpop.f32.mrf.mxu0  ;;  %v7764_v48 = vadd.f32 %v17383_v9, %v19356_v36 }
 0xb3a   : > { %v8051_v50 = vmul.f32 %v12469_v55, %v19351_v57  ;;  %v8323_v5 = vmul.f32 %v12578_v56, %v19352_v17 }
 0xb3b   : > { %v12471_v23 = vpop.f32.mrf.mxu1  ;;  %v12580_v15 = vpop.f32.mrf.mxu0 }
 0xb3c   : > { %v8083_v2 = vadd.f32 %v8051_v50, %v7762_v32  ;;  %v17536_v14 = vadd.f32 %v8323_v5, %v8082_v29  ;;  %v12472_v47 = vadd.f32 %v12471_v23, %v12470_v51  ;;  %v12581_v52 = vadd.f32 %v12580_v15, %v12579_v18  ;;  %v19359_v18 = vld [vmem:[#allocation142_spill] sm:$0xff]  ;;  %v19360_v32 = vld [vmem:[#allocation88_spill] sm:$0xff]  ;;  %v19361_v50 = vld [vmem:[#allocation97_spill] sm:$0xff] }
 0xb3d   : > { %v12473_v6 = vpop.f32.mrf.mxu1  ;;  %v12582_v27 = vpop.f32.mrf.mxu0  ;;  %v7765_v41 = vadd.f32 %v17383_v9, %v19359_v18 }
 0xb3e   : > { %v8052_v43 = vmul.f32 %v12472_v47, %v19354_v34  ;;  %v8324_v16 = vmul.f32 %v12581_v52, %v19355_v59  ;;  %v19363_v34 = vld [vmem:[#allocation73_spill] sm:$0xff]  ;;  %v19364_v59 = vld [vmem:[#allocation96_spill] sm:$0xff] }
 0xb3f   : > { %v12474_v0 = vpop.f32.mrf.mxu1  ;;  %v12583_v21 = vpop.f32.mrf.mxu0 }
 0xb40   : > { %v8084_v54 = vadd.f32 %v8052_v43, %v7763_v58  ;;  %v17542_v35 = vadd.f32 %v8324_v16, %v8083_v2  ;;  %v12475_v25 = vadd.f32 %v12474_v0, %v12473_v6  ;;  %v12584_v12 = vadd.f32 %v12583_v21, %v12582_v27 }
 0xb41   : > { %v12476_v63 = vpop.f32.mrf.mxu1  ;;  %v12585_v22 = vpop.f32.mrf.mxu0  ;;  %v7766_v58 = vadd.f32 %v17383_v9, %v19362_v38 }
 0xb42   : > { %v8053_v13 = vmul.f32 %v12475_v25, %v19357_v60  ;;  %v8325_v62 = vmul.f32 %v12584_v12, %v19358_v20 }
 0xb43   : > { %v12477_v24 = vpop.f32.mrf.mxu1  ;;  %v12586_v1 = vpop.f32.mrf.mxu0 }
 0xb44   : > { %v8085_v53 = vadd.f32 %v8053_v13, %v7764_v48  ;;  %v17548_v19 = vadd.f32 %v8325_v62, %v8084_v54  ;;  %v12478_v29 = vadd.f32 %v12477_v24, %v12476_v63  ;;  %v12587_v55 = vadd.f32 %v12586_v1, %v12585_v22  ;;  %v19365_v48 = vld [vmem:[#allocation145_spill] sm:$0xff]  ;;  %v19366_v13 = vld [vmem:[#allocation72_spill] sm:$0xff] }
 0xb45   : > { %v12479_v56 = vpop.f32.mrf.mxu1  ;;  %v12588_v51 = vpop.f32.mrf.mxu0  ;;  %v7767_v60 = vadd.f32 %v17383_v9, %v19365_v48  ;;  %v19367_v62 = vld [vmem:[#allocation81_spill] sm:$0xff] }
 0xb46   : > { %v8054_v57 = vmul.f32 %v12478_v29, %v19360_v32  ;;  %v8326_v17 = vmul.f32 %v12587_v55, %v19361_v50  ;;  %v19368_v32 = vld [vmem:[#allocation187_spill] sm:$0xff]  ;;  %v19369_v50 = vld [vmem:[#allocation57_spill] sm:$0xff] }
 0xb47   : > { %v12480_v5 = vpop.f32.mrf.mxu1  ;;  %v12589_v23 = vpop.f32.mrf.mxu0 }
 0xb48   : > { %v8086_v15 = vadd.f32 %v8054_v57, %v7765_v41  ;;  %v17554_v2 = vadd.f32 %v8326_v17, %v8085_v53  ;;  %v12481_v47 = vadd.f32 %v12480_v5, %v12479_v56  ;;  %v12590_v52 = vadd.f32 %v12589_v23, %v12588_v51  ;;  %v19370_v5 = vld [vmem:[#allocation80_spill] sm:$0xff] }
 0xb49   : > { %v12482_v6 = vpop.f32.mrf.mxu1  ;;  %v12591_v27 = vpop.f32.mrf.mxu0  ;;  %v7768_v57 = vadd.f32 %v17383_v9, %v19368_v32 }
 0xb4a   : > { %v8055_v43 = vmul.f32 %v12481_v47, %v19363_v34  ;;  %v8327_v16 = vmul.f32 %v12590_v52, %v19364_v59 }
 0xb4b   : > { %v12483_v0 = vpop.f32.mrf.mxu1  ;;  %v12592_v21 = vpop.f32.mrf.mxu0 }
 0xb4c   : > { %v8087_v54 = vadd.f32 %v8055_v43, %v7766_v58  ;;  %v17560_v25 = vadd.f32 %v8327_v16, %v8086_v15  ;;  %v12484_v12 = vadd.f32 %v12483_v0, %v12482_v6  ;;  %v12593_v63 = vadd.f32 %v12592_v21, %v12591_v27  ;;  %v19371_v43 = vld [vmem:[#allocation190_spill] sm:$0xff]  ;;  %v19372_v16 = vld [vmem:[#allocation56_spill] sm:$0xff]  ;;  %v19373_v21 = vld [vmem:[#allocation65_spill] sm:$0xff] }
 0xb4d   : > { %v12485_v22 = vpop.f32.mrf.mxu1  ;;  %v12594_v36 = vpop.f32.mrf.mxu0  ;;  %v7769_v59 = vadd.f32 %v17383_v9, %v19371_v43 }
 0xb4e   : > { %v8056_v20 = vmul.f32 %v12484_v12, %v19366_v13  ;;  %v8328_v24 = vmul.f32 %v12593_v63, %v19367_v62  ;;  %v19374_v62 = vld [vmem:[#allocation147_spill] sm:$0xff] }
 0xb4f   : > { %v12486_v1 = vpop.f32.mrf.mxu1  ;;  %v12595_v53 = vpop.f32.mrf.mxu0 }
 0xb50   : > { %v8088_v29 = vadd.f32 %v8056_v20, %v7767_v60  ;;  %v17566_v55 = vadd.f32 %v8328_v24, %v8087_v54  ;;  %v12487_v56 = vadd.f32 %v12486_v1, %v12485_v22  ;;  %v12596_v51 = vadd.f32 %v12595_v53, %v12594_v36  ;;  %v19375_v1 = vld [vmem:[#allocation41_spill] sm:$0xff] }
 0xb51   : > { %v12488_v18 = vpop.f32.mrf.mxu1  ;;  %v12597_v41 = vpop.f32.mrf.mxu0  ;;  %v7770_v24 = vadd.f32 %v17383_v9, %v19374_v62 }
 0xb52   : > { %v8057_v17 = vmul.f32 %v12487_v56, %v19369_v50  ;;  %v8329_v23 = vmul.f32 %v12596_v51, %v19370_v5 }
 0xb53   : > { %v12489_v15 = vpop.f32.mrf.mxu1  ;;  %v12598_v47 = vpop.f32.mrf.mxu0 }
 0xb54   : > { %v8089_v52 = vadd.f32 %v8057_v17, %v7768_v57  ;;  %v17572_v6 = vadd.f32 %v8329_v23, %v8088_v29  ;;  %v12490_v27 = vadd.f32 %v12489_v15, %v12488_v18  ;;  %v12599_v38 = vadd.f32 %v12598_v47, %v12597_v41  ;;  %v19376_v29 = vld [vmem:[#allocation64_spill] sm:$0xff] }
 0xb55   : > { %v12491_v58 = vpop.f32.mrf.mxu1  ;;  %v12600_v34 = vpop.f32.mrf.mxu0  ;;  %v19377_v23 = vld [vmem:[#allocation148_spill] sm:$0xff] }
 0xb56   : > { %v8058_v0 = vmul.f32 %v12490_v27, %v19372_v16  ;;  %v8330_v54 = vmul.f32 %v12599_v38, %v19373_v21  ;;  %v7771_v15 = vadd.f32 %v17383_v9, %v19377_v23  ;;  %v19378_v47 = vld [vmem:[#allocation40_spill] sm:$0xff]  ;;  %v19379_v27 = vld [vmem:[#allocation49_spill] sm:$0xff] }
 0xb57   : > { %v12492_v12 = vpop.f32.mrf.mxu1  ;;  %v12601_v63 = vpop.f32.mrf.mxu0 }
 0xb58   : > { %v8090_v22 = vadd.f32 %v8058_v0, %v7769_v59  ;;  %v17578_v36 = vadd.f32 %v8330_v54, %v8089_v52  ;;  %v12493_v48 = vadd.f32 %v12492_v12, %v12491_v58  ;;  %v12602_v60 = vadd.f32 %v12601_v63, %v12600_v34  ;;  %v19380_v12 = vld [vmem:[#allocation192_spill] sm:$0xff] }
 0xb59   : > { %v12494_v13 = vpop.f32.mrf.mxu1  ;;  %v12603_v20 = vpop.f32.mrf.mxu0  ;;  %v7772_v63 = vadd.f32 %v17383_v9, %v19380_v12 }
 0xb5a   : > { %v8059_v53 = vmul.f32 %v12493_v48, %v19375_v1  ;;  %v8331_v56 = vmul.f32 %v12602_v60, %v19376_v29  ;;  %v19382_v60 = vld [vmem:[#allocation48_spill] sm:$0xff] }
 0xb5b   : > { %v12495_v51 = vpop.f32.mrf.mxu1  ;;  %v12604_v18 = vpop.f32.mrf.mxu0 }
 0xb5c   : > { %v8091_v41 = vadd.f32 %v8059_v53, %v7770_v24  ;;  %v17584_v32 = vadd.f32 %v8331_v56, %v8090_v22  ;;  %v12496_v57 = vadd.f32 %v12495_v51, %v12494_v13  ;;  %v12605_v50 = vadd.f32 %v12604_v18, %v12603_v20  ;;  %v19381_v22 = vld [vmem:[#allocation33_spill] sm:$0xff] }
 0xb5d   : > { %v12497_v17 = vpop.f32.mrf.mxu1  ;;  %v12606_v5 = vpop.f32.mrf.mxu0  ;;  %v19383_v18 = vld [vmem:[#allocation149_spill] sm:$0xff] }
 0xb5e   : > { %v8060_v52 = vmul.f32 %v12496_v57, %v19378_v47  ;;  %v8332_v38 = vmul.f32 %v12605_v50, %v19379_v27  ;;  %v19384_v57 = vld [vmem:[#allocation32_spill] sm:$0xff] }
 0xb5f   : > { %v12498_v58 = vpop.f32.mrf.mxu1  ;;  %v12607_v34 = vpop.f32.mrf.mxu0 }
 0xb60   : > { %v8092_v43 = vadd.f32 %v8060_v52, %v7771_v15  ;;  %v17590_v59 = vadd.f32 %v8332_v38, %v8091_v41  ;;  %v12499_v16 = vadd.f32 %v12498_v58, %v12497_v17  ;;  %v12608_v0 = vadd.f32 %v12607_v34, %v12606_v5  ;;  %v19385_v17 = vld [vmem:[#allocation37_spill] sm:$0xff] }
 0xb61   : > { %v12500_v21 = vpop.f32.mrf.mxu1  ;;  %v12609_v54 = vpop.f32.mrf.mxu0  ;;  %v7773_v41 = vadd.f32 %v17383_v9, %v19383_v18 }
 0xb62   : > { %v8061_v48 = vmul.f32 %v12499_v16, %v19381_v22  ;;  %v8333_v13 = vmul.f32 %v12608_v0, %v19382_v60  ;;  %v19387_v0 = vld [vmem:[#allocation141_spill] sm:$0xff] }
 0xb63   : > { %v12501_v20 = vpop.f32.mrf.mxu1  ;;  %v12610_v62 = vpop.f32.mrf.mxu0 }
 0xb64   : > { %v8093_v24 = vadd.f32 %v8061_v48, %v7772_v63  ;;  %v17596_v1 = vadd.f32 %v8333_v13, %v8092_v43  ;;  %v12502_v53 = vadd.f32 %v12501_v20, %v12500_v21  ;;  %v12611_v29 = vadd.f32 %v12610_v62, %v12609_v54  ;;  %v19386_v43 = vld [vmem:[#allocation36_spill] sm:$0xff]  ;;  %v19388_v20 = vld [vmem:[#allocation30_spill] sm:$0xff] }
 0xb65   : > { %v12612_v56 = vpop.f32.mrf.mxu0  ;;  %v12631_v51 = vpop.f32.mrf.mxu1 }
 0xb66   : > { %v8062_v50 = vmul.f32 %v12502_v53, %v19384_v57  ;;  %v8334_v5 = vmul.f32 %v12611_v29, %v19385_v17 }
 0xb67   : > { %v12613_v23 = vpop.f32.mrf.mxu0  ;;  %v12632_v15 = vpop.f32.mrf.mxu1 }
 0xb68   : > { %v8094_v47 = vadd.f32 %v8062_v50, %v7773_v41  ;;  %v17602_v52 = vadd.f32 %v8334_v5, %v8093_v24  ;;  %v12614_v27 = vadd.f32 %v12613_v23, %v12612_v56  ;;  %v12633_v38 = vadd.f32 %v12632_v15, %v12631_v51  ;;  %v19389_v24 = vld [vmem:[#allocation144_spill] sm:$0xff]  ;;  %v19390_v5 = vld [vmem:[#allocation10_spill] sm:$0xff] }
 0xb69   : > { %v12634_v58 = vpop.f32.mrf.mxu1  ;;  %v12743_v34 = vpop.f32.mrf.mxu0 }
 0xb6a   : > { %v8335_v16 = vmul.f32 %v12614_v27, %v19386_v43  ;;  %v8577_v21 = vmul.f32 %v12633_v38, %v19387_v0 }
 0xb6b   : > { %v12635_v54 = vpop.f32.mrf.mxu1  ;;  %v12744_v12 = vpop.f32.mrf.mxu0 }
 0xb6c   : > { %v17606_v9 = vadd.f32 %v8335_v16, %v8094_v47  ;;  %v8609_v63 = vadd.f32 %v8577_v21, %v17396_v7  ;;  %v12636_v22 = vadd.f32 %v12635_v54, %v12634_v58  ;;  %v12745_v48 = vadd.f32 %v12744_v12, %v12743_v34  ;;  %v19391_v7 = vld [vmem:[#allocation146_spill] sm:$0xff] }
 0xb6d   : > { %v12637_v60 = vpop.f32.mrf.mxu1  ;;  %v12746_v13 = vpop.f32.mrf.mxu0  ;;  %v19393_v12 = vld [vmem:[#allocation26_spill] sm:$0xff] }
 0xb6e   : > { %v8578_v62 = vmul.f32 %v12636_v22, %v19388_v20  ;;  %v8802_v53 = vmul.f32 %v12745_v48, %v19389_v24 }
 0xb6f   : > { %v12638_v29 = vpop.f32.mrf.mxu1  ;;  %v12747_v56 = vpop.f32.mrf.mxu0 }
 0xb70   : > { %v8610_v51 = vadd.f32 %v8578_v62, %v17404_v61  ;;  %v8834_v18 = vadd.f32 %v8802_v53, %v8609_v63  ;;  %v12639_v41 = vadd.f32 %v12638_v29, %v12637_v60  ;;  %v12748_v57 = vadd.f32 %v12747_v56, %v12746_v13  ;;  %v19392_v61 = vld [vmem:[#allocation9_spill] sm:$0xff]  ;;  %v19394_v56 = vld [vmem:[#allocation127_spill] sm:$0xff] }
 0xb71   : > { %v12640_v50 = vpop.f32.mrf.mxu1  ;;  %v12749_v17 = vpop.f32.mrf.mxu0 }
 0xb72   : > { %v8579_v23 = vmul.f32 %v12639_v41, %v19390_v5  ;;  %v8803_v15 = vmul.f32 %v12748_v57, %v19391_v7  ;;  %v8866_v22 = vmax.f32 %v8834_v18, 0.0  ;;  %v19395_v41 = vld [vmem:[#allocation27_spill] sm:$0xff] }
 0xb73   : > { %v12641_v47 = vpop.f32.mrf.mxu1  ;;  %v12750_v27 = vpop.f32.mrf.mxu0 }
 0xb74   : > { %v8611_v38 = vadd.f32 %v8579_v23, %v17412_v4  ;;  %v8835_v58 = vadd.f32 %v8803_v15, %v8610_v51  ;;  %v12642_v34 = vadd.f32 %v12641_v47, %v12640_v50  ;;  %v12751_v43 = vadd.f32 %v12750_v27, %v12749_v17  ;;  %v19396_v27 = vld [vmem:[#allocation126_spill] sm:$0xff] }
 0xb75   : > { %v12643_v16 = vpop.f32.mrf.mxu1  ;;  %v12752_v0 = vpop.f32.mrf.mxu0 }
 0xb76   : > { %v8867_v21 = vmax.f32 %v8835_v58, 0.0  ;;  %v8580_v54 = vmul.f32 %v12642_v34, %v19392_v61  ;;  %v8804_v63 = vmul.f32 %v12751_v43, %v19393_v12  ;;  %v19397_v58 = vld [vmem:[#allocation132_spill] sm:$0xff] }
 0xb77   : > { %v12644_v48 = vpop.f32.mrf.mxu1  ;;  %v12753_v60 = vpop.f32.mrf.mxu0 }
 0xb78   : > { %v8612_v13 = vadd.f32 %v8580_v54, %v17420_v28  ;;  %v8836_v20 = vadd.f32 %v8804_v63, %v8611_v38  ;;  %v12645_v62 = vadd.f32 %v12644_v48, %v12643_v16  ;;  %v12754_v24 = vadd.f32 %v12753_v60, %v12752_v0  ;;  %v19398_v48 = vld [vmem:[#allocation111_spill] sm:$0xff] }
 0xb79   : > { %v12646_v53 = vpop.f32.mrf.mxu1  ;;  %v12755_v4 = vpop.f32.mrf.mxu0  ;;  %v17618_v29 = vpack.c.bf16 %v8867_v21, %v8866_v22 }
 0xb7a   : > { %v8581_v51 = vmul.f32 %v12645_v62, %v19394_v56  ;;  %v8805_v57 = vmul.f32 %v12754_v24, %v19395_v41  ;;  %v8868_v43 = vmax.f32 %v8836_v20, 0.0 }
 0xb7b   : > { %v12647_v50 = vpop.f32.mrf.mxu1  ;;  %v12756_v17 = vpop.f32.mrf.mxu0 }
 0xb7c   : > { %v8613_v5 = vadd.f32 %v8581_v51, %v17428_v40  ;;  %v8837_v18 = vadd.f32 %v8805_v57, %v8612_v13  ;;  %v12648_v23 = vadd.f32 %v12647_v50, %v12646_v53  ;;  %v12757_v7 = vadd.f32 %v12756_v17, %v12755_v4  ;;  %v19399_v13 = vld [vmem:[#allocation13_spill] sm:$0xff]  ;;  %v19400_v50 = vld [vmem:[#allocation110_spill] sm:$0xff] }
 0xb7d   : > { %v12649_v15 = vpop.f32.mrf.mxu1  ;;  %v12758_v28 = vpop.f32.mrf.mxu0 }
 0xb7e   : > { %v8869_v47 = vmax.f32 %v8837_v18, 0.0  ;;  %v8582_v38 = vmul.f32 %v12648_v23, %v19396_v27  ;;  %v8806_v34 = vmul.f32 %v12757_v7, %v19397_v58 }
 0xb7f   : > { %v12650_v16 = vpop.f32.mrf.mxu1  ;;  %v12759_v0 = vpop.f32.mrf.mxu0 }
 0xb80   : > { %v8614_v21 = vadd.f32 %v8582_v38, %v17436_v8  ;;  %v8838_v61 = vadd.f32 %v8806_v34, %v8613_v5  ;;  %v12651_v54 = vadd.f32 %v12650_v16, %v12649_v15  ;;  %v12760_v12 = vadd.f32 %v12759_v0, %v12758_v28  ;;  %v19401_v5 = vld [vmem:[#allocation119_spill] sm:$0xff]  ;;  %v19403_v0 = vld [vmem:[#allocation118_spill] sm:$0xff] }
 0xb81   : > { %v12652_v63 = vpop.f32.mrf.mxu1  ;;  %v12761_v40 = vpop.f32.mrf.mxu0  ;;  %v17626_v22 = vpack.c.bf16 %v8869_v47, %v8868_v43  ;;  %v19402_v43 = vld [vmem:[#allocation95_spill] sm:$0xff] }
 0xb82   : > { %v8583_v60 = vmul.f32 %v12651_v54, %v19398_v48  ;;  %v8807_v62 = vmul.f32 %v12760_v12, %v19399_v13  ;;  %v8870_v23 = vmax.f32 %v8838_v61, 0.0 }
 0xb83   : > { %v12653_v24 = vpop.f32.mrf.mxu1  ;;  %v12762_v53 = vpop.f32.mrf.mxu0 }
 0xb84   : > { %v8615_v4 = vadd.f32 %v8583_v60, %v17444_v37  ;;  %v8839_v20 = vadd.f32 %v8807_v62, %v8614_v21  ;;  %v12654_v56 = vadd.f32 %v12653_v24, %v12652_v63  ;;  %v12763_v51 = vadd.f32 %v12762_v53, %v12761_v40  ;;  %v19404_v62 = vld [vmem:[#allocation94_spill] sm:$0xff]  ;;  %v19405_v53 = vld [vmem:[#allocation103_spill] sm:$0xff] }
 0xb85   : > { %v12655_v41 = vpop.f32.mrf.mxu1  ;;  %v12764_v8 = vpop.f32.mrf.mxu0 }
 0xb86   : > { %v8871_v57 = vmax.f32 %v8839_v20, 0.0  ;;  %v8584_v17 = vmul.f32 %v12654_v56, %v19400_v50  ;;  %v8808_v18 = vmul.f32 %v12763_v51, %v19401_v5 }
 0xb87   : > { %v12656_v7 = vpop.f32.mrf.mxu1  ;;  %v12765_v15 = vpop.f32.mrf.mxu0 }
 0xb88   : > { %v8616_v28 = vadd.f32 %v8584_v17, %v17452_v10  ;;  %v8840_v47 = vadd.f32 %v8808_v18, %v8615_v4  ;;  %v12657_v27 = vadd.f32 %v12656_v7, %v12655_v41  ;;  %v12766_v38 = vadd.f32 %v12765_v15, %v12764_v8  ;;  %v19406_v18 = vld [vmem:[#allocation79_spill] sm:$0xff]  ;;  %v19407_v7 = vld [vmem:[#allocation102_spill] sm:$0xff] }
 0xb89   : > { %v12658_v58 = vpop.f32.mrf.mxu1  ;;  %v12767_v37 = vpop.f32.mrf.mxu0  ;;  %v17634_v34 = vpack.c.bf16 %v8871_v57, %v8870_v23 }
 0xb8a   : > { %v8585_v16 = vmul.f32 %v12657_v27, %v19402_v43  ;;  %v8809_v21 = vmul.f32 %v12766_v38, %v19403_v0  ;;  %v8872_v20 = vmax.f32 %v8840_v47, 0.0  ;;  %v19408_v0 = vld [vmem:[#allocation78_spill] sm:$0xff] }
 0xb8b   : > { %v12659_v54 = vpop.f32.mrf.mxu1  ;;  %v12768_v12 = vpop.f32.mrf.mxu0 }
 0xb8c   : > { %v8617_v63 = vadd.f32 %v8585_v16, %v17460_v44  ;;  %v8841_v61 = vadd.f32 %v8809_v21, %v8616_v28  ;;  %v12660_v40 = vadd.f32 %v12659_v54, %v12658_v58  ;;  %v12769_v48 = vadd.f32 %v12768_v12, %v12767_v37  ;;  %v19409_v54 = vld [vmem:[#allocation87_spill] sm:$0xff] }
 0xb8d   : > { %v12661_v60 = vpop.f32.mrf.mxu1  ;;  %v12770_v10 = vpop.f32.mrf.mxu0 }
 0xb8e   : > { %v8873_v13 = vmax.f32 %v8841_v61, 0.0  ;;  %v8586_v24 = vmul.f32 %v12660_v40, %v19404_v62  ;;  %v8810_v4 = vmul.f32 %v12769_v48, %v19405_v53  ;;  %v19410_v53 = vld [vmem:[#allocation63_spill] sm:$0xff] }
 0xb8f   : > { %v12662_v56 = vpop.f32.mrf.mxu1  ;;  %v12771_v51 = vpop.f32.mrf.mxu0 }
 0xb90   : > { %v8618_v41 = vadd.f32 %v8586_v24, %v17468_v31  ;;  %v8842_v8 = vadd.f32 %v8810_v4, %v8617_v63  ;;  %v12663_v57 = vadd.f32 %v12662_v56, %v12661_v60  ;;  %v12772_v50 = vadd.f32 %v12771_v51, %v12770_v10 }
 0xb91   : > { %v12664_v17 = vpop.f32.mrf.mxu1  ;;  %v12773_v44 = vpop.f32.mrf.mxu0  ;;  %v17642_v5 = vpack.c.bf16 %v8873_v13, %v8872_v20  ;;  %v19411_v20 = vld [vmem:[#allocation86_spill] sm:$0xff] }
 0xb92   : > { %v8587_v23 = vmul.f32 %v12663_v57, %v19406_v18  ;;  %v8811_v15 = vmul.f32 %v12772_v50, %v19407_v7  ;;  %v8874_v63 = vmax.f32 %v8842_v8, 0.0 }
 0xb93   : > { %v12665_v28 = vpop.f32.mrf.mxu1  ;;  %v12774_v27 = vpop.f32.mrf.mxu0 }
 0xb94   : > { %v8619_v38 = vadd.f32 %v8587_v23, %v17476_v3  ;;  %v8843_v47 = vadd.f32 %v8811_v15, %v8618_v41  ;;  %v12666_v58 = vadd.f32 %v12665_v28, %v12664_v17  ;;  %v12775_v37 = vadd.f32 %v12774_v27, %v12773_v44  ;;  %v19412_v23 = vld [vmem:[#allocation62_spill] sm:$0xff]  ;;  %v19413_v15 = vld [vmem:[#allocation71_spill] sm:$0xff] }
 0xb95   : > { %v12667_v43 = vpop.f32.mrf.mxu1  ;;  %v12776_v31 = vpop.f32.mrf.mxu0 }
 0xb96   : > { %v8875_v16 = vmax.f32 %v8843_v47, 0.0  ;;  %v8588_v21 = vmul.f32 %v12666_v58, %v19408_v0  ;;  %v8812_v12 = vmul.f32 %v12775_v37, %v19409_v54 }
 0xb97   : > { %v12668_v61 = vpop.f32.mrf.mxu1  ;;  %v12777_v40 = vpop.f32.mrf.mxu0 }
 0xb98   : > { %v8620_v48 = vadd.f32 %v8588_v21, %v17484_v46  ;;  %v8844_v60 = vadd.f32 %v8812_v12, %v8619_v38  ;;  %v12669_v10 = vadd.f32 %v12668_v61, %v12667_v43  ;;  %v12778_v13 = vadd.f32 %v12777_v40, %v12776_v31  ;;  %v19414_v21 = vld [vmem:[#allocation47_spill] sm:$0xff]  ;;  %v19415_v12 = vld [vmem:[#allocation70_spill] sm:$0xff] }
 0xb99   : > { %v12670_v62 = vpop.f32.mrf.mxu1  ;;  %v12779_v3 = vpop.f32.mrf.mxu0  ;;  %v17650_v24 = vpack.c.bf16 %v8875_v16, %v8874_v63 }
 0xb9a   : > { %v8589_v4 = vmul.f32 %v12669_v10, %v19410_v53  ;;  %v8813_v56 = vmul.f32 %v12778_v13, %v19411_v20  ;;  %v8876_v27 = vmax.f32 %v8844_v60, 0.0  ;;  %v19416_v53 = vld [vmem:[#allocation46_spill] sm:$0xff]  ;;  %v19417_v20 = vld [vmem:[#allocation55_spill] sm:$0xff] }
 0xb9b   : > { %v12671_v51 = vpop.f32.mrf.mxu1  ;;  %v12780_v41 = vpop.f32.mrf.mxu0 }
 0xb9c   : > { %v8621_v57 = vadd.f32 %v8589_v4, %v17492_v39  ;;  %v8845_v8 = vadd.f32 %v8813_v56, %v8620_v48  ;;  %v12672_v50 = vadd.f32 %v12671_v51, %v12670_v62  ;;  %v12781_v17 = vadd.f32 %v12780_v41, %v12779_v3 }
 0xb9d   : > { %v12673_v44 = vpop.f32.mrf.mxu1  ;;  %v12782_v46 = vpop.f32.mrf.mxu0 }
 0xb9e   : > { %v8877_v18 = vmax.f32 %v8845_v8, 0.0  ;;  %v8590_v7 = vmul.f32 %v12672_v50, %v19412_v23  ;;  %v8814_v28 = vmul.f32 %v12781_v17, %v19413_v15  ;;  %v19418_v23 = vld [vmem:[#allocation28_spill] sm:$0xff]  ;;  %v19419_v15 = vld [vmem:[#allocation54_spill] sm:$0xff] }
 0xb9f   : > { %v12674_v38 = vpop.f32.mrf.mxu1  ;;  %v12783_v47 = vpop.f32.mrf.mxu0 }
 0xba0   : > { %v8622_v58 = vadd.f32 %v8590_v7, %v17500_v49  ;;  %v8846_v37 = vadd.f32 %v8814_v28, %v8621_v57  ;;  %v12675_v43 = vadd.f32 %v12674_v38, %v12673_v44  ;;  %v12784_v31 = vadd.f32 %v12783_v47, %v12782_v46 }
 0xba1   : > { %v12676_v16 = vpop.f32.mrf.mxu1  ;;  %v12785_v39 = vpop.f32.mrf.mxu0  ;;  %v17658_v0 = vpack.c.bf16 %v8877_v18, %v8876_v27 }
 0xba2   : > { %v8591_v54 = vmul.f32 %v12675_v43, %v19414_v21  ;;  %v8815_v63 = vmul.f32 %v12784_v31, %v19415_v12  ;;  %v8878_v51 = vmax.f32 %v8846_v37, 0.0 }
 0xba3   : > { %v12677_v61 = vpop.f32.mrf.mxu1  ;;  %v12786_v40 = vpop.f32.mrf.mxu0 }
 0xba4   : > { %v8623_v48 = vadd.f32 %v8591_v54, %v17506_v42  ;;  %v8847_v60 = vadd.f32 %v8815_v63, %v8622_v58  ;;  %v12678_v10 = vadd.f32 %v12677_v61, %v12676_v16  ;;  %v12787_v13 = vadd.f32 %v12786_v40, %v12785_v39  ;;  %v19420_v39 = vld [vmem:[#allocation29_spill] sm:$0xff]  ;;  %v19421_v54 = vld [vmem:[#allocation31_spill] sm:$0xff] }
 0xba5   : > { %v12679_v62 = vpop.f32.mrf.mxu1  ;;  %v12788_v49 = vpop.f32.mrf.mxu0 }
 0xba6   : > { %v8879_v3 = vmax.f32 %v8847_v60, 0.0  ;;  %v8592_v4 = vmul.f32 %v12678_v10, %v19416_v53  ;;  %v8816_v56 = vmul.f32 %v12787_v13, %v19417_v20 }
 0xba7   : > { %v12680_v41 = vpop.f32.mrf.mxu1  ;;  %v12789_v57 = vpop.f32.mrf.mxu0 }
 0xba8   : > { %v8624_v8 = vadd.f32 %v8592_v4, %v17512_v45  ;;  %v8848_v50 = vadd.f32 %v8816_v56, %v8623_v48  ;;  %v12681_v17 = vadd.f32 %v12680_v41, %v12679_v62  ;;  %v12790_v44 = vadd.f32 %v12789_v57, %v12788_v49  ;;  %v19423_v4 = vld [vmem:[#allocation143_spill] sm:$0xff] }
 0xba9   : > { %v12682_v46 = vpop.f32.mrf.mxu1  ;;  %v12791_v42 = vpop.f32.mrf.mxu0  ;;  %v17666_v18 = vpack.c.bf16 %v8879_v3, %v8878_v51  ;;  %v19422_v3 = vld [vmem:[#allocation134_spill] sm:$0xff] }
 0xbaa   : > { %v8593_v7 = vmul.f32 %v12681_v17, %v19418_v23  ;;  %v8817_v28 = vmul.f32 %v12790_v44, %v19419_v15  ;;  %v8880_v63 = vmax.f32 %v8848_v50, 0.0  ;;  %v19424_v44 = vld [vmem:[#allocation15_spill] sm:$0xff] }
 0xbab   : > { %v12683_v27 = vpop.f32.mrf.mxu1  ;;  %v12792_v38 = vpop.f32.mrf.mxu0 }
 0xbac   : > { %v8625_v47 = vadd.f32 %v8593_v7, %v17518_v26  ;;  %v8849_v58 = vadd.f32 %v8817_v28, %v8624_v8  ;;  %v12684_v37 = vadd.f32 %v12683_v27, %v12682_v46  ;;  %v12793_v43 = vadd.f32 %v12792_v38, %v12791_v42  ;;  %v19425_v42 = vld [vmem:[#allocation136_spill] sm:$0xff] }
 0xbad   : > { %v12685_v31 = vpop.f32.mrf.mxu1  ;;  %v12794_v45 = vpop.f32.mrf.mxu0 }
 0xbae   : > { %v8881_v16 = vmax.f32 %v8849_v58, 0.0  ;;  %v8594_v21 = vmul.f32 %v12684_v37, %v19420_v39  ;;  %v8818_v12 = vmul.f32 %v12793_v43, %v19421_v54  ;;  %v19427_v39 = vld [vmem:[#allocation19_spill] sm:$0xff] }
 0xbaf   : > { %v12686_v61 = vpop.f32.mrf.mxu1  ;;  %v12795_v40 = vpop.f32.mrf.mxu0 }
 0xbb0   : > { %v8626_v48 = vadd.f32 %v8594_v21, %v17524_v33  ;;  %v8850_v60 = vadd.f32 %v8818_v12, %v8625_v47  ;;  %v12687_v10 = vadd.f32 %v12686_v61, %v12685_v31  ;;  %v12796_v13 = vadd.f32 %v12795_v40, %v12794_v45  ;;  %v19426_v45 = vld [vmem:[#allocation123_spill] sm:$0xff] }
 0xbb1   : > { %v12688_v62 = vpop.f32.mrf.mxu1  ;;  %v12797_v26 = vpop.f32.mrf.mxu0  ;;  %v17674_v49 = vpack.c.bf16 %v8881_v16, %v8880_v63 }
 0xbb2   : > { %v8595_v53 = vmul.f32 %v12687_v10, %v19422_v3  ;;  %v8819_v20 = vmul.f32 %v12796_v13, %v19423_v4  ;;  %v8882_v15 = vmax.f32 %v8850_v60, 0.0  ;;  %v19428_v10 = vld [vmem:[#allocation122_spill] sm:$0xff] }
 0xbb3   : > { %v12689_v56 = vpop.f32.mrf.mxu1  ;;  %v12798_v51 = vpop.f32.mrf.mxu0 }
 0xbb4   : > { %v8627_v41 = vadd.f32 %v8595_v53, %v17530_v11  ;;  %v8851_v57 = vadd.f32 %v8819_v20, %v8626_v48  ;;  %v12690_v8 = vadd.f32 %v12689_v56, %v12688_v62  ;;  %v12799_v50 = vadd.f32 %v12798_v51, %v12797_v26  ;;  %v19429_v62 = vld [vmem:[#allocation130_spill] sm:$0xff] }
 0xbb5   : > { %v12691_v17 = vpop.f32.mrf.mxu1  ;;  %v12800_v33 = vpop.f32.mrf.mxu0 }
 0xbb6   : > { %v8596_v46 = vmul.f32 %v12690_v8, %v19424_v44  ;;  %v8820_v23 = vmul.f32 %v12799_v50, %v19425_v42  ;;  %v8883_v7 = vmax.f32 %v8851_v57, 0.0 }
 0xbb7   : > { %v12692_v28 = vpop.f32.mrf.mxu1  ;;  %v12801_v27 = vpop.f32.mrf.mxu0 }
 0xbb8   : > { %v8628_v38 = vadd.f32 %v8596_v46, %v17536_v14  ;;  %v8852_v47 = vadd.f32 %v8820_v23, %v8627_v41  ;;  %v12693_v58 = vadd.f32 %v12692_v28, %v12691_v17  ;;  %v12802_v37 = vadd.f32 %v12801_v27, %v12800_v33  ;;  %v19430_v17 = vld [vmem:[#allocation11_spill] sm:$0xff] }
 0xbb9   : > { %v12694_v43 = vpop.f32.mrf.mxu1  ;;  %v12803_v11 = vpop.f32.mrf.mxu0  ;;  %v17682_v31 = vpack.c.bf16 %v8883_v7, %v8882_v15  ;;  %v19431_v15 = vld [vmem:[#allocation107_spill] sm:$0xff] }
 0xbba   : > { %v8597_v16 = vmul.f32 %v12693_v58, %v19426_v45  ;;  %v8821_v21 = vmul.f32 %v12802_v37, %v19427_v39  ;;  %v8884_v53 = vmax.f32 %v8852_v47, 0.0  ;;  %v19432_v47 = vld [vmem:[#allocation106_spill] sm:$0xff] }
 0xbbb   : > { %v12695_v54 = vpop.f32.mrf.mxu1  ;;  %v12804_v12 = vpop.f32.mrf.mxu0 }
 0xbbc   : > { %v8629_v63 = vadd.f32 %v8597_v16, %v17542_v35  ;;  %v8853_v61 = vadd.f32 %v8821_v21, %v8628_v38  ;;  %v12696_v40 = vadd.f32 %v12695_v54, %v12694_v43  ;;  %v12805_v48 = vadd.f32 %v12804_v12, %v12803_v11  ;;  %v19433_v11 = vld [vmem:[#allocation115_spill] sm:$0xff] }
 0xbbd   : > { %v12697_v60 = vpop.f32.mrf.mxu1  ;;  %v12806_v14 = vpop.f32.mrf.mxu0 }
 0xbbe   : > { %v8598_v13 = vmul.f32 %v12696_v40, %v19428_v10  ;;  %v8822_v26 = vmul.f32 %v12805_v48, %v19429_v62  ;;  %v8885_v3 = vmax.f32 %v8853_v61, 0.0  ;;  %v19434_v48 = vld [vmem:[#allocation114_spill] sm:$0xff] }
 0xbbf   : > { %v12698_v4 = vpop.f32.mrf.mxu1  ;;  %v12807_v20 = vpop.f32.mrf.mxu0 }
 0xbc0   : > { %v8854_v56 = vadd.f32 %v8822_v26, %v8629_v63  ;;  %v12808_v51 = vadd.f32 %v12807_v20, %v12806_v14  ;;  %v12699_v41 = vadd.f32 %v12698_v4, %v12697_v60  ;;  %v17689_v50 = vpack.c.bf16 %v8885_v3, %v8884_v53  ;;  %v19435_v53 = vld [vmem:[#allocation91_spill] sm:$0xff] }
 0xbc1   : > { %v12700_v57 = vpop.f32.mrf.mxu1  ;;  %v12809_v8 = vpop.f32.mrf.mxu0  ;;  %v8630_v35 = vadd.f32 %v8598_v13, %v17548_v19 }
 0xbc2   : > { %v8823_v33 = vmul.f32 %v12808_v51, %v19430_v17  ;;  %v8599_v28 = vmul.f32 %v12699_v41, %v19431_v15  ;;  %v8886_v43 = vmax.f32 %v8854_v56, 0.0 }
 0xbc3   : > { %v12701_v44 = vpop.f32.mrf.mxu1  ;;  %v12810_v46 = vpop.f32.mrf.mxu0 }
 0xbc4   : > { %v8855_v42 = vadd.f32 %v8823_v33, %v8630_v35  ;;  %v12702_v23 = vadd.f32 %v12701_v44, %v12700_v57  ;;  %v12811_v7 = vadd.f32 %v12810_v46, %v12809_v8  ;;  %v8631_v21 = vadd.f32 %v8599_v28, %v17554_v2  ;;  %v19436_v2 = vld [vmem:[#allocation90_spill] sm:$0xff]  ;;  %v19437_v8 = vld [vmem:[#allocation99_spill] sm:$0xff] }
 0xbc5   : > { %v12703_v27 = vpop.f32.mrf.mxu1  ;;  %v12812_v38 = vpop.f32.mrf.mxu0  ;;  %v19438_v28 = vld [vmem:[#allocation98_spill] sm:$0xff] }
 0xbc6   : > { %v8600_v58 = vmul.f32 %v12702_v23, %v19432_v47  ;;  %v8887_v37 = vmax.f32 %v8855_v42, 0.0  ;;  %v8824_v45 = vmul.f32 %v12811_v7, %v19433_v11 }
 0xbc7   : > { %v12704_v16 = vpop.f32.mrf.mxu1  ;;  %v12813_v39 = vpop.f32.mrf.mxu0 }
 0xbc8   : > { %v12814_v19 = vadd.f32 %v12813_v39, %v12812_v38  ;;  %v12705_v54 = vadd.f32 %v12704_v16, %v12703_v27  ;;  %v17697_v61 = vpack.c.bf16 %v8887_v37, %v8886_v43  ;;  %v8632_v40 = vadd.f32 %v8600_v58, %v17560_v25 }
 0xbc9   : > { %v12706_v12 = vpop.f32.mrf.mxu1  ;;  %v12815_v63 = vpop.f32.mrf.mxu0  ;;  %v8856_v14 = vadd.f32 %v8824_v45, %v8631_v21  ;;  %v19439_v45 = vld [vmem:[#allocation75_spill] sm:$0xff] }
 0xbca   : > { %v8825_v60 = vmul.f32 %v12814_v19, %v19434_v48  ;;  %v8601_v4 = vmul.f32 %v12705_v54, %v19435_v53  ;;  %v19442_v53 = vld [vmem:[#allocation82_spill] sm:$0xff] }
 0xbcb   : > { %v12707_v10 = vpop.f32.mrf.mxu1  ;;  %v12816_v13 = vpop.f32.mrf.mxu0  ;;  %v8888_v57 = vmax.f32 %v8856_v14, 0.0 }
 0xbcc   : > { %v8857_v62 = vadd.f32 %v8825_v60, %v8632_v40  ;;  %v12708_v26 = vadd.f32 %v12707_v10, %v12706_v12  ;;  %v12817_v3 = vadd.f32 %v12816_v13, %v12815_v63  ;;  %v8633_v44 = vadd.f32 %v8601_v4, %v17566_v55  ;;  %v19440_v55 = vld [vmem:[#allocation74_spill] sm:$0xff]  ;;  %v19441_v63 = vld [vmem:[#allocation83_spill] sm:$0xff] }
 0xbcd   : > { %v12709_v20 = vpop.f32.mrf.mxu1  ;;  %v12818_v56 = vpop.f32.mrf.mxu0 }
 0xbce   : > { %v8602_v51 = vmul.f32 %v12708_v26, %v19436_v2  ;;  %v8889_v41 = vmax.f32 %v8857_v62, 0.0  ;;  %v8826_v35 = vmul.f32 %v12817_v3, %v19437_v8 }
 0xbcf   : > { %v12710_v17 = vpop.f32.mrf.mxu1  ;;  %v12819_v25 = vpop.f32.mrf.mxu0 }
 0xbd0   : > { %v12820_v33 = vadd.f32 %v12819_v25, %v12818_v56  ;;  %v12711_v46 = vadd.f32 %v12710_v17, %v12709_v20  ;;  %v17705_v7 = vpack.c.bf16 %v8889_v41, %v8888_v57  ;;  %v8634_v15 = vadd.f32 %v8602_v51, %v17572_v6  ;;  %v19443_v51 = vld [vmem:[#allocation59_spill] sm:$0xff] }
 0xbd1   : > { %v12712_v42 = vpop.f32.mrf.mxu1  ;;  %v12821_v23 = vpop.f32.mrf.mxu0  ;;  %v8858_v38 = vadd.f32 %v8826_v35, %v8633_v44  ;;  %v19445_v44 = vld [vmem:[#allocation67_spill] sm:$0xff] }
 0xbd2   : > { %v8827_v27 = vmul.f32 %v12820_v33, %v19438_v28  ;;  %v8603_v16 = vmul.f32 %v12711_v46, %v19439_v45  ;;  %v19444_v33 = vld [vmem:[#allocation58_spill] sm:$0xff] }
 0xbd3   : > { %v12713_v47 = vpop.f32.mrf.mxu1  ;;  %v12822_v58 = vpop.f32.mrf.mxu0  ;;  %v8890_v12 = vmax.f32 %v8858_v38, 0.0  ;;  %v19446_v45 = vld [vmem:[#allocation66_spill] sm:$0xff] }
 0xbd4   : > { %v8859_v37 = vadd.f32 %v8827_v27, %v8634_v15  ;;  %v12714_v43 = vadd.f32 %v12713_v47, %v12712_v42  ;;  %v12823_v11 = vadd.f32 %v12822_v58, %v12821_v23  ;;  %v8635_v10 = vadd.f32 %v8603_v16, %v17578_v36 }
 0xbd5   : > { %v12715_v39 = vpop.f32.mrf.mxu1  ;;  %v12824_v19 = vpop.f32.mrf.mxu0 }
 0xbd6   : > { %v8604_v21 = vmul.f32 %v12714_v43, %v19440_v55  ;;  %v8891_v54 = vmax.f32 %v8859_v37, 0.0  ;;  %v8828_v40 = vmul.f32 %v12823_v11, %v19441_v63  ;;  %v19447_v55 = vld [vmem:[#allocation43_spill] sm:$0xff] }
 0xbd7   : > { %v12716_v48 = vpop.f32.mrf.mxu1  ;;  %v12825_v6 = vpop.f32.mrf.mxu0 }
 0xbd8   : > { %v12717_v60 = vadd.f32 %v12716_v48, %v12715_v39  ;;  %v12826_v14 = vadd.f32 %v12825_v6, %v12824_v19  ;;  %v17713_v26 = vpack.c.bf16 %v8891_v54, %v8890_v12  ;;  %v8636_v3 = vadd.f32 %v8604_v21, %v17584_v32  ;;  %v19448_v48 = vld [vmem:[#allocation42_spill] sm:$0xff] }
 0xbd9   : > { %v12718_v13 = vpop.f32.mrf.mxu1  ;;  %v12827_v62 = vpop.f32.mrf.mxu0  ;;  %v8860_v20 = vadd.f32 %v8828_v40, %v8635_v10 }
 0xbda   : > { %v8829_v4 = vmul.f32 %v12826_v14, %v19442_v53  ;;  %v8605_v41 = vmul.f32 %v12717_v60, %v19443_v51  ;;  %v19449_v60 = vld [vmem:[#allocation51_spill] sm:$0xff] }
 0xbdb   : > { %v12719_v56 = vpop.f32.mrf.mxu1  ;;  %v12828_v2 = vpop.f32.mrf.mxu0  ;;  %v8892_v23 = vmax.f32 %v8860_v20, 0.0  ;;  %v19450_v20 = vld [vmem:[#allocation50_spill] sm:$0xff] }
 0xbdc   : > { %v8861_v57 = vadd.f32 %v8829_v4, %v8636_v3  ;;  %v12720_v8 = vadd.f32 %v12719_v56, %v12718_v13  ;;  %v12829_v35 = vadd.f32 %v12828_v2, %v12827_v62  ;;  %v8637_v28 = vadd.f32 %v8605_v41, %v17590_v59 }
 0xbdd   : > { %v12721_v17 = vpop.f32.mrf.mxu1  ;;  %v12830_v25 = vpop.f32.mrf.mxu0 }
 0xbde   : > { %v8606_v36 = vmul.f32 %v12720_v8, %v19444_v33  ;;  %v8830_v46 = vmul.f32 %v12829_v35, %v19445_v44  ;;  %v8893_v42 = vmax.f32 %v8861_v57, 0.0  ;;  %v13904_v8 = vld [vmem:[%s16087_s23 + $0x10] ss:$8 sps:$4 sm:$0xff]   ;;  %v13905_v35 = vld [vmem:[%s16087_s23 + $0x24] ss:$8 sps:$4 sm:$0xff]  }
 0xbdf   : > { %v12722_v15 = vpop.f32.mrf.mxu1  ;;  %v12831_v32 = vpop.f32.mrf.mxu0  ;;  %v13908_v33 = vld [vmem:[%s16087_s23 + $0x30] ss:$8 sps:$4 sm:$0xff]   ;;  %v13910_v44 = vld [vmem:[%s16087_s23 + $0x40] ss:$8 sps:$4 sm:$0xff]  }
 0xbe0   : > { %v12723_v27 = vadd.f32 %v12722_v15, %v12721_v17  ;;  %v12832_v38 = vadd.f32 %v12831_v32, %v12830_v25  ;;  %v17721_v37 = vpack.c.bf16 %v8893_v42, %v8892_v23  ;;  %v8638_v43 = vadd.f32 %v8606_v36, %v17596_v1  ;;  %v13906_v17 = vld [vmem:[%s16087_s23 + $0x20] ss:$8 sps:$4 sm:$0xff]   ;;  %v13907_v25 = vld [vmem:[%s16087_s23 + $0x34] ss:$8 sps:$4 sm:$0xff]   ;;  %v13909_v36 = vld [vmem:[%s16087_s23 + $0x44] ss:$8 sps:$4 sm:$0xff]  }
 0xbe1   : > { %v12724_v47 = vpop.f32.mrf.mxu1  ;;  %v12833_v58 = vpop.f32.mrf.mxu0  ;;  %v8862_v11 = vadd.f32 %v8830_v46, %v8637_v28  ;;  %v13911_v46 = vld [vmem:[%s16087_s23 + $0x54] ss:$8 sps:$4 sm:$0xff]   ;;  %v13912_v42 = vld [vmem:[%s16087_s23 + $0x50] ss:$8 sps:$4 sm:$0xff]   ;;  %v13913_v23 = vld [vmem:[%s16087_s23 + $0x64] ss:$8 sps:$4 sm:$0xff]  }
 0xbe2   : > { %v8831_v16 = vmul.f32 %v12832_v38, %v19446_v45  ;;  %v8607_v21 = vmul.f32 %v12723_v27, %v19447_v55  ;;  %v13914_v15 = vld [vmem:[%s16087_s23 + $0x60] ss:$8 sps:$4 sm:$0xff]   ;;  %v13915_v32 = vld [vmem:[%s16087_s23 + $0x74] ss:$8 sps:$4 sm:$0xff]   ;;  %v13916_v28 = vld [vmem:[%s16087_s23 + $0x70] ss:$8 sps:$4 sm:$0xff]  }
 0xbe3   : > { %v12725_v39 = vpop.f32.mrf.mxu1  ;;  %v12834_v19 = vpop.f32.mrf.mxu0  ;;  %v8894_v59 = vmax.f32 %v8862_v11, 0.0  ;;  %v13917_v27 = vld [vmem:[%s16087_s23 + $0x84] ss:$8 sps:$4 sm:$0xff]   ;;  %v13918_v38 = vld [vmem:[%s16087_s23 + $0x80] ss:$8 sps:$4 sm:$0xff]  }
 0xbe4   : > { %v8863_v54 = vadd.f32 %v8831_v16, %v8638_v43  ;;  %v12726_v12 = vadd.f32 %v12725_v39, %v12724_v47  ;;  %v12835_v63 = vadd.f32 %v12834_v19, %v12833_v58  ;;  %v8639_v1 = vadd.f32 %v8607_v21, %v17602_v52  ;;  %v13902_v52 = vld [vmem:[%s16087_s23] ss:$8 sps:$4 sm:$0xff]   ;;  %v13919_v47 = vld [vmem:[%s16087_s23 + $0x94] ss:$8 sps:$4 sm:$0xff]   ;;  %v13752_v58 = vld [vmem:[%s18673_s11 + $0x4c] ss:$12 sps:$4 sm:$0xff]  }
 0xbe5   : > { %v12836_v40 = vpop.f32.mrf.mxu0  ;;  %v13750_v43 = vld [vmem:[%s18673_s11 + $0x48] ss:$12 sps:$4 sm:$0xff]   ;;  %9201 = vmatprep.subr.bf16.mxu0 %v13752_v58  ;;  %v13753_v45 = vld [vmem:[%s18673_s11 + $0x30] ss:$12 sps:$4 sm:$0xff]   ;;  %v13921_v39 = vld [vmem:[%s16087_s23 + $0xa4] ss:$8 sps:$4 sm:$0xff]  }
 0xbe6   : > { %v8608_v6 = vmul.f32 %v12726_v12, %v19448_v48  ;;  %v8832_v14 = vmul.f32 %v12835_v63, %v19449_v60  ;;  %v8895_v10 = vmax.f32 %v8863_v54, 0.0  ;;  %9202 = vmatpush1.bf16.msra.mxu0 %v13750_v43  ;;  %v13755_v11 = vld [vmem:[%s18673_s11 + $0x34] ss:$12 sps:$4 sm:$0xff]   ;;  %v13920_v16 = vld [vmem:[%s16087_s23 + $0x90] ss:$8 sps:$4 sm:$0xff]   ;;  %v17830_v43 = vld [vmem:[%s18675_s13 + $0x88] sm:$0xff]  }
 0xbe7   : > { %v12837_v13 = vpop.f32.mrf.mxu0  ;;  %9203 = vmatprep.subr.bf16.mxu0 %v13755_v11  ;;  %v13756_v19 = vld [vmem:[%s18673_s11 + $0x50] ss:$12 sps:$4 sm:$0xff]   ;;  %v13757_v55 = vld [vmem:[%s18673_s11 + $0x38] ss:$12 sps:$4 sm:$0xff]   ;;  %v13922_v21 = vld [vmem:[%s16087_s23 + $0xa0] ss:$8 sps:$4 sm:$0xff]  }
 0xbe8   : > { %v12838_v62 = vadd.f32 %v12837_v13, %v12836_v40  ;;  %v17729_v3 = vpack.c.bf16 %v8895_v10, %v8894_v59  ;;  %v8640_v53 = vadd.f32 %v8608_v6, %v17606_v9  ;;  %v8864_v4 = vadd.f32 %v8832_v14, %v8639_v1  ;;  %v13903_v9 = vld [vmem:[%s16087_s23 + $0x14] ss:$8 sps:$4 sm:$0xff]   ;;  %v13924_v12 = vld [vmem:[%s16087_s23 + $0xb0] ss:$8 sps:$4 sm:$0xff]   ;;  %v13925_v63 = vld [vmem:[%s16087_s23 + $0xc4] ss:$8 sps:$4 sm:$0xff]  }
 0xbe9   : > { %v13923_v54 = vld [vmem:[%s16087_s23 + $0xb4] ss:$8 sps:$4 sm:$0xff]   ;;  %v13926_v40 = vld [vmem:[%s16087_s23 + $0xc0] ss:$8 sps:$4 sm:$0xff]   ;;  %v13928_v48 = vld [vmem:[%s16087_s23 + $0xd0] ss:$8 sps:$4 sm:$0xff]  }
 0xbea   : > { %v8833_v56 = vmul.f32 %v12838_v62, %v19450_v20  ;;  %v8896_v51 = vmax.f32 %v8864_v4, 0.0  ;;  %9204 = vmatpush1.bf16.msra.mxu0 %v13753_v45  ;;  %v13927_v59 = vld [vmem:[%s16087_s23 + $0xd4] ss:$8 sps:$4 sm:$0xff]   ;;  %v13929_v6 = vld [vmem:[%s16087_s23 + $0xe4] ss:$8 sps:$4 sm:$0xff]  }
 0xbeb   : > { %v13930_v60 = vld [vmem:[%s16087_s23 + $0xe0] ss:$8 sps:$4 sm:$0xff]   ;;  %v13931_v14 = vld [vmem:[%s16087_s23 + $0xf4] ss:$8 sps:$4 sm:$0xff]   ;;  %v13932_v10 = vld [vmem:[%s16087_s23 + $0xf0] ss:$8 sps:$4 sm:$0xff]  }
 0xbec   : > { %v8865_v2 = vadd.f32 %v8833_v56, %v8640_v53  ;;  %v13760_v62 = vld [vmem:[%s18672_s10 + $0x4c] ss:$12 sps:$4 sm:$0xff]   ;;  %v13761_v53 = vld [vmem:[%s18672_s10 + $0x50] ss:$12 sps:$4 sm:$0xff]  }
 0xbed   : > { %13323 = vmatprep.subr.bf16.mxu0 %v13761_v53 }
 0xbee   : > { %v8897_v41 = vmax.f32 %v8865_v2, 0.0 }
 0xbf0   : > { %v17733_v57 = vpack.c.bf16 %v8897_v41, %v8896_v51 }
 0xbf2   : > { %12839 = vmatprep.subr.bf16.mxu1 %v17733_v57 }
 0xbf3   : > { %12840 = vmatpush3.bf16.msra.mxu1 %v17674_v49 }
 0xbf4   : > { %12841 = vmatprep.subr.bf16.mxu1 %v17729_v3 }
 0xbf7   : > { %12842 = vmatpush3.bf16.msra.mxu1 %v17666_v18 }
 0xbf8   : > { %12843 = vmatprep.subr.bf16.mxu1 %v17721_v37 }
 0xbfb   : > { %12844 = vmatpush3.bf16.msra.mxu1 %v17658_v0 }
 0xbfc   : > { %12845 = vmatprep.subr.bf16.mxu1 %v17713_v26 }
 0xbff   : > { %12846 = vmatpush3.bf16.msra.mxu1 %v17650_v24 }
 0xc00   : > { %12847 = vmatprep.subr.bf16.mxu1 %v17705_v7 }
 0xc03   : > { %12848 = vmatpush3.bf16.msra.mxu1 %v17642_v5 }
 0xc04   : > { %12849 = vmatprep.subr.bf16.mxu1 %v17697_v61 }
 0xc07   : > { %12850 = vmatpush3.bf16.msra.mxu1 %v17634_v34 }
 0xc08   : > { %12851 = vmatprep.subr.bf16.mxu1 %v17689_v50 }
 0xc0b   : > { %12852 = vmatpush3.bf16.msra.mxu1 %v17626_v22 }
 0xc0c   : > { %12853 = vmatprep.subr.bf16.mxu1 %v17682_v31 }
 0xc0f   : > { %12854 = vmatpush3.bf16.msra.mxu1 %v17618_v29 }
 0xc10   : > { %13287 = vmatprep.subr.bf16.mxu1 %v13756_v19 }
 0xc12   : > { %8947 = vmatmul.mubr.bf16.vlgmr.msra.gmra.mxu1 %v13902_v52  ;;  %v13765_v52 = vld [vmem:[%s18672_s10 + $0x38] ss:$12 sps:$4 sm:$0xff]  }
 0xc13   : > { %8954 = vmatprep.mubr.bf16.mxu1 %v13903_v9  ;;  %13288 = vmatpush3.bf16.msra.mxu1 %v13756_v19 }
 0xc14   : > { %13289 = vmatprep.subr.bf16.mxu1 %v13757_v55 }
 0xc17   : > { %13290 = vmatpush3.bf16.msra.mxu1 %v13757_v55 }
 0xc18   : > { %9635 = vmatprep.subr.bf16.mxu1 %v13760_v62 }
 0xc1a   : > { %8955 = vmatmul.mubr.bf16.gmra.mxu1 %v13904_v8 }
 0xc1b   : > { %8962 = vmatprep.mubr.bf16.mxu1 %v13905_v35 }
 0xc22   : > { %8963 = vmatmul.mubr.bf16.gmra.mxu1 %v13906_v17 }
 0xc23   : > { %8970 = vmatprep.mubr.bf16.mxu1 %v13907_v25 }
 0xc2a   : > { %8971 = vmatmul.mubr.bf16.gmra.mxu1 %v13908_v33 }
 0xc2b   : > { %8978 = vmatprep.mubr.bf16.mxu1 %v13909_v36  ;;  %v13758_v36 = vld [vmem:[%s18672_s10 + $0x48] ss:$12 sps:$4 sm:$0xff]  }
 0xc32   : > { %8979 = vmatmul.mubr.bf16.gmra.mxu1 %v13910_v44 }
 0xc33   : > { %8986 = vmatprep.mubr.bf16.mxu1 %v13911_v46  ;;  %v13764_v46 = vld [vmem:[%s18672_s10 + $0x34] ss:$12 sps:$4 sm:$0xff]  }
 0xc3a   : > { %8987 = vmatmul.mubr.bf16.gmra.mxu1 %v13912_v42  ;;  %v13933_v42 = vld [vmem:[%s18675_s13 + $0x78] sm:$0xff]  }
 0xc3b   : > { %8994 = vmatprep.mubr.bf16.mxu1 %v13913_v23 }
 0xc42   : > { %8995 = vmatmul.mubr.bf16.gmra.mxu1 %v13914_v15 }
 0xc43   : > { %9002 = vmatprep.mubr.bf16.mxu1 %v13915_v32  ;;  %v13762_v32 = vld [vmem:[%s18672_s10 + $0x30] ss:$12 sps:$4 sm:$0xff]  }
 0xc4a   : > { %9003 = vmatmul.mubr.bf16.gmra.mxu1 %v13916_v28 }
 0xc4b   : > { %9010 = vmatprep.mubr.bf16.mxu1 %v13917_v27 }
 0xc52   : > { %9011 = vmatmul.mubr.bf16.gmra.mxu1 %v13918_v38 }
 0xc53   : > { %9018 = vmatprep.mubr.bf16.mxu1 %v13919_v47 }
 0xc5a   : > { %9019 = vmatmul.mubr.bf16.gmra.mxu1 %v13920_v16 }
 0xc5b   : > { %9026 = vmatprep.mubr.bf16.mxu1 %v13921_v39 }
 0xc62   : > { %9027 = vmatmul.mubr.bf16.gmra.mxu1 %v13922_v21 }
 0xc63   : > { %9034 = vmatprep.mubr.bf16.mxu1 %v13923_v54 }
 0xc6a   : > { %9035 = vmatmul.mubr.bf16.gmra.mxu1 %v13924_v12 }
 0xc6b   : > { %9042 = vmatprep.mubr.bf16.mxu1 %v13925_v63 }
 0xc72   : > { %9043 = vmatmul.mubr.bf16.gmra.mxu1 %v13926_v40 }
 0xc73   : > { %9050 = vmatprep.mubr.bf16.mxu1 %v13927_v59 }
 0xc7a   : > { %9051 = vmatmul.mubr.bf16.gmra.mxu1 %v13928_v48 }
 0xc7b   : > { %9058 = vmatprep.mubr.bf16.mxu1 %v13929_v6 }
 0xc82   : > { %9059 = vmatmul.mubr.bf16.gmra.mxu1 %v13930_v60 }
 0xc83   : > { %9066 = vmatprep.mubr.bf16.mxu1 %v13931_v14 }
 0xc8a   : > { %9067 = vmatmul.mubr.bf16.gmra.mxu1 %v13932_v10 }
 0xcd2   : > { %v12855_v13 = vpop.f32.mrf.mxu1 }
 0xcd4   : > { %v12856_v1 = vpop.f32.mrf.mxu1 }
 0xcd5   : > { %v12857_v56 = vadd.f32 %v12856_v1, %v12855_v13 }
 0xcd6   : > { %v12858_v4 = vpop.f32.mrf.mxu1 }
 0xcd8   : > { %v12859_v20 = vpop.f32.mrf.mxu1 }
 0xcd9   : > { %v12860_v2 = vadd.f32 %v12859_v20, %v12858_v4 }
 0xcda   : > { %v12861_v51 = vpop.f32.mrf.mxu1 }
 0xcdb   : > { %v9084_v41 = vpack.c.bf16 %v12860_v2, %v12857_v56 }
 0xcdc   : > { %v12862_v9 = vpop.f32.mrf.mxu1 }
 0xcdd   : > { %11545 = vmatmul.mubr.msk.bf16.vlgmr.msra.gmra.mxu0 %vm2337_vm2, %v9084_v41  ;;  %13291 = vmatprep.mubr.msk.bf16.mxu1 %vm2337_vm2, %v9084_v41  ;;  %v12863_v17 = vadd.f32 %v12862_v9, %v12861_v51 }
 0xcde   : > { %v12864_v8 = vpop.f32.mrf.mxu1  ;;  %9231 = vmatprep.mubr.bf16.mxu0 %v19334_v30  ;;  %13324 = vmatpush3.bf16.msra.mxu0 %v13761_v53 }
 0xcdf   : > { %13325 = vmatprep.subr.bf16.mxu0 %v13765_v52 }
 0xce0   : > { %v12865_v35 = vpop.f32.mrf.mxu1 }
 0xce1   : > { %v12866_v25 = vadd.f32 %v12865_v35, %v12864_v8 }
 0xce2   : > { %v12867_v33 = vpop.f32.mrf.mxu1  ;;  %13326 = vmatpush3.bf16.msra.mxu0 %v13765_v52 }
 0xce3   : > { %v9085_v44 = vpack.c.bf16 %v12866_v25, %v12863_v17  ;;  %12987 = vmatprep.subr.bf16.mxu0 %v13933_v42 }
 0xce4   : > { %v12868_v23 = vpop.f32.mrf.mxu1 }
 0xce5   : > { %11546 = vmatmul.mubr.msk.bf16.gmra.mxu0 %vm2337_vm2, %v9085_v44  ;;  %13292 = vmatmul.mubr.msk.bf16.vlgmr.msra.gmra.mxu1 %vm2337_vm2, %v9085_v44  ;;  %v12869_v27 = vadd.f32 %v12868_v23, %v12867_v33 }
 0xce6   : > { %v12870_v15 = vpop.f32.mrf.mxu1  ;;  %9241 = vmatprep.mubr.bf16.mxu0 %v19334_v30  ;;  %9636 = vmatpush1.bf16.msra.mxu1 %v13758_v36 }
 0xce7   : > { %9637 = vmatprep.subr.bf16.mxu1 %v13764_v46 }
 0xce8   : > { %v12871_v28 = vpop.f32.mrf.mxu1 }
 0xce9   : > { %v12872_v38 = vadd.f32 %v12871_v28, %v12870_v15 }
 0xcea   : > { %v12873_v47 = vpop.f32.mrf.mxu1  ;;  %9638 = vmatpush1.bf16.msra.mxu1 %v13762_v32 }
 0xceb   : > { %v9086_v58 = vpack.c.bf16 %v12872_v38, %v12869_v27  ;;  %13359 = vmatprep.subr.bf16.mxu1 %v17830_v43 }
 0xcec   : > { %v12874_v11 = vpop.f32.mrf.mxu1 }
 0xced   : > { %11547 = vmatmul.mubr.msk.bf16.gmra.mxu0 %vm2337_vm2, %v9086_v58  ;;  %13295 = vmatprep.mubr.msk.bf16.mxu1 %vm2337_vm2, %v9086_v58  ;;  %v12875_v39 = vadd.f32 %v12874_v11, %v12873_v47 }
 0xcee   : > { %v12876_v45 = vpop.f32.mrf.mxu1  ;;  %9251 = vmatprep.mubr.bf16.mxu0 %v19334_v30 }
 0xcf0   : > { %v12877_v16 = vpop.f32.mrf.mxu1 }
 0xcf1   : > { %v12878_v19 = vadd.f32 %v12877_v16, %v12876_v45 }
 0xcf2   : > { %v12879_v55 = vpop.f32.mrf.mxu1 }
 0xcf3   : > { %v9087_v21 = vpack.c.bf16 %v12878_v19, %v12875_v39 }
 0xcf4   : > { %v12880_v54 = vpop.f32.mrf.mxu1 }
 0xcf5   : > { %11548 = vmatmul.mubr.msk.bf16.gmra.mxu0 %vm2337_vm2, %v9087_v21  ;;  %13296 = vmatmul.mubr.msk.bf16.gmra.mxu1 %vm2337_vm2, %v9087_v21  ;;  %v12881_v40 = vadd.f32 %v12880_v54, %v12879_v55 }
 0xcf6   : > { %v12882_v12 = vpop.f32.mrf.mxu1  ;;  %9261 = vmatprep.mubr.bf16.mxu0 %v19334_v30 }
 0xcf8   : > { %v12883_v63 = vpop.f32.mrf.mxu1 }
 0xcf9   : > { %v12884_v59 = vadd.f32 %v12883_v63, %v12882_v12 }
 0xcfa   : > { %v12885_v48 = vpop.f32.mrf.mxu1 }
 0xcfb   : > { %v9088_v6 = vpack.c.bf16 %v12884_v59, %v12881_v40 }
 0xcfc   : > { %v12886_v60 = vpop.f32.mrf.mxu1 }
 0xcfd   : > { %11549 = vmatmul.mubr.msk.bf16.gmra.mxu0 %vm2337_vm2, %v9088_v6  ;;  %13299 = vmatprep.mubr.msk.bf16.mxu1 %vm2337_vm2, %v9088_v6  ;;  %v12887_v13 = vadd.f32 %v12886_v60, %v12885_v48 }
 0xcfe   : > { %v12888_v14 = vpop.f32.mrf.mxu1  ;;  %9271 = vmatprep.mubr.bf16.mxu0 %v19334_v30 }
 0xd00   : > { %v12889_v10 = vpop.f32.mrf.mxu1 }
 0xd01   : > { %v12890_v1 = vadd.f32 %v12889_v10, %v12888_v14 }
 0xd02   : > { %v12891_v62 = vpop.f32.mrf.mxu1 }
 0xd03   : > { %v9089_v53 = vpack.c.bf16 %v12890_v1, %v12887_v13 }
 0xd04   : > { %v12892_v4 = vpop.f32.mrf.mxu1 }
 0xd05   : > { %11550 = vmatmul.mubr.msk.bf16.gmra.mxu0 %vm2337_vm2, %v9089_v53  ;;  %13300 = vmatmul.mubr.msk.bf16.gmra.mxu1 %vm2337_vm2, %v9089_v53  ;;  %v12893_v2 = vadd.f32 %v12892_v4, %v12891_v62 }
 0xd06   : > { %v12894_v20 = vpop.f32.mrf.mxu1  ;;  %9281 = vmatprep.mubr.bf16.mxu0 %v19334_v30 }
 0xd08   : > { %v12895_v56 = vpop.f32.mrf.mxu1 }
 0xd09   : > { %v12896_v51 = vadd.f32 %v12895_v56, %v12894_v20 }
 0xd0a   : > { %v12897_v41 = vpop.f32.mrf.mxu1 }
 0xd0b   : > { %v9090_v52 = vpack.c.bf16 %v12896_v51, %v12893_v2 }
 0xd0c   : > { %v12898_v9 = vpop.f32.mrf.mxu1 }
 0xd0d   : > { %11551 = vmatmul.mubr.msk.bf16.gmra.mxu0 %vm2337_vm2, %v9090_v52  ;;  %13303 = vmatprep.mubr.msk.bf16.mxu1 %vm2337_vm2, %v9090_v52  ;;  %v12899_v17 = vadd.f32 %v12898_v9, %v12897_v41 }
 0xd0e   : > { %v12900_v8 = vpop.f32.mrf.mxu1  ;;  %9291 = vmatprep.mubr.bf16.mxu0 %v19334_v30 }
 0xd10   : > { %v12901_v35 = vpop.f32.mrf.mxu1 }
 0xd11   : > { %v12902_v25 = vadd.f32 %v12901_v35, %v12900_v8 }
 0xd12   : > { %v12903_v33 = vpop.f32.mrf.mxu1 }
 0xd13   : > { %v9091_v36 = vpack.c.bf16 %v12902_v25, %v12899_v17 }
 0xd14   : > { %v12904_v44 = vpop.f32.mrf.mxu1 }
 0xd15   : > { %11552 = vmatmul.mubr.msk.bf16.gmra.mxu0 %vm2337_vm2, %v9091_v36  ;;  %13304 = vmatmul.mubr.msk.bf16.gmra.mxu1 %vm2337_vm2, %v9091_v36  ;;  %v12905_v23 = vadd.f32 %v12904_v44, %v12903_v33 }
 0xd16   : > { %v12906_v46 = vpop.f32.mrf.mxu1  ;;  %9301 = vmatprep.mubr.bf16.mxu0 %v19334_v30 }
 0xd18   : > { %v12907_v42 = vpop.f32.mrf.mxu1 }
 0xd19   : > { %v12908_v15 = vadd.f32 %v12907_v42, %v12906_v46 }
 0xd1a   : > { %v12909_v32 = vpop.f32.mrf.mxu1 }
 0xd1b   : > { %v9092_v28 = vpack.c.bf16 %v12908_v15, %v12905_v23 }
 0xd1c   : > { %v12910_v27 = vpop.f32.mrf.mxu1 }
 0xd1d   : > { %11553 = vmatmul.mubr.msk.bf16.gmra.mxu0 %vm2337_vm2, %v9092_v28  ;;  %13307 = vmatprep.mubr.msk.bf16.mxu1 %vm2337_vm2, %v9092_v28  ;;  %v12911_v58 = vadd.f32 %v12910_v27, %v12909_v32 }
 0xd1e   : > { %v12912_v38 = vpop.f32.mrf.mxu1  ;;  %9311 = vmatprep.mubr.bf16.mxu0 %v19334_v30 }
 0xd20   : > { %v12913_v47 = vpop.f32.mrf.mxu1 }
 0xd21   : > { %v12914_v11 = vadd.f32 %v12913_v47, %v12912_v38  ;;  %v13935_v47 = vld [vmem:[%s18675_s13 + $0x38] sm:$0xff]  }
 0xd22   : > { %v12915_v45 = vpop.f32.mrf.mxu1 }
 0xd23   : > { %v9093_v16 = vpack.c.bf16 %v12914_v11, %v12911_v58  ;;  %v13936_v58 = vld [vmem:[%s18675_s13 + $0x70] sm:$0xff]  }
 0xd24   : > { %v12916_v39 = vpop.f32.mrf.mxu1  ;;  %v13938_v11 = vld [vmem:[%s18675_s13 + $0x30] sm:$0xff]  }
 0xd25   : > { %11554 = vmatmul.mubr.msk.bf16.gmra.mxu0 %vm2337_vm2, %v9093_v16  ;;  %13308 = vmatmul.mubr.msk.bf16.gmra.mxu1 %vm2337_vm2, %v9093_v16  ;;  %v12917_v21 = vadd.f32 %v12916_v39, %v12915_v45  ;;  %v13940_v45 = vld [vmem:[%s18675_s13 + $0x28] sm:$0xff]   ;;  %v13941_v16 = vld [vmem:[%s18675_s13 + $0x60] sm:$0xff]   ;;  %v13943_v39 = vld [vmem:[%s18675_s13 + $0x58] sm:$0xff]  }
 0xd26   : > { %v12918_v19 = vpop.f32.mrf.mxu1  ;;  %9321 = vmatprep.mubr.bf16.mxu0 %v19334_v30 }
 0xd28   : > { %v12919_v55 = vpop.f32.mrf.mxu1 }
 0xd29   : > { %v12920_v54 = vadd.f32 %v12919_v55, %v12918_v19  ;;  %v13944_v19 = vld [vmem:[%s18675_s13 + $0x18] sm:$0xff]   ;;  %v13945_v55 = vld [vmem:[%s18675_s13 + $0x50] sm:$0xff]  }
 0xd2a   : > { %v12921_v12 = vpop.f32.mrf.mxu1 }
 0xd2b   : > { %v9094_v63 = vpack.c.bf16 %v12920_v54, %v12917_v21  ;;  %v13947_v21 = vld [vmem:[%s18675_s13 + $0x48] sm:$0xff]  }
 0xd2c   : > { %v12922_v40 = vpop.f32.mrf.mxu1  ;;  %v13948_v54 = vld [vmem:[%s18675_s13 + $0x8] sm:$0xff]  }
 0xd2d   : > { %11555 = vmatmul.mubr.msk.bf16.gmra.mxu0 %vm2337_vm2, %v9094_v63  ;;  %13311 = vmatprep.mubr.msk.bf16.mxu1 %vm2337_vm2, %v9094_v63  ;;  %v12923_v6 = vadd.f32 %v12922_v40, %v12921_v12  ;;  %v13949_v12 = vld [vmem:[%s18675_s13 + $0x40] sm:$0xff]  }
 0xd2e   : > { %v12924_v59 = vpop.f32.mrf.mxu1  ;;  %9331 = vmatprep.mubr.bf16.mxu0 %v19334_v30 }
 0xd30   : > { %v12925_v48 = vpop.f32.mrf.mxu1 }
 0xd31   : > { %v12926_v60 = vadd.f32 %v12925_v48, %v12924_v59 }
 0xd32   : > { %v12927_v14 = vpop.f32.mrf.mxu1 }
 0xd33   : > { %v9095_v10 = vpack.c.bf16 %v12926_v60, %v12923_v6 }
 0xd34   : > { %v12928_v13 = vpop.f32.mrf.mxu1 }
 0xd35   : > { %11556 = vmatmul.mubr.msk.bf16.gmra.mxu0 %vm2337_vm2, %v9095_v10  ;;  %13312 = vmatmul.mubr.msk.bf16.gmra.mxu1 %vm2337_vm2, %v9095_v10  ;;  %v12929_v53 = vadd.f32 %v12928_v13, %v12927_v14 }
 0xd36   : > { %v12930_v1 = vpop.f32.mrf.mxu1  ;;  %9341 = vmatprep.mubr.bf16.mxu0 %v19334_v30 }
 0xd38   : > { %v12931_v62 = vpop.f32.mrf.mxu1 }
 0xd39   : > { %v12932_v4 = vadd.f32 %v12931_v62, %v12930_v1 }
 0xd3a   : > { %v12933_v20 = vpop.f32.mrf.mxu1 }
 0xd3b   : > { %v9096_v56 = vpack.c.bf16 %v12932_v4, %v12929_v53 }
 0xd3c   : > { %v12934_v2 = vpop.f32.mrf.mxu1 }
 0xd3d   : > { %11557 = vmatmul.mubr.msk.bf16.gmra.mxu0 %vm2337_vm2, %v9096_v56  ;;  %13315 = vmatprep.mubr.msk.bf16.mxu1 %vm2337_vm2, %v9096_v56  ;;  %v12935_v52 = vadd.f32 %v12934_v2, %v12933_v20 }
 0xd3e   : > { %v12936_v51 = vpop.f32.mrf.mxu1  ;;  %9351 = vmatprep.mubr.bf16.mxu0 %v19334_v30 }
 0xd40   : > { %v12937_v41 = vpop.f32.mrf.mxu1 }
 0xd41   : > { %v12938_v9 = vadd.f32 %v12937_v41, %v12936_v51 }
 0xd42   : > { %v12939_v8 = vpop.f32.mrf.mxu1 }
 0xd43   : > { %v9097_v35 = vpack.c.bf16 %v12938_v9, %v12935_v52 }
 0xd44   : > { %v12940_v17 = vpop.f32.mrf.mxu1 }
 0xd45   : > { %11558 = vmatmul.mubr.msk.bf16.gmra.mxu0 %vm2337_vm2, %v9097_v35  ;;  %13316 = vmatmul.mubr.msk.bf16.gmra.mxu1 %vm2337_vm2, %v9097_v35  ;;  %v12941_v36 = vadd.f32 %v12940_v17, %v12939_v8 }
 0xd46   : > { %v12942_v25 = vpop.f32.mrf.mxu1  ;;  %9361 = vmatprep.mubr.bf16.mxu0 %v19334_v30 }
 0xd48   : > { %v12943_v33 = vpop.f32.mrf.mxu1 }
 0xd49   : > { %v12944_v44 = vadd.f32 %v12943_v33, %v12942_v25 }
 0xd4a   : > { %v12945_v46 = vpop.f32.mrf.mxu1 }
 0xd4b   : > { %v9098_v42 = vpack.c.bf16 %v12944_v44, %v12941_v36 }
 0xd4c   : > { %v12946_v23 = vpop.f32.mrf.mxu1 }
 0xd4d   : > { %11559 = vmatmul.mubr.msk.bf16.gmra.mxu0 %vm2337_vm2, %v9098_v42  ;;  %13319 = vmatprep.mubr.msk.bf16.mxu1 %vm2337_vm2, %v9098_v42  ;;  %v12947_v28 = vadd.f32 %v12946_v23, %v12945_v46 }
 0xd4e   : > { %v12948_v15 = vpop.f32.mrf.mxu1  ;;  %9371 = vmatprep.mubr.bf16.mxu0 %v19334_v30 }
 0xd50   : > { %v12949_v32 = vpop.f32.mrf.mxu1 }
 0xd51   : > { %v12950_v27 = vadd.f32 %v12949_v32, %v12948_v15 }
 0xd53   : > { %v9099_v38 = vpack.c.bf16 %v12950_v27, %v12947_v28 }
 0xd55   : > { %11560 = vmatmul.mubr.msk.bf16.gmra.mxu0 %vm2337_vm2, %v9099_v38  ;;  %13320 = vmatmul.mubr.msk.bf16.gmra.mxu1 %vm2337_vm2, %v9099_v38 }
 0xd56   : > { %13327 = vmatprep.mubr.msk.bf16.mxu0 %vm2337_vm2, %v17618_v29  ;;  %9655 = vmatprep.mubr.bf16.mxu1 %v19334_v30 }
 0xd5d   : > { %11583 = vmatmul.mubr.msk.bf16.vlgmr.msra.gmra.mxu1 %vm2337_vm2, %v17618_v29  ;;  %13328 = vmatmul.mubr.msk.bf16.vlgmr.msra.gmra.mxu0 %vm2337_vm2, %v17626_v22  ;;  %v13937_v29 = vld [vmem:[%s18675_s13 + $0x80] sm:$0xff]  }
 0xd5e   : > { %13331 = vmatprep.mubr.msk.bf16.mxu0 %vm2337_vm2, %v17634_v34  ;;  %9665 = vmatprep.mubr.bf16.mxu1 %v19334_v30 }
 0xd5f   : > { %12988 = vmatpush3.bf16.msra.mxu0 %v13935_v47  ;;  %13360 = vmatpush3.bf16.msra.mxu1 %v17830_v43  ;;  %v13939_v43 = vld [vmem:[%s18675_s13 + $0x68] sm:$0xff]  }
 0xd60   : > { %12989 = vmatprep.subr.bf16.mxu0 %v13936_v58  ;;  %13361 = vmatprep.subr.bf16.mxu1 %v13937_v29 }
 0xd63   : > { %12990 = vmatpush3.bf16.msra.mxu0 %v13938_v11  ;;  %13362 = vmatpush3.bf16.msra.mxu1 %v13937_v29 }
 0xd64   : > { %12991 = vmatprep.subr.bf16.mxu0 %v13939_v43 }
 0xd65   : > { %11584 = vmatmul.mubr.msk.bf16.gmra.mxu1 %vm2337_vm2, %v17626_v22  ;;  %13332 = vmatmul.mubr.msk.bf16.gmra.mxu0 %vm2337_vm2, %v17642_v5  ;;  %v13942_v22 = vld [vmem:[%s18675_s13 + $0x20] sm:$0xff]  }
 0xd66   : > { %13335 = vmatprep.mubr.msk.bf16.mxu0 %vm2337_vm2, %v17650_v24  ;;  %9675 = vmatprep.mubr.bf16.mxu1 %v19334_v30 }
 0xd67   : > { %12992 = vmatpush3.bf16.msra.mxu0 %v13940_v45 }
 0xd68   : > { %12993 = vmatprep.subr.bf16.mxu0 %v13941_v16 }
 0xd6b   : > { %12994 = vmatpush3.bf16.msra.mxu0 %v13942_v22 }
 0xd6c   : > { %12995 = vmatprep.subr.bf16.mxu0 %v13943_v39 }
 0xd6d   : > { %11585 = vmatmul.mubr.msk.bf16.gmra.mxu1 %vm2337_vm2, %v17634_v34  ;;  %13336 = vmatmul.mubr.msk.bf16.gmra.mxu0 %vm2337_vm2, %v17658_v0  ;;  %v13946_v34 = vld [vmem:[%s18675_s13 + $0x10] sm:$0xff]  }
 0xd6e   : > { %13339 = vmatprep.mubr.msk.bf16.mxu0 %vm2337_vm2, %v17666_v18  ;;  %9685 = vmatprep.mubr.bf16.mxu1 %v19334_v30 }
 0xd6f   : > { %12996 = vmatpush3.bf16.msra.mxu0 %v13944_v19 }
 0xd70   : > { %12997 = vmatprep.subr.bf16.mxu0 %v13945_v55 }
 0xd73   : > { %12998 = vmatpush3.bf16.msra.mxu0 %v13946_v34 }
 0xd74   : > { %12999 = vmatprep.subr.bf16.mxu0 %v13947_v21 }
 0xd75   : > { %11586 = vmatmul.mubr.msk.bf16.gmra.mxu1 %vm2337_vm2, %v17642_v5  ;;  %13340 = vmatmul.mubr.msk.bf16.gmra.mxu0 %vm2337_vm2, %v17674_v49  ;;  %v13950_v5 = vld [vmem:[%s18675_s13] sm:$0xff]  }
 0xd76   : > { %13343 = vmatprep.mubr.msk.bf16.mxu0 %vm2337_vm2, %v17682_v31  ;;  %9695 = vmatprep.mubr.bf16.mxu1 %v19334_v30 }
 0xd77   : > { %13000 = vmatpush3.bf16.msra.mxu0 %v13948_v54 }
 0xd78   : > { %13001 = vmatprep.subr.bf16.mxu0 %v13949_v12 }
 0xd7b   : > { %13002 = vmatpush3.bf16.msra.mxu0 %v13950_v5 }
 0xd7d   : > { %11587 = vmatmul.mubr.msk.bf16.gmra.mxu1 %vm2337_vm2, %v17650_v24  ;;  %13344 = vmatmul.mubr.msk.bf16.gmra.mxu0 %vm2337_vm2, %v17689_v50 }
 0xd7e   : > { %13347 = vmatprep.mubr.msk.bf16.mxu0 %vm2337_vm2, %v17697_v61  ;;  %9705 = vmatprep.mubr.bf16.mxu1 %v19334_v30 }
 0xd85   : > { %11588 = vmatmul.mubr.msk.bf16.gmra.mxu1 %vm2337_vm2, %v17658_v0  ;;  %13348 = vmatmul.mubr.msk.bf16.gmra.mxu0 %vm2337_vm2, %v17705_v7 }
 0xd86   : > { %13351 = vmatprep.mubr.msk.bf16.mxu0 %vm2337_vm2, %v17713_v26  ;;  %9715 = vmatprep.mubr.bf16.mxu1 %v19334_v30 }
 0xd8d   : > { %11589 = vmatmul.mubr.msk.bf16.gmra.mxu1 %vm2337_vm2, %v17666_v18  ;;  %13352 = vmatmul.mubr.msk.bf16.gmra.mxu0 %vm2337_vm2, %v17721_v37 }
 0xd8e   : > { %13355 = vmatprep.mubr.msk.bf16.mxu0 %vm2337_vm2, %v17729_v3  ;;  %9725 = vmatprep.mubr.bf16.mxu1 %v19334_v30 }
 0xd95   : > { %11590 = vmatmul.mubr.msk.bf16.gmra.mxu1 %vm2337_vm2, %v17674_v49  ;;  %13356 = vmatmul.mubr.msk.bf16.gmra.mxu0 %vm2337_vm2, %v17733_v57 }
 0xd96   : > { %9735 = vmatprep.mubr.bf16.mxu1 %v19334_v30 }
 0xd9d   : > { %v17980_v24 = vpop.f32.mrf.mxu0  ;;  %11591 = vmatmul.mubr.msk.bf16.gmra.mxu1 %vm2337_vm2, %v17682_v31 }
 0xd9e   : > { %9745 = vmatprep.mubr.bf16.mxu1 %v19334_v30 }
 0xd9f   : > { %v17985_v0 = vpop.f32.mrf.mxu0 }
 0xda1   : > { %v17987_v18 = vpop.f32.mrf.mxu0 }
 0xda3   : > { %v17989_v63 = vpop.f32.mrf.mxu0 }
 0xda5   : > { %v17991_v40 = vpop.f32.mrf.mxu0  ;;  %11592 = vmatmul.mubr.msk.bf16.gmra.mxu1 %vm2337_vm2, %v17689_v50  ;;  %v18013_v14 = vpop.f32.mrf.mxu1 }
 0xda6   : > { %9755 = vmatprep.mubr.bf16.mxu1 %v19334_v30 }
 0xda7   : > { %v17996_v49 = vpop.f32.mrf.mxu0 }
 0xda9   : > { %v17998_v59 = vpop.f32.mrf.mxu0 }
 0xdab   : > { %v18000_v31 = vpop.f32.mrf.mxu0 }
 0xdad   : > { %v18002_v48 = vpop.f32.mrf.mxu0  ;;  %11593 = vmatmul.mubr.msk.bf16.gmra.mxu1 %vm2337_vm2, %v17697_v61  ;;  %v18022_v61 = vpop.f32.mrf.mxu1 }
 0xdae   : > { %9765 = vmatprep.mubr.bf16.mxu1 %v19334_v30 }
 0xdaf   : > { %v18007_v6 = vpop.f32.mrf.mxu0  ;;  %v18028_v53 = vpop.f32.mrf.mxu1 }
 0xdb1   : > { %v18009_v60 = vpop.f32.mrf.mxu0  ;;  %v18037_v20 = vpop.f32.mrf.mxu1 }
 0xdb3   : > { %v18011_v50 = vpop.f32.mrf.mxu0 }
 0xdb5   : > { %v18015_v10 = vpop.f32.mrf.mxu0  ;;  %11594 = vmatmul.mubr.msk.bf16.gmra.mxu1 %vm2337_vm2, %v17705_v7  ;;  %v18041_v2 = vpop.f32.mrf.mxu1 }
 0xdb6   : > { %9775 = vmatprep.mubr.bf16.mxu1 %v19334_v30 }
 0xdb7   : > { %v18020_v13 = vpop.f32.mrf.mxu0  ;;  %v18049_v52 = vpop.f32.mrf.mxu1 }
 0xdb9   : > { %v18024_v1 = vpop.f32.mrf.mxu0  ;;  %v18056_v8 = vpop.f32.mrf.mxu1 }
 0xdbb   : > { %v18026_v62 = vpop.f32.mrf.mxu0  ;;  %v18064_v25 = vpop.f32.mrf.mxu1 }
 0xdbd   : > { %v18030_v4 = vpop.f32.mrf.mxu0  ;;  %11595 = vmatmul.mubr.msk.bf16.gmra.mxu1 %vm2337_vm2, %v17713_v26 }
 0xdbe   : > { %9785 = vmatprep.mubr.bf16.mxu1 %v19334_v30 }
 0xdbf   : > { %v18035_v7 = vpop.f32.mrf.mxu0 }
 0xdc1   : > { %v18039_v56 = vpop.f32.mrf.mxu0 }
 0xdc3   : > { %v18043_v51 = vpop.f32.mrf.mxu0 }
 0xdc5   : > { %v18045_v41 = vpop.f32.mrf.mxu0  ;;  %11596 = vmatmul.mubr.msk.bf16.gmra.mxu1 %vm2337_vm2, %v17721_v37  ;;  %v18069_v33 = vpop.f32.mrf.mxu1 }
 0xdc6   : > { %9795 = vmatprep.mubr.bf16.mxu1 %v19334_v30 }
 0xdc7   : > { %v18052_v26 = vpop.f32.mrf.mxu0  ;;  %v18075_v46 = vpop.f32.mrf.mxu1 }
 0xdc8   : > { %19451 = vst [vmem:[#allocation195_spill] sm:$0xff] %v18052_v26  ;;  %v13957_v26 = vld [vmem:[%s16666_s25 + $0x40] sm:$0xff] }
 0xdc9   : > { %v18054_v9 = vpop.f32.mrf.mxu0  ;;  %v18083_v23 = vpop.f32.mrf.mxu1 }
 0xdca   : > { %19452 = vst [vmem:[#allocation150_spill] sm:$0xff] %v18054_v9 }
 0xdcb   : > { %v18058_v35 = vpop.f32.mrf.mxu0  ;;  %v18089_v32 = vpop.f32.mrf.mxu1 }
 0xdcc   : > { %19453 = vst [vmem:[#allocation197_spill] sm:$0xff] %v18058_v35 }
 0xdcd   : > { %v18060_v17 = vpop.f32.mrf.mxu0  ;;  %11597 = vmatmul.mubr.msk.bf16.gmra.mxu1 %vm2337_vm2, %v17729_v3 }
 0xdce   : > { %19454 = vst [vmem:[#allocation152_spill] sm:$0xff] %v18060_v17  ;;  %9805 = vmatprep.mubr.bf16.mxu1 %v19334_v30 }
 0xdcf   : > { %v18067_v37 = vpop.f32.mrf.mxu0 }
 0xdd0   : > { %19455 = vst [vmem:[#allocation151_spill] sm:$0xff] %v18067_v37 }
 0xdd1   : > { %v18071_v36 = vpop.f32.mrf.mxu0 }
 0xdd2   : > { %19456 = vst [vmem:[#allocation153_spill] sm:$0xff] %v18071_v36  ;;  %v19506_v36 = vld [vmem:[#allocation193_spill] sm:$0xff] }
 0xdd3   : > { %v18073_v44 = vpop.f32.mrf.mxu0 }
 0xdd4   : > { %19457 = vst [vmem:[#allocation154_spill] sm:$0xff] %v18073_v44 }
 0xdd5   : > { %v18077_v42 = vpop.f32.mrf.mxu0  ;;  %11598 = vmatmul.mubr.msk.bf16.gmra.mxu1 %vm2337_vm2, %v17733_v57  ;;  %v18093_v27 = vpop.f32.mrf.mxu1 }
 0xdd6   : > { %19458 = vst [vmem:[#allocation156_spill] sm:$0xff] %v18077_v42 }
 0xdd7   : > { %v18081_v3 = vpop.f32.mrf.mxu0  ;;  %v18099_v58 = vpop.f32.mrf.mxu1 }
 0xdd8   : > { %19459 = vst [vmem:[#allocation155_spill] sm:$0xff] %v18081_v3 }
 0xdd9   : > { %v18085_v30 = vpop.f32.mrf.mxu0  ;;  %v18105_v11 = vpop.f32.mrf.mxu1 }
 0xdda   : > { %19460 = vst [vmem:[#allocation157_spill] sm:$0xff] %v18085_v30 }
 0xddb   : > { %v18087_v15 = vpop.f32.mrf.mxu0  ;;  %v18111_v16 = vpop.f32.mrf.mxu1 }
 0xddc   : > { %19461 = vst [vmem:[#allocation158_spill] sm:$0xff] %v18087_v15 }
 0xddd   : > { %v18091_v28 = vpop.f32.mrf.mxu0 }
 0xdde   : > { %19462 = vst [vmem:[#allocation160_spill] sm:$0xff] %v18091_v28 }
 0xddf   : > { %v18095_v38 = vpop.f32.mrf.mxu0 }
 0xde0   : > { %19463 = vst [vmem:[#allocation159_spill] sm:$0xff] %v18095_v38 }
 0xde1   : > { %v18097_v47 = vpop.f32.mrf.mxu0 }
 0xde2   : > { %19464 = vst [vmem:[#allocation161_spill] sm:$0xff] %v18097_v47 }
 0xde3   : > { %v18101_v57 = vpop.f32.mrf.mxu0 }
 0xde4   : > { %19465 = vst [vmem:[#allocation163_spill] sm:$0xff] %v18101_v57 }
 0xde5   : > { %v18103_v29 = vpop.f32.mrf.mxu0  ;;  %v18115_v39 = vpop.f32.mrf.mxu1 }
 0xde6   : > { %19466 = vst [vmem:[#allocation166_spill] sm:$0xff] %v18103_v29 }
 0xde7   : > { %v18107_v43 = vpop.f32.mrf.mxu0  ;;  %v18121_v34 = vpop.f32.mrf.mxu1 }
 0xde8   : > { %19467 = vst [vmem:[#allocation164_spill] sm:$0xff] %v18107_v43 }
 0xde9   : > { %v18109_v45 = vpop.f32.mrf.mxu0  ;;  %v18127_v12 = vpop.f32.mrf.mxu1 }
 0xdea   : > { %19468 = vst [vmem:[#allocation168_spill] sm:$0xff] %v18109_v45 }
 0xdeb   : > { %v18113_v22 = vpop.f32.mrf.mxu0  ;;  %v18133_v29 = vpop.f32.mrf.mxu1 }
 0xdec   : > { %19469 = vst [vmem:[#allocation169_spill] sm:$0xff] %v18113_v22 }
 0xded   : > { %v18117_v19 = vpop.f32.mrf.mxu0 }
 0xdee   : > { %19470 = vst [vmem:[#allocation172_spill] sm:$0xff] %v18117_v19 }
 0xdef   : > { %v18119_v55 = vpop.f32.mrf.mxu0 }
 0xdf0   : > { %19471 = vst [vmem:[#allocation171_spill] sm:$0xff] %v18119_v55 }
 0xdf1   : > { %v18123_v21 = vpop.f32.mrf.mxu0 }
 0xdf2   : > { %19472 = vst [vmem:[#allocation174_spill] sm:$0xff] %v18123_v21 }
 0xdf3   : > { %v18125_v54 = vpop.f32.mrf.mxu0 }
 0xdf4   : > { %19473 = vst [vmem:[#allocation175_spill] sm:$0xff] %v18125_v54 }
 0xdf5   : > { %v18129_v5 = vpop.f32.mrf.mxu0  ;;  %v18137_v43 = vpop.f32.mrf.mxu1 }
 0xdf6   : > { %19474 = vst [vmem:[#allocation179_spill] sm:$0xff] %v18129_v5  ;;  %19477 = vst [vmem:[#allocation182_spill] sm:$0xff] %v18137_v43 }
 0xdf7   : > { %v18131_v45 = vpop.f32.mrf.mxu0  ;;  %v18143_v57 = vpop.f32.mrf.mxu1 }
 0xdf8   : > { %19475 = vst [vmem:[#allocation177_spill] sm:$0xff] %v18131_v45  ;;  %19480 = vst [vmem:[#allocation186_spill] sm:$0xff] %v18143_v57  ;;  %v13956_v57 = vld [vmem:[%s16666_s25 + $0x28] sm:$0xff] }
 0xdf9   : > { %v18135_v22 = vpop.f32.mrf.mxu0  ;;  %v18149_v47 = vpop.f32.mrf.mxu1 }
 0xdfa   : > { %19476 = vst [vmem:[#allocation180_spill] sm:$0xff] %v18135_v22  ;;  %19483 = vst [vmem:[#allocation189_spill] sm:$0xff] %v18149_v47 }
 0xdfb   : > { %v18139_v19 = vpop.f32.mrf.mxu0  ;;  %v18155_v28 = vpop.f32.mrf.mxu1 }
 0xdfc   : > { %19478 = vst [vmem:[#allocation185_spill] sm:$0xff] %v18139_v19  ;;  %19486 = vst [vmem:[#allocation135_spill] sm:$0xff] %v18155_v28 }
 0xdfd   : > { %v18141_v55 = vpop.f32.mrf.mxu0 }
 0xdfe   : > { %19479 = vst [vmem:[#allocation183_spill] sm:$0xff] %v18141_v55 }
 0xdff   : > { %v18145_v21 = vpop.f32.mrf.mxu0 }
 0xe00   : > { %19481 = vst [vmem:[#allocation188_spill] sm:$0xff] %v18145_v21 }
 0xe01   : > { %v18147_v54 = vpop.f32.mrf.mxu0 }
 0xe02   : > { %19482 = vst [vmem:[#allocation191_spill] sm:$0xff] %v18147_v54 }
 0xe03   : > { %v18151_v5 = vpop.f32.mrf.mxu0 }
 0xe04   : > { %19484 = vst [vmem:[#allocation194_spill] sm:$0xff] %v18151_v5 }
 0xe05   : > { %v18153_v45 = vpop.f32.mrf.mxu0  ;;  %v18159_v38 = vpop.f32.mrf.mxu1 }
 0xe06   : > { %19485 = vst [vmem:[#allocation196_spill] sm:$0xff] %v18153_v45  ;;  %19488 = vst [vmem:[#allocation137_spill] sm:$0xff] %v18159_v38  ;;  %v19509_v38 = vsub.s32 1, %v19506_v36 }
 0xe07   : > { %v18157_v22 = vpop.f32.mrf.mxu0  ;;  %v18165_v15 = vpop.f32.mrf.mxu1 }
 0xe08   : > { %19487 = vst [vmem:[#allocation16_spill] sm:$0xff] %v18157_v22  ;;  %19491 = vst [vmem:[#allocation124_spill] sm:$0xff] %v18165_v15 }
 0xe09   : > { %v18161_v19 = vpop.f32.mrf.mxu0  ;;  %v18171_v30 = vpop.f32.mrf.mxu1 }
 0xe0a   : > { %19489 = vst [vmem:[#allocation125_spill] sm:$0xff] %v18161_v19  ;;  %19494 = vst [vmem:[#allocation12_spill] sm:$0xff] %v18171_v30 }
 0xe0b   : > { %v18163_v55 = vpop.f32.mrf.mxu0  ;;  %v18177_v3 = vpop.f32.mrf.mxu1 }
 0xe0c   : > { %19490 = vst [vmem:[#allocation20_spill] sm:$0xff] %v18163_v55  ;;  %19497 = vst [vmem:[#allocation93_spill] sm:$0xff] %v18177_v3 }
 0xe0d   : > { %v18167_v21 = vpop.f32.mrf.mxu0 }
 0xe0e   : > { %19492 = vst [vmem:[#allocation131_spill] sm:$0xff] %v18167_v21 }
 0xe0f   : > { %v18169_v54 = vpop.f32.mrf.mxu0 }
 0xe10   : > { %19493 = vst [vmem:[#allocation109_spill] sm:$0xff] %v18169_v54 }
 0xe11   : > { %v18173_v5 = vpop.f32.mrf.mxu0 }
 0xe12   : > { %19495 = vst [vmem:[#allocation108_spill] sm:$0xff] %v18173_v5 }
 0xe13   : > { %v18175_v45 = vpop.f32.mrf.mxu0 }
 0xe14   : > { %19496 = vst [vmem:[#allocation117_spill] sm:$0xff] %v18175_v45  ;;  %v11615_v45 = vld [vmem:[%s18674_s12 + $0x3] sm:$0x7] }
 0xe15   : > { %v18179_v22 = vpop.f32.mrf.mxu0  ;;  %v18181_v42 = vpop.f32.mrf.mxu1  ;;  %v18212_v17 = vrot.slane %v11615_v45, %v19509_v38 }
 0xe16   : > { %19498 = vst [vmem:[#allocation116_spill] sm:$0xff] %v18179_v22  ;;  %19499 = vst [vmem:[#allocation21_spill] sm:$0xff] %v18181_v42 }
 0xe17   : > { %v18183_v19 = vpop.f32.mrf.mxu0  ;;  %v18185_v55 = vpop.f32.mrf.mxu1 }
 0xe18   : > { %19500 = vst [vmem:[#allocation92_spill] sm:$0xff] %v18183_v19  ;;  %19501 = vst [vmem:[#allocation101_spill] sm:$0xff] %v18185_v55  ;;  %v19507_v55 = vsub.s32 0, %v19506_v36 }
 0xe19   : > { %v18187_v44 = vpop.f32.mrf.mxu0  ;;  %v18189_v21 = vpop.f32.mrf.mxu1 }
 0xe1a   : > { %19502 = vst [vmem:[#allocation162_spill] sm:$0xff] %v18187_v44  ;;  %19503 = vst [vmem:[#allocation77_spill] sm:$0xff] %v18189_v21  ;;  %v18201_v15 = vrot.slane %v11615_v45, %v19507_v55 }
 0xe1b   : > { %v18191_v54 = vpop.f32.mrf.mxu0  ;;  %v18193_v30 = vpop.f32.mrf.mxu1 }
 0xe1c   : > { %19504 = vst [vmem:[#allocation100_spill] sm:$0xff] %v18191_v54  ;;  %19505 = vst [vmem:[#allocation22_spill] sm:$0xff] %v18193_v30  ;;  %v19508_v30 = vsub.s32 2, %v19506_v36 }
 0xe1d   : > { %v9657_v5 = vpop.f32.mrf.mxu1  ;;  %v13329_v22 = vpop.f32.mrf.mxu0 }
 0xe1e   : > { %v9658_v19 = vadd.f32 %v9657_v5, %v17980_v24  ;;  %v9859_v54 = vadd.f32 %v13329_v22, %v18013_v14  ;;  %v18207_v21 = vrot.slane %v11615_v45, %v19508_v30  ;;  %v13952_v22 = vld [vmem:[%s16666_s25 + $0x58] sm:$0xff] }
 0xe1f   : > { %v9659_v3 = vpop.f32.mrf.mxu1  ;;  %v9850_v42 = vpop.f32.mrf.mxu0 }
 0xe20   : > { %v9851_v44 = vadd.f32 %v9850_v42, %v18022_v61  ;;  %v9660_v37 = vadd.f32 %v9659_v3, %v17985_v0  ;;  %v9995_v14 = vadd.f32 %v18201_v15, %v9658_v19  ;;  %v10003_v3 = vadd.f32 %v18207_v21, %v9859_v54 }
 0xe21   : > { %v9661_v28 = vpop.f32.mrf.mxu1  ;;  %v13330_v24 = vpop.f32.mrf.mxu0 }
 0xe22   : > { %v9662_v5 = vadd.f32 %v9661_v28, %v17987_v18  ;;  %v9862_v55 = vadd.f32 %v13330_v24, %v18028_v53  ;;  %v9997_v42 = vadd.f32 %v18207_v21, %v9851_v44  ;;  %v9996_v30 = vadd.f32 %v18212_v17, %v9660_v37  ;;  %v13951_v44 = vld [vmem:[%s16666_s25 + $0x18] sm:$0xff] }
 0xe23   : > { %v9663_v35 = vpop.f32.mrf.mxu1  ;;  %v9853_v61 = vpop.f32.mrf.mxu0 }
 0xe24   : > { %v9664_v0 = vadd.f32 %v9663_v35, %v17989_v63  ;;  %v9854_v36 = vadd.f32 %v9853_v61, %v18037_v20  ;;  %v9998_v18 = vadd.f32 %v18201_v15, %v9662_v5  ;;  %v10006_v53 = vadd.f32 %v18207_v21, %v9862_v55  ;;  %v13953_v5 = vld [vmem:[%s16666_s25] sm:$0xff]  ;;  %v13954_v61 = vld [vmem:[%s16666_s25 + $0x10] sm:$0xff] }
 0xe25   : > { %v9667_v28 = vpop.f32.mrf.mxu1  ;;  %v13333_v38 = vpop.f32.mrf.mxu0  ;;  %v10091_v55 = vmul.f32 %v13953_v5, %v9995_v14  ;;  %v10093_v47 = vmul.f32 %v13954_v61, %v9997_v42 }
 0xe26   : > { %v9999_v45 = vadd.f32 %v18212_v17, %v9664_v0  ;;  %v10000_v63 = vadd.f32 %v18207_v21, %v9854_v36  ;;  %v9668_v20 = vadd.f32 %v9667_v28, %v17991_v40  ;;  %v9875_v35 = vadd.f32 %v13333_v38, %v18041_v2  ;;  %v13955_v0 = vld [vmem:[%s16666_s25 + $0x20] sm:$0xff]  ;;  %v13958_v28 = vld [vmem:[%s16666_s25 + $0x8] sm:$0xff] }
 0xe27   : > { %v10094_v37 = vmul.f32 %v13951_v44, %v9998_v18  ;;  %v10102_v19 = vmul.f32 %v13952_v22, %v10006_v53  ;;  %v9669_v54 = vpop.f32.mrf.mxu1  ;;  %v9866_v24 = vpop.f32.mrf.mxu0  ;;  %v10099_v40 = vmul.f32 %v13957_v26, %v10003_v3  ;;  %v10092_v43 = vmul.f32 %v13958_v28, %v9996_v30  ;;  %v13963_v28 = vld [vmem:[%s16666_s25 + $0x70] sm:$0xff] }
 0xe28   : > { %v10095_v9 = vmul.f32 %v13955_v0, %v9999_v45  ;;  %v10096_v36 = vmul.f32 %v13956_v57, %v10000_v63  ;;  %v9670_v2 = vadd.f32 %v9669_v54, %v17996_v49  ;;  %v9867_v18 = vadd.f32 %v9866_v24, %v18049_v52  ;;  %v13961_v54 = vld [vmem:[%s16666_s25 + $0xb8] sm:$0xff] }
 0xe29   : > { %v9671_v38 = vpop.f32.mrf.mxu1  ;;  %v13334_v53 = vpop.f32.mrf.mxu0  ;;  %v10001_v22 = vadd.f32 %v18201_v15, %v9668_v20  ;;  %v10015_v14 = vadd.f32 %v18207_v21, %v9875_v35  ;;  %v10187_v45 = vpack.c.bf16 %v10094_v37, %v10091_v55  ;;  %v10192_v5 = vpack.c.bf16 %v10102_v19, %v10099_v40  ;;  %v13960_v37 = vld [vmem:[%s16666_s25 + $0x30] sm:$0xff] }
 0xe2a   : > { %v10189_v44 = vpack.c.bf16 %v10096_v36, %v10093_v47  ;;  %v9672_v42 = vadd.f32 %v9671_v38, %v17998_v59  ;;  %v9878_v26 = vadd.f32 %v13334_v53, %v18056_v8  ;;  %v10188_v30 = vpack.c.bf16 %v10095_v9, %v10092_v43  ;;  %v13959_v43 = vld [vmem:[%s16666_s25 + $0x48] sm:$0xff]  ;;  %v13962_v36 = vld [vmem:[%s16666_s25 + $0xa0] sm:$0xff] }
 0xe2b   : > { %v9673_v57 = vpop.f32.mrf.mxu1  ;;  %v9869_v3 = vpop.f32.mrf.mxu0  ;;  %v10009_v49 = vadd.f32 %v18207_v21, %v9867_v18  ;;  %v10002_v59 = vadd.f32 %v18212_v17, %v9670_v2  ;;  %v10097_v19 = vmul.f32 %v13960_v37, %v10001_v22  ;;  %v10111_v40 = vmul.f32 %v13962_v36, %v10015_v14  ;;  %v13964_v18 = vld [vmem:[%s16666_s25 + $0x50] sm:$0xff]  ;;  %v13965_v53 = vld [vmem:[%s16666_s25 + $0x88] sm:$0xff]  ;;  %v13968_v37 = vld [vmem:[%s16666_s25 + $0x78] sm:$0xff] }
 0xe2c   : > { %v10004_v52 = vadd.f32 %v18201_v15, %v9672_v42  ;;  %v9674_v47 = vadd.f32 %v9673_v57, %v18000_v31  ;;  %v9870_v63 = vadd.f32 %v9869_v3, %v18064_v25  ;;  %13363 = vmatprep.mubr.msk.bf16.mxu1 %vm2337_vm2, %v10189_v44  ;;  %v10018_v20 = vadd.f32 %v18207_v21, %v9878_v26  ;;  %v13966_v42 = vld [vmem:[%s16666_s25 + $0x38] sm:$0xff]  ;;  %v13970_v36 = vld [vmem:[%s16666_s25 + $0xd0] sm:$0xff] }
 0xe2d   : > { %10315 = vmatprep.mubr.bf16.mxu0 %v10188_v30  ;;  %v9677_v8 = vpop.f32.mrf.mxu1  ;;  %v13337_v9 = vpop.f32.mrf.mxu0  ;;  %13364 = vmatmul.mubr.msk.bf16.vlgmr.msra.gmra.mxu1 %vm2337_vm2, %v10192_v5  ;;  %v10105_v2 = vmul.f32 %v13963_v28, %v10009_v49  ;;  %v10098_v5 = vmul.f32 %v13966_v42, %v10002_v59  ;;  %v13971_v28 = vld [vmem:[%s16666_s25 + $0x80] sm:$0xff]  ;;  %v13974_v42 = vld [vmem:[%s16666_s25 + $0x118] sm:$0xff] }
 0xe2e   : > { %v10100_v35 = vmul.f32 %v13959_v43, %v10004_v52  ;;  %v10005_v31 = vadd.f32 %v18212_v17, %v9674_v47  ;;  %v10012_v25 = vadd.f32 %v18207_v21, %v9870_v63  ;;  %10316 = vmatmul.mubr.bf16.vlgmr.msra.gmra.mxu0 %v10187_v45  ;;  %v10114_v24 = vmul.f32 %v13961_v54, %v10018_v20 }
 0xe2f   : > { %v9678_v55 = vadd.f32 %v9677_v8, %v18002_v48  ;;  %v9679_v61 = vpop.f32.mrf.mxu1  ;;  %v9882_v0 = vpop.f32.mrf.mxu0  ;;  %v9891_v45 = vadd.f32 %v13337_v9, %v18069_v33 }
 0xe30   : > { %v10101_v38 = vmul.f32 %v13964_v18, %v10005_v31  ;;  %v10108_v44 = vmul.f32 %v13965_v53, %v10012_v25  ;;  %v9680_v22 = vadd.f32 %v9679_v61, %v18007_v6  ;;  %v9883_v26 = vadd.f32 %v9882_v0, %v18075_v46  ;;  %v13969_v61 = vld [vmem:[%s16666_s25 + $0x68] sm:$0xff]  ;;  %v13973_v53 = vld [vmem:[%s16666_s25 + $0x100] sm:$0xff] }
 0xe31   : > { %v9681_v57 = vpop.f32.mrf.mxu1  ;;  %v13338_v48 = vpop.f32.mrf.mxu0  ;;  %v10190_v3 = vpack.c.bf16 %v10100_v35, %v10097_v19  ;;  %v10198_v52 = vpack.c.bf16 %v10114_v24, %v10111_v40  ;;  %v10007_v47 = vadd.f32 %v18201_v15, %v9678_v55  ;;  %v13972_v18 = vld [vmem:[%s16666_s25 + $0xe8] sm:$0xff] }
 0xe32   : > { %v10195_v30 = vpack.c.bf16 %v10108_v44, %v10105_v2  ;;  %v9682_v14 = vadd.f32 %v9681_v57, %v18009_v60  ;;  %v9894_v49 = vadd.f32 %v13338_v48, %v18083_v23  ;;  %v10008_v63 = vadd.f32 %v18212_v17, %v9680_v22 }
 0xe33   : > { %v9683_v59 = vpop.f32.mrf.mxu1  ;;  %v9885_v20 = vpop.f32.mrf.mxu0  ;;  %v10191_v33 = vpack.c.bf16 %v10101_v38, %v10098_v5  ;;  %v10021_v6 = vadd.f32 %v18207_v21, %v9883_v26  ;;  %v10027_v23 = vadd.f32 %v18207_v21, %v9891_v45 }
 0xe34   : > { %v10010_v46 = vadd.f32 %v18201_v15, %v9682_v14  ;;  %v9684_v8 = vadd.f32 %v9683_v59, %v18011_v50  ;;  %v9886_v60 = vadd.f32 %v9885_v20, %v18089_v32  ;;  %13367 = vmatprep.mubr.msk.bf16.mxu1 %vm2337_vm2, %v10195_v30  ;;  %v10030_v9 = vadd.f32 %v18207_v21, %v9894_v49  ;;  %v13967_v32 = vld [vmem:[%s16666_s25 + $0x60] sm:$0xff] }
 0xe35   : > { %10323 = vmatprep.mubr.bf16.mxu0 %v10191_v33  ;;  %v9687_v43 = vpop.f32.mrf.mxu1  ;;  %v13341_v35 = vpop.f32.mrf.mxu0  ;;  %13368 = vmatmul.mubr.msk.bf16.gmra.mxu1 %vm2337_vm2, %v10198_v52  ;;  %v10103_v25 = vmul.f32 %v13967_v32, %v10007_v47  ;;  %v10104_v0 = vmul.f32 %v13969_v61, %v10008_v63  ;;  %v10117_v40 = vmul.f32 %v13970_v36, %v10021_v6  ;;  %v13981_v61 = vld [vmem:[%s16666_s25 + $0x178] sm:$0xff] }
 0xe36   : > { %v10011_v31 = vadd.f32 %v18212_v17, %v9684_v8  ;;  %v10024_v50 = vadd.f32 %v18207_v21, %v9886_v60  ;;  %10324 = vmatmul.mubr.bf16.gmra.mxu0 %v10190_v3  ;;  %v10106_v19 = vmul.f32 %v13968_v37, %v10010_v46  ;;  %v9688_v54 = vadd.f32 %v9687_v43, %v18015_v10 }
 0xe37   : > { %v9689_v24 = vpop.f32.mrf.mxu1  ;;  %v9898_v55 = vpop.f32.mrf.mxu0  ;;  %v10123_v44 = vmul.f32 %v13973_v53, %v10027_v23  ;;  %v10126_v5 = vmul.f32 %v13974_v42, %v10030_v9  ;;  %v9907_v52 = vadd.f32 %v13341_v35, %v18093_v27  ;;  %v13976_v23 = vld [vmem:[%s16666_s25 + $0xa8] sm:$0xff]  ;;  %v13982_v42 = vld [vmem:[%s16666_s25 + $0x160] sm:$0xff] }
 0xe38   : > { %v10107_v2 = vmul.f32 %v13971_v28, %v10011_v31  ;;  %v10120_v38 = vmul.f32 %v13972_v18, %v10024_v50  ;;  %v9690_v45 = vadd.f32 %v9689_v24, %v18020_v13  ;;  %v9899_v22 = vadd.f32 %v9898_v55, %v18099_v58  ;;  %v13977_v50 = vld [vmem:[%s16666_s25 + $0x98] sm:$0xff]  ;;  %v13980_v24 = vld [vmem:[%s16666_s25 + $0x148] sm:$0xff] }
 0xe39   : > { %v9691_v26 = vpop.f32.mrf.mxu1  ;;  %v13342_v10 = vpop.f32.mrf.mxu0  ;;  %v10193_v14 = vpack.c.bf16 %v10106_v19, %v10103_v25  ;;  %v10013_v49 = vadd.f32 %v18201_v15, %v9688_v54  ;;  %v10204_v20 = vpack.c.bf16 %v10126_v5, %v10123_v44  ;;  %v13978_v25 = vld [vmem:[%s16666_s25 + $0x130] sm:$0xff] }
 0xe3a   : > { %v10201_v57 = vpack.c.bf16 %v10120_v38, %v10117_v40  ;;  %v9692_v48 = vadd.f32 %v9691_v26, %v18024_v1  ;;  %v9910_v3 = vadd.f32 %v13342_v10, %v18105_v11  ;;  %v10194_v30 = vpack.c.bf16 %v10107_v2, %v10104_v0  ;;  %v13979_v19 = vld [vmem:[%s16666_s25 + $0xb0] sm:$0xff] }
 0xe3b   : > { %v10014_v47 = vadd.f32 %v18212_v17, %v9690_v45  ;;  %v9693_v63 = vpop.f32.mrf.mxu1  ;;  %v9901_v13 = vpop.f32.mrf.mxu0  ;;  %v10033_v58 = vadd.f32 %v18207_v21, %v9899_v22 }
 0xe3c   : > { %v10016_v59 = vadd.f32 %v18201_v15, %v9692_v48  ;;  %v9694_v1 = vadd.f32 %v9693_v63, %v18026_v62  ;;  %v9902_v11 = vadd.f32 %v9901_v13, %v18111_v16  ;;  %10331 = vmatprep.mubr.bf16.mxu0 %v10194_v30  ;;  %v10042_v33 = vadd.f32 %v18207_v21, %v9910_v3  ;;  %v13975_v62 = vld [vmem:[%s16666_s25 + $0x90] sm:$0xff] }
 0xe3d   : > { %13371 = vmatprep.mubr.msk.bf16.mxu1 %vm2337_vm2, %v10201_v57  ;;  %v9697_v27 = vpop.f32.mrf.mxu1  ;;  %v13345_v6 = vpop.f32.mrf.mxu0  ;;  %v10109_v60 = vmul.f32 %v13975_v62, %v10013_v49  ;;  %v10039_v16 = vadd.f32 %v18207_v21, %v9907_v52  ;;  %v10110_v32 = vmul.f32 %v13977_v50, %v10014_v47  ;;  %v10129_v37 = vmul.f32 %v13978_v25, %v10033_v58  ;;  %v13984_v47 = vld [vmem:[%s16666_s25 + $0xd8] sm:$0xff]  ;;  %v19510_v58 = vld [vmem:[#allocation182_spill] sm:$0xff] }
 0xe3e   : > { %v10017_v46 = vadd.f32 %v18212_v17, %v9694_v1  ;;  %v10036_v8 = vadd.f32 %v18207_v21, %v9902_v11  ;;  %10332 = vmatmul.mubr.bf16.gmra.mxu0 %v10193_v14  ;;  %v10112_v9 = vmul.f32 %v13976_v23, %v10016_v59  ;;  %v9698_v43 = vadd.f32 %v9697_v27, %v18030_v4  ;;  %v13986_v27 = vld [vmem:[%s16666_s25 + $0x190] sm:$0xff]  ;;  %v13988_v62 = vld [vmem:[%s16666_s25 + $0x1a8] sm:$0xff] }
 0xe3f   : > { %13372 = vmatmul.mubr.msk.bf16.gmra.mxu1 %vm2337_vm2, %v10204_v20  ;;  %v9699_v35 = vpop.f32.mrf.mxu1  ;;  %v9914_v31 = vpop.f32.mrf.mxu0  ;;  %v10138_v0 = vmul.f32 %v13981_v61, %v10042_v33  ;;  %v9923_v36 = vadd.f32 %v13345_v6, %v18115_v39  ;;  %v10135_v5 = vmul.f32 %v13982_v42, %v10039_v16  ;;  %v13985_v20 = vld [vmem:[%s16666_s25 + $0xc8] sm:$0xff]  ;;  %v13989_v16 = vld [vmem:[%s16666_s25 + $0x1c0] sm:$0xff]  ;;  %v19516_v42 = vld [vmem:[#allocation135_spill] sm:$0xff] }
 0xe40   : > { %v10113_v54 = vmul.f32 %v13979_v19, %v10017_v46  ;;  %v10132_v55 = vmul.f32 %v13980_v24, %v10036_v8  ;;  %v9700_v40 = vadd.f32 %v9699_v35, %v18035_v7  ;;  %v9915_v4 = vadd.f32 %v9914_v31, %v18121_v34  ;;  %v13987_v46 = vld [vmem:[%s16666_s25 + $0xe0] sm:$0xff]  ;;  %v19511_v35 = vld [vmem:[#allocation195_spill] sm:$0xff]  ;;  %v19512_v31 = vld [vmem:[#allocation186_spill] sm:$0xff] }
 0xe41   : > { %v9701_v28 = vpop.f32.mrf.mxu1  ;;  %v13346_v2 = vpop.f32.mrf.mxu0  ;;  %v10196_v45 = vpack.c.bf16 %v10112_v9, %v10109_v60  ;;  %v10019_v22 = vadd.f32 %v18201_v15, %v9698_v43  ;;  %v10210_v57 = vpack.c.bf16 %v10138_v0, %v10135_v5  ;;  %v10051_v48 = vadd.f32 %v18207_v21, %v9923_v36  ;;  %v13990_v9 = vld [vmem:[%s16666_s25 + $0x1d8] sm:$0xff]  ;;  %v19513_v19 = vld [vmem:[#allocation150_spill] sm:$0xff]  ;;  %v19514_v24 = vld [vmem:[#allocation189_spill] sm:$0xff] }
 0xe42   : > { %v10207_v18 = vpack.c.bf16 %v10132_v55, %v10129_v37  ;;  %v9702_v38 = vadd.f32 %v9701_v28, %v18039_v56  ;;  %v9926_v53 = vadd.f32 %v13346_v2, %v18127_v12  ;;  %v10197_v44 = vpack.c.bf16 %v10113_v54, %v10110_v32 }
 0xe43   : > { %v10020_v26 = vadd.f32 %v18212_v17, %v9700_v40  ;;  %v9703_v39 = vpop.f32.mrf.mxu1  ;;  %v9917_v7 = vpop.f32.mrf.mxu0  ;;  %v10045_v34 = vadd.f32 %v18207_v21, %v9915_v4  ;;  %v10147_v23 = vmul.f32 %v13989_v16, %v10051_v48  ;;  %v13993_v48 = vld [vmem:[%s16666_s25 + $0x108] sm:$0xff] }
 0xe44   : > { %v10022_v10 = vadd.f32 %v18201_v15, %v9702_v38  ;;  %v9704_v56 = vadd.f32 %v9703_v39, %v18043_v51  ;;  %v9918_v12 = vadd.f32 %v9917_v7, %v18133_v29  ;;  %10339 = vmatprep.mubr.bf16.mxu0 %v10197_v44  ;;  %v10054_v3 = vadd.f32 %v18207_v21, %v9926_v53  ;;  %v13983_v51 = vld [vmem:[%s16666_s25 + $0xc0] sm:$0xff] }
 0xe45   : > { %13375 = vmatprep.mubr.msk.bf16.mxu1 %vm2337_vm2, %v10207_v18  ;;  %v9707_v30 = vpop.f32.mrf.mxu1  ;;  %v13349_v14 = vpop.f32.mrf.mxu0  ;;  %v10115_v29 = vmul.f32 %v13983_v51, %v10019_v22  ;;  %v10116_v33 = vmul.f32 %v13985_v20, %v10020_v26  ;;  %v10141_v6 = vmul.f32 %v13986_v27, %v10045_v34  ;;  %v19515_v53 = vld [vmem:[#allocation197_spill] sm:$0xff]  ;;  %v13994_v51 = vld [vmem:[%s16666_s25 + $0xf8] sm:$0xff] }
 0xe46   : > { %v10023_v49 = vadd.f32 %v18212_v17, %v9704_v56  ;;  %v10048_v52 = vadd.f32 %v18207_v21, %v9918_v12  ;;  %10340 = vmatmul.mubr.bf16.gmra.mxu0 %v10196_v45  ;;  %v10118_v63 = vmul.f32 %v13984_v47, %v10022_v10  ;;  %v9708_v13 = vadd.f32 %v9707_v30, %v18045_v41  ;;  %v13991_v10 = vld [vmem:[%s16666_s25 + $0xf0] sm:$0xff]  ;;  %v13992_v12 = vld [vmem:[%s16666_s25 + $0x220] sm:$0xff]  ;;  %v19517_v30 = vld [vmem:[#allocation152_spill] sm:$0xff] }
 0xe47   : > { %v9939_v59 = vadd.f32 %v13349_v14, %v19510_v58  ;;  %13376 = vmatmul.mubr.msk.bf16.gmra.mxu1 %vm2337_vm2, %v10210_v57  ;;  %v9709_v1 = vpop.f32.mrf.mxu1  ;;  %v9930_v11 = vpop.f32.mrf.mxu0  ;;  %v10150_v43 = vmul.f32 %v13990_v9, %v10054_v3  ;;  %v13995_v47 = vld [vmem:[%s16666_s25 + $0x1f0] sm:$0xff]  ;;  %v19521_v9 = vld [vmem:[#allocation153_spill] sm:$0xff] }
 0xe48   : > { %v10119_v8 = vmul.f32 %v13987_v46, %v10023_v49  ;;  %v10144_v60 = vmul.f32 %v13988_v62, %v10048_v52  ;;  %v9710_v41 = vadd.f32 %v9709_v1, %v19511_v35  ;;  %v9931_v50 = vadd.f32 %v9930_v11, %v19512_v31  ;;  %v13998_v11 = vld [vmem:[%s16666_s25 + $0x238] sm:$0xff] }
 0xe49   : > { %v9711_v32 = vpop.f32.mrf.mxu1  ;;  %v13350_v25 = vpop.f32.mrf.mxu0  ;;  %v10199_v0 = vpack.c.bf16 %v10118_v63, %v10115_v29  ;;  %v10025_v36 = vadd.f32 %v18201_v15, %v9708_v13  ;;  %v10063_v40 = vadd.f32 %v18207_v21, %v9939_v59  ;;  %v10216_v45 = vpack.c.bf16 %v10150_v43, %v10147_v23  ;;  %v13996_v13 = vld [vmem:[%s16666_s25 + $0x110] sm:$0xff]  ;;  %v13997_v59 = vld [vmem:[%s16666_s25 + $0x208] sm:$0xff]  ;;  %v19522_v35 = vld [vmem:[#allocation12_spill] sm:$0xff] }
 0xe4a   : > { %v10213_v37 = vpack.c.bf16 %v10144_v60, %v10141_v6  ;;  %v9712_v54 = vadd.f32 %v9711_v32, %v19513_v19  ;;  %v9942_v55 = vadd.f32 %v13350_v25, %v19514_v24  ;;  %v10200_v61 = vpack.c.bf16 %v10119_v8, %v10116_v33  ;;  %v19518_v33 = vld [vmem:[#allocation137_spill] sm:$0xff]  ;;  %v19519_v6 = vld [vmem:[#allocation151_spill] sm:$0xff]  ;;  %v19520_v8 = vld [vmem:[#allocation124_spill] sm:$0xff] }
 0xe4b   : > { %v10026_v4 = vadd.f32 %v18212_v17, %v9710_v41  ;;  %v9713_v28 = vpop.f32.mrf.mxu1  ;;  %v9933_v2 = vpop.f32.mrf.mxu0  ;;  %v10057_v18 = vadd.f32 %v18207_v21, %v9931_v50  ;;  %v10121_v56 = vmul.f32 %v13991_v10, %v10025_v36  ;;  %v10159_v57 = vmul.f32 %v13992_v12, %v10063_v40  ;;  %v19524_v36 = vld [vmem:[#allocation93_spill] sm:$0xff] }
 0xe4c   : > { %v10028_v38 = vadd.f32 %v18201_v15, %v9712_v54  ;;  %v9714_v44 = vadd.f32 %v9713_v28, %v19515_v53  ;;  %v9934_v5 = vadd.f32 %v9933_v2, %v19516_v42  ;;  %10347 = vmatprep.mubr.bf16.mxu0 %v10200_v61  ;;  %v10066_v22 = vadd.f32 %v18207_v21, %v9942_v55  ;;  %v19523_v61 = vld [vmem:[#allocation154_spill] sm:$0xff] }
 0xe4d   : > { %13379 = vmatprep.mubr.msk.bf16.mxu1 %vm2337_vm2, %v10213_v37  ;;  %v9717_v26 = vpop.f32.mrf.mxu1  ;;  %v13353_v39 = vpop.f32.mrf.mxu0  ;;  %v10122_v29 = vmul.f32 %v13994_v51, %v10026_v4  ;;  %v10153_v63 = vmul.f32 %v13995_v47, %v10057_v18  ;;  %v19527_v47 = vld [vmem:[#allocation155_spill] sm:$0xff] }
 0xe4e   : > { %v10029_v7 = vadd.f32 %v18212_v17, %v9714_v44  ;;  %v10060_v34 = vadd.f32 %v18207_v21, %v9934_v5  ;;  %10348 = vmatmul.mubr.bf16.gmra.mxu0 %v10199_v0  ;;  %v10124_v3 = vmul.f32 %v13993_v48, %v10028_v38  ;;  %v9718_v14 = vadd.f32 %v9717_v26, %v19517_v30  ;;  %v13999_v44 = vld [vmem:[%s16666_s25 + $0x120] sm:$0xff]  ;;  %v14000_v5 = vld [vmem:[%s16666_s25 + $0x128] sm:$0xff] }
 0xe4f   : > { %13380 = vmatmul.mubr.msk.bf16.gmra.mxu1 %vm2337_vm2, %v10216_v45  ;;  %v9719_v49 = vpop.f32.mrf.mxu1  ;;  %v9946_v52 = vpop.f32.mrf.mxu0  ;;  %v10162_v20 = vmul.f32 %v13998_v11, %v10066_v22  ;;  %v9955_v27 = vadd.f32 %v13353_v39, %v19518_v33  ;;  %v14001_v22 = vld [vmem:[%s16666_s25 + $0x138] sm:$0xff]  ;;  %v19525_v39 = vld [vmem:[#allocation21_spill] sm:$0xff] }
 0xe50   : > { %v10125_v58 = vmul.f32 %v13996_v13, %v10029_v7  ;;  %v10156_v1 = vmul.f32 %v13997_v59, %v10060_v34  ;;  %v9720_v46 = vadd.f32 %v9719_v49, %v19519_v6  ;;  %v9947_v62 = vadd.f32 %v9946_v52, %v19520_v8  ;;  %v19526_v52 = vld [vmem:[#allocation156_spill] sm:$0xff]  ;;  %v19528_v13 = vld [vmem:[#allocation101_spill] sm:$0xff] }
 0xe51   : > { %v9721_v60 = vpop.f32.mrf.mxu1  ;;  %v13354_v16 = vpop.f32.mrf.mxu0  ;;  %v10202_v50 = vpack.c.bf16 %v10124_v3, %v10121_v56  ;;  %v10031_v32 = vadd.f32 %v18201_v15, %v9718_v14  ;;  %v10222_v4 = vpack.c.bf16 %v10162_v20, %v10159_v57  ;;  %v10075_v18 = vadd.f32 %v18207_v21, %v9955_v27  ;;  %v14002_v56 = vld [vmem:[%s16666_s25 + $0x250] sm:$0xff]  ;;  %v14003_v57 = vld [vmem:[%s16666_s25 + $0x298] sm:$0xff]  ;;  %v14004_v3 = vld [vmem:[%s16666_s25 + $0x140] sm:$0xff] }
 0xe52   : > { %v10219_v23 = vpack.c.bf16 %v10156_v1, %v10153_v63  ;;  %v9722_v43 = vadd.f32 %v9721_v60, %v19521_v9  ;;  %v9958_v41 = vadd.f32 %v13354_v16, %v19522_v35  ;;  %v10203_v31 = vpack.c.bf16 %v10125_v58, %v10122_v29  ;;  %v14005_v14 = vld [vmem:[%s16666_s25 + $0x268] sm:$0xff]  ;;  %v19529_v20 = vld [vmem:[#allocation157_spill] sm:$0xff] }
 0xe53   : > { %v10032_v25 = vadd.f32 %v18212_v17, %v9720_v46  ;;  %v10069_v37 = vadd.f32 %v18207_v21, %v9947_v62  ;;  %v9723_v19 = vpop.f32.mrf.mxu1  ;;  %v9949_v54 = vpop.f32.mrf.mxu0  ;;  %v10127_v42 = vmul.f32 %v13999_v44, %v10031_v32  ;;  %v19530_v27 = vld [vmem:[#allocation77_spill] sm:$0xff]  ;;  %v19532_v32 = vld [vmem:[#allocation22_spill] sm:$0xff] }
 0xe54   : > { %v10034_v24 = vadd.f32 %v18201_v15, %v9722_v43  ;;  %v10078_v55 = vadd.f32 %v18207_v21, %v9958_v41  ;;  %v9724_v0 = vadd.f32 %v9723_v19, %v19523_v61  ;;  %v9950_v40 = vadd.f32 %v9949_v54, %v19524_v36  ;;  %10355 = vmatprep.mubr.bf16.mxu0 %v10203_v31  ;;  %v14006_v8 = vld [vmem:[%s16666_s25 + $0x280] sm:$0xff]  ;;  %v19531_v31 = vld [vmem:[#allocation158_spill] sm:$0xff]  ;;  %v14008_v61 = vld [vmem:[%s16666_s25 + $0x2f8] sm:$0xff] }
 0xe55   : > { %13383 = vmatprep.mubr.msk.bf16.mxu1 %vm2337_vm2, %v10219_v23  ;;  %v9727_v28 = vpop.f32.mrf.mxu1  ;;  %v13357_v2 = vpop.f32.mrf.mxu0  ;;  %v10128_v45 = vmul.f32 %v14000_v5, %v10032_v25  ;;  %v10165_v12 = vmul.f32 %v14002_v56, %v10069_v37  ;;  %v10171_v62 = vmul.f32 %v14006_v8, %v10075_v18  ;;  %v14012_v5 = vld [vmem:[%s16666_s25 + $0x170] sm:$0xff] }
 0xe56   : > { %v10035_v38 = vadd.f32 %v18212_v17, %v9724_v0  ;;  %v10072_v53 = vadd.f32 %v18207_v21, %v9950_v40  ;;  %10356 = vmatmul.mubr.bf16.gmra.mxu0 %v10202_v50  ;;  %v10130_v26 = vmul.f32 %v14001_v22, %v10034_v24  ;;  %v9971_v7 = vadd.f32 %v13357_v2, %v19525_v39  ;;  %v14007_v24 = vld [vmem:[%s16666_s25 + $0x2e0] sm:$0xff]  ;;  %v14010_v2 = vld [vmem:[%s16666_s25 + $0x168] sm:$0xff]  ;;  %v14014_v39 = vld [vmem:[%s16666_s25 + $0x150] sm:$0xff] }
 0xe57   : > { %13384 = vmatmul.mubr.msk.bf16.gmra.mxu1 %vm2337_vm2, %v10222_v4  ;;  %v9729_v34 = vpop.f32.mrf.mxu1  ;;  %v9962_v10 = vpop.f32.mrf.mxu0  ;;  %v10174_v48 = vmul.f32 %v14003_v57, %v10078_v55  ;;  %v9728_v51 = vadd.f32 %v9727_v28, %v19526_v52  ;;  %v14009_v4 = vld [vmem:[%s16666_s25 + $0x158] sm:$0xff]  ;;  %v14013_v22 = vld [vmem:[%s16666_s25 + $0x2c8] sm:$0xff] }
 0xe58   : > { %v10131_v30 = vmul.f32 %v14004_v3, %v10035_v38  ;;  %v10168_v49 = vmul.f32 %v14005_v14, %v10072_v53  ;;  %v10087_v29 = vadd.f32 %v18207_v21, %v9971_v7  ;;  %v9730_v63 = vadd.f32 %v9729_v34, %v19527_v47  ;;  %v14011_v53 = vld [vmem:[%s16666_s25 + $0x2b0] sm:$0xff] }
 0xe59   : > { %v9963_v58 = vadd.f32 %v9962_v10, %v19528_v13  ;;  %v9731_v59 = vpop.f32.mrf.mxu1  ;;  %v13358_v1 = vpop.f32.mrf.mxu0  ;;  %v10205_v60 = vpack.c.bf16 %v10130_v26, %v10127_v42  ;;  %v10228_v37 = vpack.c.bf16 %v10174_v48, %v10171_v62  ;;  %v10037_v19 = vadd.f32 %v18201_v15, %v9728_v51  ;;  %v19533_v34 = vld [vmem:[#allocation159_spill] sm:$0xff]  ;;  %v19535_v48 = vld [vmem:[#allocation161_spill] sm:$0xff] }
 0xe5a   : > { %v10225_v11 = vpack.c.bf16 %v10168_v49, %v10165_v12  ;;  %v9732_v33 = vadd.f32 %v9731_v59, %v19529_v20  ;;  %v9974_v6 = vadd.f32 %v13358_v1, %v19530_v27  ;;  %v10206_v46 = vpack.c.bf16 %v10131_v30, %v10128_v45  ;;  %v19534_v12 = vld [vmem:[#allocation160_spill] sm:$0xff]  ;;  %v14015_v1 = vld [vmem:[%s16666_s25 + $0x188] sm:$0xff]  ;;  %v14017_v27 = vld [vmem:[%s16666_s25 + $0x1a0] sm:$0xff] }
 0xe5b   : > { %v10038_v16 = vadd.f32 %v18212_v17, %v9730_v63  ;;  %v10081_v23 = vadd.f32 %v18207_v21, %v9963_v58  ;;  %v9733_v9 = vpop.f32.mrf.mxu1  ;;  %v9965_v43 = vpop.f32.mrf.mxu0  ;;  %v10183_v55 = vmul.f32 %v14007_v24, %v10087_v29  ;;  %v10133_v7 = vmul.f32 %v14014_v39, %v10037_v19  ;;  %v19536_v29 = vld [vmem:[#allocation163_spill] sm:$0xff]  ;;  %v14016_v20 = vld [vmem:[%s16666_s25 + $0x198] sm:$0xff] }
 0xe5c   : > { %v10040_v35 = vadd.f32 %v18201_v15, %v9732_v33  ;;  %v10090_v41 = vadd.f32 %v18207_v21, %v9974_v6  ;;  %v9734_v50 = vadd.f32 %v9733_v9, %v19531_v31  ;;  %v9966_v25 = vadd.f32 %v9965_v43, %v19532_v32  ;;  %10363 = vmatprep.mubr.bf16.mxu0 %v10206_v46  ;;  %v19537_v46 = vld [vmem:[#allocation164_spill] sm:$0xff] }
 0xe5d   : > { %13387 = vmatprep.mubr.msk.bf16.mxu1 %vm2337_vm2, %v10225_v11  ;;  %v9737_v54 = vpop.f32.mrf.mxu1  ;;  %v10134_v28 = vmul.f32 %v14009_v4, %v10038_v16  ;;  %v10177_v44 = vmul.f32 %v14011_v53, %v10081_v23  ;;  %v19538_v23 = vld [vmem:[#allocation166_spill] sm:$0xff]  ;;  %v19539_v43 = vld [vmem:[#allocation168_spill] sm:$0xff] }
 0xe5e   : > { %v10186_v0 = vmul.f32 %v14008_v61, %v10090_v41  ;;  %v10041_v36 = vadd.f32 %v18212_v17, %v9734_v50  ;;  %v10084_v40 = vadd.f32 %v18207_v21, %v9966_v25  ;;  %10364 = vmatmul.mubr.bf16.gmra.mxu0 %v10205_v60  ;;  %v10136_v18 = vmul.f32 %v14010_v2, %v10040_v35  ;;  %v14018_v60 = vld [vmem:[%s16666_s25 + $0x180] sm:$0xff] }
 0xe5f   : > { %13388 = vmatmul.mubr.msk.bf16.gmra.mxu1 %vm2337_vm2, %v10228_v37  ;;  %v9739_v38 = vpop.f32.mrf.mxu1  ;;  %v9738_v57 = vadd.f32 %v9737_v54, %v19534_v12  ;;  %v19540_v37 = vld [vmem:[#allocation169_spill] sm:$0xff] }
 0xe60   : > { %v10234_v42 = vpack.c.bf16 %v10186_v0, %v10183_v55  ;;  %v10137_v45 = vmul.f32 %v14012_v5, %v10041_v36  ;;  %v10180_v26 = vmul.f32 %v14013_v22, %v10084_v40  ;;  %v9740_v10 = vadd.f32 %v9739_v38, %v19533_v34  ;;  %v14019_v0 = vld [vmem:[%s16666_s25 + $0x1b8] sm:$0xff]  ;;  %v14020_v40 = vld [vmem:[%s16666_s25 + $0x1c8] sm:$0xff] }
 0xe61   : > { %v9741_v21 = vpop.f32.mrf.mxu1  ;;  %v10208_v14 = vpack.c.bf16 %v10136_v18, %v10133_v7  ;;  %v10043_v13 = vadd.f32 %v18201_v15, %v9738_v57  ;;  %v19541_v18 = vld [vmem:[#allocation171_spill] sm:$0xff]  ;;  %v19542_v5 = vld [vmem:[#allocation172_spill] sm:$0xff]  ;;  %v19543_v22 = vld [vmem:[#allocation174_spill] sm:$0xff] }
 0xe62   : > { %v10231_v56 = vpack.c.bf16 %v10180_v26, %v10177_v44  ;;  %v9742_v3 = vadd.f32 %v9741_v21, %v19535_v48  ;;  %v10209_v30 = vpack.c.bf16 %v10137_v45, %v10134_v28  ;;  %v10044_v52 = vadd.f32 %v18212_v17, %v9740_v10  ;;  %v14021_v28 = vld [vmem:[%s16666_s25 + $0x1d0] sm:$0xff] }
 0xe63   : > { %v9743_v49 = vpop.f32.mrf.mxu1  ;;  %v10139_v16 = vmul.f32 %v14018_v60, %v10043_v13  ;;  %v14022_v44 = vld [vmem:[%s16666_s25 + $0x1b0] sm:$0xff] }
 0xe64   : > { %v10046_v51 = vadd.f32 %v18201_v15, %v9742_v3  ;;  %v9744_v47 = vadd.f32 %v9743_v49, %v19536_v29  ;;  %10371 = vmatprep.mubr.bf16.mxu0 %v10209_v30  ;;  %13391 = vmatprep.mubr.msk.bf16.mxu1 %vm2337_vm2, %v10231_v56  ;;  %v10140_v11 = vmul.f32 %v14015_v1, %v10044_v52  ;;  %v19544_v56 = vld [vmem:[#allocation175_spill] sm:$0xff]  ;;  %v14024_v52 = vld [vmem:[%s16666_s25 + $0x1f8] sm:$0xff]  ;;  %v14025_v29 = vld [vmem:[%s16666_s25 + $0x200] sm:$0xff] }
 0xe65   : > { %v9747_v63 = vpop.f32.mrf.mxu1 }
 0xe66   : > { %v10047_v58 = vadd.f32 %v18212_v17, %v9744_v47  ;;  %10372 = vmatmul.mubr.bf16.gmra.mxu0 %v10208_v14  ;;  %v10142_v33 = vmul.f32 %v14016_v20, %v10046_v51  ;;  %v9748_v9 = vadd.f32 %v9747_v63, %v19538_v23  ;;  %v14023_v14 = vld [vmem:[%s16666_s25 + $0x1e8] sm:$0xff]  ;;  %v19545_v63 = vld [vmem:[#allocation177_spill] sm:$0xff] }
 0xe67   : > { %13392 = vmatmul.mubr.msk.bf16.gmra.mxu1 %vm2337_vm2, %v10234_v42  ;;  %v9749_v59 = vpop.f32.mrf.mxu1 }
 0xe68   : > { %v10143_v6 = vmul.f32 %v14017_v27, %v10047_v58  ;;  %v9750_v8 = vadd.f32 %v9749_v59, %v19537_v46  ;;  %v10211_v50 = vpack.c.bf16 %v10142_v33, %v10139_v16  ;;  %v10049_v24 = vadd.f32 %v18201_v15, %v9748_v9  ;;  %v14026_v59 = vld [vmem:[%s16666_s25 + $0x1e0] sm:$0xff]  ;;  %v19547_v33 = vld [vmem:[#allocation180_spill] sm:$0xff] }
 0xe69   : > { %v9751_v62 = vpop.f32.mrf.mxu1  ;;  %v19548_v16 = vld [vmem:[#allocation185_spill] sm:$0xff] }
 0xe6a   : > { %v9752_v35 = vadd.f32 %v9751_v62, %v19539_v43  ;;  %v10212_v41 = vpack.c.bf16 %v10143_v6, %v10140_v11  ;;  %v10050_v32 = vadd.f32 %v18212_v17, %v9750_v8  ;;  %v10145_v42 = vmul.f32 %v14022_v44, %v10049_v24  ;;  %v19546_v11 = vld [vmem:[#allocation179_spill] sm:$0xff] }
 0xe6b   : > { %v9753_v31 = vpop.f32.mrf.mxu1 }
 0xe6c   : > { %v10052_v25 = vadd.f32 %v18201_v15, %v9752_v35  ;;  %v9754_v19 = vadd.f32 %v9753_v31, %v19540_v37  ;;  %10379 = vmatprep.mubr.bf16.mxu0 %v10212_v41  ;;  %v10146_v36 = vmul.f32 %v14019_v0, %v10050_v32  ;;  %v14027_v31 = vld [vmem:[%s16666_s25 + $0x218] sm:$0xff]  ;;  %v14028_v32 = vld [vmem:[%s16666_s25 + $0x228] sm:$0xff]  ;;  %v14029_v37 = vld [vmem:[%s16666_s25 + $0x230] sm:$0xff] }
 0xe6d   : > { %v9757_v54 = vpop.f32.mrf.mxu1 }
 0xe6e   : > { %v10053_v55 = vadd.f32 %v18212_v17, %v9754_v19  ;;  %10380 = vmatmul.mubr.bf16.gmra.mxu0 %v10211_v50  ;;  %v10148_v4 = vmul.f32 %v14020_v40, %v10052_v25  ;;  %v9758_v45 = vadd.f32 %v9757_v54, %v19542_v5  ;;  %v19549_v54 = vld [vmem:[#allocation188_spill] sm:$0xff] }
 0xe6f   : > { %v9759_v61 = vpop.f32.mrf.mxu1 }
 0xe70   : > { %v10149_v2 = vmul.f32 %v14021_v28, %v10053_v55  ;;  %v9760_v38 = vadd.f32 %v9759_v61, %v19541_v18  ;;  %v10214_v34 = vpack.c.bf16 %v10148_v4, %v10145_v42  ;;  %v10055_v48 = vadd.f32 %v18201_v15, %v9758_v45  ;;  %v14030_v61 = vld [vmem:[%s16666_s25 + $0x210] sm:$0xff]  ;;  %v19552_v42 = vld [vmem:[#allocation194_spill] sm:$0xff] }
 0xe71   : > { %v9761_v53 = vpop.f32.mrf.mxu1  ;;  %v19551_v4 = vld [vmem:[#allocation191_spill] sm:$0xff] }
 0xe72   : > { %v9762_v26 = vadd.f32 %v9761_v53, %v19543_v22  ;;  %v10215_v39 = vpack.c.bf16 %v10149_v2, %v10146_v36  ;;  %v10056_v10 = vadd.f32 %v18212_v17, %v9760_v38  ;;  %v10151_v1 = vmul.f32 %v14026_v59, %v10055_v48  ;;  %v19550_v36 = vld [vmem:[#allocation183_spill] sm:$0xff] }
 0xe73   : > { %v9763_v7 = vpop.f32.mrf.mxu1 }
 0xe74   : > { %v10058_v21 = vadd.f32 %v18201_v15, %v9762_v26  ;;  %v9764_v12 = vadd.f32 %v9763_v7, %v19544_v56  ;;  %10387 = vmatprep.mubr.bf16.mxu0 %v10215_v39  ;;  %v10152_v49 = vmul.f32 %v14023_v14, %v10056_v10  ;;  %v14031_v7 = vld [vmem:[%s16666_s25 + $0x248] sm:$0xff]  ;;  %v14032_v10 = vld [vmem:[%s16666_s25 + $0x258] sm:$0xff]  ;;  %v14033_v56 = vld [vmem:[%s16666_s25 + $0x260] sm:$0xff] }
 0xe75   : > { %v9767_v57 = vpop.f32.mrf.mxu1 }
 0xe76   : > { %v10059_v3 = vadd.f32 %v18212_v17, %v9764_v12  ;;  %10388 = vmatmul.mubr.bf16.gmra.mxu0 %v10214_v34  ;;  %v10154_v51 = vmul.f32 %v14024_v52, %v10058_v21  ;;  %v9768_v20 = vadd.f32 %v9767_v57, %v19546_v11  ;;  %v19553_v57 = vld [vmem:[#allocation16_spill] sm:$0xff] }
 0xe77   : > { %v9769_v30 = vpop.f32.mrf.mxu1 }
 0xe78   : > { %v10155_v47 = vmul.f32 %v14025_v29, %v10059_v3  ;;  %v9770_v13 = vadd.f32 %v9769_v30, %v19545_v63  ;;  %v10217_v8 = vpack.c.bf16 %v10154_v51, %v10151_v1  ;;  %v10061_v43 = vadd.f32 %v18201_v15, %v9768_v20  ;;  %v14034_v30 = vld [vmem:[%s16666_s25 + $0x240] sm:$0xff]  ;;  %v19556_v1 = vld [vmem:[#allocation20_spill] sm:$0xff] }
 0xe79   : > { %v9771_v58 = vpop.f32.mrf.mxu1  ;;  %v19555_v51 = vld [vmem:[#allocation125_spill] sm:$0xff] }
 0xe7a   : > { %v9772_v27 = vadd.f32 %v9771_v58, %v19547_v33  ;;  %v10218_v6 = vpack.c.bf16 %v10155_v47, %v10152_v49  ;;  %v10062_v62 = vadd.f32 %v18212_v17, %v9770_v13  ;;  %v10157_v0 = vmul.f32 %v14030_v61, %v10061_v43  ;;  %v19554_v49 = vld [vmem:[#allocation196_spill] sm:$0xff] }
 0xe7b   : > { %v9773_v46 = vpop.f32.mrf.mxu1 }
 0xe7c   : > { %v10064_v60 = vadd.f32 %v18201_v15, %v9772_v27  ;;  %v9774_v23 = vadd.f32 %v9773_v46, %v19548_v16  ;;  %10395 = vmatprep.mubr.bf16.mxu0 %v10218_v6  ;;  %v10158_v50 = vmul.f32 %v14027_v31, %v10062_v62  ;;  %v14035_v46 = vld [vmem:[%s16666_s25 + $0x278] sm:$0xff]  ;;  %v14036_v62 = vld [vmem:[%s16666_s25 + $0x288] sm:$0xff]  ;;  %v14037_v16 = vld [vmem:[%s16666_s25 + $0x290] sm:$0xff] }
 0xe7d   : > { %v9777_v9 = vpop.f32.mrf.mxu1 }
 0xe7e   : > { %v10065_v35 = vadd.f32 %v18212_v17, %v9774_v23  ;;  %10396 = vmatmul.mubr.bf16.gmra.mxu0 %v10217_v8  ;;  %v10160_v25 = vmul.f32 %v14028_v32, %v10064_v60  ;;  %v9778_v40 = vadd.f32 %v9777_v9, %v19550_v36  ;;  %v19557_v9 = vld [vmem:[#allocation109_spill] sm:$0xff] }
 0xe7f   : > { %v9779_v41 = vpop.f32.mrf.mxu1 }
 0xe80   : > { %v10161_v19 = vmul.f32 %v14029_v37, %v10065_v35  ;;  %v9780_v24 = vadd.f32 %v9779_v41, %v19549_v54  ;;  %v10220_v38 = vpack.c.bf16 %v10160_v25, %v10157_v0  ;;  %v10067_v22 = vadd.f32 %v18201_v15, %v9778_v40  ;;  %v14038_v41 = vld [vmem:[%s16666_s25 + $0x270] sm:$0xff]  ;;  %v19559_v25 = vld [vmem:[#allocation108_spill] sm:$0xff]  ;;  %v19560_v0 = vld [vmem:[#allocation117_spill] sm:$0xff] }
 0xe81   : > { %v9781_v55 = vpop.f32.mrf.mxu1 }
 0xe82   : > { %v9782_v28 = vadd.f32 %v9781_v55, %v19551_v4  ;;  %v10221_v2 = vpack.c.bf16 %v10161_v19, %v10158_v50  ;;  %v10068_v53 = vadd.f32 %v18212_v17, %v9780_v24  ;;  %v10163_v14 = vmul.f32 %v14034_v30, %v10067_v22  ;;  %v19558_v50 = vld [vmem:[#allocation131_spill] sm:$0xff] }
 0xe83   : > { %v9783_v18 = vpop.f32.mrf.mxu1 }
 0xe84   : > { %v10070_v44 = vadd.f32 %v18201_v15, %v9782_v28  ;;  %v9784_v5 = vadd.f32 %v9783_v18, %v19552_v42  ;;  %10403 = vmatprep.mubr.bf16.mxu0 %v10221_v2  ;;  %v10164_v34 = vmul.f32 %v14031_v7, %v10068_v53  ;;  %v14039_v18 = vld [vmem:[%s16666_s25 + $0x2a8] sm:$0xff]  ;;  %v14040_v53 = vld [vmem:[%s16666_s25 + $0x2b8] sm:$0xff]  ;;  %v14041_v42 = vld [vmem:[%s16666_s25 + $0x2c0] sm:$0xff] }
 0xe85   : > { %v9787_v45 = vpop.f32.mrf.mxu1 }
 0xe86   : > { %v10071_v26 = vadd.f32 %v18212_v17, %v9784_v5  ;;  %10404 = vmatmul.mubr.bf16.gmra.mxu0 %v10220_v38  ;;  %v10166_v21 = vmul.f32 %v14032_v10, %v10070_v44  ;;  %v9788_v52 = vadd.f32 %v9787_v45, %v19554_v49  ;;  %v19561_v45 = vld [vmem:[#allocation92_spill] sm:$0xff] }
 0xe87   : > { %v9789_v39 = vpop.f32.mrf.mxu1 }
 0xe88   : > { %v10167_v12 = vmul.f32 %v14033_v56, %v10071_v26  ;;  %v9790_v48 = vadd.f32 %v9789_v39, %v19553_v57  ;;  %v10223_v13 = vpack.c.bf16 %v10166_v21, %v10163_v14  ;;  %v10073_v33 = vadd.f32 %v18201_v15, %v9788_v52  ;;  %v14042_v39 = vld [vmem:[%s16666_s25 + $0x2a0] sm:$0xff]  ;;  %v19563_v21 = vld [vmem:[#allocation162_spill] sm:$0xff]  ;;  %v19564_v14 = vld [vmem:[#allocation100_spill] sm:$0xff] }
 0xe89   : > { %v9791_v3 = vpop.f32.mrf.mxu1 }
 0xe8a   : > { %v9792_v29 = vadd.f32 %v9791_v3, %v19555_v51  ;;  %v10224_v47 = vpack.c.bf16 %v10167_v12, %v10164_v34  ;;  %v10074_v58 = vadd.f32 %v18212_v17, %v9790_v48  ;;  %v10169_v31 = vmul.f32 %v14038_v41, %v10073_v33  ;;  %v19562_v34 = vld [vmem:[#allocation116_spill] sm:$0xff] }
 0xe8b   : > { %v9793_v63 = vpop.f32.mrf.mxu1 }
 0xe8c   : > { %v10076_v59 = vadd.f32 %v18201_v15, %v9792_v29  ;;  %v9794_v11 = vadd.f32 %v9793_v63, %v19556_v1  ;;  %10411 = vmatprep.mubr.bf16.mxu0 %v10224_v47  ;;  %v10170_v8 = vmul.f32 %v14035_v46, %v10074_v58  ;;  %v14043_v29 = vld [vmem:[%s16666_s25 + $0x2d8] sm:$0xff]  ;;  %v14044_v63 = vld [vmem:[%s16666_s25 + $0x2e8] sm:$0xff]  ;;  %v14045_v58 = vld [vmem:[%s16666_s25 + $0x2f0] sm:$0xff] }
 0xe8d   : > { %v9797_v20 = vpop.f32.mrf.mxu1  ;;  %v14046_v1 = vld [vmem:[%s16666_s25 + $0x2d0] sm:$0xff]  ;;  %s10990_s25 = sshll.u32 %s15218_s2, 4 }
 0xe8e   : > { %v10077_v27 = vadd.f32 %v18212_v17, %v9794_v11  ;;  %10412 = vmatmul.mubr.bf16.gmra.mxu0 %v10223_v13  ;;  %v10172_v60 = vmul.f32 %v14036_v62, %v10076_v59  ;;  %v9798_v32 = vadd.f32 %v9797_v20, %v19558_v50  ;;  %s18539_s19 = scalar_lea.vmem [#allocation5], %s10990_s25  ;;  %s10996_s25 = sshll.u32 %s19604_s18, 3 }
 0xe8f   : > { %v9799_v6 = vpop.f32.mrf.mxu1  ;;  %s1992_s21 = scalar_lea.vmem %s19593_s16, %s10996_s25 }
 0xe90   : > { %v10173_v23 = vmul.f32 %v14037_v16, %v10077_v27  ;;  %v9800_v43 = vadd.f32 %v9799_v6, %v19557_v9  ;;  %v10226_v24 = vpack.c.bf16 %v10172_v60, %v10169_v31  ;;  %v10079_v4 = vadd.f32 %v18201_v15, %v9798_v32 }
 0xe91   : > { %v9801_v35 = vpop.f32.mrf.mxu1 }
 0xe92   : > { %v9802_v37 = vadd.f32 %v9801_v35, %v19559_v25  ;;  %v10227_v19 = vpack.c.bf16 %v10173_v23, %v10170_v8  ;;  %v10080_v55 = vadd.f32 %v18212_v17, %v9800_v43  ;;  %v10175_v7 = vmul.f32 %v14042_v39, %v10079_v4 }
 0xe93   : > { %v9803_v54 = vpop.f32.mrf.mxu1 }
 0xe94   : > { %v10082_v61 = vadd.f32 %v18201_v15, %v9802_v37  ;;  %v9804_v36 = vadd.f32 %v9803_v54, %v19560_v0  ;;  %10419 = vmatprep.mubr.bf16.mxu0 %v10227_v19  ;;  %v10176_v38 = vmul.f32 %v14039_v18, %v10080_v55 }
 0xe95   : > { %v9807_v40 = vpop.f32.mrf.mxu1 }
 0xe96   : > { %v10083_v28 = vadd.f32 %v18212_v17, %v9804_v36  ;;  %10420 = vmatmul.mubr.bf16.gmra.mxu0 %v10226_v24  ;;  %v10178_v44 = vmul.f32 %v14040_v53, %v10082_v61  ;;  %v9808_v10 = vadd.f32 %v9807_v40, %v19562_v34 }
 0xe97   : > { %v9809_v2 = vpop.f32.mrf.mxu1 }
 0xe98   : > { %v10179_v5 = vmul.f32 %v14041_v42, %v10083_v28  ;;  %v9810_v22 = vadd.f32 %v9809_v2, %v19561_v45  ;;  %v10229_v48 = vpack.c.bf16 %v10178_v44, %v10175_v7  ;;  %v10085_v52 = vadd.f32 %v18201_v15, %v9808_v10 }
 0xe99   : > { %v9811_v26 = vpop.f32.mrf.mxu1 }
 0xe9a   : > { %v9812_v56 = vadd.f32 %v9811_v26, %v19563_v21  ;;  %v10230_v12 = vpack.c.bf16 %v10179_v5, %v10176_v38  ;;  %v10086_v3 = vadd.f32 %v18212_v17, %v9810_v22  ;;  %v10181_v11 = vmul.f32 %v14046_v1, %v10085_v52 }
 0xe9b   : > { %v9813_v57 = vpop.f32.mrf.mxu1 }
 0xe9c   : > { %v10088_v30 = vadd.f32 %v18201_v15, %v9812_v56  ;;  %v9814_v49 = vadd.f32 %v9813_v57, %v19564_v14  ;;  %10427 = vmatprep.mubr.bf16.mxu0 %v10230_v12  ;;  %v10182_v47 = vmul.f32 %v14043_v29, %v10086_v3 }
 0xe9e   : > { %v10089_v51 = vadd.f32 %v18212_v17, %v9814_v49  ;;  %10428 = vmatmul.mubr.bf16.gmra.mxu0 %v10229_v48  ;;  %v10184_v13 = vmul.f32 %v14044_v63, %v10088_v30  ;;  %v13768_v49 = vld [vmem:[%s18539_s19 + $0x4] ss:$8 sps:$4 sm:$0xff]  }
 0xe9f   : > { %10665 = vmatprep.mubr.bf16.mxu1 %v13768_v49 }
 0xea0   : > { %v10185_v59 = vmul.f32 %v14045_v58, %v10089_v51  ;;  %v10232_v33 = vpack.c.bf16 %v10184_v13, %v10181_v11 }
 0xea2   : > { %v10233_v20 = vpack.c.bf16 %v10185_v59, %v10182_v47 }
 0xea4   : > { %10435 = vmatprep.mubr.bf16.mxu0 %v10233_v20 }
 0xea6   : > { %10436 = vmatmul.mubr.bf16.gmra.mxu0 %v10232_v33 }
 0xeed   : > { %v13365_v27 = vpop.f32.mrf.mxu1 }
 0xeee   : > { %v13003_v6 = vpop.f32.mrf.mxu0 }
 0xeef   : > { %v10478_v46 = vpop.f32.mrf.mxu1 }
 0xef0   : > { %v13004_v8 = vpop.f32.mrf.mxu0 }
 0xef1   : > { %v13005_v15 = vadd.f32 %v13004_v8, %v13003_v6  ;;  %v13366_v17 = vpop.f32.mrf.mxu1 }
 0xef2   : > { %v13006_v62 = vpop.f32.mrf.mxu0 }
 0xef3   : > { %v18514_v60 = vadd.f32 %v13005_v15, %v10478_v46  ;;  %v10481_v9 = vpop.f32.mrf.mxu1 }
 0xef4   : > { %v13007_v16 = vpop.f32.mrf.mxu0 }
 0xef5   : > { %19565 = vst [vmem:[#allocation76_spill] sm:$0xff] %v18514_v60  ;;  %v13008_v23 = vadd.f32 %v13007_v16, %v13006_v62  ;;  %v13369_v32 = vpop.f32.mrf.mxu1 }
 0xef6   : > { %v13009_v43 = vpop.f32.mrf.mxu0 }
 0xef7   : > { %v18516_v35 = vadd.f32 %v13008_v23, %v10481_v9  ;;  %v10494_v24 = vpop.f32.mrf.mxu1 }
 0xef8   : > { %v13010_v41 = vpop.f32.mrf.mxu0 }
 0xef9   : > { %19566 = vst [vmem:[#allocation85_spill] sm:$0xff] %v18516_v35  ;;  %v13011_v50 = vadd.f32 %v13010_v41, %v13009_v43  ;;  %v13370_v4 = vpop.f32.mrf.mxu1 }
 0xefa   : > { %v13012_v25 = vpop.f32.mrf.mxu0 }
 0xefb   : > { %v18520_v37 = vadd.f32 %v13365_v27, %v13011_v50  ;;  %v10497_v53 = vpop.f32.mrf.mxu1 }
 0xefc   : > { %v13013_v19 = vpop.f32.mrf.mxu0 }
 0xefd   : > { %19567 = vst [vmem:[#allocation165_spill] sm:$0xff] %v18520_v37  ;;  %v13014_v54 = vadd.f32 %v13013_v19, %v13012_v25 }
 0xefe   : > { %v13015_v55 = vpop.f32.mrf.mxu0 }
 0xeff   : > { %v18522_v61 = vadd.f32 %v13366_v17, %v13014_v54  ;;  %v13373_v26 = vpop.f32.mrf.mxu1 }
 0xf00   : > { %v13016_v0 = vpop.f32.mrf.mxu0 }
 0xf01   : > { %19568 = vst [vmem:[#allocation61_spill] sm:$0xff] %v18522_v61  ;;  %v13017_v40 = vadd.f32 %v13016_v0, %v13015_v55  ;;  %v10510_v21 = vpop.f32.mrf.mxu1 }
 0xf02   : > { %v13018_v28 = vpop.f32.mrf.mxu0 }
 0xf03   : > { %v18526_v2 = vadd.f32 %v13017_v40, %v10494_v24  ;;  %v13374_v30 = vpop.f32.mrf.mxu1 }
 0xf04   : > { %v13019_v18 = vpop.f32.mrf.mxu0 }
 0xf05   : > { %v13020_v38 = vadd.f32 %v13019_v18, %v13018_v28  ;;  %v10513_v29 = vpop.f32.mrf.mxu1 }
 0xf06   : > { %v13021_v44 = vpop.f32.mrf.mxu0 }
 0xf07   : > { %v18528_v42 = vadd.f32 %v13020_v38, %v10497_v53  ;;  %v13377_v11 = vpop.f32.mrf.mxu1 }
 0xf08   : > { %v13022_v5 = vpop.f32.mrf.mxu0 }
 0xf09   : > { %v13023_v22 = vadd.f32 %v13022_v5, %v13021_v44  ;;  %v10526_v6 = vpop.f32.mrf.mxu1 }
 0xf0a   : > { %v13024_v39 = vpop.f32.mrf.mxu0 }
 0xf0b   : > { %v18532_v7 = vadd.f32 %v13369_v32, %v13023_v22  ;;  %v13378_v23 = vpop.f32.mrf.mxu1 }
 0xf0c   : > { %v13025_v34 = vpop.f32.mrf.mxu0 }
 0xf0d   : > { %v13026_v10 = vadd.f32 %v13025_v34, %v13024_v39  ;;  %v10529_v50 = vpop.f32.mrf.mxu1 }
 0xf0e   : > { %v13027_v56 = vpop.f32.mrf.mxu0 }
 0xf0f   : > { %v18534_v12 = vadd.f32 %v13370_v4, %v13026_v10  ;;  %v13381_v0 = vpop.f32.mrf.mxu1 }
 0xf10   : > { %v13028_v57 = vpop.f32.mrf.mxu0 }
 0xf11   : > { %v13029_v3 = vadd.f32 %v13028_v57, %v13027_v56  ;;  %v10542_v18 = vpop.f32.mrf.mxu1 }
 0xf12   : > { %v13030_v14 = vpop.f32.mrf.mxu0 }
 0xf13   : > { %v18542_v63 = vadd.f32 %v13029_v3, %v10510_v21  ;;  %v13382_v39 = vpop.f32.mrf.mxu1 }
 0xf14   : > { %v13031_v52 = vpop.f32.mrf.mxu0 }
 0xf15   : > { %v13032_v51 = vadd.f32 %v13031_v52, %v13030_v14  ;;  %v10545_v56 = vpop.f32.mrf.mxu1 }
 0xf16   : > { %v13033_v47 = vpop.f32.mrf.mxu0 }
 0xf17   : > { %v18544_v13 = vadd.f32 %v13032_v51, %v10513_v29 }
 0xf18   : > { %v13034_v58 = vpop.f32.mrf.mxu0 }
 0xf19   : > { %v13035_v1 = vadd.f32 %v13034_v58, %v13033_v47 }
 0xf1a   : > { %v13036_v20 = vpop.f32.mrf.mxu0 }
 0xf1b   : > { %v18548_v8 = vadd.f32 %v13373_v26, %v13035_v1 }
 0xf1c   : > { %v13037_v33 = vpop.f32.mrf.mxu0 }
 0xf1d   : > { %v13038_v27 = vadd.f32 %v13037_v33, %v13036_v20 }
 0xf1e   : > { %v13039_v46 = vpop.f32.mrf.mxu0 }
 0xf1f   : > { %v18550_v15 = vadd.f32 %v13374_v30, %v13038_v27  ;;  %v18582_v27 = vpop.f32.mrf.mxu1 }
 0xf20   : > { %v13040_v62 = vpop.f32.mrf.mxu0 }
 0xf21   : > { %v13041_v16 = vadd.f32 %v13040_v62, %v13039_v46  ;;  %v18584_v62 = vpop.f32.mrf.mxu1 }
 0xf22   : > { %v13042_v9 = vpop.f32.mrf.mxu0 }
 0xf23   : > { %v18554_v25 = vadd.f32 %v13041_v16, %v10526_v6 }
 0xf24   : > { %v13043_v43 = vpop.f32.mrf.mxu0 }
 0xf25   : > { %v13044_v41 = vadd.f32 %v13043_v43, %v13042_v9  ;;  %v13386_v9 = vpop.f32.mrf.mxu1 }
 0xf26   : > { %v13045_v32 = vpop.f32.mrf.mxu0 }
 0xf27   : > { %v18556_v19 = vadd.f32 %v13044_v41, %v10529_v50  ;;  %v10561_v50 = vpop.f32.mrf.mxu1 }
 0xf28   : > { %v13046_v54 = vpop.f32.mrf.mxu0 }
 0xf29   : > { %v13047_v55 = vadd.f32 %v13046_v54, %v13045_v32 }
 0xf2a   : > { %v13048_v40 = vpop.f32.mrf.mxu0 }
 0xf2b   : > { %v18560_v53 = vadd.f32 %v13377_v11, %v13047_v55  ;;  %v13389_v55 = vpop.f32.mrf.mxu1 }
 0xf2c   : > { %v13049_v4 = vpop.f32.mrf.mxu0 }
 0xf2d   : > { %v13050_v28 = vadd.f32 %v13049_v4, %v13048_v40  ;;  %v10574_v4 = vpop.f32.mrf.mxu1 }
 0xf2e   : > { %v13051_v38 = vpop.f32.mrf.mxu0 }
 0xf2f   : > { %v18562_v44 = vadd.f32 %v13378_v23, %v13050_v28 }
 0xf30   : > { %v13052_v5 = vpop.f32.mrf.mxu0 }
 0xf31   : > { %v13053_v26 = vadd.f32 %v13052_v5, %v13051_v38  ;;  %v13390_v38 = vpop.f32.mrf.mxu1 }
 0xf32   : > { %v13054_v34 = vpop.f32.mrf.mxu0 }
 0xf33   : > { %v18566_v3 = vadd.f32 %v13053_v26, %v10542_v18 }
 0xf34   : > { %v13055_v10 = vpop.f32.mrf.mxu0 }
 0xf35   : > { %v13056_v21 = vadd.f32 %v13055_v10, %v13054_v34  ;;  %19569 = vst [vmem:[#allocation84_spill] sm:$0xff] %v18566_v3 }
 0xf36   : > { %v13057_v57 = vpop.f32.mrf.mxu0 }
 0xf37   : > { %v18568_v30 = vadd.f32 %v13056_v21, %v10545_v56 }
 0xf38   : > { %v13058_v14 = vpop.f32.mrf.mxu0 }
 0xf39   : > { %19570 = vst [vmem:[#allocation23_spill] sm:$0xff] %v18568_v30  ;;  %v13059_v49 = vadd.f32 %v13058_v14, %v13057_v57 }
 0xf3a   : > { %v13060_v51 = vpop.f32.mrf.mxu0 }
 0xf3b   : > { %v18574_v1 = vadd.f32 %v13381_v0, %v13059_v49 }
 0xf3c   : > { %v13061_v29 = vpop.f32.mrf.mxu0 }
 0xf3d   : > { %v13062_v47 = vadd.f32 %v13061_v29, %v13060_v51  ;;  %19571 = vst [vmem:[#allocation60_spill] sm:$0xff] %v18574_v1  ;;  %v19572_v1 = vpack.c.bf16 %v18562_v44, %v18560_v53 }
 0xf3e   : > { %v18572_v58 = vpop.f32.mrf.mxu0 }
 0xf3f   : > { %v18576_v11 = vadd.f32 %v13382_v39, %v13062_v47  ;;  %v10577_v39 = vpop.f32.mrf.mxu1 }
 0xf40   : > { %v18578_v20 = vpop.f32.mrf.mxu0 }
 0xf41   : > { %v13393_v21 = vpop.f32.mrf.mxu1 }
 0xf42   : > { %v13066_v6 = vpop.f32.mrf.mxu0 }
 0xf43   : > { %v10590_v14 = vpop.f32.mrf.mxu1 }
 0xf44   : > { %v13067_v46 = vpop.f32.mrf.mxu0 }
 0xf45   : > { %v13394_v29 = vpop.f32.mrf.mxu1 }
 0xf46   : > { %v13069_v16 = vpop.f32.mrf.mxu0 }
 0xf47   : > { %v10593_v48 = vpop.f32.mrf.mxu1 }
 0xf48   : > { %v13070_v23 = vpop.f32.mrf.mxu0 }
 0xf4a   : > { %v13072_v43 = vpop.f32.mrf.mxu0 }
 0xf4c   : > { %v13073_v41 = vpop.f32.mrf.mxu0 }
 0xf4e   : > { %v13075_v32 = vpop.f32.mrf.mxu0 }
 0xf50   : > { %v13076_v54 = vpop.f32.mrf.mxu0 }
 0xf52   : > { %v13078_v0 = vpop.f32.mrf.mxu0 }
 0xf54   : > { %v13079_v40 = vpop.f32.mrf.mxu0 }
 0xf55   : > { %v13080_v30 = vadd.f32 %v13079_v40, %v13078_v0 }
 0xf56   : > { %v13081_v28 = vpop.f32.mrf.mxu0 }
 0xf58   : > { %v13082_v18 = vpop.f32.mrf.mxu0 }
 0xf59   : > { %v13083_v60 = vadd.f32 %v13082_v18, %v13081_v28 }
 0xf5a   : > { %v13084_v5 = vpop.f32.mrf.mxu0 }
 0xf5c   : > { %v13085_v26 = vpop.f32.mrf.mxu0 }
 0xf5d   : > { %v13086_v59 = vadd.f32 %v13085_v26, %v13084_v5  ;;  %v11638_v26 = vld [vmem:[%s19592_s27] ss:$0 sm:$0xff] }
 0xf5e   : > { %v13087_v34 = vpop.f32.mrf.mxu0 }
 0xf5f   : > { %v10586_v37 = vadd.f32 %v13390_v38, %v13086_v59  ;;  %v13068_v59 = vadd.f32 %v13067_v46, %v13066_v6 }
 0xf60   : > { %v13088_v10 = vpop.f32.mrf.mxu0 }
 0xf61   : > { %v13089_v33 = vadd.f32 %v13088_v10, %v13087_v34  ;;  %v10578_v34 = vadd.f32 %v13080_v30, %v10577_v39  ;;  %v19580_v30 = vld [vmem:[#allocation61_spill] sm:$0xff] }
 0xf62   : > { %v13090_v56 = vpop.f32.mrf.mxu0 }
 0xf63   : > { %v10591_v35 = vadd.f32 %v13089_v33, %v10590_v14 }
 0xf64   : > { %v13091_v57 = vpop.f32.mrf.mxu0 }
 0xf65   : > { %v13092_v31 = vadd.f32 %v13091_v57, %v13090_v56  ;;  %v13077_v56 = vadd.f32 %v13076_v54, %v13075_v32  ;;  %v10583_v57 = vadd.f32 %v13389_v55, %v13083_v60  ;;  %v13065_v60 = vadd.f32 %v18578_v20, %v18572_v58  ;;  %v19584_v58 = vld [vmem:[#allocation84_spill] sm:$0xff] }
 0xf66   : > { %v13093_v49 = vpop.f32.mrf.mxu0  ;;  %v13766_v20 = vld [vmem:[%s18539_s19] ss:$8 sps:$4 sm:$0xff]  }
 0xf67   : > { %v10594_v17 = vadd.f32 %v13092_v31, %v10593_v48  ;;  %v10620_v5 = vpack.c.bf16 %v10586_v37, %v10583_v57  ;;  %v19573_v31 = vpack.c.bf16 %v18556_v19, %v18554_v25  ;;  %v10575_v48 = vadd.f32 %v13077_v56, %v10574_v4 }
 0xf68   : > { %v13094_v51 = vpop.f32.mrf.mxu0  ;;  %v19575_v19 = vpack.c.bf16 %v18544_v13, %v18542_v63  ;;  %v10559_v53 = vadd.f32 %v13065_v60, %v18584_v62  ;;  %v19581_v63 = vld [vmem:[#allocation165_spill] sm:$0xff] }
 0xf69   : > { %v13095_v52 = vadd.f32 %v13094_v51, %v13093_v49  ;;  %v10621_v61 = vpack.c.bf16 %v10594_v17, %v10591_v35  ;;  %v10619_v35 = vpack.c.bf16 %v10578_v34, %v10575_v48  ;;  %v19574_v17 = vpack.c.bf16 %v18550_v15, %v18548_v8 }
 0xf6a   : > { %v13096_v47 = vpop.f32.mrf.mxu0  ;;  %v19576_v8 = vpack.c.bf16 %v18534_v12, %v18532_v7  ;;  %v19577_v15 = vpack.c.bf16 %v18528_v42, %v18526_v2  ;;  %v19582_v13 = vpack.c.bf16 %v19580_v30, %v19581_v63  ;;  %v19586_v7 = vld [vmem:[#allocation85_spill] sm:$0xff]  ;;  %v19587_v12 = vld [vmem:[#allocation76_spill] sm:$0xff]  ;;  %v13769_v2 = vld [vmem:[%s18676_s14 + $0x8] sm:$0xff]   ;;  %v14091_v42 = vmov 0.0  }
 0xf6b   : > { %v10599_v24 = vadd.f32 %v13393_v21, %v13095_v52  ;;  %v19583_v52 = vld [vmem:[#allocation23_spill] sm:$0xff]  ;;  %v19588_v33 = vpack.c.bf16 %v19586_v7, %v19587_v12 }
 0xf6c   : > { %v13097_v36 = vpop.f32.mrf.mxu0 }
 0xf6d   : > { %v13098_v45 = vadd.f32 %v13097_v36, %v13096_v47  ;;  %v13074_v36 = vadd.f32 %v13073_v41, %v13072_v43  ;;  %v13771_v43 = vld [vmem:[%s19589_s22 + $0x8] sm:$0xff]   ;;  %v13772_v41 = vld [vmem:[%s19589_s22] sm:$0xff]  }
 0xf6f   : > { %v10602_v22 = vadd.f32 %v13394_v29, %v13098_v45  ;;  %v13071_v45 = vadd.f32 %v13070_v23, %v13069_v16 }
 0xf71   : > { %v10622_v3 = vpack.c.bf16 %v10602_v22, %v10599_v24  ;;  %v10570_v24 = vadd.f32 %v13386_v9, %v13074_v36  ;;  %v10567_v37 = vadd.f32 %v18582_v27, %v13071_v45  ;;  %v19578_v22 = vld [vmem:[#allocation60_spill] sm:$0xff] }
 0xf73   : > { %13117 = vmatprep.subr.bf16.mxu1 %v10622_v3  ;;  %v10618_v25 = vpack.c.bf16 %v10570_v24, %v10567_v37  ;;  %v19579_v3 = vpack.c.bf16 %v18576_v11, %v19578_v22  ;;  %v13770_v11 = vld [vmem:[%s18676_s14] sm:$0xff]  }
 0xf74   : > { %13118 = vmatpush3.bf16.msra.mxu1 %v19572_v1  ;;  %v19585_v1 = vpack.c.bf16 %v19583_v52, %v19584_v58 }
 0xf75   : > { %13119 = vmatprep.subr.bf16.mxu1 %v10621_v61  ;;  %v10562_v61 = vadd.f32 %v13068_v59, %v10561_v50  ;;  %v11634_v50 = vld [vmem:[%s19590_s17] ss:$0 sm:$0xff] }
 0xf77   : > { %v10617_v44 = vpack.c.bf16 %v10562_v61, %v10559_v53 }
 0xf78   : > { %13120 = vmatpush3.bf16.msra.mxu1 %v19573_v31 }
 0xf79   : > { %13121 = vmatprep.subr.bf16.mxu1 %v10620_v5 }
 0xf7c   : > { %13122 = vmatpush3.bf16.msra.mxu1 %v19574_v17 }
 0xf7d   : > { %13123 = vmatprep.subr.bf16.mxu1 %v10619_v35 }
 0xf80   : > { %13124 = vmatpush3.bf16.msra.mxu1 %v19575_v19 }
 0xf81   : > { %13125 = vmatprep.subr.bf16.mxu1 %v10618_v25 }
 0xf84   : > { %13126 = vmatpush3.bf16.msra.mxu1 %v19576_v8 }
 0xf85   : > { %13127 = vmatprep.subr.bf16.mxu1 %v10617_v44 }
 0xf88   : > { %13128 = vmatpush3.bf16.msra.mxu1 %v19577_v15 }
 0xf89   : > { %13129 = vmatprep.subr.bf16.mxu1 %v19579_v3 }
 0xf8c   : > { %13130 = vmatpush3.bf16.msra.mxu1 %v19582_v13 }
 0xf8d   : > { %13131 = vmatprep.subr.bf16.mxu1 %v19585_v1 }
 0xf90   : > { %13132 = vmatpush3.bf16.msra.mxu1 %v19588_v33 }
 0xf91   : > { %13395 = vmatprep.subr.bf16.mxu1 %v14091_v42 }
 0xf93   : > { %10666 = vmatmul.mubr.bf16.vlgmr.msra.gmra.mxu1 %v13766_v20 }
 0xf94   : > { %13396 = vmatpush3.bf16.msra.mxu1 %v13769_v2  ;;  %13399 = vmatprep.mubr.msk.bf16.mxu1 %vm14092_vm3, %v14091_v42 }
 0xf95   : > { %13397 = vmatprep.subr.bf16.mxu1 %v14091_v42 }
 0xf98   : > { %13398 = vmatpush3.bf16.msra.mxu1 %v13770_v11 }
 0xf99   : > { %13403 = vmatprep.subr.bf16.mxu1 %v14091_v42 }
0x1053   : > { %v13133_v27 = vpop.f32.mrf.mxu1 }
0x1055   : > { %v13134_v6 = vpop.f32.mrf.mxu1 }
0x1056   : > { %v13135_v16 = vadd.f32 %v13134_v6, %v13133_v27 }
0x1057   : > { %v13136_v46 = vpop.f32.mrf.mxu1 }
0x1059   : > { %v13137_v62 = vpop.f32.mrf.mxu1 }
0x105a   : > { %v13138_v23 = vadd.f32 %v13137_v62, %v13136_v46 }
0x105c   : > { %v10674_v9 = vpack.c.bf16 %v13138_v23, %v13135_v16 }
0x105e   : > { %13400 = vmatmul.mubr.msk.bf16.vlgmr.msra.gmra.mxu1 %vm2337_vm2, %v10674_v9 }
0x105f   : > { %13407 = vmatprep.mubr.msk.bf16.mxu1 %vm14092_vm3, %v14091_v42  ;;  %13404 = vmatpush3.bf16.msra.mxu1 %v13771_v43 }
0x1060   : > { %13405 = vmatprep.subr.bf16.mxu1 %v14091_v42 }
0x1063   : > { %13406 = vmatpush3.bf16.msra.mxu1 %v13772_v41 }
0x111e   : > { %v10735_v32 = vpop.f32.mrf.mxu1 }
0x111f   : > { %v10736_v55 = vadd.f32 %v11634_v50, %v10735_v32 }
0x1120   : > { %v13401_v54 = vpop.f32.mrf.mxu1 }
0x1121   : > { %v10742_v28 = vmax.f32 %v10736_v55, 0.0 }
0x1122   : > { %v10738_v0 = vpop.f32.mrf.mxu1 }
0x1123   : > { %v10739_v40 = vadd.f32 %v11634_v50, %v10738_v0 }
0x1124   : > { %v13402_v4 = vpop.f32.mrf.mxu1 }
0x1125   : > { %v10743_v18 = vmax.f32 %v10739_v40, 0.0 }
0x1127   : > { %v10744_v38 = vpack.c.bf16 %v10743_v18, %v10742_v28 }
0x1129   : > { %13408 = vmatmul.mubr.msk.bf16.vlgmr.msra.gmra.mxu1 %vm2337_vm2, %v10744_v38 }
0x11e9   : > { %v10805_v39 = vpop.f32.mrf.mxu1 }
0x11ea   : > { %v10806_v10 = vadd.f32 %v11638_v26, %v10805_v39 }
0x11eb   : > { %v13409_v21 = vpop.f32.mrf.mxu1 }
0x11ec   : > { %10813 = vst.msk [vmem:[%s1992_s21] sm:$0xff] %vm10812_vm4, %v10806_v10 }
0x11ed   : > { %v10808_v14 = vpop.f32.mrf.mxu1 }
0x11ee   : > { %v10809_v49 = vadd.f32 %v11638_v26, %v10808_v14 }
0x11ef   : > { %v13410_v51 = vpop.f32.mrf.mxu1 }
0x11f0   : > { %10814 = vst.msk [vmem:[%s1992_s21 + $0x8] sm:$0xff] %vm10812_vm4, %v10809_v49 }
0x11f1 PF: > { %s19594_s0 = sld [smem:[#allocation6_spill]]  ;;  %s19597_s27 = smov %s14073_s28 }
0x11f2   : > { %s19595_s15 = sld [smem:[#allocation8_spill]]  ;;  %s19599_s29 = smov %s14081_s30 }
0x11f3   : > { %s19596_s26 = sld [smem:[#allocation7_spill]] }
0x11f7   : > { %p25_p13 = scmp.ge.s32.totalorder %s19594_s0, 4  }
0x11f8   : > { %s19598_s28 = smov %s19595_s15 }
0x11f9   : > { %s19600_s30 = smov %s19596_s26  ;;  %27 = sbr.rel (!%p25_p13) target bundleno = 11 (0xb), region = 320 }

</bundles_post_ra>
